<compile_context>
chip_gen: v7x
topology: tpu7x:2x2x1
jax: 0.10.0
libtpu: 0.0.40
codegen_flags: <defaults>
</compile_context>

<pallas_src>
import functools

import jax
import jax.numpy as jnp
from jax import lax
from jax.experimental import pallas as pl
from jax.experimental.pallas import tpu as pltpu

_LANES = 128


def _basic_block_kernel(xpad_ref, w1_ref, s1_ref, b1_ref, w2_ref, s2_ref, b2_ref,
                        o_ref, slab_ref, mid_ref, *, H, W, C, BH):
    NB = H // BH

    # Zero only the 1-pixel halo of the conv2 input scratch (interior is fully
    # overwritten below).  Done every grid step so it is megacore-safe under
    # dimension_semantics=("parallel",).
    zrow = jnp.zeros((1, W + 2, C), mid_ref.dtype)
    zcol = jnp.zeros((H + 2, 1, C), mid_ref.dtype)
    mid_ref[0:1, :, :] = zrow
    mid_ref[H + 1:H + 2, :, :] = zrow
    mid_ref[:, 0:1, :] = zcol
    mid_ref[:, W + 1:W + 2, :] = zcol

    # ---- conv1 + bn1 + relu : im2col -> one (BH*W, 9C) x (9C, C) matmul ----
    for b in range(NB):
        r0 = b * BH
        for t in range(9):
            dy, dx = divmod(t, 3)
            patch = xpad_ref[0, r0 + dy:r0 + dy + BH, dx:dx + W, :]
            slab_ref[:, t * C:(t + 1) * C] = (
                patch.reshape(BH * W, C).astype(slab_ref.dtype))
        acc1 = jnp.dot(slab_ref[...], w1_ref[...],
                       preferred_element_type=jnp.float32)
        out1 = jnp.maximum(acc1 * s1_ref[...] + b1_ref[...], 0.0)
        mid_ref[1 + r0:1 + r0 + BH, 1:1 + W, :] = (
            out1.reshape(BH, W, C).astype(mid_ref.dtype))

    # ---- conv2 + bn2 + residual add + relu ----
    for b in range(NB):
        r0 = b * BH
        for t in range(9):
            dy, dx = divmod(t, 3)
            patch = mid_ref[r0 + dy:r0 + dy + BH, dx:dx + W, :]
            slab_ref[:, t * C:(t + 1) * C] = patch.reshape(BH * W, C)
        acc2 = jnp.dot(slab_ref[...], w2_ref[...],
                       preferred_element_type=jnp.float32)
        out2 = acc2 * s2_ref[...] + b2_ref[...]
        # residual comes straight from the (already resident) padded input.
        residual = xpad_ref[0, 1 + r0:1 + r0 + BH, 1:1 + W, :]
        residual = residual.reshape(BH * W, C).astype(jnp.float32)
        out = jnp.maximum(out2 + residual, 0.0)
        o_ref[:, r0:r0 + BH, :, :] = out.reshape(1, BH, W, C).astype(o_ref.dtype)


def _pick_band_rows(H, W, max_rows=256):
    """Largest divisor BH of H with BH*W <= max_rows (bounds vreg pressure)."""
    bh = max(1, min(H, max_rows // max(W, 1)))
    while H % bh != 0:
        bh -= 1
    return bh


def basic_block_pallas(x_nhwc, w1_hwio, s1, b1, w2_hwio, s2, b2):
    """x_nhwc: (N,H,W,Cin) f32.  w*_hwio: (3,3,Cin,planes) f32.  s*/b*: (planes,) or (1,planes)."""
    N, H, W, Cin = x_nhwc.shape
    planes = w1_hwio.shape[-1]
    assert Cin == planes, "no downsample path -> inplanes must equal planes"

    # Lane-dense channel count.
    Cp = ((max(Cin, planes) + _LANES - 1) // _LANES) * _LANES

    # Pad spatially by 1 (conv1 halo) and channels to Cp (lane-dense) with zeros.
    xpad = jnp.pad(x_nhwc, ((0, 0), (1, 1), (1, 1), (0, Cp - Cin)))

    def pad_w(w):
        w = jnp.pad(w, ((0, 0), (0, 0), (0, Cp - Cin), (0, Cp - planes)))
        # (3,3,Cp,Cp) -> (9*Cp, Cp): K index = (dy*3+dx)*Cp + cin, matches slab.
        return w.reshape(9 * Cp, Cp).astype(jnp.bfloat16)

    def pad_v(v):
        v = jnp.asarray(v, jnp.float32).reshape(-1)
        return jnp.pad(v, (0, Cp - planes)).reshape(1, Cp)

    w1p, w2p = pad_w(w1_hwio), pad_w(w2_hwio)
    s1p, b1p, s2p, b2p = pad_v(s1), pad_v(b1), pad_v(s2), pad_v(b2)

    BH = _pick_band_rows(H, W)
    kernel = functools.partial(_basic_block_kernel, H=H, W=W, C=Cp, BH=BH)

    out = pl.pallas_call(
        kernel,
        out_shape=jax.ShapeDtypeStruct((N, H, W, Cp), jnp.float32),
        grid_spec=pltpu.PrefetchScalarGridSpec(
            num_scalar_prefetch=0,
            grid=(N,),
            in_specs=[
                pl.BlockSpec((1, H + 2, W + 2, Cp), lambda n: (n, 0, 0, 0)),
                pl.BlockSpec((9 * Cp, Cp), lambda n: (0, 0)),
                pl.BlockSpec((1, Cp), lambda n: (0, 0)),
                pl.BlockSpec((1, Cp), lambda n: (0, 0)),
                pl.BlockSpec((9 * Cp, Cp), lambda n: (0, 0)),
                pl.BlockSpec((1, Cp), lambda n: (0, 0)),
                pl.BlockSpec((1, Cp), lambda n: (0, 0)),
            ],
            out_specs=pl.BlockSpec((1, H, W, Cp), lambda n: (n, 0, 0, 0)),
            scratch_shapes=[
                pltpu.VMEM((BH * W, 9 * Cp), jnp.bfloat16),   # im2col slab
                pltpu.VMEM((H + 2, W + 2, Cp), jnp.bfloat16),  # padded conv2 input
            ],
        ),
        compiler_params=pltpu.CompilerParams(
            dimension_semantics=("parallel",)),
    )(xpad, w1p, s1p, b1p, w2p, s2p, b2p)

    return out[..., :planes]


def basic_block_reference(x_nhwc, w1_hwio, s1, b1, w2_hwio, s2, b2):
    """Pure-JAX f32 reference (same math, lax conv)."""
    dn = ("NHWC", "HWIO", "NHWC")
    out = lax.conv_general_dilated(x_nhwc, w1_hwio, (1, 1), "SAME",
                                   dimension_numbers=dn)
    out = jnp.maximum(out * s1 + b1, 0.0)
    out = lax.conv_general_dilated(out, w2_hwio, (1, 1), "SAME",
                                   dimension_numbers=dn)
    out = out * s2 + b2
    return jnp.maximum(out + x_nhwc, 0.0)


def _fold_bn(gamma, beta, mean, var, eps=1e-5):
    scale = gamma / jnp.sqrt(var + eps)
    bias = beta - mean * scale
    return scale.reshape(1, -1), bias.reshape(1, -1)


if __name__ == "__main__":
    # Small shapes: batch=2, inplanes=planes=4, spatial=16, stride=1, no downsample.
    N, C, H, W = 2, 4, 16, 16
    planes = C

    key = jax.random.PRNGKey(0)
    ks = jax.random.split(key, 10)

    # Input (conceptually NCHW like PyTorch); kernel uses NHWC.
    x_nchw = jax.random.normal(ks[0], (N, C, H, W), jnp.float32)
    x_nhwc = jnp.transpose(x_nchw, (0, 2, 3, 1))

    # conv weights: PyTorch layout (Cout, Cin, 3, 3) -> HWIO.
    w1_torch = 0.1 * jax.random.normal(ks[1], (planes, C, 3, 3), jnp.float32)
    w2_torch = 0.1 * jax.random.normal(ks[2], (planes, planes, 3, 3), jnp.float32)
    w1_hwio = jnp.transpose(w1_torch, (2, 3, 1, 0))          # (3,3,Cin,Cout)
    w2_hwio = jnp.transpose(w2_torch, (2, 3, 1, 0))

    # BatchNorm parameters (deterministic, non-trivial), inference-mode fold.
    g1 = 1.0 + 0.1 * jax.random.normal(ks[3], (planes,), jnp.float32)
    be1 = 0.1 * jax.random.normal(ks[4], (planes,), jnp.float32)
    m1 = 0.1 * jax.random.normal(ks[5], (planes,), jnp.float32)
    v1 = 1.0 + 0.1 * jax.random.uniform(ks[6], (planes,), jnp.float32)
    g2 = 1.0 + 0.1 * jax.random.normal(ks[7], (planes,), jnp.float32)
    be2 = 0.1 * jax.random.normal(ks[8], (planes,), jnp.float32)
    m2 = 0.1 * jax.random.normal(ks[9], (planes,), jnp.float32)
    v2 = 1.0 + 0.1 * jax.random.uniform(key, (planes,), jnp.float32)

    s1, b1 = _fold_bn(g1, be1, m1, v1)
    s2, b2 = _fold_bn(g2, be2, m2, v2)

    out = basic_block_pallas(x_nhwc, w1_hwio, s1, b1, w2_hwio, s2, b2)
    out = jax.block_until_ready(out)

    ref = basic_block_reference(x_nhwc, w1_hwio, s1, b1, w2_hwio, s2, b2)
    ref = jax.block_until_ready(ref)

    assert out.shape == (N, H, W, planes)
    # bf16 MXU inputs with f32 accumulation -> loosened tolerance vs the f32 reference.
    if not jnp.allclose(out, ref, atol=3e-2, rtol=3e-2):
        raise AssertionError("Pallas output does not match JAX reference")

    print("KERNEL_OK")
</pallas_src>

<mosaic_0001>
module attributes {stable_mosaic.version = 11 : i64} {
  func.func @_basic_block_kernel(%arg0: i32, %arg1: memref<1x18x18x128xf32, #tpu.memory_space<vmem>>, %arg2: memref<1152x128xbf16, #tpu.memory_space<vmem>>, %arg3: memref<1x128xf32, #tpu.memory_space<vmem>>, %arg4: memref<1x128xf32, #tpu.memory_space<vmem>>, %arg5: memref<1152x128xbf16, #tpu.memory_space<vmem>>, %arg6: memref<1x128xf32, #tpu.memory_space<vmem>>, %arg7: memref<1x128xf32, #tpu.memory_space<vmem>>, %arg8: memref<1x16x16x128xf32, #tpu.memory_space<vmem>>, %arg9: memref<256x1152xbf16, #tpu.memory_space<vmem>>, %arg10: memref<18x18x128xbf16, #tpu.memory_space<vmem>>) attributes {dimension_semantics = [#tpu.dimension_semantics<parallel>], iteration_bounds = array<i64: 2>, scalar_prefetch = 0 : i64, scratch_operands = 2 : i64, tpu.core_type = #tpu.core_type<tc>, window_params = [{transform_indices = @transform_0, window_bounds = array<i64: 1, 18, 18, 128>}, {pipeline_mode = #tpu.pipeline_mode<synchronous>, transform_indices = @transform_1, window_bounds = array<i64: 1152, 128>}, {pipeline_mode = #tpu.pipeline_mode<synchronous>, transform_indices = @transform_2, window_bounds = array<i64: 1, 128>}, {pipeline_mode = #tpu.pipeline_mode<synchronous>, transform_indices = @transform_3, window_bounds = array<i64: 1, 128>}, {pipeline_mode = #tpu.pipeline_mode<synchronous>, transform_indices = @transform_4, window_bounds = array<i64: 1152, 128>}, {pipeline_mode = #tpu.pipeline_mode<synchronous>, transform_indices = @transform_5, window_bounds = array<i64: 1, 128>}, {pipeline_mode = #tpu.pipeline_mode<synchronous>, transform_indices = @transform_6, window_bounds = array<i64: 1, 128>}, {transform_indices = @transform_7, window_bounds = array<i64: 1, 16, 16, 128>}]} {
    %cst = arith.constant 0.000000e+00 : bf16
    %0 = vector.broadcast %cst : bf16 to vector<1x18x128xbf16>
    %cst_0 = arith.constant 0.000000e+00 : bf16
    %1 = vector.broadcast %cst_0 : bf16 to vector<18x1x128xbf16>
    %c0 = arith.constant 0 : index
    %c0_1 = arith.constant 0 : index
    %c0_2 = arith.constant 0 : index
    %2 = vector.load %arg10[%c0, %c0_1, %c0_2] : memref<18x18x128xbf16, #tpu.memory_space<vmem>>, vector<1x18x128xbf16>
    tpu.vector_store %arg10[%c0, %c0_1, %c0_2], %0 {strides = array<i32>} : memref<18x18x128xbf16, #tpu.memory_space<vmem>>, vector<1x18x128xbf16>,
    %c17 = arith.constant 17 : index
    %c0_3 = arith.constant 0 : index
    %c0_4 = arith.constant 0 : index
    %3 = vector.load %arg10[%c17, %c0_3, %c0_4] : memref<18x18x128xbf16, #tpu.memory_space<vmem>>, vector<1x18x128xbf16>
    tpu.vector_store %arg10[%c17, %c0_3, %c0_4], %0 {strides = array<i32>} : memref<18x18x128xbf16, #tpu.memory_space<vmem>>, vector<1x18x128xbf16>,
    %c0_5 = arith.constant 0 : index
    %c0_6 = arith.constant 0 : index
    %c0_7 = arith.constant 0 : index
    %4 = vector.load %arg10[%c0_5, %c0_6, %c0_7] : memref<18x18x128xbf16, #tpu.memory_space<vmem>>, vector<18x1x128xbf16>
    tpu.vector_store %arg10[%c0_5, %c0_6, %c0_7], %1 {strides = array<i32>} : memref<18x18x128xbf16, #tpu.memory_space<vmem>>, vector<18x1x128xbf16>,
    %c0_8 = arith.constant 0 : index
    %c17_9 = arith.constant 17 : index
    %c0_10 = arith.constant 0 : index
    %5 = vector.load %arg10[%c0_8, %c17_9, %c0_10] : memref<18x18x128xbf16, #tpu.memory_space<vmem>>, vector<18x1x128xbf16>
    tpu.vector_store %arg10[%c0_8, %c17_9, %c0_10], %1 {strides = array<i32>} : memref<18x18x128xbf16, #tpu.memory_space<vmem>>, vector<18x1x128xbf16>,
    %c0_11 = arith.constant 0 : index
    %c0_12 = arith.constant 0 : index
    %c0_13 = arith.constant 0 : index
    %c0_14 = arith.constant 0 : index
    %6 = vector.load %arg1[%c0_11, %c0_12, %c0_13, %c0_14] : memref<1x18x18x128xf32, #tpu.memory_space<vmem>>, vector<1x16x16x128xf32>
    %7 = vector.shape_cast %6 : vector<1x16x16x128xf32> to vector<16x16x128xf32>
    %8 = vector.shape_cast %7 : vector<16x16x128xf32> to vector<256x128xf32>
    %9 = arith.truncf %8 : vector<256x128xf32> to vector<256x128xbf16>
    %c0_15 = arith.constant 0 : index
    %c0_16 = arith.constant 0 : index
    %10 = vector.load %arg9[%c0_15, %c0_16] : memref<256x1152xbf16, #tpu.memory_space<vmem>>, vector<256x128xbf16>
    tpu.vector_store %arg9[%c0_15, %c0_16], %9 {strides = array<i32>} : memref<256x1152xbf16, #tpu.memory_space<vmem>>, vector<256x128xbf16>,
    %c0_17 = arith.constant 0 : index
    %c0_18 = arith.constant 0 : index
    %c1 = arith.constant 1 : index
    %c0_19 = arith.constant 0 : index
    %11 = vector.load %arg1[%c0_17, %c0_18, %c1, %c0_19] : memref<1x18x18x128xf32, #tpu.memory_space<vmem>>, vector<1x16x16x128xf32>
    %12 = vector.shape_cast %11 : vector<1x16x16x128xf32> to vector<16x16x128xf32>
    %13 = vector.shape_cast %12 : vector<16x16x128xf32> to vector<256x128xf32>
    %14 = arith.truncf %13 : vector<256x128xf32> to vector<256x128xbf16>
    %c0_20 = arith.constant 0 : index
    %c128 = arith.constant 128 : index
    %15 = vector.load %arg9[%c0_20, %c128] : memref<256x1152xbf16, #tpu.memory_space<vmem>>, vector<256x128xbf16>
    tpu.vector_store %arg9[%c0_20, %c128], %14 {strides = array<i32>} : memref<256x1152xbf16, #tpu.memory_space<vmem>>, vector<256x128xbf16>,
    %c0_21 = arith.constant 0 : index
    %c0_22 = arith.constant 0 : index
    %c2 = arith.constant 2 : index
    %c0_23 = arith.constant 0 : index
    %16 = vector.load %arg1[%c0_21, %c0_22, %c2, %c0_23] : memref<1x18x18x128xf32, #tpu.memory_space<vmem>>, vector<1x16x16x128xf32>
    %17 = vector.shape_cast %16 : vector<1x16x16x128xf32> to vector<16x16x128xf32>
    %18 = vector.shape_cast %17 : vector<16x16x128xf32> to vector<256x128xf32>
    %19 = arith.truncf %18 : vector<256x128xf32> to vector<256x128xbf16>
    %c0_24 = arith.constant 0 : index
    %c256 = arith.constant 256 : index
    %20 = vector.load %arg9[%c0_24, %c256] : memref<256x1152xbf16, #tpu.memory_space<vmem>>, vector<256x128xbf16>
    tpu.vector_store %arg9[%c0_24, %c256], %19 {strides = array<i32>} : memref<256x1152xbf16, #tpu.memory_space<vmem>>, vector<256x128xbf16>,
    %c0_25 = arith.constant 0 : index
    %c1_26 = arith.constant 1 : index
    %c0_27 = arith.constant 0 : index
    %c0_28 = arith.constant 0 : index
    %21 = vector.load %arg1[%c0_25, %c1_26, %c0_27, %c0_28] : memref<1x18x18x128xf32, #tpu.memory_space<vmem>>, vector<1x16x16x128xf32>
    %22 = vector.shape_cast %21 : vector<1x16x16x128xf32> to vector<16x16x128xf32>
    %23 = vector.shape_cast %22 : vector<16x16x128xf32> to vector<256x128xf32>
    %24 = arith.truncf %23 : vector<256x128xf32> to vector<256x128xbf16>
    %c0_29 = arith.constant 0 : index
    %c384 = arith.constant 384 : index
    %25 = vector.load %arg9[%c0_29, %c384] : memref<256x1152xbf16, #tpu.memory_space<vmem>>, vector<256x128xbf16>
    tpu.vector_store %arg9[%c0_29, %c384], %24 {strides = array<i32>} : memref<256x1152xbf16, #tpu.memory_space<vmem>>, vector<256x128xbf16>,
    %c0_30 = arith.constant 0 : index
    %c1_31 = arith.constant 1 : index
    %c1_32 = arith.constant 1 : index
    %c0_33 = arith.constant 0 : index
    %26 = vector.load %arg1[%c0_30, %c1_31, %c1_32, %c0_33] : memref<1x18x18x128xf32, #tpu.memory_space<vmem>>, vector<1x16x16x128xf32>
    %27 = vector.shape_cast %26 : vector<1x16x16x128xf32> to vector<16x16x128xf32>
    %28 = vector.shape_cast %27 : vector<16x16x128xf32> to vector<256x128xf32>
    %29 = arith.truncf %28 : vector<256x128xf32> to vector<256x128xbf16>
    %c0_34 = arith.constant 0 : index
    %c512 = arith.constant 512 : index
    %30 = vector.load %arg9[%c0_34, %c512] : memref<256x1152xbf16, #tpu.memory_space<vmem>>, vector<256x128xbf16>
    tpu.vector_store %arg9[%c0_34, %c512], %29 {strides = array<i32>} : memref<256x1152xbf16, #tpu.memory_space<vmem>>, vector<256x128xbf16>,
    %c0_35 = arith.constant 0 : index
    %c1_36 = arith.constant 1 : index
    %c2_37 = arith.constant 2 : index
    %c0_38 = arith.constant 0 : index
    %31 = vector.load %arg1[%c0_35, %c1_36, %c2_37, %c0_38] : memref<1x18x18x128xf32, #tpu.memory_space<vmem>>, vector<1x16x16x128xf32>
    %32 = vector.shape_cast %31 : vector<1x16x16x128xf32> to vector<16x16x128xf32>
    %33 = vector.shape_cast %32 : vector<16x16x128xf32> to vector<256x128xf32>
    %34 = arith.truncf %33 : vector<256x128xf32> to vector<256x128xbf16>
    %c0_39 = arith.constant 0 : index
    %c640 = arith.constant 640 : index
    %35 = vector.load %arg9[%c0_39, %c640] : memref<256x1152xbf16, #tpu.memory_space<vmem>>, vector<256x128xbf16>
    tpu.vector_store %arg9[%c0_39, %c640], %34 {strides = array<i32>} : memref<256x1152xbf16, #tpu.memory_space<vmem>>, vector<256x128xbf16>,
    %c0_40 = arith.constant 0 : index
    %c2_41 = arith.constant 2 : index
    %c0_42 = arith.constant 0 : index
    %c0_43 = arith.constant 0 : index
    %36 = vector.load %arg1[%c0_40, %c2_41, %c0_42, %c0_43] : memref<1x18x18x128xf32, #tpu.memory_space<vmem>>, vector<1x16x16x128xf32>
    %37 = vector.shape_cast %36 : vector<1x16x16x128xf32> to vector<16x16x128xf32>
    %38 = vector.shape_cast %37 : vector<16x16x128xf32> to vector<256x128xf32>
    %39 = arith.truncf %38 : vector<256x128xf32> to vector<256x128xbf16>
    %c0_44 = arith.constant 0 : index
    %c768 = arith.constant 768 : index
    %40 = vector.load %arg9[%c0_44, %c768] : memref<256x1152xbf16, #tpu.memory_space<vmem>>, vector<256x128xbf16>
    tpu.vector_store %arg9[%c0_44, %c768], %39 {strides = array<i32>} : memref<256x1152xbf16, #tpu.memory_space<vmem>>, vector<256x128xbf16>,
    %c0_45 = arith.constant 0 : index
    %c2_46 = arith.constant 2 : index
    %c1_47 = arith.constant 1 : index
    %c0_48 = arith.constant 0 : index
    %41 = vector.load %arg1[%c0_45, %c2_46, %c1_47, %c0_48] : memref<1x18x18x128xf32, #tpu.memory_space<vmem>>, vector<1x16x16x128xf32>
    %42 = vector.shape_cast %41 : vector<1x16x16x128xf32> to vector<16x16x128xf32>
    %43 = vector.shape_cast %42 : vector<16x16x128xf32> to vector<256x128xf32>
    %44 = arith.truncf %43 : vector<256x128xf32> to vector<256x128xbf16>
    %c0_49 = arith.constant 0 : index
    %c896 = arith.constant 896 : index
    %45 = vector.load %arg9[%c0_49, %c896] : memref<256x1152xbf16, #tpu.memory_space<vmem>>, vector<256x128xbf16>
    tpu.vector_store %arg9[%c0_49, %c896], %44 {strides = array<i32>} : memref<256x1152xbf16, #tpu.memory_space<vmem>>, vector<256x128xbf16>,
    %c0_50 = arith.constant 0 : index
    %c2_51 = arith.constant 2 : index
    %c2_52 = arith.constant 2 : index
    %c0_53 = arith.constant 0 : index
    %46 = vector.load %arg1[%c0_50, %c2_51, %c2_52, %c0_53] : memref<1x18x18x128xf32, #tpu.memory_space<vmem>>, vector<1x16x16x128xf32>
    %47 = vector.shape_cast %46 : vector<1x16x16x128xf32> to vector<16x16x128xf32>
    %48 = vector.shape_cast %47 : vector<16x16x128xf32> to vector<256x128xf32>
    %49 = arith.truncf %48 : vector<256x128xf32> to vector<256x128xbf16>
    %c0_54 = arith.constant 0 : index
    %c1024 = arith.constant 1024 : index
    %50 = vector.load %arg9[%c0_54, %c1024] : memref<256x1152xbf16, #tpu.memory_space<vmem>>, vector<256x128xbf16>
    tpu.vector_store %arg9[%c0_54, %c1024], %49 {strides = array<i32>} : memref<256x1152xbf16, #tpu.memory_space<vmem>>, vector<256x128xbf16>,
    %c0_55 = arith.constant 0 : index
    %c0_56 = arith.constant 0 : index
    %51 = vector.load %arg9[%c0_55, %c0_56] : memref<256x1152xbf16, #tpu.memory_space<vmem>>, vector<256x1152xbf16>
    %c0_57 = arith.constant 0 : index
    %c0_58 = arith.constant 0 : index
    %52 = vector.load %arg2[%c0_57, %c0_58] : memref<1152x128xbf16, #tpu.memory_space<vmem>>, vector<1152x128xbf16>
    %cst_59 = arith.constant dense<0.000000e+00> : vector<256x128xf32>
    %53 = tpu.matmul %51, %52, %cst_59 {dimension_numbers = #tpu.dot_dimension_numbers<[1], [0], [0], [1], [0, 0, 1, 1], [], []>} : vector<256x1152xbf16>, vector<1152x128xbf16>, vector<256x128xf32> -> vector<256x128xf32>
    %c0_60 = arith.constant 0 : index
    %c0_61 = arith.constant 0 : index
    %54 = vector.load %arg3[%c0_60, %c0_61] : memref<1x128xf32, #tpu.memory_space<vmem>>, vector<1x128xf32>
    %55 = vector.broadcast %54 : vector<1x128xf32> to vector<256x128xf32>
    %56 = arith.mulf %53, %55 : vector<256x128xf32>
    %c0_62 = arith.constant 0 : index
    %c0_63 = arith.constant 0 : index
    %57 = vector.load %arg4[%c0_62, %c0_63] : memref<1x128xf32, #tpu.memory_space<vmem>>, vector<1x128xf32>
    %58 = vector.broadcast %57 : vector<1x128xf32> to vector<256x128xf32>
    %59 = arith.addf %56, %58 : vector<256x128xf32>
    %cst_64 = arith.constant 0.000000e+00 : f32
    %60 = vector.broadcast %cst_64 : f32 to vector<256x128xf32>
    %61 = arith.maximumf %59, %60 : vector<256x128xf32>
    %62 = vector.shape_cast %61 : vector<256x128xf32> to vector<16x16x128xf32>
    %63 = arith.truncf %62 : vector<16x16x128xf32> to vector<16x16x128xbf16>
    %c1_65 = arith.constant 1 : index
    %c1_66 = arith.constant 1 : index
    %c0_67 = arith.constant 0 : index
    %64 = vector.load %arg10[%c1_65, %c1_66, %c0_67] : memref<18x18x128xbf16, #tpu.memory_space<vmem>>, vector<16x16x128xbf16>
    tpu.vector_store %arg10[%c1_65, %c1_66, %c0_67], %63 {strides = array<i32>} : memref<18x18x128xbf16, #tpu.memory_space<vmem>>, vector<16x16x128xbf16>,
    %c0_68 = arith.constant 0 : index
    %c0_69 = arith.constant 0 : index
    %c0_70 = arith.constant 0 : index
    %65 = vector.load %arg10[%c0_68, %c0_69, %c0_70] : memref<18x18x128xbf16, #tpu.memory_space<vmem>>, vector<16x16x128xbf16>
    %66 = vector.shape_cast %65 : vector<16x16x128xbf16> to vector<256x128xbf16>
    %c0_71 = arith.constant 0 : index
    %c0_72 = arith.constant 0 : index
    %67 = vector.load %arg9[%c0_71, %c0_72] : memref<256x1152xbf16, #tpu.memory_space<vmem>>, vector<256x128xbf16>
    tpu.vector_store %arg9[%c0_71, %c0_72], %66 {strides = array<i32>} : memref<256x1152xbf16, #tpu.memory_space<vmem>>, vector<256x128xbf16>,
    %c0_73 = arith.constant 0 : index
    %c1_74 = arith.constant 1 : index
    %c0_75 = arith.constant 0 : index
    %68 = vector.load %arg10[%c0_73, %c1_74, %c0_75] : memref<18x18x128xbf16, #tpu.memory_space<vmem>>, vector<16x16x128xbf16>
    %69 = vector.shape_cast %68 : vector<16x16x128xbf16> to vector<256x128xbf16>
    %c0_76 = arith.constant 0 : index
    %c128_77 = arith.constant 128 : index
    %70 = vector.load %arg9[%c0_76, %c128_77] : memref<256x1152xbf16, #tpu.memory_space<vmem>>, vector<256x128xbf16>
    tpu.vector_store %arg9[%c0_76, %c128_77], %69 {strides = array<i32>} : memref<256x1152xbf16, #tpu.memory_space<vmem>>, vector<256x128xbf16>,
    %c0_78 = arith.constant 0 : index
    %c2_79 = arith.constant 2 : index
    %c0_80 = arith.constant 0 : index
    %71 = vector.load %arg10[%c0_78, %c2_79, %c0_80] : memref<18x18x128xbf16, #tpu.memory_space<vmem>>, vector<16x16x128xbf16>
    %72 = vector.shape_cast %71 : vector<16x16x128xbf16> to vector<256x128xbf16>
    %c0_81 = arith.constant 0 : index
    %c256_82 = arith.constant 256 : index
    %73 = vector.load %arg9[%c0_81, %c256_82] : memref<256x1152xbf16, #tpu.memory_space<vmem>>, vector<256x128xbf16>
    tpu.vector_store %arg9[%c0_81, %c256_82], %72 {strides = array<i32>} : memref<256x1152xbf16, #tpu.memory_space<vmem>>, vector<256x128xbf16>,
    %c1_83 = arith.constant 1 : index
    %c0_84 = arith.constant 0 : index
    %c0_85 = arith.constant 0 : index
    %74 = vector.load %arg10[%c1_83, %c0_84, %c0_85] : memref<18x18x128xbf16, #tpu.memory_space<vmem>>, vector<16x16x128xbf16>
    %75 = vector.shape_cast %74 : vector<16x16x128xbf16> to vector<256x128xbf16>
    %c0_86 = arith.constant 0 : index
    %c384_87 = arith.constant 384 : index
    %76 = vector.load %arg9[%c0_86, %c384_87] : memref<256x1152xbf16, #tpu.memory_space<vmem>>, vector<256x128xbf16>
    tpu.vector_store %arg9[%c0_86, %c384_87], %75 {strides = array<i32>} : memref<256x1152xbf16, #tpu.memory_space<vmem>>, vector<256x128xbf16>,
    %c1_88 = arith.constant 1 : index
    %c1_89 = arith.constant 1 : index
    %c0_90 = arith.constant 0 : index
    %77 = vector.load %arg10[%c1_88, %c1_89, %c0_90] : memref<18x18x128xbf16, #tpu.memory_space<vmem>>, vector<16x16x128xbf16>
    %78 = vector.shape_cast %77 : vector<16x16x128xbf16> to vector<256x128xbf16>
    %c0_91 = arith.constant 0 : index
    %c512_92 = arith.constant 512 : index
    %79 = vector.load %arg9[%c0_91, %c512_92] : memref<256x1152xbf16, #tpu.memory_space<vmem>>, vector<256x128xbf16>
    tpu.vector_store %arg9[%c0_91, %c512_92], %78 {strides = array<i32>} : memref<256x1152xbf16, #tpu.memory_space<vmem>>, vector<256x128xbf16>,
    %c1_93 = arith.constant 1 : index
    %c2_94 = arith.constant 2 : index
    %c0_95 = arith.constant 0 : index
    %80 = vector.load %arg10[%c1_93, %c2_94, %c0_95] : memref<18x18x128xbf16, #tpu.memory_space<vmem>>, vector<16x16x128xbf16>
    %81 = vector.shape_cast %80 : vector<16x16x128xbf16> to vector<256x128xbf16>
    %c0_96 = arith.constant 0 : index
    %c640_97 = arith.constant 640 : index
    %82 = vector.load %arg9[%c0_96, %c640_97] : memref<256x1152xbf16, #tpu.memory_space<vmem>>, vector<256x128xbf16>
    tpu.vector_store %arg9[%c0_96, %c640_97], %81 {strides = array<i32>} : memref<256x1152xbf16, #tpu.memory_space<vmem>>, vector<256x128xbf16>,
    %c2_98 = arith.constant 2 : index
    %c0_99 = arith.constant 0 : index
    %c0_100 = arith.constant 0 : index
    %83 = vector.load %arg10[%c2_98, %c0_99, %c0_100] : memref<18x18x128xbf16, #tpu.memory_space<vmem>>, vector<16x16x128xbf16>
    %84 = vector.shape_cast %83 : vector<16x16x128xbf16> to vector<256x128xbf16>
    %c0_101 = arith.constant 0 : index
    %c768_102 = arith.constant 768 : index
    %85 = vector.load %arg9[%c0_101, %c768_102] : memref<256x1152xbf16, #tpu.memory_space<vmem>>, vector<256x128xbf16>
    tpu.vector_store %arg9[%c0_101, %c768_102], %84 {strides = array<i32>} : memref<256x1152xbf16, #tpu.memory_space<vmem>>, vector<256x128xbf16>,
    %c2_103 = arith.constant 2 : index
    %c1_104 = arith.constant 1 : index
    %c0_105 = arith.constant 0 : index
    %86 = vector.load %arg10[%c2_103, %c1_104, %c0_105] : memref<18x18x128xbf16, #tpu.memory_space<vmem>>, vector<16x16x128xbf16>
    %87 = vector.shape_cast %86 : vector<16x16x128xbf16> to vector<256x128xbf16>
    %c0_106 = arith.constant 0 : index
    %c896_107 = arith.constant 896 : index
    %88 = vector.load %arg9[%c0_106, %c896_107] : memref<256x1152xbf16, #tpu.memory_space<vmem>>, vector<256x128xbf16>
    tpu.vector_store %arg9[%c0_106, %c896_107], %87 {strides = array<i32>} : memref<256x1152xbf16, #tpu.memory_space<vmem>>, vector<256x128xbf16>,
    %c2_108 = arith.constant 2 : index
    %c2_109 = arith.constant 2 : index
    %c0_110 = arith.constant 0 : index
    %89 = vector.load %arg10[%c2_108, %c2_109, %c0_110] : memref<18x18x128xbf16, #tpu.memory_space<vmem>>, vector<16x16x128xbf16>
    %90 = vector.shape_cast %89 : vector<16x16x128xbf16> to vector<256x128xbf16>
    %c0_111 = arith.constant 0 : index
    %c1024_112 = arith.constant 1024 : index
    %91 = vector.load %arg9[%c0_111, %c1024_112] : memref<256x1152xbf16, #tpu.memory_space<vmem>>, vector<256x128xbf16>
    tpu.vector_store %arg9[%c0_111, %c1024_112], %90 {strides = array<i32>} : memref<256x1152xbf16, #tpu.memory_space<vmem>>, vector<256x128xbf16>,
    %c0_113 = arith.constant 0 : index
    %c0_114 = arith.constant 0 : index
    %92 = vector.load %arg9[%c0_113, %c0_114] : memref<256x1152xbf16, #tpu.memory_space<vmem>>, vector<256x1152xbf16>
    %c0_115 = arith.constant 0 : index
    %c0_116 = arith.constant 0 : index
    %93 = vector.load %arg5[%c0_115, %c0_116] : memref<1152x128xbf16, #tpu.memory_space<vmem>>, vector<1152x128xbf16>
    %cst_117 = arith.constant dense<0.000000e+00> : vector<256x128xf32>
    %94 = tpu.matmul %92, %93, %cst_117 {dimension_numbers = #tpu.dot_dimension_numbers<[1], [0], [0], [1], [0, 0, 1, 1], [], []>} : vector<256x1152xbf16>, vector<1152x128xbf16>, vector<256x128xf32> -> vector<256x128xf32>
    %c0_118 = arith.constant 0 : index
    %c0_119 = arith.constant 0 : index
    %95 = vector.load %arg6[%c0_118, %c0_119] : memref<1x128xf32, #tpu.memory_space<vmem>>, vector<1x128xf32>
    %96 = vector.broadcast %95 : vector<1x128xf32> to vector<256x128xf32>
    %97 = arith.mulf %94, %96 : vector<256x128xf32>
    %c0_120 = arith.constant 0 : index
    %c0_121 = arith.constant 0 : index
    %98 = vector.load %arg7[%c0_120, %c0_121] : memref<1x128xf32, #tpu.memory_space<vmem>>, vector<1x128xf32>
    %99 = vector.broadcast %98 : vector<1x128xf32> to vector<256x128xf32>
    %100 = arith.addf %97, %99 : vector<256x128xf32>
    %c0_122 = arith.constant 0 : index
    %c1_123 = arith.constant 1 : index
    %c1_124 = arith.constant 1 : index
    %c0_125 = arith.constant 0 : index
    %101 = vector.load %arg1[%c0_122, %c1_123, %c1_124, %c0_125] : memref<1x18x18x128xf32, #tpu.memory_space<vmem>>, vector<1x16x16x128xf32>
    %102 = vector.shape_cast %101 : vector<1x16x16x128xf32> to vector<16x16x128xf32>
    %103 = vector.shape_cast %102 : vector<16x16x128xf32> to vector<256x128xf32>
    %104 = arith.addf %100, %103 : vector<256x128xf32>
    %cst_126 = arith.constant 0.000000e+00 : f32
    %105 = vector.broadcast %cst_126 : f32 to vector<256x128xf32>
    %106 = arith.maximumf %104, %105 : vector<256x128xf32>
    %107 = vector.shape_cast %106 : vector<256x128xf32> to vector<1x16x16x128xf32>
    %c0_127 = arith.constant 0 : index
    %c0_128 = arith.constant 0 : index
    %c0_129 = arith.constant 0 : index
    %c0_130 = arith.constant 0 : index
    %108 = vector.load %arg8[%c0_127, %c0_128, %c0_129, %c0_130] : memref<1x16x16x128xf32, #tpu.memory_space<vmem>>, vector<1x16x16x128xf32>
    tpu.vector_store %arg8[%c0_127, %c0_128, %c0_129, %c0_130], %107 {strides = array<i32>} : memref<1x16x16x128xf32, #tpu.memory_space<vmem>>, vector<1x16x16x128xf32>,
    return
  }
  func.func @transform_0(%arg0: i32) -> (i32, i32, i32, i32) {
    %c0_i32 = arith.constant 0 : i32
    %c0_i32_0 = arith.constant 0 : i32
    %c0_i32_1 = arith.constant 0 : i32
    %c0_i32_2 = arith.constant 0 : i32
    return %arg0, %c0_i32, %c0_i32_0, %c0_i32_1 : i32, i32, i32, i32
  }
  func.func @transform_1(%arg0: i32) -> (i32, i32) {
    %c0_i32 = arith.constant 0 : i32
    %c0_i32_0 = arith.constant 0 : i32
    %c0_i32_1 = arith.constant 0 : i32
    return %c0_i32, %c0_i32_0 : i32, i32
  }
  func.func @transform_2(%arg0: i32) -> (i32, i32) {
    %c0_i32 = arith.constant 0 : i32
    %c0_i32_0 = arith.constant 0 : i32
    %c0_i32_1 = arith.constant 0 : i32
    return %c0_i32, %c0_i32_0 : i32, i32
  }
  func.func @transform_3(%arg0: i32) -> (i32, i32) {
    %c0_i32 = arith.constant 0 : i32
    %c0_i32_0 = arith.constant 0 : i32
    %c0_i32_1 = arith.constant 0 : i32
    return %c0_i32, %c0_i32_0 : i32, i32
  }
  func.func @transform_4(%arg0: i32) -> (i32, i32) {
    %c0_i32 = arith.constant 0 : i32
    %c0_i32_0 = arith.constant 0 : i32
    %c0_i32_1 = arith.constant 0 : i32
    return %c0_i32, %c0_i32_0 : i32, i32
  }
  func.func @transform_5(%arg0: i32) -> (i32, i32) {
    %c0_i32 = arith.constant 0 : i32
    %c0_i32_0 = arith.constant 0 : i32
    %c0_i32_1 = arith.constant 0 : i32
    return %c0_i32, %c0_i32_0 : i32, i32
  }
  func.func @transform_6(%arg0: i32) -> (i32, i32) {
    %c0_i32 = arith.constant 0 : i32
    %c0_i32_0 = arith.constant 0 : i32
    %c0_i32_1 = arith.constant 0 : i32
    return %c0_i32, %c0_i32_0 : i32, i32
  }
  func.func @transform_7(%arg0: i32) -> (i32, i32, i32, i32) {
    %c0_i32 = arith.constant 0 : i32
    %c0_i32_0 = arith.constant 0 : i32
    %c0_i32_1 = arith.constant 0 : i32
    %c0_i32_2 = arith.constant 0 : i32
    return %arg0, %c0_i32, %c0_i32_0, %c0_i32_1 : i32, i32, i32, i32
  }
}

</mosaic_0001>

<bundles_post_ra>
// kernel: tpu_custom_call.1
= control target key start
LH: loop header
LB: loop body
LE: loop exit
PB: predicated region body
PF: predicated region fallthrough
CT: control target
= control target key end

     0   :  { %12 = vsyncpa [#allocation5], 0  ;;  %s12357_s0 = inlined_call_operand.vmem [shape: f32[2,18,18,128], index: 0, kind: input, shape index: {}]   ;;  %s12358_s1 = inlined_call_operand.vmem [shape: bf16[1152,128], index: 1, kind: input, shape index: {}]   ;;  %s12359_s2 = inlined_call_operand.vmem [shape: f32[1,128], index: 2, kind: input, shape index: {}]   ;;  %s12360_s3 = inlined_call_operand.vmem [shape: f32[1,128], index: 3, kind: input, shape index: {}]   ;;  %s12361_s4 = inlined_call_operand.vmem [shape: bf16[1152,128], index: 4, kind: input, shape index: {}]   ;;  %s12362_s5 = inlined_call_operand.vmem [shape: f32[1,128], index: 5, kind: input, shape index: {}]   ;;  %s12363_s6 = inlined_call_operand.vmem [shape: f32[1,128], index: 6, kind: input, shape index: {}]   ;;  %s12364_s7 = inlined_call_operand.hbm [shape: f32[2,16,16,128], index: 7, kind: output, shape index: {}]  }
   0x1   :  { %14 = vsyncpa [#allocation5 + $0x1], 0  ;;  %s9816_s24 = smov 0   ;;  %s9818_s25 = smov 0  }
   0x2   :  { %s9820_s26 = smov 0   ;;  %s9822_s27 = smov 0  }
   0x3 LB: > { %s9837_s28 = sadd.s32 4294967295, %s9770_s27   ;;  %s7790_s29 = sadd.s32 4294967294, %s9770_s27   ;;  %s9770_s27 = sphi %s9822_s27, %s12386_s27   ;;  %s9766_s26 = sphi %s9820_s26, %s12385_s26   ;;  %s9762_s25 = sphi %s9818_s25, %s12384_s25   ;;  %s9758_s24 = sphi %s9816_s24, %s12383_s24  }
   0x4   : > { %s9841_s30 = sadd.s32 1, %s9770_s27   ;;  %s179_s8 = sadd.s32 1, %s9766_s26 }
   0x5   : > { %s176_s9 = ssub.s32 %s9770_s27, %s9841_s30  ;;  %p189_p0 = scmp.ne.s32.totalorder %s9766_s26, %s9762_s25 }
   0x6   : > { %p177_p1 = scmp.eq.s32.totalorder %s176_s9, 0  ;;  %p190_p2 = scmp.eq.s32.totalorder %s9837_s28, 1 }
   0x7   : > { %p195_p3 = scmp.ne.s32.totalorder %s9762_s25, %s9758_s24  ;;  %p196_p4 = scmp.eq.s32.totalorder %s7790_s29, 1 }
   0x8   : > { %s9852_s10 = scalar_select %p177_p1, %s9766_s26, %s179_s8  }
   0x9   : > { %p9854_p5 = por %p190_p2, %p189_p0  ;;  %p9858_p6 = por %p196_p4, %p195_p3 }
   0xa   : > { %p7793_p7 = scmp.ge.s32.totalorder %s9770_s27, 1  ;;  %p240_p8 = scmp.lt.s32.totalorder %s9770_s27, 3 }
   0xc   : > { %p241_p9 = pnand %p7793_p7, %p240_p8 }
   0xe   : > { %244 = sbr.rel (%p241_p9) target bundleno = 1190 (0x4a6), region = 48 }
  0x15   : > { %v9513_v0 = vld [vmem:[%s12358_s1 + $0x40] sm:$0xff]   ;;  %v9517_v4 = vld [vmem:[%s12358_s1 + $0x48] sm:$0xff]   ;;  %v9521_v8 = vld [vmem:[%s12358_s1 + $0x50] sm:$0xff]   ;;  %p272_p10 = scmp.lt.s32.totalorder %s9837_s28, 1  ;;  %vm285_vm0 = vcmask 1040384   ;;  %vm3899_vm8 = vcmask 1042432  }
  0x16   : > { %v9514_v1 = vld [vmem:[%s12358_s1 + $0xc0] sm:$0xff]   ;;  %8430 = vmatprep.subr.bf16.mxu0 %v9513_v0  ;;  %v9518_v5 = vld [vmem:[%s12358_s1 + $0xc8] sm:$0xff]   ;;  %v9522_v9 = vld [vmem:[%s12358_s1 + $0xd0] sm:$0xff]   ;;  %vm286_vm1 = vsmask.f32 256  ;;  %vm3900_vm9 = vcmask 1046532  }
  0x17   : > { %v9515_v2 = vld [vmem:[%s12358_s1] sm:$0xff]   ;;  %8542 = vmatprep.subr.bf16.mxu1 %v9514_v1  ;;  %v9519_v6 = vld [vmem:[%s12358_s1 + $0x8] sm:$0xff]   ;;  %v9523_v10 = vld [vmem:[%s12358_s1 + $0x10] sm:$0xff]   ;;  %s273_s15 = scalar_select %p272_p10, %s9837_s28, 1  ;;  %vm342_vm3 = vsmask.f32 7938 }
  0x18   : > { %v9516_v3 = vld [vmem:[%s12358_s1 + $0x80] sm:$0xff]   ;;  %8431 = vmatpush3.bf16.msra.mxu0 %v9515_v2  ;;  %v9520_v7 = vld [vmem:[%s12358_s1 + $0x88] sm:$0xff]   ;;  %v9524_v11 = vld [vmem:[%s12358_s1 + $0x90] sm:$0xff]   ;;  %vm3336_vm5 = vsmask.f32 3328  ;;  %vm3030_vm11 = vcmask 1043456  }
  0x19   : > { %8543 = vmatpush3.bf16.msra.mxu1 %v9516_v3  ;;  %8432 = vmatprep.subr.bf16.mxu0 %v9517_v4  ;;  %v9525_v12 = vld [vmem:[%s12358_s1 + $0x58] sm:$0xff]   ;;  %v9529_v16 = vld [vmem:[%s12358_s1 + $0x60] sm:$0xff]   ;;  %v9533_v20 = vld [vmem:[%s12358_s1 + $0x68] sm:$0xff]   ;;  %s9470_s29 = smul.u32 432, %s273_s15  ;;  %vm3337_vm6 = vsmask.f32 7440 }
  0x1a   : > { %8544 = vmatprep.subr.bf16.mxu1 %v9518_v5  ;;  %v9526_v13 = vld [vmem:[%s12358_s1 + $0xd8] sm:$0xff]   ;;  %v9530_v17 = vld [vmem:[%s12358_s1 + $0xe0] sm:$0xff]   ;;  %v9534_v21 = vld [vmem:[%s12358_s1 + $0xe8] sm:$0xff]   ;;  %vm2707_vm12 = vsmask.f32 4368  ;;  %s269_s14 = sand.u32 1, %s9762_s25  }
  0x1b   : > { %v9527_v14 = vld [vmem:[%s12358_s1 + $0x18] sm:$0xff]   ;;  %v9531_v18 = vld [vmem:[%s12358_s1 + $0x20] sm:$0xff]   ;;  %v9535_v22 = vld [vmem:[%s12358_s1 + $0x28] sm:$0xff]   ;;  %s9959_s21 = scalar_lea.vmem %s12357_s0, %s9470_s29  ;;  %s7794_s18 = sshll.u32 %s269_s14, 8 }
  0x1c   : > { %8433 = vmatpush3.bf16.msra.mxu0 %v9519_v6  ;;  %v9528_v15 = vld [vmem:[%s12358_s1 + $0x98] sm:$0xff]   ;;  %v9532_v19 = vld [vmem:[%s12358_s1 + $0xa0] sm:$0xff]   ;;  %v9536_v23 = vld [vmem:[%s12358_s1 + $0xa8] sm:$0xff]   ;;  %s12161_s19 = scalar_lea.vmem [#allocation4], %s7794_s18  ;;  %s8429_s15 = sshll.u32 %s9837_s28, 12 }
  0x1d   : > { %8545 = vmatpush3.bf16.msra.mxu1 %v9520_v7  ;;  %8434 = vmatprep.subr.bf16.mxu0 %v9521_v8  ;;  %v9537_v24 = vld [vmem:[%s12358_s1 + $0x70] sm:$0xff]   ;;  %v9541_v28 = vld [vmem:[%s12358_s1 + $0x78] sm:$0xff]   ;;  %v462_v32 = vld [vmem:[%s9959_s21 + $0x1] sm:$0xff]  ;;  %s7728_s20 = sshll.u32 %s12161_s19, 4  ;;  %s12307_s8 = scalar_lea.hbm %s12364_s7, %s8429_s15  ;;  %s12309_s20 = int_to_ptr.vmem [resolvable:$true] %s7728_s20 }
  0x1e   : > { %8546 = vmatprep.subr.bf16.mxu1 %v9522_v9  ;;  %v9538_v25 = vld [vmem:[%s12358_s1 + $0xf0] sm:$0xff]   ;;  %v9542_v29 = vld [vmem:[%s12358_s1 + $0xf8] sm:$0xff]   ;;  %v7797_v36 = vld [vmem:[%s9959_s21 + $0x20] sm:$0xff]  ;;  %s12316_s28 = scalar_lea.sflag [#allocation5], %s269_s14  ;;  %s9773_s9 = smov [#allocation4]  }
  0x1f   : > { %v9539_v26 = vld [vmem:[%s12358_s1 + $0x30] sm:$0xff]   ;;  %v9543_v30 = vld [vmem:[%s12358_s1 + $0x38] sm:$0xff]   ;;  %v398_v37 = vld [vmem:[%s9959_s21] sm:$0xff]  ;;  %s9712_s29 = sshll.u32 %s9773_s9, 4  ;;  %s9713_s29 = int_to_ptr.vmem [resolvable:$false] %s9712_s29 }
  0x20   : > { %8435 = vmatpush3.bf16.msra.mxu0 %v9523_v10  ;;  %v9540_v27 = vld [vmem:[%s12358_s1 + $0xb0] sm:$0xff]   ;;  %v9544_v31 = vld [vmem:[%s12358_s1 + $0xb8] sm:$0xff]   ;;  %v399_v38 = vld [vmem:[%s9959_s21 + $0x8] sm:$0xff]  ;;  %s9714_s13 = scalar_lea.vmem %s9713_s29, 8192  ;;  %p9715_p0 = scmp.lt.s32.totalorder %s12309_s20, %s9713_s29 }
  0x21   : > { %8547 = vmatpush3.bf16.msra.mxu1 %v9524_v11  ;;  %8436 = vmatprep.subr.bf16.mxu0 %v9525_v12  ;;  %v463_v33 = vld [vmem:[%s9959_s21 + $0x9] sm:$0xff]  ;;  %v7796_v34 = vld [vmem:[%s9959_s21 + $0x18] sm:$0xff]  ;;  %v430_v40 = vpack.c.bf16 %v399_v38, %v398_v37  ;;  %v9545_v44 = vld [vmem:[%s12358_s1 + $0x140] sm:$0xff]  }
  0x22   : > { %8548 = vmatprep.subr.bf16.mxu1 %v9526_v13  ;;  %v494_v35 = vpack.c.bf16 %v463_v33, %v462_v32  ;;  %v623_v39 = vpack.c.bf16 %v7797_v36, %v7796_v34  ;;  %v526_v41 = vld [vmem:[%s9959_s21 + $0x2] sm:$0xff]  ;;  %v527_v42 = vld [vmem:[%s9959_s21 + $0xa] sm:$0xff]  ;;  %v464_v46 = vld [vmem:[%s9959_s21 + $0x19] sm:$0xff] }
  0x23   : > { %v558_v43 = vpack.c.bf16 %v527_v42, %v526_v41  ;;  %v9546_v45 = vld [vmem:[%s12358_s1 + $0x100] sm:$0xff]   ;;  %v7798_v48 = vld [vmem:[%s9959_s21 + $0x30] sm:$0xff]  ;;  %v7799_v49 = vld [vmem:[%s9959_s21 + $0x38] sm:$0xff] }
  0x24   : > { %8437 = vmatpush3.bf16.msra.mxu0 %v9527_v14  ;;  %1728 = vmatprep.mubr.bf16.mxu0 %v494_v35  ;;  %v465_v47 = vld [vmem:[%s9959_s21 + $0x21] sm:$0xff]  ;;  %v9987_v51 = vpack.c.bf16 %v7799_v49, %v7798_v48  ;;  %v466_v54 = vld [vmem:[%s9959_s21 + $0x31] sm:$0xff]  ;;  %v467_v55 = vld [vmem:[%s9959_s21 + $0x39] sm:$0xff] }
  0x25   : > { %8549 = vmatpush3.bf16.msra.mxu1 %v9528_v15  ;;  %8438 = vmatprep.subr.bf16.mxu0 %v9529_v16  ;;  %v9985_v50 = vpack.c.bf16 %v465_v47, %v464_v46  ;;  %v528_v52 = vld [vmem:[%s9959_s21 + $0x1a] sm:$0xff]  ;;  %v529_v53 = vld [vmem:[%s9959_s21 + $0x22] sm:$0xff]  ;;  %v7801_v57 = vld [vmem:[%s9959_s21 + $0x50] sm:$0xff]  ;;  %v9999_v59 = vpack.c.bf16 %v467_v55, %v466_v54 }
  0x26   : > { %8550 = vmatprep.subr.bf16.mxu1 %v9530_v17  ;;  %1889 = vmatprep.mubr.bf16.mxu1 %v623_v39  ;;  %v7800_v56 = vld [vmem:[%s9959_s21 + $0x48] sm:$0xff]  ;;  %v9997_v58 = vpack.c.bf16 %v529_v53, %v528_v52  ;;  %v530_v63 = vld [vmem:[%s9959_s21 + $0x32] sm:$0xff]  ;;  %v531_v0 = vld [vmem:[%s9959_s21 + $0x3a] sm:$0xff] }
  0x27   : > { %v9547_v60 = vld [vmem:[%s12358_s1 + $0x148] sm:$0xff]   ;;  %v10004_v61 = vpack.c.bf16 %v7801_v57, %v7800_v56  ;;  %v469_v2 = vld [vmem:[%s9959_s21 + $0x51] sm:$0xff]  ;;  %v7802_v3 = vld [vmem:[%s9959_s21 + $0x60] sm:$0xff]  ;;  %v10024_v7 = vpack.c.bf16 %v531_v0, %v530_v63 }
  0x28   : > { %8439 = vmatpush3.bf16.msra.mxu0 %v9531_v18  ;;  %v9548_v62 = vld [vmem:[%s12358_s1 + $0x108] sm:$0xff]   ;;  %v9549_v5 = vld [vmem:[%s12358_s1 + $0x150] sm:$0xff]   ;;  %v9551_v13 = vld [vmem:[%s12358_s1 + $0x158] sm:$0xff]  }
  0x29   : > { %8551 = vmatpush3.bf16.msra.mxu1 %v9532_v19  ;;  %8440 = vmatprep.subr.bf16.mxu0 %v9533_v20  ;;  %v468_v1 = vld [vmem:[%s9959_s21 + $0x49] sm:$0xff]  ;;  %v533_v11 = vld [vmem:[%s9959_s21 + $0x52] sm:$0xff]  ;;  %v470_v12 = vld [vmem:[%s9959_s21 + $0x61] sm:$0xff] }
  0x2a   : > { %8552 = vmatprep.subr.bf16.mxu1 %v9534_v21  ;;  %v7803_v4 = vld [vmem:[%s9959_s21 + $0x68] sm:$0xff]  ;;  %v9550_v6 = vld [vmem:[%s12358_s1 + $0x110] sm:$0xff]   ;;  %v10026_v8 = vpack.c.bf16 %v469_v2, %v468_v1  ;;  %v9552_v15 = vld [vmem:[%s12358_s1 + $0x118] sm:$0xff]  }
  0x2b   : > { %v10028_v9 = vpack.c.bf16 %v7803_v4, %v7802_v3  ;;  %v532_v10 = vld [vmem:[%s9959_s21 + $0x4a] sm:$0xff]  ;;  %v7804_v16 = vld [vmem:[%s9959_s21 + $0x78] sm:$0xff]  ;;  %v7805_v17 = vld [vmem:[%s9959_s21 + $0x80] sm:$0xff] }
  0x2c   : > { %8441 = vmatpush3.bf16.msra.mxu0 %v9535_v22  ;;  %v471_v14 = vld [vmem:[%s9959_s21 + $0x69] sm:$0xff]  ;;  %v10046_v18 = vpack.c.bf16 %v533_v11, %v532_v10  ;;  %v10050_v20 = vpack.c.bf16 %v7805_v17, %v7804_v16  ;;  %v9553_v21 = vld [vmem:[%s12358_s1 + $0x160] sm:$0xff]   ;;  %v474_v36 = vld [vmem:[%s9959_s21 + $0x91] sm:$0xff] }
  0x2d   : > { %8553 = vmatpush3.bf16.msra.mxu1 %v9536_v23  ;;  %8442 = vmatprep.subr.bf16.mxu0 %v9537_v24  ;;  %v10048_v19 = vpack.c.bf16 %v471_v14, %v470_v12  ;;  %v9554_v22 = vld [vmem:[%s12358_s1 + $0x120] sm:$0xff]   ;;  %v535_v24 = vld [vmem:[%s9959_s21 + $0x6a] sm:$0xff]  ;;  %v538_v48 = vld [vmem:[%s9959_s21 + $0x92] sm:$0xff] }
  0x2e   : > { %8554 = vmatprep.subr.bf16.mxu1 %v9538_v25  ;;  %v534_v23 = vld [vmem:[%s9959_s21 + $0x62] sm:$0xff]  ;;  %v472_v25 = vld [vmem:[%s9959_s21 + $0x79] sm:$0xff]  ;;  %v9558_v41 = vld [vmem:[%s12358_s1 + $0x130] sm:$0xff]  }
  0x2f   : > { %v9556_v33 = vld [vmem:[%s12358_s1 + $0x128] sm:$0xff]   ;;  %v536_v34 = vld [vmem:[%s9959_s21 + $0x7a] sm:$0xff]  ;;  %v477_v53 = vld [vmem:[%s9959_s21 + $0xb1] sm:$0xff] }
  0x30   : > { %8443 = vmatpush3.bf16.msra.mxu0 %v9539_v26  ;;  %v473_v26 = vld [vmem:[%s9959_s21 + $0x81] sm:$0xff]  ;;  %v475_v37 = vld [vmem:[%s9959_s21 + $0x99] sm:$0xff]  ;;  %v476_v52 = vld [vmem:[%s9959_s21 + $0xa9] sm:$0xff] }
  0x31   : > { %8555 = vmatpush3.bf16.msra.mxu1 %v9540_v27  ;;  %8444 = vmatprep.subr.bf16.mxu0 %v9541_v28  ;;  %v7806_v27 = vld [vmem:[%s9959_s21 + $0x90] sm:$0xff]  ;;  %v7807_v28 = vld [vmem:[%s9959_s21 + $0x98] sm:$0xff]  ;;  %v537_v35 = vld [vmem:[%s9959_s21 + $0x82] sm:$0xff]  ;;  %v10132_v63 = vpack.c.bf16 %v477_v53, %v476_v52 }
  0x32   : > { %8556 = vmatprep.subr.bf16.mxu1 %v9542_v29  ;;  %v10068_v29 = vpack.c.bf16 %v535_v24, %v534_v23  ;;  %v10075_v32 = vpack.c.bf16 %v7807_v28, %v7806_v27  ;;  %v7808_v38 = vld [vmem:[%s9959_s21 + $0xa8] sm:$0xff]  ;;  %v10096_v42 = vpack.c.bf16 %v537_v35, %v536_v34  ;;  %v9560_v46 = vld [vmem:[%s12358_s1 + $0x180] sm:$0xff]   ;;  %v9563_v57 = vld [vmem:[%s12358_s1 + $0x1d0] sm:$0xff]  }
  0x33   : > { %v9561_v47 = vld [vmem:[%s12358_s1 + $0x1c8] sm:$0xff]   ;;  %v539_v49 = vld [vmem:[%s9959_s21 + $0x9a] sm:$0xff]  ;;  %v541_v3 = vld [vmem:[%s9959_s21 + $0xb2] sm:$0xff] }
  0x34   : > { %8445 = vmatpush3.bf16.msra.mxu0 %v9543_v30  ;;  %v10070_v30 = vpack.c.bf16 %v473_v26, %v472_v25  ;;  %v9562_v54 = vld [vmem:[%s12358_s1 + $0x188] sm:$0xff]   ;;  %v7810_v55 = vld [vmem:[%s9959_s21 + $0xc0] sm:$0xff]  ;;  %v9565_v1 = vld [vmem:[%s12358_s1 + $0x1d8] sm:$0xff]  }
  0x35   : > { %8557 = vmatpush3.bf16.msra.mxu1 %v9544_v31  ;;  %8654 = vmatprep.subr.bf16.mxu0 %v9545_v44  ;;  %v9555_v31 = vld [vmem:[%s12358_s1 + $0x168] sm:$0xff]   ;;  %v9559_v44 = vld [vmem:[%s12358_s1 + $0x1c0] sm:$0xff]   ;;  %v7812_v10 = vld [vmem:[%s9959_s21 + $0xd8] sm:$0xff] }
  0x36   : > { %8766 = vmatprep.subr.bf16.mxu1 %v9559_v44  ;;  %v7811_v56 = vld [vmem:[%s9959_s21 + $0xc8] sm:$0xff]  ;;  %v7813_v11 = vld [vmem:[%s9959_s21 + $0xe0] sm:$0xff]  ;;  %v9567_v12 = vld [vmem:[%s12358_s1 + $0x178] sm:$0xff]  }
  0x37   : > { %1729 = vmatmul.mubr.bf16.vlgmr.msra.gmra.mrb[0].mxu0 %v430_v40  ;;  %v9557_v40 = vld [vmem:[%s12358_s1 + $0x170] sm:$0xff]   ;;  %v10134_v0 = vpack.c.bf16 %v7811_v56, %v7810_v55  ;;  %v478_v4 = vld [vmem:[%s9959_s21 + $0xc1] sm:$0xff]  ;;  %v480_v25 = vld [vmem:[%s9959_s21 + $0xd9] sm:$0xff] }
  0x38   : > { %1890 = vmatmul.mubr.bf16.vlgmr.msra.gmra.mrb[0].mxu1 %v558_v43  ;;  %8655 = vmatpush3.bf16.msra.mxu0 %v9546_v45  ;;  %v10098_v43 = vpack.c.bf16 %v475_v37, %v474_v36  ;;  %v540_v2 = vld [vmem:[%s9959_s21 + $0xaa] sm:$0xff]  ;;  %v9569_v14 = vld [vmem:[%s12358_s1 + $0x1e0] sm:$0xff]   ;;  %v546_v55 = vld [vmem:[%s9959_s21 + $0xf2] sm:$0xff] }
  0x39   : > { %1736 = vmatprep.mubr.bf16.mxu0 %v9985_v50  ;;  %1897 = vmatprep.mubr.bf16.mxu1 %v9987_v51  ;;  %v10164_v16 = vpack.c.bf16 %v541_v3, %v540_v2  ;;  %v542_v23 = vld [vmem:[%s9959_s21 + $0xc2] sm:$0xff]  ;;  %v543_v24 = vld [vmem:[%s9959_s21 + $0xca] sm:$0xff]  ;;  %v547_v56 = vld [vmem:[%s9959_s21 + $0xfa] sm:$0xff] }
  0x3a   : > { %8656 = vmatprep.subr.bf16.mxu0 %v9547_v60  ;;  %8767 = vmatpush3.bf16.msra.mxu1 %v9560_v46  ;;  %v9564_v60 = vld [vmem:[%s12358_s1 + $0x190] sm:$0xff]   ;;  %v481_v26 = vld [vmem:[%s9959_s21 + $0xe1] sm:$0xff]  ;;  %v10192_v35 = vpack.c.bf16 %v543_v24, %v542_v23  ;;  %v483_v46 = vld [vmem:[%s9959_s21 + $0xf9] sm:$0xff]  ;;  %v10236_v3 = vpack.c.bf16 %v547_v56, %v546_v55 }
  0x3b   : > { %8768 = vmatprep.subr.bf16.mxu1 %v9561_v47  ;;  %v9572_v27 = vld [vmem:[%s12358_s1 + $0x1a8] sm:$0xff]   ;;  %v9573_v28 = vld [vmem:[%s12358_s1 + $0x1f0] sm:$0xff]   ;;  %v10194_v36 = vpack.c.bf16 %v481_v26, %v480_v25  ;;  %v10199_v37 = vld [vmem:[%s12358_s1 + $0x200] sm:$0xff]  }
  0x3c   : > { %8657 = vmatpush3.bf16.msra.mxu0 %v9548_v62  ;;  %v10130_v62 = vpack.c.bf16 %v539_v49, %v538_v48  ;;  %v9574_v34 = vld [vmem:[%s12358_s1 + $0x1b0] sm:$0xff]   ;;  %v9576_v47 = vld [vmem:[%s12358_s1 + $0x1b8] sm:$0xff]   ;;  %v7816_v48 = vld [vmem:[%s9959_s21 + $0x108] sm:$0xff] }
  0x3d   : > { %8658 = vmatprep.subr.bf16.mxu0 %v9549_v5  ;;  %v479_v5 = vld [vmem:[%s9959_s21 + $0xc9] sm:$0xff]  ;;  %v482_v44 = vld [vmem:[%s9959_s21 + $0xf1] sm:$0xff]  ;;  %v488_v26 = vld [vmem:[%s9959_s21 + $0x139] sm:$0xff] }
  0x3e   : > { %8769 = vmatpush3.bf16.msra.mxu1 %v9562_v54  ;;  %v10166_v17 = vpack.c.bf16 %v479_v5, %v478_v4  ;;  %v7817_v49 = vld [vmem:[%s9959_s21 + $0x110] sm:$0xff]  ;;  %v10222_v53 = vpack.c.bf16 %v483_v46, %v482_v44  ;;  %v7819_v2 = vld [vmem:[%s9959_s21 + $0x128] sm:$0xff]  ;;  %v491_v46 = vld [vmem:[%s9959_s21 + $0x159] sm:$0xff] }
  0x3f   : > { %1737 = vmatmul.mubr.bf16.gmra.mrb[4].mxu0 %v623_v39  ;;  %v7809_v39 = vld [vmem:[%s9959_s21 + $0xb0] sm:$0xff]  ;;  %8770 = vmatprep.subr.bf16.mxu1 %v9563_v57  ;;  %v10224_v54 = vpack.c.bf16 %v7817_v49, %v7816_v48  ;;  %v550_v24 = vld [vmem:[%s9959_s21 + $0x122] sm:$0xff]  ;;  %vm10544_vm2 = vmand %vm285_vm0, %vm286_vm1 }
  0x40   : > { %1898 = vmatmul.mubr.bf16.gmra.mrb[4].mxu1 %v9997_v58  ;;  %1744 = vmatprep.mubr.bf16.mxu0 %v9999_v59  ;;  %v10103_v45 = vpack.c.bf16 %v7809_v39, %v7808_v38  ;;  %v9575_v39 = vld [vmem:[%s12358_s1 + $0x1f8] sm:$0xff]   ;;  %v484_v57 = vld [vmem:[%s9959_s21 + $0x109] sm:$0xff]  ;;  %vm10571_vm4 = vmand %vm285_vm0, %vm342_vm3 }
  0x41   : > { %1905 = vmatprep.mubr.bf16.mxu1 %v10004_v61  ;;  %8659 = vmatpush3.bf16.msra.mxu0 %v9550_v6  ;;  %v9566_v6 = vld [vmem:[%s12358_s1 + $0x198] sm:$0xff]   ;;  %v551_v25 = vld [vmem:[%s9959_s21 + $0x12a] sm:$0xff]  ;;  %vm10676_vm7 = vmor %vm3336_vm5, %vm3337_vm6 }
  0x42   : > { %8660 = vmatprep.subr.bf16.mxu0 %v9551_v13  ;;  %8771 = vmatpush3.bf16.msra.mxu1 %v9564_v60  ;;  %v9568_v13 = vld [vmem:[%s12358_s1 + $0x138] sm:$0xff]   ;;  %v7825_v48 = vld [vmem:[%s9959_s21 + $0x170] sm:$0xff]  ;;  %vm10816_vm10 = vmor %vm3899_vm8, %vm3900_vm9 }
  0x43   : > { %8772 = vmatprep.subr.bf16.mxu1 %v9565_v1  ;;  %v485_v60 = vld [vmem:[%s9959_s21 + $0x111] sm:$0xff]  ;;  %v7818_v1 = vld [vmem:[%s9959_s21 + $0x120] sm:$0xff]  ;;  %vm10851_vm13 = vmand %vm3030_vm11, %vm342_vm3 }
  0x44   : > { %v10238_v4 = vpack.c.bf16 %v485_v60, %v484_v57  ;;  %v10240_v5 = vpack.c.bf16 %v7819_v2, %v7818_v1  ;;  %v490_v44 = vld [vmem:[%s9959_s21 + $0x151] sm:$0xff]  ;;  %v555_v60 = vld [vmem:[%s9959_s21 + $0x15a] sm:$0xff]  ;;  %v492_v1 = vld [vmem:[%s9959_s21 + $0x169] sm:$0xff] }
  0x45   : > { %8661 = vmatpush3.bf16.msra.mxu0 %v9552_v15  ;;  %v9570_v15 = vld [vmem:[%s12358_s1 + $0x1a0] sm:$0xff]   ;;  %v10286_v55 = vpack.c.bf16 %v491_v46, %v490_v44  ;;  %v554_v57 = vld [vmem:[%s9959_s21 + $0x152] sm:$0xff]  ;;  %vm10858_vm14 = vmor %vm286_vm1, %vm2707_vm12 }
  0x46   : > { %8662 = vmatprep.subr.bf16.mxu0 %v9553_v21  ;;  %8773 = vmatpush3.bf16.msra.mxu1 %v9566_v6  ;;  %v10168_v21 = vpack.c.bf16 %v7813_v11, %v7812_v10  ;;  %v548_v6 = vld [vmem:[%s9959_s21 + $0x10a] sm:$0xff]  ;;  %v549_v10 = vld [vmem:[%s9959_s21 + $0x112] sm:$0xff]  ;;  %v486_v11 = vld [vmem:[%s9959_s21 + $0x121] sm:$0xff] }
  0x47   : > { %1745 = vmatmul.mubr.bf16.gmra.mrb[8].mxu0 %v9987_v51  ;;  %8774 = vmatprep.subr.bf16.mxu1 %v9569_v14  ;;  %v7821_v14 = vld [vmem:[%s9959_s21 + $0x140] sm:$0xff]  ;;  %v493_v2 = vld [vmem:[%s9959_s21 + $0x171] sm:$0xff] }
  0x48   : > { %1906 = vmatmul.mubr.bf16.gmra.mrb[8].mxu1 %v10024_v7  ;;  %1752 = vmatprep.mubr.bf16.mxu0 %v10026_v8 }
  0x49   : > { %1913 = vmatprep.mubr.bf16.mxu1 %v10028_v9  ;;  %8663 = vmatpush3.bf16.msra.mxu0 %v9554_v22  ;;  %v9571_v22 = vld [vmem:[%s12358_s1 + $0x1e8] sm:$0xff]  }
  0x4a   : > { %8664 = vmatprep.subr.bf16.mxu0 %v9555_v31  ;;  %8775 = vmatpush3.bf16.msra.mxu1 %v9570_v15  ;;  %v7814_v31 = vld [vmem:[%s9959_s21 + $0xf0] sm:$0xff]  ;;  %v10252_v15 = vpack.c.bf16 %v549_v10, %v548_v6  ;;  %v7826_v6 = vld [vmem:[%s9959_s21 + $0x180] sm:$0xff]  ;;  %v7827_v10 = vld [vmem:[%s9959_s21 + $0x188] sm:$0xff] }
  0x4b   : > { %8776 = vmatprep.subr.bf16.mxu1 %v9571_v22 }
  0x4d   : > { %8665 = vmatpush3.bf16.msra.mxu0 %v9556_v33  ;;  %v7815_v33 = vld [vmem:[%s9959_s21 + $0xf8] sm:$0xff] }
  0x4e   : > { %8666 = vmatprep.subr.bf16.mxu0 %v9557_v40  ;;  %8777 = vmatpush3.bf16.msra.mxu1 %v9572_v27  ;;  %v10201_v38 = vpack.c.bf16 %v7815_v33, %v7814_v31  ;;  %v544_v40 = vld [vmem:[%s9959_s21 + $0xda] sm:$0xff]  ;;  %v10268_v33 = vpack.c.bf16 %v551_v25, %v550_v24  ;;  %v557_v24 = vld [vmem:[%s9959_s21 + $0x172] sm:$0xff] }
  0x4f   : > { %1753 = vmatmul.mubr.bf16.gmra.mrb[12].mxu0 %v10004_v61  ;;  %8778 = vmatprep.subr.bf16.mxu1 %v9573_v28  ;;  %v489_v27 = vld [vmem:[%s9959_s21 + $0x141] sm:$0xff]  ;;  %v7822_v28 = vld [vmem:[%s9959_s21 + $0x150] sm:$0xff]  ;;  %v7823_v31 = vld [vmem:[%s9959_s21 + $0x158] sm:$0xff] }
  0x50   : > { %1914 = vmatmul.mubr.bf16.gmra.mrb[12].mxu1 %v10046_v18  ;;  %1760 = vmatprep.mubr.bf16.mxu0 %v10048_v19 }
  0x51   : > { %1921 = vmatprep.mubr.bf16.mxu1 %v10050_v20  ;;  %8667 = vmatpush3.bf16.msra.mxu0 %v9558_v41  ;;  %v545_v41 = vld [vmem:[%s9959_s21 + $0xe2] sm:$0xff] }
  0x52   : > { %8668 = vmatprep.subr.bf16.mxu0 %v9567_v12  ;;  %8779 = vmatpush3.bf16.msra.mxu1 %v9574_v34  ;;  %v10220_v52 = vpack.c.bf16 %v545_v41, %v544_v40  ;;  %v487_v12 = vld [vmem:[%s9959_s21 + $0x129] sm:$0xff]  ;;  %v10270_v34 = vpack.c.bf16 %v489_v27, %v488_v26  ;;  %v552_v40 = vld [vmem:[%s9959_s21 + $0x13a] sm:$0xff] }
  0x53   : > { %8780 = vmatprep.subr.bf16.mxu1 %v9575_v39  ;;  %v10254_v22 = vpack.c.bf16 %v487_v12, %v486_v11  ;;  %v10272_v39 = vpack.c.bf16 %v7823_v31, %v7822_v28  ;;  %v553_v41 = vld [vmem:[%s9959_s21 + $0x142] sm:$0xff]  ;;  %v10300_v11 = vpack.c.bf16 %v555_v60, %v554_v57  ;;  %v10302_v12 = vpack.c.bf16 %v493_v2, %v492_v1  ;;  %v9580_v27 = vld [vmem:[%s12358_s1 + $0x218] sm:$0xff]   ;;  %v7891_v1 = vld [vmem:[%s9959_s21 + $0x18a] sm:$0xff] }
  0x54   : > { %v10284_v49 = vpack.c.bf16 %v553_v41, %v552_v40  ;;  %v9578_v26 = vld [vmem:[%s12358_s1 + $0x208] sm:$0xff]  }
  0x55   : > { %8669 = vmatpush3.bf16.msra.mxu0 %v9568_v13  ;;  %v7820_v13 = vld [vmem:[%s9959_s21 + $0x138] sm:$0xff]  ;;  %v7890_v60 = vld [vmem:[%s9959_s21 + $0x182] sm:$0xff] }
  0x56   : > { %9374 = vmatprep.subr.bf16.mxu0 %v10199_v37  ;;  %8781 = vmatpush3.bf16.msra.mxu1 %v9576_v47  ;;  %v10256_v23 = vpack.c.bf16 %v7821_v14, %v7820_v13  ;;  %v7824_v47 = vld [vmem:[%s9959_s21 + $0x168] sm:$0xff]  ;;  %v10304_v13 = vpack.c.bf16 %v7827_v10, %v7826_v6  ;;  %v7954_v10 = vld [vmem:[%s9959_s21 + $0x199] sm:$0xff] }
  0x57   : > { %1761 = vmatmul.mubr.bf16.gmra.mrb[16].mxu0 %v10028_v9  ;;  %v10288_v56 = vpack.c.bf16 %v7825_v48, %v7824_v47  ;;  %v556_v14 = vld [vmem:[%s9959_s21 + $0x16a] sm:$0xff] }
  0x58   : > { %1922 = vmatmul.mubr.bf16.gmra.mrb[16].mxu1 %v10068_v29  ;;  %1768 = vmatprep.mubr.bf16.mxu0 %v10070_v30  ;;  %v10312_v25 = vpack.c.bf16 %v557_v24, %v556_v14 }
  0x59   : > { %1929 = vmatprep.mubr.bf16.mxu1 %v10075_v32 }
  0x5f   : > { %1769 = vmatmul.mubr.bf16.gmra.mrb[20].mxu0 %v10050_v20 }
  0x60   : > { %1930 = vmatmul.mubr.bf16.gmra.mrb[20].mxu1 %v10096_v42  ;;  %1776 = vmatprep.mubr.bf16.mxu0 %v10098_v43 }
  0x61   : > { %1937 = vmatprep.mubr.bf16.mxu1 %v10103_v45 }
  0x67   : > { %1777 = vmatmul.mubr.bf16.gmra.mrb[24].mxu0 %v10075_v32 }
  0x68   : > { %1938 = vmatmul.mubr.bf16.gmra.mrb[24].mxu1 %v10130_v62  ;;  %1784 = vmatprep.mubr.bf16.mxu0 %v10132_v63 }
  0x69   : > { %1945 = vmatprep.mubr.bf16.mxu1 %v10134_v0 }
  0x6f   : > { %1785 = vmatmul.mubr.bf16.gmra.mrb[28].mxu0 %v10103_v45 }
  0x70   : > { %1946 = vmatmul.mubr.bf16.gmra.mrb[28].mxu1 %v10164_v16  ;;  %1792 = vmatprep.mubr.bf16.mxu0 %v10166_v17 }
  0x71   : > { %1953 = vmatprep.mubr.bf16.mxu1 %v10168_v21 }
  0x77   : > { %1793 = vmatmul.mubr.bf16.gmra.mrb[32].mxu0 %v10134_v0 }
  0x78   : > { %1954 = vmatmul.mubr.bf16.gmra.mrb[32].mxu1 %v10192_v35  ;;  %1800 = vmatprep.mubr.bf16.mxu0 %v10194_v36 }
  0x79   : > { %1961 = vmatprep.mubr.bf16.mxu1 %v10201_v38 }
  0x7f   : > { %1801 = vmatmul.mubr.bf16.gmra.mrb[36].mxu0 %v10168_v21 }
  0x80   : > { %1962 = vmatmul.mubr.bf16.gmra.mrb[36].mxu1 %v10220_v52  ;;  %1808 = vmatprep.mubr.bf16.mxu0 %v10222_v53 }
  0x81   : > { %1969 = vmatprep.mubr.bf16.mxu1 %v10224_v54 }
  0x87   : > { %1809 = vmatmul.mubr.bf16.gmra.mrb[40].mxu0 %v10201_v38 }
  0x88   : > { %1970 = vmatmul.mubr.bf16.gmra.mrb[40].mxu1 %v10236_v3  ;;  %1816 = vmatprep.mubr.bf16.mxu0 %v10238_v4 }
  0x89   : > { %1977 = vmatprep.mubr.bf16.mxu1 %v10240_v5 }
  0x8f   : > { %1817 = vmatmul.mubr.bf16.gmra.mrb[44].mxu0 %v10224_v54 }
  0x90   : > { %1978 = vmatmul.mubr.bf16.gmra.mrb[44].mxu1 %v10252_v15  ;;  %1824 = vmatprep.mubr.bf16.mxu0 %v10254_v22 }
  0x91   : > { %1985 = vmatprep.mubr.bf16.mxu1 %v10256_v23 }
  0x97   : > { %1825 = vmatmul.mubr.bf16.gmra.mrb[48].mxu0 %v10240_v5 }
  0x98   : > { %1986 = vmatmul.mubr.bf16.gmra.mrb[48].mxu1 %v10268_v33  ;;  %1832 = vmatprep.mubr.bf16.mxu0 %v10270_v34 }
  0x99   : > { %1993 = vmatprep.mubr.bf16.mxu1 %v10272_v39 }
  0x9f   : > { %1833 = vmatmul.mubr.bf16.gmra.mrb[52].mxu0 %v10256_v23 }
  0xa0   : > { %1994 = vmatmul.mubr.bf16.gmra.mrb[52].mxu1 %v10284_v49  ;;  %1840 = vmatprep.mubr.bf16.mxu0 %v10286_v55 }
  0xa1   : > { %2001 = vmatprep.mubr.bf16.mxu1 %v10288_v56 }
  0xa7   : > { %1841 = vmatmul.mubr.bf16.gmra.mrb[56].mxu0 %v10272_v39 }
  0xa8   : > { %2002 = vmatmul.mubr.bf16.gmra.mrb[56].mxu1 %v10300_v11  ;;  %1848 = vmatprep.mubr.bf16.mxu0 %v10302_v12 }
  0xa9   : > { %2009 = vmatprep.mubr.bf16.mxu1 %v10304_v13 }
  0xaf   : > { %1849 = vmatmul.mubr.bf16.gmra.mrb[60].mxu0 %v10288_v56 }
  0xb0   : > { %2010 = vmatmul.mubr.bf16.gmra.mrb[60].mxu1 %v10312_v25  ;;  %2050 = vmatprep.mubr.bf16.mxu0 %v9997_v58  ;;  %v9579_v58 = vld [vmem:[%s12358_s1 + $0x210] sm:$0xff]  }
  0xb1   : > { %2211 = vmatprep.mubr.bf16.mxu1 %v9999_v59 }
  0xb7   : > { %2051 = vmatmul.mubr.bf16.vlgmr.msra.gmra.mrb[64].mxu0 %v9985_v50  ;;  %v9581_v50 = vld [vmem:[%s12358_s1 + $0x220] sm:$0xff]  }
  0xb8   : > { %9375 = vmatpush3.bf16.msra.mxu0 %v10199_v37  ;;  %2212 = vmatmul.mubr.bf16.vlgmr.msra.gmra.mrb[64].mxu1 %v9987_v51  ;;  %v9582_v51 = vld [vmem:[%s12358_s1 + $0x228] sm:$0xff]  }
  0xb9   : > { %2058 = vmatprep.mubr.bf16.mxu0 %v10024_v7  ;;  %2219 = vmatprep.mubr.bf16.mxu1 %v10026_v8 }
  0xba   : > { %9376 = vmatprep.subr.bf16.mxu0 %v9578_v26 }
  0xbc   : > { %9377 = vmatpush3.bf16.msra.mxu0 %v9578_v26 }
  0xbd   : > { %9378 = vmatprep.subr.bf16.mxu0 %v9579_v58 }
  0xbf   : > { %2059 = vmatmul.mubr.bf16.gmra.mrb[68].mxu0 %v9999_v59  ;;  %v9583_v59 = vld [vmem:[%s12358_s1 + $0x230] sm:$0xff]  }
  0xc0   : > { %2220 = vmatmul.mubr.bf16.gmra.mrb[68].mxu1 %v10004_v61  ;;  %2066 = vmatprep.mubr.bf16.mxu0 %v10046_v18  ;;  %v9584_v61 = vld [vmem:[%s12358_s1 + $0x238] sm:$0xff]  }
  0xc1   : > { %2227 = vmatprep.mubr.bf16.mxu1 %v10048_v19  ;;  %9379 = vmatpush3.bf16.msra.mxu0 %v9579_v58 }
  0xc2   : > { %9380 = vmatprep.subr.bf16.mxu0 %v9580_v27 }
  0xc5   : > { %9381 = vmatpush3.bf16.msra.mxu0 %v9580_v27  ;;  %v10413_v27 = vpack.c.bf16 %v7891_v1, %v7890_v60 }
  0xc6   : > { %9382 = vmatprep.subr.bf16.mxu0 %v9581_v50 }
  0xc7   : > { %2067 = vmatmul.mubr.bf16.gmra.mrb[72].mxu0 %v10026_v8 }
  0xc8   : > { %2228 = vmatmul.mubr.bf16.gmra.mrb[72].mxu1 %v10028_v9  ;;  %2074 = vmatprep.mubr.bf16.mxu0 %v10068_v29 }
  0xc9   : > { %2235 = vmatprep.mubr.bf16.mxu1 %v10070_v30  ;;  %9383 = vmatpush3.bf16.msra.mxu0 %v9581_v50 }
  0xca   : > { %9384 = vmatprep.subr.bf16.mxu0 %v9582_v51 }
  0xcd   : > { %9385 = vmatpush3.bf16.msra.mxu0 %v9582_v51 }
  0xce   : > { %9386 = vmatprep.subr.bf16.mxu0 %v9583_v59 }
  0xcf   : > { %2075 = vmatmul.mubr.bf16.gmra.mrb[76].mxu0 %v10048_v19 }
  0xd0   : > { %2236 = vmatmul.mubr.bf16.gmra.mrb[76].mxu1 %v10050_v20  ;;  %2082 = vmatprep.mubr.bf16.mxu0 %v10096_v42 }
  0xd1   : > { %2243 = vmatprep.mubr.bf16.mxu1 %v10098_v43  ;;  %9387 = vmatpush3.bf16.msra.mxu0 %v9583_v59 }
  0xd2   : > { %9388 = vmatprep.subr.bf16.mxu0 %v9584_v61 }
  0xd5   : > { %9389 = vmatpush3.bf16.msra.mxu0 %v9584_v61 }
  0xd7   : > { %2083 = vmatmul.mubr.bf16.gmra.mrb[80].mxu0 %v10070_v30 }
  0xd8   : > { %2244 = vmatmul.mubr.bf16.gmra.mrb[80].mxu1 %v10075_v32  ;;  %2090 = vmatprep.mubr.bf16.mxu0 %v10130_v62 }
  0xd9   : > { %2251 = vmatprep.mubr.bf16.mxu1 %v10132_v63 }
  0xdf   : > { %2091 = vmatmul.mubr.bf16.gmra.mrb[84].mxu0 %v10098_v43 }
  0xe0   : > { %2252 = vmatmul.mubr.bf16.gmra.mrb[84].mxu1 %v10103_v45  ;;  %2098 = vmatprep.mubr.bf16.mxu0 %v10164_v16 }
  0xe1   : > { %2259 = vmatprep.mubr.bf16.mxu1 %v10166_v17 }
  0xe7   : > { %2099 = vmatmul.mubr.bf16.gmra.mrb[88].mxu0 %v10132_v63 }
  0xe8   : > { %2260 = vmatmul.mubr.bf16.gmra.mrb[88].mxu1 %v10134_v0  ;;  %2106 = vmatprep.mubr.bf16.mxu0 %v10192_v35 }
  0xe9   : > { %2267 = vmatprep.mubr.bf16.mxu1 %v10194_v36 }
  0xef   : > { %2107 = vmatmul.mubr.bf16.gmra.mrb[92].mxu0 %v10166_v17 }
  0xf0   : > { %2268 = vmatmul.mubr.bf16.gmra.mrb[92].mxu1 %v10168_v21  ;;  %2114 = vmatprep.mubr.bf16.mxu0 %v10220_v52 }
  0xf1   : > { %2275 = vmatprep.mubr.bf16.mxu1 %v10222_v53 }
  0xf7   : > { %2115 = vmatmul.mubr.bf16.gmra.mrb[96].mxu0 %v10194_v36 }
  0xf8   : > { %2276 = vmatmul.mubr.bf16.gmra.mrb[96].mxu1 %v10201_v38  ;;  %2122 = vmatprep.mubr.bf16.mxu0 %v10236_v3 }
  0xf9   : > { %2283 = vmatprep.mubr.bf16.mxu1 %v10238_v4 }
  0xff   : > { %2123 = vmatmul.mubr.bf16.gmra.mrb[100].mxu0 %v10222_v53 }
 0x100   : > { %2284 = vmatmul.mubr.bf16.gmra.mrb[100].mxu1 %v10224_v54  ;;  %2130 = vmatprep.mubr.bf16.mxu0 %v10252_v15 }
 0x101   : > { %2291 = vmatprep.mubr.bf16.mxu1 %v10254_v22 }
 0x107   : > { %2131 = vmatmul.mubr.bf16.gmra.mrb[104].mxu0 %v10238_v4 }
 0x108   : > { %2292 = vmatmul.mubr.bf16.gmra.mrb[104].mxu1 %v10240_v5  ;;  %2138 = vmatprep.mubr.bf16.mxu0 %v10268_v33 }
 0x109   : > { %2299 = vmatprep.mubr.bf16.mxu1 %v10270_v34 }
 0x10a   : > { %v8446_v7 = vpop.f32.mrb[0].mxu0 }
 0x10b   : > { %v8558_v8 = vpop.f32.mrb[0].mxu1  ;;  %v8447_v9 = vpop.f32.mrb[1].mxu0 }
 0x10c   : > { %v8448_v18 = vadd.f32 %v8447_v9, %v8446_v7  ;;  %v8559_v19 = vpop.f32.mrb[1].mxu1  ;;  %v8449_v20 = vpop.f32.mrb[2].mxu0  ;;  %v7922_v9 = vld [vmem:[%s9959_s21 + $0x198] sm:$0xff] }
 0x10d   : > { %v8560_v29 = vadd.f32 %v8559_v19, %v8558_v8  ;;  %v8561_v30 = vpop.f32.mrb[2].mxu1  ;;  %v8450_v32 = vpop.f32.mrb[3].mxu0  ;;  %v7956_v19 = vld [vmem:[%s9959_s21 + $0x32] sm:$0xff] }
 0x10e   : > { %v8451_v42 = vadd.f32 %v8450_v32, %v8449_v20  ;;  %v8562_v43 = vpop.f32.mrb[3].mxu1  ;;  %v7957_v20 = vld [vmem:[%s9959_s21 + $0x3a] sm:$0xff] }
 0x10f   : > { %v8563_v45 = vadd.f32 %v8562_v43, %v8561_v30  ;;  %2139 = vmatmul.mubr.bf16.gmra.mrb[108].mxu0 %v10254_v22  ;;  %v10385_v62 = vadd.f32 %v8560_v29, %v8448_v18  ;;  %v7952_v22 = vld [vmem:[%s9959_s21 + $0x181] sm:$0xff] }
 0x110   : > { %2300 = vmatmul.mubr.bf16.gmra.mrb[108].mxu1 %v10256_v23  ;;  %2146 = vmatprep.mubr.bf16.mxu0 %v10284_v49  ;;  %v7953_v23 = vld [vmem:[%s9959_s21 + $0x189] sm:$0xff]  ;;  %v7923_v18 = vld [vmem:[%s9959_s21 + $0x1a0] sm:$0xff] }
 0x111   : > { %2307 = vmatprep.mubr.bf16.mxu1 %v10286_v55  ;;  %v10390_v63 = vadd.f32 %v8563_v45, %v8451_v42  ;;  %v894_v46 = vpack.c.bf16 %v7953_v23, %v7952_v22  ;;  %v7961_v22 = vld [vmem:[%s9959_s21 + $0x6a] sm:$0xff] }
 0x112   : > { %v8452_v0 = vpop.f32.mrb[4].mxu0 }
 0x113   : > { %v8564_v16 = vpop.f32.mrb[4].mxu1  ;;  %v8453_v17 = vpop.f32.mrb[5].mxu0 }
 0x114   : > { %v8454_v21 = vadd.f32 %v8453_v17, %v8452_v0  ;;  %v8565_v35 = vpop.f32.mrb[5].mxu1  ;;  %v8455_v36 = vpop.f32.mrb[6].mxu0  ;;  %v831_v0 = vpack.c.bf16 %v7923_v18, %v7922_v9 }
 0x115   : > { %v8566_v37 = vadd.f32 %v8565_v35, %v8564_v16  ;;  %v8567_v38 = vpop.f32.mrb[6].mxu1  ;;  %v8456_v52 = vpop.f32.mrb[7].mxu0 }
 0x116   : > { %v8457_v53 = vadd.f32 %v8456_v52, %v8455_v36  ;;  %v8568_v54 = vpop.f32.mrb[7].mxu1 }
 0x117   : > { %v8569_v3 = vadd.f32 %v8568_v54, %v8567_v38  ;;  %2147 = vmatmul.mubr.bf16.gmra.mrb[112].mxu0 %v10270_v34  ;;  %v10393_v4 = vadd.f32 %v8566_v37, %v8454_v21  ;;  %v9585_v37 = vld [vmem:[%s12361_s4 + $0x40] sm:$0xff]   ;;  %v7958_v54 = vld [vmem:[%s9959_s21 + $0x4a] sm:$0xff] }
 0x118   : > { %2308 = vmatmul.mubr.bf16.gmra.mrb[112].mxu1 %v10272_v39  ;;  %2154 = vmatprep.mubr.bf16.mxu0 %v10300_v11  ;;  %v7955_v11 = vld [vmem:[%s9959_s21 + $0x1a1] sm:$0xff] }
 0x119   : > { %2315 = vmatprep.mubr.bf16.mxu1 %v10302_v12  ;;  %v10398_v5 = vadd.f32 %v8569_v3, %v8457_v53  ;;  %v895_v51 = vpack.c.bf16 %v7955_v11, %v7954_v10  ;;  %v9586_v38 = vld [vmem:[%s12361_s4] sm:$0xff]   ;;  %v7959_v3 = vld [vmem:[%s9959_s21 + $0x52] sm:$0xff]  ;;  %8902 = vmatprep.subr.bf16.mxu1 %v9585_v37 }
 0x11a   : > { %v8458_v15 = vpop.f32.mrb[8].mxu0  ;;  %8903 = vmatpush3.bf16.msra.mxu1 %v9586_v38  ;;  %v7962_v10 = vld [vmem:[%s9959_s21 + $0x7a] sm:$0xff]  ;;  %v7963_v11 = vld [vmem:[%s9959_s21 + $0x82] sm:$0xff] }
 0x11b   : > { %v8570_v28 = vpop.f32.mrb[8].mxu1  ;;  %v8459_v31 = vpop.f32.mrb[9].mxu0 }
 0x11c   : > { %v8460_v33 = vadd.f32 %v8459_v31, %v8458_v15  ;;  %v8571_v40 = vpop.f32.mrb[9].mxu1  ;;  %v8461_v34 = vpop.f32.mrb[10].mxu0  ;;  %v7960_v15 = vld [vmem:[%s9959_s21 + $0x62] sm:$0xff] }
 0x11d   : > { %v8572_v41 = vadd.f32 %v8571_v40, %v8570_v28  ;;  %v8573_v44 = vpop.f32.mrb[10].mxu1  ;;  %v8462_v39 = vpop.f32.mrb[11].mxu0  ;;  %v945_v40 = vpack.c.bf16 %v7959_v3, %v7958_v54 }
 0x11e   : > { %v8463_v47 = vadd.f32 %v8462_v39, %v8461_v34  ;;  %v8574_v48 = vpop.f32.mrb[11].mxu1  ;;  %v946_v39 = vpack.c.bf16 %v7961_v22, %v7960_v15 }
 0x11f   : > { %v8575_v49 = vadd.f32 %v8574_v48, %v8573_v44  ;;  %2155 = vmatmul.mubr.bf16.gmra.mrb[116].mxu0 %v10286_v55  ;;  %v10403_v57 = vadd.f32 %v8572_v41, %v8460_v33 }
 0x120   : > { %2316 = vmatmul.mubr.bf16.gmra.mrb[116].mxu1 %v10288_v56  ;;  %2162 = vmatprep.mubr.bf16.mxu0 %v10312_v25 }
 0x121   : > { %2323 = vmatprep.mubr.bf16.mxu1 %v894_v46  ;;  %v10409_v2 = vadd.f32 %v8575_v49, %v8463_v47 }
 0x122   : > { %v8464_v6 = vpop.f32.mrb[12].mxu0 }
 0x123   : > { %v8576_v14 = vpop.f32.mrb[12].mxu1  ;;  %v8465_v24 = vpop.f32.mrb[13].mxu0 }
 0x124   : > { %v8466_v26 = vadd.f32 %v8465_v24, %v8464_v6  ;;  %v8577_v58 = vpop.f32.mrb[13].mxu1  ;;  %v8467_v55 = vpop.f32.mrb[14].mxu0  ;;  %v7965_v24 = vld [vmem:[%s9959_s21 + $0x9a] sm:$0xff] }
 0x125   : > { %v8578_v56 = vadd.f32 %v8577_v58, %v8576_v14  ;;  %v8579_v25 = vpop.f32.mrb[14].mxu1  ;;  %v8468_v50 = vpop.f32.mrb[15].mxu0  ;;  %v7964_v14 = vld [vmem:[%s9959_s21 + $0x92] sm:$0xff] }
 0x126   : > { %v8469_v59 = vadd.f32 %v8468_v50, %v8467_v55  ;;  %v8580_v61 = vpop.f32.mrb[15].mxu1 }
 0x127   : > { %v8581_v7 = vadd.f32 %v8580_v61, %v8579_v25  ;;  %2163 = vmatmul.mubr.bf16.gmra.mrb[120].mxu0 %v10302_v12  ;;  %v10416_v8 = vadd.f32 %v8578_v56, %v8466_v26  ;;  %v947_v25 = vpack.c.bf16 %v7963_v11, %v7962_v10  ;;  %v948_v61 = vpack.c.bf16 %v7965_v24, %v7964_v14 }
 0x128   : > { %2324 = vmatmul.mubr.bf16.gmra.mrb[120].mxu1 %v10304_v13  ;;  %2170 = vmatprep.mubr.bf16.mxu0 %v10413_v27  ;;  %v944_v13 = vpack.c.bf16 %v7957_v20, %v7956_v19 }
 0x129   : > { %2331 = vmatprep.mubr.bf16.mxu1 %v895_v51  ;;  %v10424_v29 = vadd.f32 %v8581_v7, %v8469_v59 }
 0x12a   : > { %v8470_v30 = vpop.f32.mrb[16].mxu0 }
 0x12b   : > { %v8582_v32 = vpop.f32.mrb[16].mxu1  ;;  %v8471_v42 = vpop.f32.mrb[17].mxu0 }
 0x12c   : > { %v8472_v43 = vadd.f32 %v8471_v42, %v8470_v30  ;;  %v8583_v45 = vpop.f32.mrb[17].mxu1  ;;  %v8473_v12 = vpop.f32.mrb[18].mxu0  ;;  %v9587_v30 = vld [vmem:[%s12361_s4 + $0x48] sm:$0xff]  }
 0x12d   : > { %v8584_v16 = vadd.f32 %v8583_v45, %v8582_v32  ;;  %v8585_v17 = vpop.f32.mrb[18].mxu1  ;;  %v8474_v21 = vpop.f32.mrb[19].mxu0  ;;  %v9588_v32 = vld [vmem:[%s12361_s4 + $0x8] sm:$0xff]   ;;  %8904 = vmatprep.subr.bf16.mxu1 %v9587_v30 }
 0x12e   : > { %v8475_v35 = vadd.f32 %v8474_v21, %v8473_v12  ;;  %v8586_v36 = vpop.f32.mrb[19].mxu1  ;;  %v7966_v45 = vld [vmem:[%s9959_s21 + $0xaa] sm:$0xff]  ;;  %v7967_v12 = vld [vmem:[%s9959_s21 + $0xb2] sm:$0xff]  ;;  %8905 = vmatpush3.bf16.msra.mxu1 %v9588_v32 }
 0x12f   : > { %v8587_v52 = vadd.f32 %v8586_v36, %v8585_v17  ;;  %2171 = vmatmul.mubr.bf16.gmra.mrb[124].mxu0 %v894_v46  ;;  %v10432_v53 = vadd.f32 %v8584_v16, %v8472_v43  ;;  %v949_v36 = vpack.c.bf16 %v7967_v12, %v7966_v45 }
 0x130   : > { %2332 = vmatmul.mubr.bf16.gmra.mrb[124].mxu1 %v831_v0  ;;  %9390 = vmatprep.mubr.bf16.mxu0 %v944_v13  ;;  %v7968_v0 = vld [vmem:[%s9959_s21 + $0xc2] sm:$0xff]  ;;  %v7969_v13 = vld [vmem:[%s9959_s21 + $0xca] sm:$0xff] }
 0x131   : > { %v10438_v23 = vadd.f32 %v8587_v52, %v8475_v35  ;;  %v950_v54 = vpack.c.bf16 %v7969_v13, %v7968_v0 }
 0x132   : > { %v8476_v28 = vpop.f32.mrb[20].mxu0 }
 0x133   : > { %v8588_v31 = vpop.f32.mrb[20].mxu1  ;;  %v8477_v33 = vpop.f32.mrb[21].mxu0 }
 0x134   : > { %v8478_v34 = vadd.f32 %v8477_v33, %v8476_v28  ;;  %v8589_v41 = vpop.f32.mrb[21].mxu1  ;;  %v8479_v44 = vpop.f32.mrb[22].mxu0 }
 0x135   : > { %v8590_v46 = vadd.f32 %v8589_v41, %v8588_v31  ;;  %v8591_v47 = vpop.f32.mrb[22].mxu1  ;;  %v8480_v48 = vpop.f32.mrb[23].mxu0  ;;  %v7971_v41 = vld [vmem:[%s9959_s21 + $0xe2] sm:$0xff] }
 0x136   : > { %v8481_v49 = vadd.f32 %v8480_v48, %v8479_v44  ;;  %v8592_v60 = vpop.f32.mrb[23].mxu1  ;;  %v7972_v44 = vld [vmem:[%s9959_s21 + $0xf2] sm:$0xff] }
 0x137   : > { %v8593_v1 = vadd.f32 %v8592_v60, %v8591_v47  ;;  %9391 = vmatmul.mubr.bf16.vlgmr.msra.gmra.mrb[128].mxu0 %v945_v40  ;;  %v10440_v6 = vadd.f32 %v8590_v46, %v8478_v34  ;;  %v7970_v34 = vld [vmem:[%s9959_s21 + $0xda] sm:$0xff] }
 0x138   : > { %9394 = vmatprep.mubr.bf16.mxu0 %v946_v39  ;;  %v7973_v39 = vld [vmem:[%s9959_s21 + $0xfa] sm:$0xff]  ;;  %v951_v60 = vpack.c.bf16 %v7971_v41, %v7970_v34 }
 0x139   : > { %v10446_v26 = vadd.f32 %v8593_v1, %v8481_v49  ;;  %v952_v14 = vpack.c.bf16 %v7973_v39, %v7972_v44 }
 0x13a   : > { %v8482_v58 = vpop.f32.mrb[24].mxu0 }
 0x13b   : > { %v8594_v55 = vpop.f32.mrb[24].mxu1  ;;  %v8483_v56 = vpop.f32.mrb[25].mxu0 }
 0x13c   : > { %v8484_v50 = vadd.f32 %v8483_v56, %v8482_v58  ;;  %v8595_v51 = vpop.f32.mrb[25].mxu1  ;;  %v8485_v59 = vpop.f32.mrb[26].mxu0 }
 0x13d   : > { %v8596_v7 = vadd.f32 %v8595_v51, %v8594_v55  ;;  %v8597_v9 = vpop.f32.mrb[26].mxu1  ;;  %v8486_v18 = vpop.f32.mrb[27].mxu0  ;;  %v9590_v51 = vld [vmem:[%s12361_s4 + $0x10] sm:$0xff]  }
 0x13e   : > { %v8487_v19 = vadd.f32 %v8486_v18, %v8485_v59  ;;  %v8598_v20 = vpop.f32.mrb[27].mxu1 }
 0x13f   : > { %v8599_v42 = vadd.f32 %v8598_v20, %v8597_v9  ;;  %9395 = vmatmul.mubr.bf16.gmra.mrb[132].mxu0 %v947_v25  ;;  %v10454_v43 = vadd.f32 %v8596_v7, %v8484_v50  ;;  %v9589_v50 = vld [vmem:[%s12361_s4 + $0x50] sm:$0xff]  }
 0x140   : > { %9398 = vmatprep.mubr.bf16.mxu0 %v948_v61  ;;  %v7974_v7 = vld [vmem:[%s9959_s21 + $0x10a] sm:$0xff]  ;;  %v7975_v9 = vld [vmem:[%s9959_s21 + $0x112] sm:$0xff]  ;;  %8906 = vmatprep.subr.bf16.mxu1 %v9589_v50 }
 0x141   : > { %v10460_v16 = vadd.f32 %v8599_v42, %v8487_v19  ;;  %v7976_v19 = vld [vmem:[%s9959_s21 + $0x122] sm:$0xff]  ;;  %v7977_v20 = vld [vmem:[%s9959_s21 + $0x12a] sm:$0xff]  ;;  %8907 = vmatpush3.bf16.msra.mxu1 %v9590_v51  ;;  %v953_v45 = vpack.c.bf16 %v7975_v9, %v7974_v7  ;;  %v7983_v50 = vld [vmem:[%s9959_s21 + $0x172] sm:$0xff] }
 0x142   : > { %v8488_v17 = vpop.f32.mrb[28].mxu0 }
 0x143   : > { %v8600_v21 = vpop.f32.mrb[28].mxu1  ;;  %v8489_v35 = vpop.f32.mrb[29].mxu0 }
 0x144   : > { %v8490_v37 = vadd.f32 %v8489_v35, %v8488_v17  ;;  %v8601_v38 = vpop.f32.mrb[29].mxu1  ;;  %v8491_v52 = vpop.f32.mrb[30].mxu0  ;;  %v954_v17 = vpack.c.bf16 %v7977_v20, %v7976_v19 }
 0x145   : > { %v8602_v3 = vadd.f32 %v8601_v38, %v8600_v21  ;;  %v8603_v15 = vpop.f32.mrb[30].mxu1  ;;  %v8492_v22 = vpop.f32.mrb[31].mxu0 }
 0x146   : > { %v8493_v28 = vadd.f32 %v8492_v22, %v8491_v52  ;;  %v8604_v31 = vpop.f32.mrb[31].mxu1 }
 0x147   : > { %v8605_v33 = vadd.f32 %v8604_v31, %v8603_v15  ;;  %9399 = vmatmul.mubr.bf16.gmra.mrb[136].mxu0 %v949_v36  ;;  %v10462_v40 = vadd.f32 %v8602_v3, %v8490_v37  ;;  %v7978_v3 = vld [vmem:[%s9959_s21 + $0x13a] sm:$0xff]  ;;  %v7979_v15 = vld [vmem:[%s9959_s21 + $0x142] sm:$0xff] }
 0x148   : > { %9402 = vmatprep.mubr.bf16.mxu0 %v950_v54  ;;  %v7981_v31 = vld [vmem:[%s9959_s21 + $0x15a] sm:$0xff]  ;;  %v955_v44 = vpack.c.bf16 %v7979_v15, %v7978_v3 }
 0x149   : > { %v10468_v46 = vadd.f32 %v8605_v33, %v8493_v28  ;;  %v7980_v28 = vld [vmem:[%s9959_s21 + $0x152] sm:$0xff] }
 0x14a   : > { %v8494_v47 = vpop.f32.mrb[32].mxu0 }
 0x14b   : > { %v8606_v48 = vpop.f32.mrb[32].mxu1  ;;  %v8495_v49 = vpop.f32.mrb[33].mxu0 }
 0x14c   : > { %v8496_v1 = vadd.f32 %v8495_v49, %v8494_v47  ;;  %v8607_v10 = vpop.f32.mrb[33].mxu1  ;;  %v8497_v11 = vpop.f32.mrb[34].mxu0  ;;  %v956_v49 = vpack.c.bf16 %v7981_v31, %v7980_v28 }
 0x14d   : > { %v8608_v24 = vadd.f32 %v8607_v10, %v8606_v48  ;;  %v8609_v58 = vpop.f32.mrb[34].mxu1  ;;  %v8498_v55 = vpop.f32.mrb[35].mxu0 }
 0x14e   : > { %v8499_v56 = vadd.f32 %v8498_v55, %v8497_v11  ;;  %v8610_v25 = vpop.f32.mrb[35].mxu1 }
 0x14f   : > { %v10476_v59 = vadd.f32 %v8608_v24, %v8496_v1  ;;  %v8611_v61 = vadd.f32 %v8610_v25, %v8609_v58  ;;  %9403 = vmatmul.mubr.bf16.gmra.mrb[140].mxu0 %v951_v60  ;;  %v9591_v24 = vld [vmem:[%s12361_s4 + $0x58] sm:$0xff]   ;;  %v7982_v25 = vld [vmem:[%s9959_s21 + $0x16a] sm:$0xff] }
 0x150   : > { %9406 = vmatprep.mubr.bf16.mxu0 %v952_v14  ;;  %v9592_v58 = vld [vmem:[%s12361_s4 + $0x18] sm:$0xff]   ;;  %8908 = vmatprep.subr.bf16.mxu1 %v9591_v24  ;;  %v957_v19 = vpack.c.bf16 %v7983_v50, %v7982_v25 }
 0x151   : > { %v10480_v18 = vadd.f32 %v8611_v61, %v8499_v56  ;;  %8909 = vmatpush3.bf16.msra.mxu1 %v9592_v58 }
 0x152   : > { %v8500_v30 = vpop.f32.mrb[36].mxu0 }
 0x153   : > { %v8612_v32 = vpop.f32.mrb[36].mxu1  ;;  %v8501_v42 = vpop.f32.mrb[37].mxu0 }
 0x154   : > { %v8502_v12 = vadd.f32 %v8501_v42, %v8500_v30  ;;  %v8613_v0 = vpop.f32.mrb[37].mxu1  ;;  %v8503_v13 = vpop.f32.mrb[38].mxu0 }
 0x155   : > { %v8614_v21 = vadd.f32 %v8613_v0, %v8612_v32  ;;  %v8615_v35 = vpop.f32.mrb[38].mxu1  ;;  %v8504_v36 = vpop.f32.mrb[39].mxu0 }
 0x156   : > { %v8505_v37 = vadd.f32 %v8504_v36, %v8503_v13  ;;  %v8616_v38 = vpop.f32.mrb[39].mxu1  ;;  %v7987_v36 = vld [vmem:[%s9959_s21 + $0x1a2] sm:$0xff] }
 0x157   : > { %v10484_v52 = vadd.f32 %v8614_v21, %v8502_v12  ;;  %v8617_v54 = vadd.f32 %v8616_v38, %v8615_v35  ;;  %9407 = vmatmul.mubr.bf16.gmra.mrb[144].mxu0 %v953_v45  ;;  %v7986_v35 = vld [vmem:[%s9959_s21 + $0x19a] sm:$0xff] }
 0x158   : > { %9410 = vmatprep.mubr.bf16.mxu0 %v954_v17  ;;  %v959_v15 = vpack.c.bf16 %v7987_v36, %v7986_v35 }
 0x159   : > { %v10488_v22 = vadd.f32 %v8617_v54, %v8505_v37 }
 0x15a   : > { %v8506_v33 = vpop.f32.mrb[40].mxu0 }
 0x15b   : > { %v8618_v34 = vpop.f32.mrb[40].mxu1  ;;  %v8507_v41 = vpop.f32.mrb[41].mxu0 }
 0x15c   : > { %v8508_v39 = vadd.f32 %v8507_v41, %v8506_v33  ;;  %v8619_v47 = vpop.f32.mrb[41].mxu1  ;;  %v8509_v48 = vpop.f32.mrb[42].mxu0 }
 0x15d   : > { %v8620_v60 = vadd.f32 %v8619_v47, %v8618_v34  ;;  %v8621_v1 = vpop.f32.mrb[42].mxu1  ;;  %v8510_v10 = vpop.f32.mrb[43].mxu0 }
 0x15e   : > { %v8511_v11 = vadd.f32 %v8510_v10, %v8509_v48  ;;  %v8622_v14 = vpop.f32.mrb[43].mxu1  ;;  %v9594_v48 = vld [vmem:[%s12361_s4 + $0x20] sm:$0xff]  }
 0x15f   : > { %v10498_v55 = vadd.f32 %v8620_v60, %v8508_v39  ;;  %v8623_v56 = vadd.f32 %v8622_v14, %v8621_v1  ;;  %9411 = vmatmul.mubr.bf16.gmra.mrb[148].mxu0 %v955_v44 }
 0x160   : > { %9414 = vmatprep.mubr.bf16.mxu0 %v956_v49 }
 0x161   : > { %v10502_v51 = vadd.f32 %v8623_v56, %v8511_v11 }
 0x162   : > { %v8512_v61 = vpop.f32.mrb[44].mxu0 }
 0x163   : > { %v8624_v7 = vpop.f32.mrb[44].mxu1  ;;  %v8513_v9 = vpop.f32.mrb[45].mxu0 }
 0x164   : > { %v8514_v20 = vadd.f32 %v8513_v9, %v8512_v61  ;;  %v8625_v30 = vpop.f32.mrb[45].mxu1  ;;  %v8515_v32 = vpop.f32.mrb[46].mxu0 }
 0x165   : > { %v8626_v42 = vadd.f32 %v8625_v30, %v8624_v7  ;;  %v8627_v45 = vpop.f32.mrb[46].mxu1  ;;  %v8516_v12 = vpop.f32.mrb[47].mxu0 }
 0x166   : > { %v8517_v0 = vadd.f32 %v8516_v12, %v8515_v32  ;;  %v8628_v13 = vpop.f32.mrb[47].mxu1 }
 0x167   : > { %v10504_v17 = vadd.f32 %v8626_v42, %v8514_v20  ;;  %v8629_v21 = vadd.f32 %v8628_v13, %v8627_v45  ;;  %9415 = vmatmul.mubr.bf16.gmra.mrb[152].mxu0 %v957_v19 }
 0x168   : > { %9418 = vmatprep.mubr.bf16.mxu0 %v10413_v27  ;;  %v9593_v27 = vld [vmem:[%s12361_s4 + $0x60] sm:$0xff]  }
 0x169   : > { %v10509_v37 = vadd.f32 %v8629_v21, %v8517_v0  ;;  %8910 = vmatprep.subr.bf16.mxu1 %v9593_v27 }
 0x16a   : > { %v8518_v38 = vpop.f32.mrb[48].mxu0  ;;  %8911 = vmatpush3.bf16.msra.mxu1 %v9594_v48 }
 0x16b   : > { %v8630_v54 = vpop.f32.mrb[48].mxu1  ;;  %v8519_v3 = vpop.f32.mrb[49].mxu0 }
 0x16c   : > { %v8520_v28 = vadd.f32 %v8519_v3, %v8518_v38  ;;  %v8631_v31 = vpop.f32.mrb[49].mxu1  ;;  %v8521_v33 = vpop.f32.mrb[50].mxu0  ;;  %v9595_v3 = vld [vmem:[%s12361_s4 + $0x68] sm:$0xff]  }
 0x16d   : > { %v8632_v34 = vadd.f32 %v8631_v31, %v8630_v54  ;;  %v8633_v41 = vpop.f32.mrb[50].mxu1  ;;  %v8522_v44 = vpop.f32.mrb[51].mxu0  ;;  %8912 = vmatprep.subr.bf16.mxu1 %v9595_v3 }
 0x16e   : > { %v8523_v39 = vadd.f32 %v8522_v44, %v8521_v33  ;;  %v8634_v47 = vpop.f32.mrb[51].mxu1 }
 0x16f   : > { %v10517_v49 = vadd.f32 %v8632_v34, %v8520_v28  ;;  %v8635_v60 = vadd.f32 %v8634_v47, %v8633_v41  ;;  %9419 = vmatmul.mubr.bf16.gmra.mrb[156].mxu0 %v959_v15  ;;  %v9596_v15 = vld [vmem:[%s12361_s4 + $0x28] sm:$0xff]  }
 0x170   : > { %8913 = vmatpush3.bf16.msra.mxu1 %v9596_v15 }
 0x171   : > { %v10519_v1 = vadd.f32 %v8635_v60, %v8523_v39 }
 0x172   : > { %v8524_v10 = vpop.f32.mrb[52].mxu0 }
 0x173   : > { %v8636_v11 = vpop.f32.mrb[52].mxu1  ;;  %v8525_v14 = vpop.f32.mrb[53].mxu0 }
 0x174   : > { %v8526_v24 = vadd.f32 %v8525_v14, %v8524_v10  ;;  %v8637_v58 = vpop.f32.mrb[53].mxu1  ;;  %v8527_v56 = vpop.f32.mrb[54].mxu0 }
 0x175   : > { %v8638_v25 = vadd.f32 %v8637_v58, %v8636_v11  ;;  %v8639_v50 = vpop.f32.mrb[54].mxu1  ;;  %v8528_v61 = vpop.f32.mrb[55].mxu0 }
 0x176   : > { %v8529_v7 = vadd.f32 %v8528_v61, %v8527_v56  ;;  %v8640_v9 = vpop.f32.mrb[55].mxu1  ;;  %v294_v56 = vld [vmem:[#allocation3 + $0x18] sm:$0x1] }
 0x177   : > { %v10521_v19 = vadd.f32 %v8638_v25, %v8526_v24  ;;  %v8641_v20 = vadd.f32 %v8640_v9, %v8639_v50  ;;  %v9597_v25 = vld [vmem:[%s12361_s4 + $0xc0] sm:$0xff]  }
 0x178   : > { %9014 = vmatprep.subr.bf16.mxu0 %v9597_v25 }
 0x179   : > { %v10523_v30 = vadd.f32 %v8641_v20, %v8529_v7  ;;  %v9599_v7 = vld [vmem:[%s12361_s4 + $0x80] sm:$0xff]   ;;  %v295_v20 = vsel %vm10544_vm2, 0, %v294_v56 }
 0x17a   : > { %v8530_v32 = vpop.f32.mrb[56].mxu0  ;;  %296 = vst [vmem:[#allocation3 + $0x18] sm:$0x1] %v295_v20  ;;  %9015 = vmatpush3.bf16.msra.mxu0 %v9599_v7  ;;  %v350_v56 = vld [vmem:[#allocation3 + $0x20] sm:$0x1] }
 0x17b   : > { %v8642_v42 = vpop.f32.mrb[56].mxu1  ;;  %v8531_v45 = vpop.f32.mrb[57].mxu0  ;;  %v351_v20 = vsel %vm10571_vm4, 0, %v350_v56  ;;  %v9600_v56 = vld [vmem:[%s12361_s4 + $0x30] sm:$0xff]  }
 0x17c   : > { %v8532_v12 = vadd.f32 %v8531_v45, %v8530_v32  ;;  %v8643_v0 = vpop.f32.mrb[57].mxu1  ;;  %v8533_v13 = vpop.f32.mrb[58].mxu0  ;;  %352 = vst [vmem:[#allocation3 + $0x20] sm:$0x1] %v351_v20  ;;  %v9605_v20 = vld [vmem:[%s12361_s4 + $0xd8] sm:$0xff]  }
 0x17d   : > { %v8644_v21 = vadd.f32 %v8643_v0, %v8642_v42  ;;  %v8645_v35 = vpop.f32.mrb[58].mxu1  ;;  %v8534_v36 = vpop.f32.mrb[59].mxu0 }
 0x17e   : > { %v8535_v38 = vadd.f32 %v8534_v36, %v8533_v13  ;;  %v8646_v54 = vpop.f32.mrb[59].mxu1  ;;  %v9601_v13 = vld [vmem:[%s12361_s4 + $0xc8] sm:$0xff]  }
 0x17f   : > { %v10531_v28 = vadd.f32 %v8644_v21, %v8532_v12  ;;  %v8647_v31 = vadd.f32 %v8646_v54, %v8645_v35  ;;  %9016 = vmatprep.subr.bf16.mxu0 %v9601_v13 }
 0x181   : > { %v10533_v33 = vadd.f32 %v8647_v31, %v8535_v38  ;;  %v9602_v38 = vld [vmem:[%s12361_s4 + $0x88] sm:$0xff]  }
 0x182   : > { %v8536_v34 = vpop.f32.mrb[60].mxu0  ;;  %9017 = vmatpush3.bf16.msra.mxu0 %v9602_v38 }
 0x183   : > { %v8648_v41 = vpop.f32.mrb[60].mxu1  ;;  %v8537_v44 = vpop.f32.mrb[61].mxu0 }
 0x184   : > { %v8538_v39 = vadd.f32 %v8537_v44, %v8536_v34  ;;  %v8649_v47 = vpop.f32.mrb[61].mxu1  ;;  %v8539_v27 = vpop.f32.mrb[62].mxu0  ;;  %v9603_v44 = vld [vmem:[%s12361_s4 + $0xd0] sm:$0xff]  }
 0x185   : > { %v8650_v48 = vadd.f32 %v8649_v47, %v8648_v41  ;;  %v8651_v60 = vpop.f32.mrb[62].mxu1  ;;  %v8540_v10 = vpop.f32.mrb[63].mxu0  ;;  %9018 = vmatprep.subr.bf16.mxu0 %v9603_v44 }
 0x186   : > { %v8541_v11 = vadd.f32 %v8540_v10, %v8539_v27  ;;  %v8652_v14 = vpop.f32.mrb[63].mxu1 }
 0x187   : > { %v10535_v24 = vadd.f32 %v8650_v48, %v8538_v39  ;;  %v8653_v58 = vadd.f32 %v8652_v14, %v8651_v60  ;;  %v9604_v39 = vld [vmem:[%s12361_s4 + $0x90] sm:$0xff]   ;;  %v291_v60 = vld [vmem:[#allocation3 + $0xc] sm:$0x1] }
 0x188   : > { %9019 = vmatpush3.bf16.msra.mxu0 %v9604_v39 }
 0x189   : > { %v10540_v50 = vadd.f32 %v8653_v58, %v8541_v11  ;;  %v292_v58 = vsel %vm10544_vm2, 0, %v291_v60  ;;  %v9598_v60 = vld [vmem:[%s12361_s4 + $0x70] sm:$0xff]   ;;  %9020 = vmatprep.subr.bf16.mxu0 %v9605_v20 }
 0x18a   : > { %v8670_v9 = vpop.f32.mrb[64].mxu0  ;;  %293 = vst [vmem:[#allocation3 + $0xc] sm:$0x1] %v292_v58  ;;  %8914 = vmatprep.subr.bf16.mxu1 %v9598_v60 }
 0x18b   : > { %v8671_v32 = vpop.f32.mrb[65].mxu0  ;;  %v8782_v42 = vpop.f32.mrb[64].mxu1  ;;  %8915 = vmatpush3.bf16.msra.mxu1 %v9600_v56 }
 0x18c   : > { %v8672_v45 = vadd.f32 %v8671_v32, %v8670_v9  ;;  %v8673_v12 = vpop.f32.mrb[66].mxu0  ;;  %v8783_v0 = vpop.f32.mrb[65].mxu1  ;;  %v347_v32 = vld [vmem:[#allocation3 + $0x14] sm:$0x1] }
 0x18d   : > { %v8674_v21 = vpop.f32.mrb[67].mxu0  ;;  %v8784_v35 = vadd.f32 %v8783_v0, %v8782_v42  ;;  %v8785_v36 = vpop.f32.mrb[66].mxu1  ;;  %v348_v0 = vsel %vm10571_vm4, 0, %v347_v32 }
 0x18e   : > { %v2053_v54 = vadd.f32 %v8672_v45, %v10385_v62  ;;  %v8675_v3 = vadd.f32 %v8674_v21, %v8673_v12  ;;  %v8786_v15 = vpop.f32.mrb[67].mxu1  ;;  %v12370_v62 = vmov 0  ;;  %349 = vst [vmem:[#allocation3 + $0x14] sm:$0x1] %v348_v0 }
 0x18f   : > { %v8787_v31 = vadd.f32 %v8786_v15, %v8785_v36  ;;  %v12371_v62 = vsel %vm10571_vm4, 4294967295, %v12370_v62  ;;  %v9772_v36 = vmov 0  }
 0x190   : > { %v2056_v34 = vadd.f32 %v8675_v3, %v10390_v63  ;;  %v10561_v41 = vadd.f32 %v8784_v35, %v2053_v54  ;;  %12372 = vst [vmem:[#allocation7_spill] sm:$0xff] %v12371_v62  ;;  %278 = vst [vmem:[#allocation3] sm:$0xf] %v9772_v36  ;;  %v300_v54 = vld [vmem:[#allocation3 + $0x30] sm:$0x1] }
 0x191   : > { %279 = vst [vmem:[#allocation3 + $0x4] sm:$0xf] %v9772_v36  ;;  %280 = vst [vmem:[#allocation3 + $0x8] sm:$0x1] %v9772_v36 }
 0x192   : > { %v8676_v47 = vpop.f32.mrb[68].mxu0  ;;  %v10575_v27 = vadd.f32 %v8787_v31, %v2056_v34  ;;  %282 = vst [vmem:[#allocation3 + $0xcc] sm:$0xf] %v9772_v36  ;;  %283 = vst [vmem:[#allocation3 + $0xd0] sm:$0xf] %v9772_v36  ;;  %v301_v31 = vsel %vm10544_vm2, 0, %v300_v54 }
 0x193   : > { %v8677_v63 = vpop.f32.mrb[69].mxu0  ;;  %v8788_v48 = vpop.f32.mrb[68].mxu1  ;;  %284 = vst [vmem:[#allocation3 + $0xd4] sm:$0x1] %v9772_v36  ;;  %v297_v34 = vld [vmem:[#allocation3 + $0x24] sm:$0x1] }
 0x194   : > { %v8678_v10 = vadd.f32 %v8677_v63, %v8676_v47  ;;  %v8679_v11 = vpop.f32.mrb[70].mxu0  ;;  %v8789_v14 = vpop.f32.mrb[69].mxu1  ;;  %302 = vst [vmem:[#allocation3 + $0x30] sm:$0x1] %v301_v31 }
 0x195   : > { %v8680_v25 = vpop.f32.mrb[71].mxu0  ;;  %v8790_v7 = vadd.f32 %v8789_v14, %v8788_v48  ;;  %v8791_v9 = vpop.f32.mrb[70].mxu1 }
 0x196   : > { %v2061_v42 = vadd.f32 %v8678_v10, %v10393_v4  ;;  %v8681_v45 = vadd.f32 %v8680_v25, %v8679_v11  ;;  %v8792_v12 = vpop.f32.mrb[71].mxu1  ;;  %v298_v10 = vsel %vm10544_vm2, 0, %v297_v34  ;;  %v356_v25 = vld [vmem:[#allocation3 + $0x38] sm:$0x1] }
 0x197   : > { %v8793_v13 = vadd.f32 %v8792_v12, %v8791_v9  ;;  %299 = vst [vmem:[#allocation3 + $0x24] sm:$0x1] %v298_v10  ;;  %v357_v9 = vsel %vm10571_vm4, 0, %v356_v25  ;;  %v9607_v12 = vld [vmem:[%s12361_s4 + $0xe0] sm:$0xff]   ;;  %v353_v10 = vld [vmem:[#allocation3 + $0x2c] sm:$0x1] }
 0x198   : > { %v2064_v21 = vadd.f32 %v8681_v45, %v10398_v5  ;;  %v10585_v35 = vadd.f32 %v8790_v7, %v2061_v42  ;;  %358 = vst [vmem:[#allocation3 + $0x38] sm:$0x1] %v357_v9  ;;  %v288_v45 = vld [vmem:[#allocation3] sm:$0x1]  ;;  %v344_v31 = vld [vmem:[#allocation3 + $0x8] sm:$0x1] }
 0x199   : > { %v289_v0 = vsel %vm10544_vm2, 0, %v288_v45  ;;  %v3289_v9 = vld [vmem:[#allocation3 + $0x4] sm:$0xf] }
 0x19a   : > { %v8682_v4 = vpop.f32.mrb[72].mxu0  ;;  %v10587_v38 = vadd.f32 %v8793_v13, %v2064_v21  ;;  %290 = vst [vmem:[#allocation3] sm:$0x1] %v289_v0 }
 0x19b   : > { %v8683_v3 = vpop.f32.mrb[73].mxu0  ;;  %v8794_v15 = vpop.f32.mrb[72].mxu1 }
 0x19c   : > { %v8684_v5 = vadd.f32 %v8683_v3, %v8682_v4  ;;  %v8685_v44 = vpop.f32.mrb[74].mxu0  ;;  %v8795_v39 = vpop.f32.mrb[73].mxu1 }
 0x19d   : > { %v8686_v47 = vpop.f32.mrb[75].mxu0  ;;  %v8796_v63 = vadd.f32 %v8795_v39, %v8794_v15  ;;  %v8797_v48 = vpop.f32.mrb[74].mxu1  ;;  %v9611_v39 = vld [vmem:[%s12361_s4 + $0xe8] sm:$0xff]  }
 0x19e   : > { %v2069_v11 = vadd.f32 %v8684_v5, %v10403_v57  ;;  %v8687_v14 = vadd.f32 %v8686_v47, %v8685_v44  ;;  %v8798_v58 = vpop.f32.mrb[75].mxu1  ;;  %v9606_v57 = vld [vmem:[%s12361_s4 + $0x98] sm:$0xff]   ;;  %v345_v47 = vsel %vm10571_vm4, 0, %v344_v31 }
 0x19f   : > { %v8799_v7 = vadd.f32 %v8798_v58, %v8797_v48  ;;  %9021 = vmatpush3.bf16.msra.mxu0 %v9606_v57  ;;  %346 = vst [vmem:[#allocation3 + $0x8] sm:$0x1] %v345_v47  ;;  %v354_v58 = vsel %vm10571_vm4, 0, %v353_v10  ;;  %v303_v31 = vld [vmem:[#allocation3 + $0x3c] sm:$0x1] }
 0x1a0   : > { %v2072_v32 = vadd.f32 %v8687_v14, %v10409_v2  ;;  %v10609_v42 = vadd.f32 %v8796_v63, %v2069_v11  ;;  %v9609_v2 = vld [vmem:[%s12361_s4 + $0xa0] sm:$0xff]   ;;  %9022 = vmatprep.subr.bf16.mxu0 %v9607_v12  ;;  %v9612_v11 = vld [vmem:[%s12361_s4 + $0xa8] sm:$0xff]   ;;  %355 = vst [vmem:[#allocation3 + $0x2c] sm:$0x1] %v354_v58  ;;  %v304_v47 = vsel %vm10544_vm2, 0, %v303_v31 }
 0x1a1   : > { %305 = vst [vmem:[#allocation3 + $0x3c] sm:$0x1] %v304_v47  ;;  %v359_v58 = vld [vmem:[#allocation3 + $0x44] sm:$0x1]  ;;  %v312_v31 = vld [vmem:[#allocation3 + $0x60] sm:$0x1] }
 0x1a2   : > { %v8688_v13 = vpop.f32.mrb[76].mxu0  ;;  %v10616_v21 = vadd.f32 %v8799_v7, %v2072_v32  ;;  %v3288_v7 = vld [vmem:[#allocation3] sm:$0xf]  ;;  %v9614_v32 = vld [vmem:[%s12361_s4 + $0xb0] sm:$0xff]  }
 0x1a3   : > { %v8689_v36 = vpop.f32.mrb[77].mxu0  ;;  %v8800_v4 = vpop.f32.mrb[76].mxu1  ;;  %9023 = vmatpush3.bf16.msra.mxu0 %v9609_v2  ;;  %v3340_v45 = vshrl.u32 %v3288_v7, 16  ;;  %v3343_v12 = vshll.u32 %v3288_v7, 16  ;;  %v3349_v2 = vshll.u32 %v3289_v9, 16 }
 0x1a4   : > { %v8690_v54 = vadd.f32 %v8689_v36, %v8688_v13  ;;  %v8691_v3 = vpop.f32.mrb[78].mxu0  ;;  %v8801_v15 = vpop.f32.mrb[77].mxu1  ;;  %9024 = vmatprep.subr.bf16.mxu0 %v9611_v39  ;;  %v306_v13 = vld [vmem:[#allocation3 + $0x48] sm:$0x1]  ;;  %v3353_v36 = vshrl.u32 %v3289_v9, 16 }
 0x1a5   : > { %v8692_v34 = vpop.f32.mrb[79].mxu0  ;;  %v8802_v5 = vadd.f32 %v8801_v15, %v8800_v4  ;;  %v8803_v44 = vpop.f32.mrb[78].mxu1  ;;  %v307_v15 = vsel %vm10544_vm2, 0, %v306_v13  ;;  %v3342_v9 = vrot.slane %v3340_v45, 4  ;;  %v3351_v13 = vrot.slane %v3349_v2, 5  ;;  %v9616_v45 = vld [vmem:[%s12361_s4 + $0xb8] sm:$0xff]  }
 0x1a6   : > { %v2077_v63 = vadd.f32 %v8690_v54, %v10416_v8  ;;  %v8693_v48 = vadd.f32 %v8692_v34, %v8691_v3  ;;  %v8804_v60 = vpop.f32.mrb[79].mxu1  ;;  %v9613_v8 = vld [vmem:[%s12361_s4 + $0xf0] sm:$0xff]   ;;  %v9608_v34 = vld [vmem:[%s12361_s4 + $0x78] sm:$0xff]   ;;  %308 = vst [vmem:[#allocation3 + $0x48] sm:$0x1] %v307_v15 }
 0x1a7   : > { %v8805_v14 = vadd.f32 %v8804_v60, %v8803_v44  ;;  %9025 = vmatpush3.bf16.msra.mxu0 %v9612_v11  ;;  %8916 = vmatprep.subr.bf16.mxu1 %v9608_v34  ;;  %v3290_v7 = vld [vmem:[#allocation3 + $0x8] sm:$0x1] }
 0x1a8   : > { %v2080_v56 = vadd.f32 %v8693_v48, %v10424_v29  ;;  %v10633_v25 = vadd.f32 %v8802_v5, %v2077_v63  ;;  %9026 = vmatprep.subr.bf16.mxu0 %v9613_v8  ;;  %v362_v63 = vld [vmem:[#allocation3 + $0x50] sm:$0x1]  ;;  %v9610_v48 = vld [vmem:[%s12361_s4 + $0x38] sm:$0xff]   ;;  %v360_v8 = vsel %vm10571_vm4, 0, %v359_v58 }
 0x1a9   : > { %8917 = vmatpush3.bf16.msra.mxu1 %v9610_v48  ;;  %361 = vst [vmem:[#allocation3 + $0x44] sm:$0x1] %v360_v8  ;;  %v309_v48 = vld [vmem:[#allocation3 + $0x54] sm:$0x1] }
 0x1aa   : > { %v8694_v20 = vpop.f32.mrb[80].mxu0  ;;  %v10638_v57 = vadd.f32 %v8805_v14, %v2080_v56  ;;  %v363_v14 = vsel %vm10571_vm4, 0, %v362_v63  ;;  %v310_v58 = vsel %vm10544_vm2, 0, %v309_v48 }
 0x1ab   : > { %v8695_v29 = vpop.f32.mrb[81].mxu0  ;;  %v8806_v0 = vpop.f32.mrb[80].mxu1  ;;  %9027 = vmatpush3.bf16.msra.mxu0 %v9614_v32  ;;  %364 = vst [vmem:[#allocation3 + $0x50] sm:$0x1] %v363_v14  ;;  %v3355_v32 = vrot.slane %v3353_v36, 4  ;;  %v313_v36 = vsel %vm10544_vm2, 0, %v312_v31 }
 0x1ac   : > { %v8696_v4 = vadd.f32 %v8695_v29, %v8694_v20  ;;  %v8697_v54 = vpop.f32.mrb[82].mxu0  ;;  %v8807_v3 = vpop.f32.mrb[81].mxu1  ;;  %v9615_v29 = vld [vmem:[%s12361_s4 + $0xf8] sm:$0xff]   ;;  %314 = vst [vmem:[#allocation3 + $0x60] sm:$0x1] %v313_v36 }
 0x1ad   : > { %v8698_v5 = vpop.f32.mrb[83].mxu0  ;;  %v8808_v44 = vadd.f32 %v8807_v3, %v8806_v0  ;;  %v8809_v39 = vpop.f32.mrb[82].mxu1  ;;  %v3345_v0 = vrot.slane %v3343_v12, 5  ;;  %9028 = vmatprep.subr.bf16.mxu0 %v9615_v29  ;;  %311 = vst [vmem:[#allocation3 + $0x54] sm:$0x1] %v310_v58 }
 0x1ae   : > { %v2085_v60 = vadd.f32 %v8696_v4, %v10432_v53  ;;  %v8699_v10 = vadd.f32 %v8698_v5, %v8697_v54  ;;  %v8810_v11 = vpop.f32.mrb[83].mxu1  ;;  %v3359_v4 = vshll.u32 %v3290_v7, 16  ;;  %v3356_v5 = vor.u32 %v3355_v32, %v3351_v13 }
 0x1af   : > { %v8811_v56 = vadd.f32 %v8810_v11, %v8809_v39  ;;  %v3346_v34 = vor.u32 %v3345_v0, %v3342_v9  ;;  %9029 = vmatpush3.bf16.msra.mxu0 %v9616_v45 }
 0x1b0   : > { %v2088_v20 = vadd.f32 %v8699_v10, %v10438_v23  ;;  %v10659_v53 = vadd.f32 %v8808_v44, %v2085_v60  ;;  %v3361_v60 = vrot.slane %v3359_v4, 5  ;;  %v3357_v29 = vrot.slane %v3356_v5, 4 }
 0x1b2   : > { %v8700_v54 = vpop.f32.mrb[84].mxu0  ;;  %v10664_v3 = vadd.f32 %v8811_v56, %v2088_v20  ;;  %v368_v56 = vld [vmem:[#allocation3 + $0x68] sm:$0x1]  ;;  %v3347_v20 = vrot.slane %v3346_v34, 4  ;;  %v3362_v4 = vsel %vm10676_vm7, %v3357_v29, %v3361_v60 }
 0x1b3   : > { %v8701_v23 = vpop.f32.mrb[85].mxu0  ;;  %v8812_v15 = vpop.f32.mrb[84].mxu1  ;;  %v369_v9 = vsel %vm10571_vm4, 0, %v368_v56  ;;  %v315_v56 = vld [vmem:[#allocation3 + $0x6c] sm:$0x1] }
 0x1b4   : > { %v8702_v44 = vadd.f32 %v8701_v23, %v8700_v54  ;;  %v8703_v12 = vpop.f32.mrb[86].mxu0  ;;  %v8813_v2 = vpop.f32.mrb[85].mxu1  ;;  %370 = vst [vmem:[#allocation3 + $0x68] sm:$0x1] %v369_v9  ;;  %v3352_v32 = vsel %vm10676_vm7, %v3347_v20, %v3351_v13  ;;  %v9617_v54 = vld [vmem:[#allocation3] sm:$0xff]  }
 0x1b5   : > { %v8704_v39 = vpop.f32.mrb[87].mxu0  ;;  %v8814_v47 = vadd.f32 %v8813_v2, %v8812_v15  ;;  %v8815_v63 = vpop.f32.mrb[86].mxu1  ;;  %v365_v15 = vld [vmem:[#allocation3 + $0x5c] sm:$0x1]  ;;  %v8110_v31 = vcombine.low %v3352_v32, %v3362_v4  ;;  %v374_v9 = vld [vmem:[#allocation3 + $0x80] sm:$0x1] }
 0x1b6   : > { %v2093_v10 = vadd.f32 %v8702_v44, %v10440_v6  ;;  %v8705_v11 = vadd.f32 %v8704_v39, %v8703_v12  ;;  %v8816_v14 = vpop.f32.mrb[87].mxu1 }
 0x1b7   : > { %v8817_v7 = vadd.f32 %v8816_v14, %v8815_v63  ;;  %6735 = vmatprep.mubr.bf16.mxu1 %v8110_v31 }
 0x1b8   : > { %v2096_v6 = vadd.f32 %v8705_v11, %v10446_v26  ;;  %v10683_v0 = vadd.f32 %v8814_v47, %v2093_v10  ;;  %v366_v26 = vsel %vm10571_vm4, 0, %v365_v15  ;;  %6736 = vmatmul.mubr.bf16.vlgmr.msra.gmra.mrb[128].mxu1 %v9617_v54  ;;  %v318_v10 = vld [vmem:[#allocation3 + $0x78] sm:$0x1] }
 0x1b9   : > { %367 = vst [vmem:[#allocation3 + $0x5c] sm:$0x1] %v366_v26  ;;  %v319_v58 = vsel %vm10544_vm2, 0, %v318_v10 }
 0x1ba   : > { %v8706_v45 = vpop.f32.mrb[88].mxu0  ;;  %v10689_v23 = vadd.f32 %v8817_v7, %v2096_v6  ;;  %320 = vst [vmem:[#allocation3 + $0x78] sm:$0x1] %v319_v58  ;;  %v316_v7 = vsel %vm10544_vm2, 0, %v315_v56  ;;  %v371_v6 = vld [vmem:[#allocation3 + $0x74] sm:$0x1] }
 0x1bb   : > { %v8707_v44 = vpop.f32.mrb[89].mxu0  ;;  %v8818_v34 = vpop.f32.mrb[88].mxu1  ;;  %317 = vst [vmem:[#allocation3 + $0x6c] sm:$0x1] %v316_v7  ;;  %v372_v4 = vsel %vm10571_vm4, 0, %v371_v6  ;;  %v9621_v56 = vld [vmem:[%s12361_s4 + $0x100] sm:$0xff]  }
 0x1bc   : > { %v8708_v5 = vadd.f32 %v8707_v44, %v8706_v45  ;;  %v8709_v12 = vpop.f32.mrb[90].mxu0  ;;  %v8819_v2 = vpop.f32.mrb[89].mxu1  ;;  %373 = vst [vmem:[#allocation3 + $0x74] sm:$0x1] %v372_v4 }
 0x1bd   : > { %v8710_v13 = vpop.f32.mrb[91].mxu0  ;;  %v8820_v36 = vadd.f32 %v8819_v2, %v8818_v34  ;;  %v8821_v39 = vpop.f32.mrb[90].mxu1 }
 0x1be   : > { %v2101_v47 = vadd.f32 %v8708_v5, %v10454_v43  ;;  %v8711_v63 = vadd.f32 %v8710_v13, %v8709_v12  ;;  %v8822_v48 = vpop.f32.mrb[91].mxu1  ;;  %v375_v43 = vsel %vm10571_vm4, 0, %v374_v9 }
 0x1bf   : > { %v8823_v60 = vadd.f32 %v8822_v48, %v8821_v39  ;;  %376 = vst [vmem:[#allocation3 + $0x80] sm:$0x1] %v375_v43  ;;  %v9620_v39 = vld [vmem:[%s12361_s4 + $0x140] sm:$0xff]  }
 0x1c0   : > { %v2104_v11 = vadd.f32 %v8711_v63, %v10460_v16  ;;  %v10695_v14 = vadd.f32 %v8820_v36, %v2101_v47  ;;  %v324_v47 = vld [vmem:[#allocation3 + $0x90] sm:$0x1]  ;;  %9126 = vmatprep.subr.bf16.mxu1 %v9620_v39 }
 0x1c1   : > { %9127 = vmatpush3.bf16.msra.mxu1 %v9621_v56 }
 0x1c2   : > { %v8712_v20 = vpop.f32.mrb[92].mxu0  ;;  %v10701_v29 = vadd.f32 %v8823_v60, %v2104_v11  ;;  %v325_v60 = vsel %vm10544_vm2, 0, %v324_v47 }
 0x1c3   : > { %v8713_v16 = vpop.f32.mrb[93].mxu0  ;;  %v8824_v32 = vpop.f32.mrb[92].mxu1  ;;  %326 = vst [vmem:[#allocation3 + $0x90] sm:$0x1] %v325_v60 }
 0x1c4   : > { %v8714_v54 = vadd.f32 %v8713_v16, %v8712_v20  ;;  %v8715_v45 = vpop.f32.mrb[94].mxu0  ;;  %v8825_v15 = vpop.f32.mrb[93].mxu1 }
 0x1c5   : > { %v8716_v31 = vpop.f32.mrb[95].mxu0  ;;  %v8826_v44 = vadd.f32 %v8825_v15, %v8824_v32  ;;  %v8827_v34 = vpop.f32.mrb[94].mxu1 }
 0x1c6   : > { %v2109_v26 = vadd.f32 %v8714_v54, %v10462_v40  ;;  %v8717_v5 = vadd.f32 %v8716_v31, %v8715_v45  ;;  %v8828_v12 = vpop.f32.mrb[95].mxu1 }
 0x1c7   : > { %v8829_v2 = vadd.f32 %v8828_v12, %v8827_v34 }
 0x1c8   : > { %v2112_v13 = vadd.f32 %v8717_v5, %v10468_v46  ;;  %v10709_v36 = vadd.f32 %v8826_v44, %v2109_v26 }
 0x1ca   : > { %v8718_v63 = vpop.f32.mrb[96].mxu0  ;;  %v10714_v48 = vadd.f32 %v8829_v2, %v2112_v13 }
 0x1cb   : > { %v8719_v40 = vpop.f32.mrb[97].mxu0  ;;  %v8830_v10 = vpop.f32.mrb[96].mxu1 }
 0x1cc   : > { %v8720_v11 = vadd.f32 %v8719_v40, %v8718_v63  ;;  %v8721_v58 = vpop.f32.mrb[98].mxu0  ;;  %v8831_v46 = vpop.f32.mrb[97].mxu1  ;;  %v321_v63 = vld [vmem:[#allocation3 + $0x84] sm:$0x1] }
 0x1cd   : > { %v8722_v7 = vpop.f32.mrb[99].mxu0  ;;  %v8832_v9 = vadd.f32 %v8831_v46, %v8830_v10  ;;  %v8833_v20 = vpop.f32.mrb[98].mxu1 }
 0x1ce   : > { %v2117_v43 = vadd.f32 %v8720_v11, %v10476_v59  ;;  %v8723_v6 = vadd.f32 %v8722_v7, %v8721_v58  ;;  %v8834_v16 = vpop.f32.mrb[99].mxu1 }
 0x1cf   : > { %v8835_v32 = vadd.f32 %v8834_v16, %v8833_v20 }
 0x1d0   : > { %v2120_v4 = vadd.f32 %v8723_v6, %v10480_v18  ;;  %v10723_v54 = vadd.f32 %v8832_v9, %v2117_v43  ;;  %v322_v18 = vsel %vm10544_vm2, 0, %v321_v63 }
 0x1d1   : > { %323 = vst [vmem:[#allocation3 + $0x84] sm:$0x1] %v322_v18 }
 0x1d2   : > { %v8724_v45 = vpop.f32.mrb[100].mxu0  ;;  %v10725_v15 = vadd.f32 %v8835_v32, %v2120_v4 }
 0x1d3   : > { %v8725_v31 = vpop.f32.mrb[101].mxu0  ;;  %v8836_v44 = vpop.f32.mrb[100].mxu1 }
 0x1d4   : > { %v8726_v34 = vadd.f32 %v8725_v31, %v8724_v45  ;;  %v8727_v26 = vpop.f32.mrb[102].mxu0  ;;  %v8837_v5 = vpop.f32.mrb[101].mxu1 }
 0x1d5   : > { %v8728_v12 = vpop.f32.mrb[103].mxu0  ;;  %v8838_v2 = vadd.f32 %v8837_v5, %v8836_v44  ;;  %v8839_v13 = vpop.f32.mrb[102].mxu1  ;;  %v380_v44 = vld [vmem:[#allocation3 + $0x98] sm:$0x1]  ;;  %v377_v5 = vld [vmem:[#allocation3 + $0x8c] sm:$0x1] }
 0x1d6   : > { %v2125_v59 = vadd.f32 %v8726_v34, %v10484_v52  ;;  %v8729_v39 = vadd.f32 %v8728_v12, %v8727_v26  ;;  %v8840_v47 = vpop.f32.mrb[103].mxu1  ;;  %v381_v26 = vsel %vm10571_vm4, 0, %v380_v44 }
 0x1d7   : > { %v8841_v60 = vadd.f32 %v8840_v47, %v8839_v13  ;;  %382 = vst [vmem:[#allocation3 + $0x98] sm:$0x1] %v381_v26 }
 0x1d8   : > { %v2128_v40 = vadd.f32 %v8729_v39, %v10488_v22  ;;  %v10731_v10 = vadd.f32 %v8838_v2, %v2125_v59 }
 0x1da   : > { %v8730_v11 = vpop.f32.mrb[104].mxu0  ;;  %v10733_v58 = vadd.f32 %v8841_v60, %v2128_v40 }
 0x1db   : > { %v8731_v46 = vpop.f32.mrb[105].mxu0  ;;  %v8842_v56 = vpop.f32.mrb[104].mxu1 }
 0x1dc   : > { %v8732_v7 = vadd.f32 %v8731_v46, %v8730_v11  ;;  %v8733_v9 = vpop.f32.mrb[106].mxu0  ;;  %v8843_v52 = vpop.f32.mrb[105].mxu1 }
 0x1dd   : > { %v8734_v20 = vpop.f32.mrb[107].mxu0  ;;  %v8844_v43 = vadd.f32 %v8843_v52, %v8842_v56  ;;  %v8845_v6 = vpop.f32.mrb[106].mxu1  ;;  %v330_v56 = vld [vmem:[#allocation3 + $0xa8] sm:$0x1] }
 0x1de   : > { %v2133_v16 = vadd.f32 %v8732_v7, %v10498_v55  ;;  %v8735_v32 = vadd.f32 %v8734_v20, %v8733_v9  ;;  %v8846_v4 = vpop.f32.mrb[107].mxu1  ;;  %v378_v55 = vsel %vm10571_vm4, 0, %v377_v5  ;;  %v331_v52 = vsel %vm10544_vm2, 0, %v330_v56  ;;  %v327_v20 = vld [vmem:[#allocation3 + $0x9c] sm:$0x1] }
 0x1df   : > { %v8847_v45 = vadd.f32 %v8846_v4, %v8845_v6  ;;  %379 = vst [vmem:[#allocation3 + $0x8c] sm:$0x1] %v378_v55  ;;  %332 = vst [vmem:[#allocation3 + $0xa8] sm:$0x1] %v331_v52 }
 0x1e0   : > { %v2136_v22 = vadd.f32 %v8735_v32, %v10502_v51  ;;  %v10737_v31 = vadd.f32 %v8844_v43, %v2133_v16  ;;  %v328_v43 = vsel %vm10544_vm2, 0, %v327_v20 }
 0x1e1   : > { %329 = vst [vmem:[#allocation3 + $0x9c] sm:$0x1] %v328_v43 }
 0x1e2   : > { %v8736_v34 = vpop.f32.mrb[108].mxu0  ;;  %v10741_v12 = vadd.f32 %v8847_v45, %v2136_v22 }
 0x1e3   : > { %v8737_v2 = vpop.f32.mrb[109].mxu0  ;;  %v8848_v13 = vpop.f32.mrb[108].mxu1 }
 0x1e4   : > { %v8738_v59 = vadd.f32 %v8737_v2, %v8736_v34  ;;  %v8739_v39 = vpop.f32.mrb[110].mxu0  ;;  %v8849_v47 = vpop.f32.mrb[109].mxu1 }
 0x1e5   : > { %v8740_v51 = vpop.f32.mrb[111].mxu0  ;;  %v8850_v63 = vadd.f32 %v8849_v47, %v8848_v13  ;;  %v8851_v60 = vpop.f32.mrb[110].mxu1  ;;  %v386_v47 = vld [vmem:[#allocation3 + $0xb0] sm:$0x1] }
 0x1e6   : > { %v2141_v18 = vadd.f32 %v8738_v59, %v10504_v17  ;;  %v8741_v40 = vadd.f32 %v8740_v51, %v8739_v39  ;;  %v8852_v11 = vpop.f32.mrb[111].mxu1  ;;  %v9626_v39 = vld [vmem:[%s12361_s4 + $0x148] sm:$0xff]  }
 0x1e7   : > { %v8853_v46 = vadd.f32 %v8852_v11, %v8851_v60  ;;  %v383_v60 = vld [vmem:[#allocation3 + $0xa4] sm:$0x1]  ;;  %9128 = vmatprep.subr.bf16.mxu1 %v9626_v39 }
 0x1e8   : > { %v2144_v7 = vadd.f32 %v8741_v40, %v10509_v37  ;;  %v10747_v9 = vadd.f32 %v8850_v63, %v2141_v18  ;;  %v387_v63 = vsel %vm10571_vm4, 0, %v386_v47  ;;  %v384_v11 = vsel %vm10571_vm4, 0, %v383_v60 }
 0x1e9   : > { %388 = vst [vmem:[#allocation3 + $0xb0] sm:$0x1] %v387_v63  ;;  %385 = vst [vmem:[#allocation3 + $0xa4] sm:$0x1] %v384_v11 }
 0x1ea   : > { %v8742_v6 = vpop.f32.mrb[112].mxu0  ;;  %v10753_v16 = vadd.f32 %v8853_v46, %v2144_v7 }
 0x1eb   : > { %v8743_v17 = vpop.f32.mrb[113].mxu0  ;;  %v8854_v32 = vpop.f32.mrb[112].mxu1 }
 0x1ec   : > { %v8744_v4 = vadd.f32 %v8743_v17, %v8742_v6  ;;  %v8745_v45 = vpop.f32.mrb[114].mxu0  ;;  %v8855_v22 = vpop.f32.mrb[113].mxu1 }
 0x1ed   : > { %v8746_v37 = vpop.f32.mrb[115].mxu0  ;;  %v8856_v44 = vadd.f32 %v8855_v22, %v8854_v32  ;;  %v8857_v34 = vpop.f32.mrb[114].mxu1 }
 0x1ee   : > { %v2149_v26 = vadd.f32 %v8744_v4, %v10517_v49  ;;  %v8747_v5 = vadd.f32 %v8746_v37, %v8745_v45  ;;  %v8858_v2 = vpop.f32.mrb[115].mxu1  ;;  %v9627_v49 = vld [vmem:[%s12361_s4 + $0x108] sm:$0xff]  }
 0x1ef   : > { %v8859_v13 = vadd.f32 %v8858_v2, %v8857_v34  ;;  %9129 = vmatpush3.bf16.msra.mxu1 %v9627_v49  ;;  %v336_v34 = vld [vmem:[#allocation3 + $0xc0] sm:$0x1] }
 0x1f0   : > { %v2152_v55 = vadd.f32 %v8747_v5, %v10519_v1  ;;  %v10757_v59 = vadd.f32 %v8856_v44, %v2149_v26  ;;  %v337_v2 = vsel %vm10544_vm2, 0, %v336_v34 }
 0x1f1   : > { %338 = vst [vmem:[#allocation3 + $0xc0] sm:$0x1] %v337_v2 }
 0x1f2   : > { %v8748_v51 = vpop.f32.mrb[116].mxu0  ;;  %v10767_v18 = vadd.f32 %v8859_v13, %v2152_v55 }
 0x1f3   : > { %v8749_v40 = vpop.f32.mrb[117].mxu0  ;;  %v8860_v1 = vpop.f32.mrb[116].mxu1 }
 0x1f4   : > { %v8750_v46 = vadd.f32 %v8749_v40, %v8748_v51  ;;  %v8751_v56 = vpop.f32.mrb[118].mxu0  ;;  %v8861_v7 = vpop.f32.mrb[117].mxu1 }
 0x1f5   : > { %v8752_v52 = vpop.f32.mrb[119].mxu0  ;;  %v8862_v20 = vadd.f32 %v8861_v7, %v8860_v1  ;;  %v8863_v43 = vpop.f32.mrb[118].mxu1 }
 0x1f6   : > { %v2157_v6 = vadd.f32 %v8750_v46, %v10521_v19  ;;  %v8753_v17 = vadd.f32 %v8752_v52, %v8751_v56  ;;  %v8864_v32 = vpop.f32.mrb[119].mxu1  ;;  %v333_v19 = vld [vmem:[#allocation3 + $0xb4] sm:$0x1]  ;;  %v392_v56 = vld [vmem:[#allocation3 + $0xc8] sm:$0x1] }
 0x1f7   : > { %v8865_v4 = vadd.f32 %v8864_v32, %v8863_v43  ;;  %v393_v52 = vsel %vm10571_vm4, 0, %v392_v56 }
 0x1f8   : > { %v2160_v45 = vadd.f32 %v8753_v17, %v10523_v30  ;;  %v10773_v22 = vadd.f32 %v8862_v20, %v2157_v6  ;;  %v334_v30 = vsel %vm10544_vm2, 0, %v333_v19  ;;  %394 = vst [vmem:[#allocation3 + $0xc8] sm:$0x1] %v393_v52  ;;  %v389_v17 = vld [vmem:[#allocation3 + $0xbc] sm:$0x1] }
 0x1f9   : > { %335 = vst [vmem:[#allocation3 + $0xb4] sm:$0x1] %v334_v30  ;;  %v10798_v30 = vld [vmem:[%s12359_s2] ss:$0 sm:$0xff] }
 0x1fa   : > { %v8754_v37 = vpop.f32.mrb[120].mxu0  ;;  %v10775_v44 = vadd.f32 %v8865_v4, %v2160_v45  ;;  %v390_v45 = vsel %vm10571_vm4, 0, %v389_v17 }
 0x1fb   : > { %v8755_v26 = vpop.f32.mrb[121].mxu0  ;;  %v8866_v5 = vpop.f32.mrb[120].mxu1  ;;  %391 = vst [vmem:[#allocation3 + $0xbc] sm:$0x1] %v390_v45 }
 0x1fc   : > { %v8756_v13 = vadd.f32 %v8755_v26, %v8754_v37  ;;  %v8757_v55 = vpop.f32.mrb[122].mxu0  ;;  %v8867_v39 = vpop.f32.mrb[121].mxu1 }
 0x1fd   : > { %v8758_v47 = vpop.f32.mrb[123].mxu0  ;;  %v8868_v51 = vadd.f32 %v8867_v39, %v8866_v5  ;;  %v8869_v63 = vpop.f32.mrb[122].mxu1 }
 0x1fe   : > { %v2165_v49 = vadd.f32 %v8756_v13, %v10531_v28  ;;  %v8759_v60 = vadd.f32 %v8758_v47, %v8757_v55  ;;  %v8870_v40 = vpop.f32.mrb[123].mxu1  ;;  %v3804_v13 = vld [vmem:[#allocation3 + $0x4] sm:$0xf]  ;;  %v3803_v47 = vld [vmem:[#allocation3] sm:$0xe] }
 0x1ff   : > { %v8871_v1 = vadd.f32 %v8870_v40, %v8869_v63  ;;  %v8126_v56 = vrot.slane %v3803_v47, 9 }
 0x200   : > { %v2168_v11 = vadd.f32 %v8759_v60, %v10533_v33  ;;  %v10783_v46 = vadd.f32 %v8868_v51, %v2165_v49  ;;  %v3904_v51 = vrot.slane %v3804_v13, 5  ;;  %v3805_v49 = vld [vmem:[#allocation3 + $0x8] sm:$0x1] }
 0x201   : > { %v3907_v17 = vrot.slane %v3805_v49, 5 }
 0x202   : > { %v8760_v7 = vpop.f32.mrb[124].mxu0  ;;  %v10787_v20 = vadd.f32 %v8871_v1, %v2168_v11 }
 0x203   : > { %v8761_v43 = vpop.f32.mrb[125].mxu0  ;;  %v8872_v6 = vpop.f32.mrb[124].mxu1 }
 0x204   : > { %v8762_v28 = vadd.f32 %v8761_v43, %v8760_v7  ;;  %v8763_v32 = vpop.f32.mrb[126].mxu0  ;;  %v8873_v4 = vpop.f32.mrb[125].mxu1  ;;  %v9632_v7 = vld [vmem:[%s12361_s4 + $0x150] sm:$0xff]  }
 0x205   : > { %v8764_v33 = vpop.f32.mrb[127].mxu0  ;;  %v8874_v37 = vadd.f32 %v8873_v4, %v8872_v6  ;;  %v8875_v34 = vpop.f32.mrb[126].mxu1  ;;  %v3906_v6 = vrot.slane %v3904_v51, 4  ;;  %9130 = vmatprep.subr.bf16.mxu1 %v9632_v7 }
 0x206   : > { %v2173_v26 = vadd.f32 %v8762_v28, %v10535_v24  ;;  %v8765_v5 = vadd.f32 %v8764_v33, %v8763_v32  ;;  %v8876_v2 = vpop.f32.mrb[127].mxu1 }
 0x207   : > { %v8877_v55 = vadd.f32 %v8876_v2, %v8875_v34 }
 0x208   : > { %v2176_v39 = vadd.f32 %v8765_v5, %v10540_v50  ;;  %v10793_v19 = vadd.f32 %v8874_v37, %v2173_v26  ;;  %v10806_v50 = vld [vmem:[%s12360_s3] ss:$0 sm:$0xff]  ;;  %v10830_v26 = vsel %vm10816_vm10, %v8126_v56, %v3904_v51  ;;  %v10834_v5 = vsel %vm10816_vm10, %v3906_v6, %v3907_v17 }
 0x20a   : > { %v9392_v63 = vpop.f32.mrb[128].mxu0  ;;  %v10800_v60 = vadd.f32 %v8877_v55, %v2176_v39 }
 0x20b   : > { %v2383_v24 = vadd.f32 %v9392_v63, %v10585_v35  ;;  %v2374_v40 = vpop.f32.mrb[129].mxu0 }
 0x20c   : > { %v2375_v1 = vadd.f32 %v2374_v40, %v10561_v41  ;;  %v9393_v11 = vpop.f32.mrb[130].mxu0  ;;  %v9633_v41 = vld [vmem:[%s12361_s4 + $0x110] sm:$0xff]  }
 0x20d   : > { %v2510_v52 = vmul.f32 %v10798_v30, %v2383_v24  ;;  %v2386_v35 = vadd.f32 %v9393_v11, %v10587_v38  ;;  %v2377_v43 = vpop.f32.mrb[131].mxu0  ;;  %9131 = vmatpush3.bf16.msra.mxu1 %v9633_v41  ;;  %v3039_v41 = vld [vmem:[#allocation3 + $0x18] sm:$0xf] }
 0x20e   : > { %v2508_v28 = vmul.f32 %v10798_v30, %v2375_v1  ;;  %v2378_v32 = vadd.f32 %v2377_v43, %v10575_v27 }
 0x20f   : > { %v2549_v45 = vadd.f32 %v10806_v50, %v2510_v52  ;;  %v2511_v38 = vmul.f32 %v10798_v30, %v2386_v35 }
 0x210   : > { %v2547_v33 = vadd.f32 %v10806_v50, %v2508_v28  ;;  %v2509_v37 = vmul.f32 %v10798_v30, %v2378_v32 }
 0x211   : > { %v2581_v34 = vmax.f32 %v2549_v45, 0.0  ;;  %v2550_v27 = vadd.f32 %v10806_v50, %v2511_v38 }
 0x212   : > { %v2579_v2 = vmax.f32 %v2547_v33, 0.0  ;;  %v2548_v13 = vadd.f32 %v10806_v50, %v2509_v37  ;;  %v9396_v55 = vpop.f32.mrb[132].mxu0  ;;  %v9638_v33 = vld [vmem:[%s12361_s4 + $0x158] sm:$0xff]  }
 0x213   : > { %v8399_v39 = vpack.c.bf16 %v2581_v34, %v2581_v34  ;;  %v2582_v47 = vmax.f32 %v2550_v27, 0.0  ;;  %v2399_v63 = vadd.f32 %v9396_v55, %v10633_v25  ;;  %v2390_v49 = vpop.f32.mrb[133].mxu0  ;;  %v3032_v27 = vld [vmem:[#allocation3 + $0xc] sm:$0xf]  ;;  %9132 = vmatprep.subr.bf16.mxu1 %v9638_v33 }
 0x214   : > { %v8397_v24 = vpack.c.bf16 %v2579_v2, %v2579_v2  ;;  %v2580_v40 = vmax.f32 %v2548_v13, 0.0  ;;  %v2391_v51 = vadd.f32 %v2390_v49, %v10609_v42  ;;  %v10839_v1 = vpop.f32.mrb[134].mxu0  ;;  %v3043_v49 = vld [vmem:[#allocation3 + $0x20] sm:$0x1] }
 0x215   : > { %v2727_v56 = vshrl.u32 %v8399_v39, 16  ;;  %v2730_v7 = vshll.u32 %v8399_v39, 16  ;;  %v8400_v52 = vpack.c.bf16 %v2582_v47, %v2582_v47  ;;  %v2514_v35 = vmul.f32 %v10798_v30, %v2399_v63  ;;  %v2393_v43 = vpop.f32.mrb[135].mxu0 }
 0x216   : > { %v2710_v6 = vshrl.u32 %v8397_v24, 16  ;;  %v2713_v17 = vshll.u32 %v8397_v24, 16  ;;  %v8398_v28 = vpack.c.bf16 %v2580_v40, %v2580_v40  ;;  %v2512_v25 = vmul.f32 %v10798_v30, %v2391_v51 }
 0x217   : > { %v2729_v32 = vrot.slane %v2727_v56, 7  ;;  %v2735_v45 = vshrl.u32 %v8400_v52, 16  ;;  %v2738_v42 = vshll.u32 %v8400_v52, 16  ;;  %v2553_v38 = vadd.f32 %v10806_v50, %v2514_v35 }
 0x218   : > { %v2712_v34 = vrot.slane %v2710_v6, 7  ;;  %v2718_v2 = vshrl.u32 %v8398_v28, 16  ;;  %v2721_v13 = vshll.u32 %v8398_v28, 16  ;;  %v2551_v55 = vadd.f32 %v10806_v50, %v2512_v25 }
 0x219   : > { %v2732_v39 = vor.u32 %v2730_v7, %v2729_v32  ;;  %v2733_v47 = vrot.slane %v2729_v32, 4  ;;  %v2737_v63 = vrot.slane %v2735_v45, 7  ;;  %v2585_v24 = vmax.f32 %v2553_v38, 0.0  ;;  %v9639_v7 = vld [vmem:[%s12361_s4 + $0x118] sm:$0xff]  }
 0x21a   : > { %v2715_v40 = vor.u32 %v2713_v17, %v2712_v34  ;;  %v2716_v51 = vrot.slane %v2712_v34, 4  ;;  %v2720_v52 = vrot.slane %v2718_v2, 7  ;;  %v2583_v35 = vmax.f32 %v2551_v55, 0.0  ;;  %v9400_v6 = vpop.f32.mrb[136].mxu0  ;;  %v3036_v17 = vld [vmem:[#allocation3 + $0x14] sm:$0x1]  ;;  %9133 = vmatpush3.bf16.msra.mxu1 %v9639_v7 }
 0x21b   : > { %v3040_v28 = vsel %vm10851_vm13, %v2732_v39, %v3039_v41  ;;  %v2740_v25 = vor.u32 %v2738_v42, %v2737_v63  ;;  %v2742_v32 = vrot.slane %v2737_v63, 4  ;;  %v8403_v45 = vpack.c.bf16 %v2585_v24, %v2585_v24  ;;  %v2406_v38 = vpop.f32.mrb[137].mxu0 }
 0x21c   : > { %3041 = vst [vmem:[#allocation3 + $0x18] sm:$0xf] %v3040_v28  ;;  %v3033_v33 = vsel %vm10851_vm13, %v2715_v40, %v3032_v27  ;;  %v2723_v34 = vor.u32 %v2721_v13, %v2720_v52  ;;  %v2725_v2 = vrot.slane %v2720_v52, 4  ;;  %v8401_v55 = vpack.c.bf16 %v2583_v35, %v2583_v35  ;;  %v9401_v11 = vpop.f32.mrb[138].mxu0  ;;  %v3053_v35 = vld [vmem:[#allocation3 + $0x30] sm:$0xf] }
 0x21d   : > { %3034 = vst [vmem:[#allocation3 + $0xc] sm:$0xf] %v3033_v33  ;;  %v2741_v62 = vsel %vm10858_vm14, %v2733_v47, %v2740_v25  ;;  %v3044_v41 = vsel %vm10544_vm2, %v2742_v32, %v3043_v49  ;;  %v2761_v42 = vshrl.u32 %v8403_v45, 16  ;;  %v2764_v39 = vshll.u32 %v8403_v45, 16  ;;  %v2409_v63 = vpop.f32.mrb[139].mxu0  ;;  %v9642_v32 = vld [vmem:[%s12361_s4 + $0x1c0] sm:$0xff]  }
 0x21e   : > { %3042 = vst [vmem:[#allocation3 + $0x1c] sm:$0xf] %v2741_v62  ;;  %3045 = vst [vmem:[#allocation3 + $0x20] sm:$0x1] %v3044_v41  ;;  %v2724_v27 = vsel %vm10858_vm14, %v2716_v51, %v2723_v34  ;;  %v3037_v13 = vsel %vm10544_vm2, %v2725_v2, %v3036_v17  ;;  %v2744_v24 = vshrl.u32 %v8401_v55, 16  ;;  %v2747_v40 = vshll.u32 %v8401_v55, 16  ;;  %9238 = vmatprep.subr.bf16.mxu0 %v9642_v32 }
 0x21f   : > { %3035 = vst [vmem:[#allocation3 + $0x10] sm:$0xf] %v2724_v27  ;;  %3038 = vst [vmem:[#allocation3 + $0x14] sm:$0x1] %v3037_v13  ;;  %v10877_v52 = vrot.slane %v2761_v42, 7  ;;  %v2402_v47 = vadd.f32 %v10839_v1, %v10638_v57  ;;  %v2394_v49 = vadd.f32 %v2393_v43, %v10616_v21  ;;  %v2415_v62 = vadd.f32 %v9400_v6, %v10683_v0 }
 0x220   : > { %v10883_v7 = vrot.slane %v2744_v24, 7  ;;  %v2407_v51 = vadd.f32 %v2406_v38, %v10659_v53  ;;  %v2418_v28 = vadd.f32 %v9401_v11, %v10689_v23  ;;  %v2410_v25 = vadd.f32 %v2409_v63, %v10664_v3  ;;  %v3046_v21 = vld [vmem:[#allocation3 + $0x24] sm:$0xf] }
 0x221   : > { %v2766_v17 = vor.u32 %v2764_v39, %v10877_v52  ;;  %v2767_v57 = vrot.slane %v10877_v52, 4  ;;  %v2515_v0 = vmul.f32 %v10798_v30, %v2402_v47  ;;  %v2513_v1 = vmul.f32 %v10798_v30, %v2394_v49 }
 0x222   : > { %v2749_v43 = vor.u32 %v2747_v40, %v10883_v7  ;;  %v2750_v53 = vrot.slane %v10883_v7, 4  ;;  %v2518_v23 = vmul.f32 %v10798_v30, %v2415_v62  ;;  %v2516_v3 = vmul.f32 %v10798_v30, %v2407_v51  ;;  %v9404_v11 = vpop.f32.mrb[140].mxu0 }
 0x223   : > { %v3054_v6 = vsel %vm10851_vm13, %v2766_v17, %v3053_v35  ;;  %v2554_v45 = vadd.f32 %v10806_v50, %v2515_v0  ;;  %v2552_v38 = vadd.f32 %v10806_v50, %v2513_v1  ;;  %v2519_v33 = vmul.f32 %v10798_v30, %v2418_v28  ;;  %v2422_v34 = vpop.f32.mrb[141].mxu0  ;;  %v9643_v28 = vld [vmem:[%s12361_s4 + $0x180] sm:$0xff]  }
 0x224   : > { %3055 = vst [vmem:[#allocation3 + $0x30] sm:$0xf] %v3054_v6  ;;  %v3047_v2 = vsel %vm10851_vm13, %v2749_v43, %v3046_v21  ;;  %v2557_v55 = vadd.f32 %v10806_v50, %v2518_v23  ;;  %v2555_v41 = vadd.f32 %v10806_v50, %v2516_v3  ;;  %v2517_v42 = vmul.f32 %v10798_v30, %v2410_v25  ;;  %v10909_v39 = vpop.f32.mrb[142].mxu0 }
 0x225   : > { %3048 = vst [vmem:[#allocation3 + $0x24] sm:$0xf] %v3047_v2  ;;  %v2586_v63 = vmax.f32 %v2554_v45, 0.0  ;;  %v2584_v27 = vmax.f32 %v2552_v38, 0.0  ;;  %v2558_v13 = vadd.f32 %v10806_v50, %v2519_v33  ;;  %v2431_v24 = vadd.f32 %v9404_v11, %v10709_v36  ;;  %v10913_v40 = vpop.f32.mrb[143].mxu0  ;;  %v9619_v23 = vld [vmem:[#allocation3 + $0x18] sm:$0xff]  }
 0x226   : > { %v2589_v47 = vmax.f32 %v2557_v55, 0.0  ;;  %v2587_v49 = vmax.f32 %v2555_v41, 0.0  ;;  %v2556_v62 = vadd.f32 %v10806_v50, %v2517_v42  ;;  %v2423_v35 = vadd.f32 %v2422_v34, %v10695_v14  ;;  %v9618_v51 = vld [vmem:[#allocation3 + $0xc] sm:$0xff]   ;;  %v9646_v14 = vld [vmem:[%s12361_s4 + $0x160] sm:$0xff]   ;;  %v3057_v33 = vld [vmem:[#allocation3 + $0x38] sm:$0x1] }
 0x227   : > { %v8404_v25 = vpack.c.bf16 %v2586_v63, %v2586_v63  ;;  %v8402_v32 = vpack.c.bf16 %v2584_v27, %v2584_v27  ;;  %v2590_v17 = vmax.f32 %v2558_v13, 0.0  ;;  %v2522_v21 = vmul.f32 %v10798_v30, %v2431_v24  ;;  %6896 = vmatprep.mubr.bf16.mxu0 %v9618_v51  ;;  %v3050_v34 = vld [vmem:[#allocation3 + $0x2c] sm:$0x1]  ;;  %v9647_v27 = vld [vmem:[%s12361_s4 + $0x120] sm:$0xff]   ;;  %9134 = vmatprep.subr.bf16.mxu1 %v9646_v14 }
 0x228   : > { %v8407_v0 = vpack.c.bf16 %v2589_v47, %v2589_v47  ;;  %v8405_v36 = vpack.c.bf16 %v2587_v49, %v2587_v49  ;;  %v2588_v1 = vmax.f32 %v2556_v62, 0.0  ;;  %v2520_v43 = vmul.f32 %v10798_v30, %v2423_v35  ;;  %v3067_v47 = vld [vmem:[#allocation3 + $0x48] sm:$0xf]  ;;  %v3060_v49 = vld [vmem:[#allocation3 + $0x3c] sm:$0xf]  ;;  %9135 = vmatpush3.bf16.msra.mxu1 %v9647_v27 }
 0x229   : > { %v2769_v3 = vshrl.u32 %v8404_v25, 16  ;;  %v2772_v11 = vshll.u32 %v8404_v25, 16  ;;  %v2752_v6 = vshrl.u32 %v8402_v32, 16  ;;  %v2755_v45 = vshll.u32 %v8402_v32, 16  ;;  %v5697_v61 = vld [vmem:[#allocation3 + $0x20] sm:$0x1] }
 0x22a   : > { %v12381_v38 = vcombine.low %v10830_v26, %v10834_v5  ;;  %v2795_v2 = vshrl.u32 %v8407_v0, 16  ;;  %v2798_v55 = vshll.u32 %v8407_v0, 16  ;;  %v2778_v41 = vshrl.u32 %v8405_v36, 16  ;;  %v9408_v63 = vpop.f32.mrb[144].mxu0 }
 0x22b   : > { %v2781_v42 = vshll.u32 %v8405_v36, 16  ;;  %v2771_v13 = vrot.slane %v2769_v3, 7  ;;  %v2754_v24 = vrot.slane %v2752_v6, 7  ;;  %v8408_v62 = vpack.c.bf16 %v2590_v17, %v2590_v17  ;;  %v2438_v5 = vpop.f32.mrb[145].mxu0 }
 0x22c   : > { %6897 = vmatmul.mubr.bf16.vlgmr.msra.gmra.mrb[160].mxu0 %v12381_v38  ;;  %v8406_v26 = vpack.c.bf16 %v2588_v1, %v2588_v1  ;;  %v2797_v35 = vrot.slane %v2795_v2, 7  ;;  %v10931_v51 = vrot.slane %v2778_v41, 7  ;;  %v2561_v25 = vadd.f32 %v10806_v50, %v2522_v21 }
 0x22d   : > { %6904 = vmatprep.mubr.bf16.mxu0 %v9619_v23  ;;  %9239 = vmatpush3.bf16.msra.mxu0 %v9643_v28  ;;  %v2559_v32 = vadd.f32 %v10806_v50, %v2520_v43  ;;  %v10935_v28 = vpop.f32.mrb[146].mxu0  ;;  %v2774_v0 = vor.u32 %v2772_v11, %v2771_v13  ;;  %v2776_v36 = vrot.slane %v2771_v13, 4  ;;  %v2757_v23 = vor.u32 %v2755_v45, %v2754_v24 }
 0x22e   : > { %v2759_v3 = vrot.slane %v2754_v24, 4  ;;  %v10937_v6 = vpop.f32.mrb[147].mxu0  ;;  %v2800_v17 = vor.u32 %v2798_v55, %v2797_v35  ;;  %v2801_v1 = vrot.slane %v2797_v35, 4  ;;  %v2783_v14 = vor.u32 %v2781_v42, %v10931_v51 }
 0x22f   : > { %v2784_v38 = vrot.slane %v10931_v51, 4  ;;  %v2775_v21 = vsel %vm10858_vm14, %v2767_v57, %v2774_v0  ;;  %v3058_v43 = vsel %vm10544_vm2, %v2776_v36, %v3057_v33  ;;  %v2758_v11 = vsel %vm10858_vm14, %v2750_v53, %v2757_v23  ;;  %v3064_v0 = vld [vmem:[#allocation3 + $0x44] sm:$0x1] }
 0x230   : > { %v3051_v45 = vsel %vm10544_vm2, %v2759_v3, %v3050_v34  ;;  %3056 = vst [vmem:[#allocation3 + $0x34] sm:$0xf] %v2775_v21  ;;  %3059 = vst [vmem:[#allocation3 + $0x38] sm:$0x1] %v3058_v43  ;;  %v3068_v52 = vsel %vm10851_vm13, %v2800_v17, %v3067_v47  ;;  %v3061_v57 = vsel %vm10851_vm13, %v2783_v14, %v3060_v49  ;;  %v2803_v2 = vshrl.u32 %v8408_v62, 16 }
 0x231   : > { %3049 = vst [vmem:[#allocation3 + $0x28] sm:$0xf] %v2758_v11  ;;  %3052 = vst [vmem:[#allocation3 + $0x2c] sm:$0x1] %v3051_v45  ;;  %v2806_v33 = vshll.u32 %v8408_v62, 16  ;;  %v2786_v7 = vshrl.u32 %v8406_v26, 16  ;;  %v2434_v34 = vadd.f32 %v10909_v39, %v10714_v48  ;;  %v2426_v27 = vadd.f32 %v10913_v40, %v10701_v29 }
 0x232   : > { %3069 = vst [vmem:[#allocation3 + $0x48] sm:$0xf] %v3068_v52  ;;  %3062 = vst [vmem:[#allocation3 + $0x3c] sm:$0xf] %v3061_v57  ;;  %v2789_v55 = vshll.u32 %v8406_v26, 16  ;;  %v2593_v53 = vmax.f32 %v2561_v25, 0.0  ;;  %v2447_v13 = vadd.f32 %v9408_v63, %v10731_v10  ;;  %v2439_v51 = vadd.f32 %v2438_v5, %v10723_v54 }
 0x233   : > { %v2591_v41 = vmax.f32 %v2559_v32, 0.0  ;;  %v2805_v42 = vrot.slane %v2803_v2, 7  ;;  %v10962_v24 = vpop.f32.mrb[148].mxu0  ;;  %v3071_v47 = vld [vmem:[#allocation3 + $0x50] sm:$0x1]  ;;  %v2788_v49 = vrot.slane %v2786_v7, 7  ;;  %v2523_v48 = vmul.f32 %v10798_v30, %v2434_v34 }
 0x234   : > { %v8411_v62 = vpack.c.bf16 %v2593_v53, %v2593_v53  ;;  %v10965_v26 = vpop.f32.mrb[149].mxu0  ;;  %v2521_v39 = vmul.f32 %v10798_v30, %v2426_v27  ;;  %v9650_v54 = vld [vmem:[%s12361_s4 + $0x1c8] sm:$0xff]   ;;  %v2524_v7 = vmul.f32 %v10798_v30, %v2439_v51  ;;  %v3074_v53 = vld [vmem:[#allocation3 + $0x54] sm:$0xf] }
 0x235   : > { %v8409_v35 = vpack.c.bf16 %v2591_v41, %v2591_v41  ;;  %v2808_v25 = vor.u32 %v2806_v33, %v2805_v42  ;;  %v2810_v32 = vrot.slane %v2805_v42, 4  ;;  %v10969_v29 = vpop.f32.mrb[150].mxu0  ;;  %v2791_v10 = vor.u32 %v2789_v55, %v2788_v49  ;;  %v9651_v5 = vld [vmem:[%s12361_s4 + $0x188] sm:$0xff]   ;;  %9240 = vmatprep.subr.bf16.mxu0 %v9650_v54 }
 0x236   : > { %v2793_v40 = vrot.slane %v2788_v49, 4  ;;  %v2829_v63 = vshrl.u32 %v8411_v62, 16  ;;  %v2832_v36 = vshll.u32 %v8411_v62, 16  ;;  %v10971_v23 = vpop.f32.mrb[151].mxu0  ;;  %v2562_v52 = vadd.f32 %v10806_v50, %v2523_v48  ;;  %9241 = vmatpush3.bf16.msra.mxu0 %v9651_v5 }
 0x237   : > { %v2809_v3 = vsel %vm10858_vm14, %v2801_v1, %v2808_v25  ;;  %v3072_v17 = vsel %vm10544_vm2, %v2810_v32, %v3071_v47  ;;  %v2812_v14 = vshrl.u32 %v8409_v35, 16  ;;  %v2815_v21 = vshll.u32 %v8409_v35, 16  ;;  %v3081_v1 = vld [vmem:[#allocation3 + $0x60] sm:$0xf] }
 0x238   : > { %3070 = vst [vmem:[#allocation3 + $0x4c] sm:$0xf] %v2809_v3  ;;  %3073 = vst [vmem:[#allocation3 + $0x50] sm:$0x1] %v3072_v17  ;;  %v2792_v43 = vsel %vm10858_vm14, %v2784_v38, %v2791_v10  ;;  %v3065_v11 = vsel %vm10544_vm2, %v2793_v40, %v3064_v0  ;;  %v10987_v45 = vrot.slane %v2829_v63, 7  ;;  %v2560_v2 = vadd.f32 %v10806_v50, %v2521_v39 }
 0x239   : > { %3063 = vst [vmem:[#allocation3 + $0x40] sm:$0xf] %v2792_v43  ;;  %3066 = vst [vmem:[#allocation3 + $0x44] sm:$0x1] %v3065_v11  ;;  %v10990_v57 = vrot.slane %v2812_v14, 7  ;;  %v2526_v33 = vmul.f32 %v10798_v30, %v2447_v13  ;;  %v2594_v41 = vmax.f32 %v2562_v52, 0.0  ;;  %v2450_v42 = vadd.f32 %v10935_v28, %v10733_v58 }
 0x23a   : > { %v2834_v38 = vor.u32 %v2832_v36, %v10987_v45  ;;  %v2835_v55 = vrot.slane %v10987_v45, 4  ;;  %v2592_v47 = vmax.f32 %v2560_v2, 0.0  ;;  %v11002_v13 = vpop.f32.mrb[152].mxu0  ;;  %v2563_v51 = vadd.f32 %v10806_v50, %v2524_v7  ;;  %v3085_v43 = vld [vmem:[#allocation3 + $0x68] sm:$0x1] }
 0x23b   : > { %v2817_v34 = vor.u32 %v2815_v21, %v10990_v57  ;;  %v2818_v27 = vrot.slane %v10990_v57, 4  ;;  %v2565_v49 = vadd.f32 %v10806_v50, %v2526_v33  ;;  %v8412_v35 = vpack.c.bf16 %v2594_v41, %v2594_v41  ;;  %v11008_v32 = vpop.f32.mrb[153].mxu0  ;;  %v3078_v7 = vld [vmem:[#allocation3 + $0x5c] sm:$0x1] }
 0x23c   : > { %v3082_v62 = vsel %vm10851_vm13, %v2834_v38, %v3081_v1  ;;  %v2527_v25 = vmul.f32 %v10798_v30, %v2450_v42  ;;  %v8410_v28 = vpack.c.bf16 %v2592_v47, %v2592_v47  ;;  %v2442_v48 = vadd.f32 %v10937_v6, %v10725_v15  ;;  %v11014_v39 = vpop.f32.mrb[154].mxu0  ;;  %v3095_v47 = vld [vmem:[#allocation3 + $0x78] sm:$0xf] }
 0x23d   : > { %3083 = vst [vmem:[#allocation3 + $0x60] sm:$0xf] %v3082_v62  ;;  %v3075_v58 = vsel %vm10851_vm13, %v2817_v34, %v3074_v53  ;;  %v2597_v0 = vmax.f32 %v2565_v49, 0.0  ;;  %v2837_v10 = vshrl.u32 %v8412_v35, 16  ;;  %v2840_v40 = vshll.u32 %v8412_v35, 16  ;;  %v11017_v54 = vpop.f32.mrb[155].mxu0 }
 0x23e   : > { %3076 = vst [vmem:[#allocation3 + $0x54] sm:$0xf] %v3075_v58  ;;  %v2595_v63 = vmax.f32 %v2563_v51, 0.0  ;;  %v2566_v36 = vadd.f32 %v10806_v50, %v2527_v25  ;;  %v2820_v5 = vshrl.u32 %v8410_v28, 16  ;;  %v2823_v3 = vshll.u32 %v8410_v28, 16 }
 0x23f   : > { %v8415_v17 = vpack.c.bf16 %v2597_v0, %v2597_v0  ;;  %v2525_v14 = vmul.f32 %v10798_v30, %v2442_v48  ;;  %v2839_v21 = vrot.slane %v2837_v10, 7  ;;  %v2463_v15 = vadd.f32 %v10962_v24, %v10747_v9  ;;  %v9654_v9 = vld [vmem:[%s12361_s4 + $0x168] sm:$0xff]  }
 0x240   : > { %v8413_v11 = vpack.c.bf16 %v2595_v63, %v2595_v63  ;;  %v2598_v45 = vmax.f32 %v2566_v36, 0.0  ;;  %v2822_v6 = vrot.slane %v2820_v5, 7  ;;  %v3291_v58 = vld [vmem:[#allocation3 + $0xc] sm:$0xf]  ;;  %v3292_v36 = vld [vmem:[#allocation3 + $0x10] sm:$0xf]  ;;  %9136 = vmatprep.subr.bf16.mxu1 %v9654_v9 }
 0x241   : > { %v2863_v52 = vshrl.u32 %v8415_v17, 16  ;;  %v2866_v1 = vshll.u32 %v8415_v17, 16  ;;  %v2564_v57 = vadd.f32 %v10806_v50, %v2525_v14  ;;  %v2842_v2 = vor.u32 %v2840_v40, %v2839_v21  ;;  %v9655_v0 = vld [vmem:[%s12361_s4 + $0x128] sm:$0xff]  }
 0x242   : > { %v2844_v33 = vrot.slane %v2839_v21, 4  ;;  %v2846_v38 = vshrl.u32 %v8413_v11, 16  ;;  %v2849_v53 = vshll.u32 %v8413_v11, 16  ;;  %v2825_v41 = vor.u32 %v2823_v3, %v2822_v6  ;;  %v11025_v62 = vpop.f32.mrb[156].mxu0  ;;  %v3088_v63 = vld [vmem:[#allocation3 + $0x6c] sm:$0xf]  ;;  %9137 = vmatpush3.bf16.msra.mxu1 %v9655_v0 }
 0x243   : > { %v2827_v42 = vrot.slane %v2822_v6, 4  ;;  %v11023_v34 = vrot.slane %v2863_v52, 7  ;;  %v8416_v49 = vpack.c.bf16 %v2598_v45, %v2598_v45  ;;  %v2843_v24 = vsel %vm10858_vm14, %v2835_v55, %v2842_v2  ;;  %v11036_v28 = vpop.f32.mrb[157].mxu0  ;;  %v3293_v21 = vld [vmem:[#allocation3 + $0x14] sm:$0x1] }
 0x244   : > { %v3086_v35 = vsel %vm10544_vm2, %v2844_v33, %v3085_v43  ;;  %v11034_v51 = vrot.slane %v2846_v38, 7  ;;  %v2596_v25 = vmax.f32 %v2564_v57, 0.0  ;;  %3084 = vst [vmem:[#allocation3 + $0x64] sm:$0xf] %v2843_v24  ;;  %v2826_v48 = vsel %vm10858_vm14, %v2818_v27, %v2825_v41  ;;  %v11047_v5 = vpop.f32.mrb[158].mxu0  ;;  %v9658_v57 = vld [vmem:[%s12361_s4 + $0x1d0] sm:$0xff]  }
 0x245   : > { %3087 = vst [vmem:[#allocation3 + $0x68] sm:$0x1] %v3086_v35  ;;  %v3079_v55 = vsel %vm10544_vm2, %v2827_v42, %v3078_v7  ;;  %v2868_v10 = vor.u32 %v2866_v1, %v11023_v34  ;;  %v2869_v40 = vrot.slane %v11023_v34, 4  ;;  %3077 = vst [vmem:[#allocation3 + $0x58] sm:$0xf] %v2826_v48  ;;  %v2871_v14 = vshrl.u32 %v8416_v49, 16  ;;  %9242 = vmatprep.subr.bf16.mxu0 %v9658_v57 }
 0x246   : > { %3080 = vst [vmem:[#allocation3 + $0x5c] sm:$0x1] %v3079_v55  ;;  %v2851_v3 = vor.u32 %v2849_v53, %v11034_v51  ;;  %v2852_v17 = vrot.slane %v11034_v51, 4  ;;  %v2874_v27 = vshll.u32 %v8416_v49, 16  ;;  %v11051_v43 = vpop.f32.mrb[159].mxu0  ;;  %v8414_v6 = vpack.c.bf16 %v2596_v25, %v2596_v25  ;;  %v9659_v53 = vld [vmem:[%s12361_s4 + $0x190] sm:$0xff]  }
 0x247   : > { %v3096_v11 = vsel %vm10851_vm13, %v2868_v10, %v3095_v47  ;;  %v3099_v45 = vld [vmem:[#allocation3 + $0x80] sm:$0x1]  ;;  %v2530_v52 = vmul.f32 %v10798_v30, %v2463_v15  ;;  %v3364_v1 = vshrl.u32 %v3291_v58, 16  ;;  %v2873_v33 = vrot.slane %v2871_v14, 7  ;;  %v3806_v47 = vld [vmem:[#allocation3 + $0xc] sm:$0xe]  ;;  %9243 = vmatpush3.bf16.msra.mxu0 %v9659_v53 }
 0x248   : > { %3097 = vst [vmem:[#allocation3 + $0x78] sm:$0xf] %v3096_v11  ;;  %v3089_v2 = vsel %vm10851_vm13, %v2851_v3, %v3088_v63  ;;  %v3367_v7 = vshll.u32 %v3291_v58, 16  ;;  %v3373_v38 = vshll.u32 %v3292_v36, 16  ;;  %v2854_v41 = vshrl.u32 %v8414_v6, 16  ;;  %v9662_v49 = vld [vmem:[%s12361_s4 + $0x170] sm:$0xff]  }
 0x249   : > { %3090 = vst [vmem:[#allocation3 + $0x6c] sm:$0xf] %v3089_v2  ;;  %v2857_v42 = vshll.u32 %v8414_v6, 16  ;;  %v2569_v15 = vadd.f32 %v10806_v50, %v2530_v52  ;;  %v3366_v34 = vrot.slane %v3364_v1, 4  ;;  %v2876_v9 = vor.u32 %v2874_v27, %v2873_v33  ;;  %v3807_v25 = vld [vmem:[#allocation3 + $0x10] sm:$0xf]  ;;  %9138 = vmatprep.subr.bf16.mxu1 %v9662_v49 }
 0x24a   : > { %v2878_v24 = vrot.slane %v2873_v33, 4  ;;  %v3369_v35 = vrot.slane %v3367_v7, 5  ;;  %v11068_v51 = vrot.slane %v3373_v38, 5  ;;  %v9663_v58 = vld [vmem:[%s12361_s4 + $0x130] sm:$0xff]   ;;  %v2856_v0 = vrot.slane %v2854_v41, 7 }
 0x24b   : > { %v2601_v48 = vmax.f32 %v2569_v15, 0.0  ;;  %v3377_v55 = vshrl.u32 %v3292_v36, 16  ;;  %v3383_v10 = vshll.u32 %v3293_v21, 16  ;;  %v3808_v63 = vld [vmem:[#allocation3 + $0x14] sm:$0x1]  ;;  %v2877_v3 = vsel %vm10858_vm14, %v2869_v40, %v2876_v9  ;;  %9139 = vmatpush3.bf16.msra.mxu1 %v9663_v58 }
 0x24c   : > { %v3100_v14 = vsel %vm10544_vm2, %v2878_v24, %v3099_v45  ;;  %v3092_v27 = vld [vmem:[#allocation3 + $0x74] sm:$0x1]  ;;  %v3370_v11 = vor.u32 %v3369_v35, %v3366_v34  ;;  %v8127_v6 = vrot.slane %v3806_v47, 9  ;;  %3098 = vst [vmem:[#allocation3 + $0x7c] sm:$0xf] %v2877_v3  ;;  %v2859_v52 = vor.u32 %v2857_v42, %v2856_v0  ;;  %v9667_v3 = vld [vmem:[%s12361_s4 + $0x198] sm:$0xff]  }
 0x24d   : > { %3101 = vst [vmem:[#allocation3 + $0x80] sm:$0x1] %v3100_v14  ;;  %v2861_v1 = vrot.slane %v2856_v0, 4  ;;  %v8419_v57 = vpack.c.bf16 %v2601_v48, %v2601_v48  ;;  %v3379_v2 = vrot.slane %v3377_v55, 4  ;;  %v3294_v36 = vld [vmem:[#allocation3 + $0x18] sm:$0xf]  ;;  %v2466_v24 = vadd.f32 %v10969_v29, %v10753_v16 }
 0x24e   : > { %v3371_v21 = vrot.slane %v3370_v11, 4  ;;  %v3385_v33 = vrot.slane %v3383_v10, 5  ;;  %v3911_v7 = vrot.slane %v3807_v25, 5  ;;  %v3914_v38 = vrot.slane %v3808_v63, 5  ;;  %v3295_v53 = vld [vmem:[#allocation3 + $0x1c] sm:$0xf] }
 0x24f   : > { %v2860_v40 = vsel %vm10858_vm14, %v2852_v17, %v2859_v52  ;;  %v3093_v45 = vsel %vm10544_vm2, %v2861_v1, %v3092_v27  ;;  %v2897_v41 = vshrl.u32 %v8419_v57, 16  ;;  %v2900_v15 = vshll.u32 %v8419_v57, 16  ;;  %v3109_v25 = vld [vmem:[#allocation3 + $0x90] sm:$0xf]  ;;  %v9666_v55 = vld [vmem:[%s12361_s4 + $0x1d8] sm:$0xff]   ;;  %v9623_v27 = vld [vmem:[#allocation3 + $0x24] sm:$0xff]  }
 0x250   : > { %3091 = vst [vmem:[#allocation3 + $0x70] sm:$0xf] %v2860_v40  ;;  %3094 = vst [vmem:[#allocation3 + $0x74] sm:$0x1] %v3093_v45  ;;  %v3376_v42 = vsel %vm10676_vm7, %v3371_v21, %v11068_v51  ;;  %v3380_v34 = vor.u32 %v3379_v2, %v11068_v51  ;;  %v3912_v47 = vsel %vm10816_vm10, %v8127_v6, %v3911_v7  ;;  %v3913_v49 = vrot.slane %v3911_v7, 4  ;;  %v9622_v21 = vld [vmem:[#allocation3 + $0xc] sm:$0xff]  }
 0x251   : > { %v11087_v9 = vrot.slane %v2897_v41, 7  ;;  %v2455_v17 = vadd.f32 %v10965_v26, %v10737_v31  ;;  %v3388_v35 = vshrl.u32 %v3294_v36, 16  ;;  %v3391_v48 = vshll.u32 %v3294_v36, 16  ;;  %v3296_v16 = vld [vmem:[#allocation3 + $0x20] sm:$0x1]  ;;  %9244 = vmatprep.subr.bf16.mxu0 %v9666_v55 }
 0x252   : > { %v3381_v58 = vrot.slane %v3380_v34, 4  ;;  %v3915_v0 = vsel %vm10816_vm10, %v3913_v49, %v3914_v38  ;;  %v3397_v51 = vshll.u32 %v3295_v53, 16  ;;  %v3809_v29 = vld [vmem:[#allocation3 + $0x18] sm:$0xe]  ;;  %v2531_v11 = vmul.f32 %v10798_v30, %v2466_v24  ;;  %v3810_v45 = vld [vmem:[#allocation3 + $0x1c] sm:$0xf]  ;;  %9245 = vmatpush3.bf16.msra.mxu0 %v9667_v3 }
 0x253   : > { %v2902_v10 = vor.u32 %v2900_v15, %v11087_v9  ;;  %v2903_v63 = vrot.slane %v11087_v9, 4  ;;  %v8143_v31 = vcombine.low %v3912_v47, %v3915_v0  ;;  %v2528_v26 = vmul.f32 %v10798_v30, %v2455_v17  ;;  %v3811_v34 = vld [vmem:[#allocation3 + $0x20] sm:$0x1]  ;;  %v9671_v3 = vld [vmem:[%s12361_s4 + $0x178] sm:$0xff]  }
 0x254   : > { %v3386_v14 = vsel %vm10676_vm7, %v3381_v58, %v3385_v33  ;;  %v3390_v6 = vrot.slane %v3388_v35, 4  ;;  %v3393_v52 = vrot.slane %v3391_v48, 5  ;;  %v3399_v36 = vrot.slane %v3397_v51, 5  ;;  %9140 = vmatprep.subr.bf16.mxu1 %v9671_v3  ;;  %v11161_v9 = vld [vmem:[%s12359_s2] ss:$0 sm:$0xff] }
 0x255   : > { %v3110_v1 = vsel %vm10851_vm13, %v2902_v10, %v3109_v25  ;;  %v8111_v57 = vcombine.low %v3376_v42, %v3386_v14  ;;  %6905 = vmatmul.mubr.bf16.gmra.mrb[164].mxu0 %v8143_v31  ;;  %v2567_v2 = vadd.f32 %v10806_v50, %v2528_v26  ;;  %v2570_v7 = vadd.f32 %v10806_v50, %v2531_v11 }
 0x256   : > { %3111 = vst [vmem:[#allocation3 + $0x90] sm:$0xf] %v3110_v1  ;;  %6912 = vmatprep.mubr.bf16.mxu0 %v9623_v27  ;;  %v3394_v33 = vor.u32 %v3393_v52, %v3390_v6  ;;  %v3401_v38 = vshrl.u32 %v3295_v53, 16  ;;  %v3407_v40 = vshll.u32 %v3296_v16, 16  ;;  %v2458_v15 = vadd.f32 %v10971_v23, %v10741_v12  ;;  %v3102_v52 = vld [vmem:[#allocation3 + $0x84] sm:$0xf] }
 0x257   : > { %6743 = vmatprep.mubr.bf16.mxu1 %v8111_v57  ;;  %v2599_v41 = vmax.f32 %v2567_v2, 0.0  ;;  %v2479_v42 = vadd.f32 %v11002_v13, %v10773_v22  ;;  %v8128_v47 = vrot.slane %v3809_v29, 9  ;;  %v2602_v49 = vmax.f32 %v2570_v7, 0.0  ;;  %v9668_v22 = vld [vmem:[%s12361_s4 + $0x1e0] sm:$0xff]  }
 0x258   : > { %6744 = vmatmul.mubr.bf16.gmra.mrb[132].mxu1 %v9622_v21  ;;  %v3395_v17 = vrot.slane %v3394_v33, 4  ;;  %v3403_v24 = vrot.slane %v3401_v38, 4  ;;  %v3409_v35 = vrot.slane %v3407_v40, 5  ;;  %v2529_v53 = vmul.f32 %v10798_v30, %v2458_v15  ;;  %9246 = vmatprep.subr.bf16.mxu0 %v9668_v22  ;;  %v3113_v33 = vld [vmem:[#allocation3 + $0x98] sm:$0x1] }
 0x259   : > { %v8417_v25 = vpack.c.bf16 %v2599_v41, %v2599_v41  ;;  %v2534_v58 = vmul.f32 %v10798_v30, %v2479_v42  ;;  %v3918_v0 = vrot.slane %v3810_v45, 5  ;;  %v8420_v48 = vpack.c.bf16 %v2602_v49, %v2602_v49  ;;  %v9624_v45 = vld [vmem:[#allocation3 + $0x18] sm:$0xff]   ;;  %v3297_v15 = vld [vmem:[#allocation3 + $0x24] sm:$0xf]  ;;  %v9674_v42 = vld [vmem:[%s12361_s4 + $0x1e8] sm:$0xff]  }
 0x25a   : > { %v3400_v12 = vsel %vm10676_vm7, %v3395_v17, %v3399_v36  ;;  %v3404_v23 = vor.u32 %v3403_v24, %v3399_v36  ;;  %v3921_v51 = vrot.slane %v3811_v34, 5  ;;  %v2568_v10 = vadd.f32 %v10806_v50, %v2529_v53  ;;  %v9672_v36 = vld [vmem:[%s12361_s4 + $0x1a0] sm:$0xff]   ;;  %v3298_v24 = vld [vmem:[#allocation3 + $0x28] sm:$0xf] }
 0x25b   : > { %v2880_v13 = vshrl.u32 %v8417_v25, 16  ;;  %v2883_v55 = vshll.u32 %v8417_v25, 16  ;;  %v2573_v31 = vadd.f32 %v10806_v50, %v2534_v58  ;;  %v2905_v26 = vshrl.u32 %v8420_v48, 16  ;;  %9247 = vmatpush3.bf16.msra.mxu0 %v9672_v36 }
 0x25c   : > { %v2908_v16 = vshll.u32 %v8420_v48, 16  ;;  %v3405_v30 = vrot.slane %v3404_v23, 4  ;;  %v3919_v29 = vsel %vm10816_vm10, %v8128_v47, %v3918_v0  ;;  %v2600_v27 = vmax.f32 %v2568_v10, 0.0  ;;  %9248 = vmatprep.subr.bf16.mxu0 %v9674_v42  ;;  %v3123_v23 = vld [vmem:[#allocation3 + $0xa8] sm:$0xf] }
 0x25d   : > { %v11129_v14 = vrot.slane %v2880_v13, 7  ;;  %v2605_v11 = vmax.f32 %v2573_v31, 0.0  ;;  %v3920_v6 = vrot.slane %v3918_v0, 4  ;;  %v2907_v1 = vrot.slane %v2905_v26, 7  ;;  %v9625_v0 = vld [vmem:[#allocation3 + $0x30] sm:$0xff]  }
 0x25e   : > { %v3410_v50 = vsel %vm10676_vm7, %v3405_v30, %v3409_v35  ;;  %v2471_v57 = vadd.f32 %v11008_v32, %v10757_v59  ;;  %v2482_v2 = vadd.f32 %v11014_v39, %v10775_v44  ;;  %v8418_v40 = vpack.c.bf16 %v2600_v27, %v2600_v27  ;;  %v9673_v59 = vld [vmem:[%s12361_s4 + $0x138] sm:$0xff]   ;;  %v9675_v27 = vld [vmem:[%s12361_s4 + $0x1a8] sm:$0xff]  }
 0x25f   : > { %v2885_v21 = vor.u32 %v2883_v55, %v11129_v14  ;;  %v2886_v7 = vrot.slane %v11129_v14, 4  ;;  %v8112_v38 = vcombine.low %v3400_v12, %v3410_v50  ;;  %v2910_v32 = vor.u32 %v2908_v16, %v2907_v1  ;;  %9141 = vmatpush3.bf16.msra.mxu1 %v9673_v59  ;;  %v3106_v12 = vld [vmem:[#allocation3 + $0x8c] sm:$0x1]  ;;  %v9676_v50 = vld [vmem:[%s12361_s4 + $0x1f0] sm:$0xff]   ;;  %9249 = vmatpush3.bf16.msra.mxu0 %v9675_v27  ;;  %v3813_v42 = vld [vmem:[#allocation3 + $0x28] sm:$0xf] }
 0x260   : > { %v2912_v41 = vrot.slane %v2907_v1, 4  ;;  %v8423_v44 = vpack.c.bf16 %v2605_v11, %v2605_v11  ;;  %v3922_v39 = vsel %vm10816_vm10, %v3920_v6, %v3921_v51  ;;  %v2888_v47 = vshrl.u32 %v8418_v40, 16  ;;  %v3299_v55 = vld [vmem:[#allocation3 + $0x2c] sm:$0x1]  ;;  %9250 = vmatprep.subr.bf16.mxu0 %v9676_v50 }
 0x261   : > { %v3103_v34 = vsel %vm10851_vm13, %v2885_v21, %v3102_v52  ;;  %6751 = vmatprep.mubr.bf16.mxu1 %v8112_v38  ;;  %v2891_v49 = vshll.u32 %v8418_v40, 16  ;;  %v8144_v17 = vcombine.low %v3919_v29, %v3922_v39  ;;  %v2911_v35 = vsel %vm10858_vm14, %v2903_v63, %v2910_v32  ;;  %v11170_v29 = vld [vmem:[%s12360_s3] ss:$0 sm:$0xff]  ;;  %v9679_v32 = vld [vmem:[%s12361_s4 + $0x1f8] sm:$0xff]  }
 0x262   : > { %3104 = vst [vmem:[#allocation3 + $0x84] sm:$0xf] %v3103_v34  ;;  %v3114_v25 = vsel %vm10544_vm2, %v2912_v41, %v3113_v33  ;;  %v2931_v53 = vshrl.u32 %v8423_v44, 16  ;;  %v2934_v58 = vshll.u32 %v8423_v44, 16  ;;  %6752 = vmatmul.mubr.bf16.gmra.mrb[136].mxu1 %v9624_v45  ;;  %3112 = vst [vmem:[#allocation3 + $0x94] sm:$0xf] %v2911_v35  ;;  %v2532_v63 = vmul.f32 %v11161_v9, %v2471_v57 }
 0x263   : > { %3115 = vst [vmem:[#allocation3 + $0x98] sm:$0x1] %v3114_v25  ;;  %v2890_v48 = vrot.slane %v2888_v47, 7  ;;  %6913 = vmatmul.mubr.bf16.gmra.mrb[168].mxu0 %v8144_v17  ;;  %v2535_v51 = vmul.f32 %v11161_v9, %v2482_v2  ;;  %v3412_v22 = vshrl.u32 %v3297_v15, 16  ;;  %v3415_v10 = vshll.u32 %v3297_v15, 16 }
 0x264   : > { %v11165_v13 = vrot.slane %v2931_v53, 7  ;;  %6920 = vmatprep.mubr.bf16.mxu0 %v9625_v0  ;;  %v3421_v31 = vshll.u32 %v3298_v24, 16  ;;  %v3425_v26 = vshrl.u32 %v3298_v24, 16  ;;  %v2571_v3 = vadd.f32 %v11170_v29, %v2532_v63  ;;  %v3812_v33 = vld [vmem:[#allocation3 + $0x24] sm:$0xe]  ;;  %v9680_v0 = vld [vmem:[%s12361_s4 + $0x1b8] sm:$0xff]  }
 0x265   : > { %v2893_v16 = vor.u32 %v2891_v49, %v2890_v48  ;;  %v2895_v30 = vrot.slane %v2890_v48, 4  ;;  %v2574_v14 = vadd.f32 %v11170_v29, %v2535_v51  ;;  %v3414_v52 = vrot.slane %v3412_v22, 4  ;;  %v3814_v17 = vld [vmem:[#allocation3 + $0x2c] sm:$0x1]  ;;  %v3116_v51 = vld [vmem:[#allocation3 + $0x9c] sm:$0xf] }
 0x266   : > { %v2936_v11 = vor.u32 %v2934_v58, %v11165_v13  ;;  %v2937_v6 = vrot.slane %v11165_v13, 4  ;;  %v3417_v1 = vrot.slane %v3415_v10, 5  ;;  %v2603_v36 = vmax.f32 %v2571_v3, 0.0  ;;  %v3127_v22 = vld [vmem:[#allocation3 + $0xb0] sm:$0x1] }
 0x267   : > { %v2894_v57 = vsel %vm10858_vm14, %v2886_v7, %v2893_v16  ;;  %v3107_v2 = vsel %vm10544_vm2, %v2895_v30, %v3106_v12  ;;  %v2606_v21 = vmax.f32 %v2574_v14, 0.0  ;;  %v3423_v45 = vrot.slane %v3421_v31, 5  ;;  %v9678_v7 = vld [vmem:[%s12361_s4 + $0x1b0] sm:$0xff]   ;;  %v9682_v16 = vld [vmem:[%s12361_s4 + $0x200] sm:$0xff]  }
 0x268   : > { %3105 = vst [vmem:[#allocation3 + $0x88] sm:$0xf] %v2894_v57  ;;  %3108 = vst [vmem:[#allocation3 + $0x8c] sm:$0x1] %v3107_v2  ;;  %v3124_v38 = vsel %vm10851_vm13, %v2936_v11, %v3123_v23  ;;  %v3418_v40 = vor.u32 %v3417_v1, %v3414_v52  ;;  %v3427_v59 = vrot.slane %v3425_v26, 4  ;;  %v8421_v41 = vpack.c.bf16 %v2603_v36, %v2603_v36 }
 0x269   : > { %3125 = vst [vmem:[#allocation3 + $0xa8] sm:$0xf] %v3124_v38  ;;  %v8424_v44 = vpack.c.bf16 %v2606_v21, %v2606_v21  ;;  %v3431_v39 = vshll.u32 %v3299_v55, 16  ;;  %v2474_v15 = vadd.f32 %v11017_v54, %v10767_v18  ;;  %v2495_v49 = vadd.f32 %v11025_v62, %v10793_v19  ;;  %9251 = vmatpush3.bf16.msra.mxu0 %v9678_v7  ;;  %v3300_v57 = vld [vmem:[#allocation3 + $0x30] sm:$0xf] }
 0x26a   : > { %v3419_v34 = vrot.slane %v3418_v40, 4  ;;  %v3428_v47 = vor.u32 %v3427_v59, %v3423_v45  ;;  %v8129_v24 = vrot.slane %v3812_v33, 9  ;;  %v2914_v35 = vshrl.u32 %v8421_v41, 16  ;;  %9252 = vmatprep.subr.bf16.mxu0 %v9679_v32  ;;  %9422 = vmatprep.subr.bf16.mxu1 %v9682_v16  ;;  %v9628_v33 = vld [vmem:[#allocation3 + $0x24] sm:$0xff]  }
 0x26b   : > { %v2917_v25 = vshll.u32 %v8421_v41, 16  ;;  %v2939_v53 = vshrl.u32 %v8424_v44, 16  ;;  %v2942_v58 = vshll.u32 %v8424_v44, 16  ;;  %v3433_v48 = vrot.slane %v3431_v39, 5 }
 0x26c   : > { %v3424_v18 = vsel %vm10676_vm7, %v3419_v34, %v3423_v45  ;;  %v3429_v54 = vrot.slane %v3428_v47, 4  ;;  %v2533_v12 = vmul.f32 %v11161_v9, %v2474_v15  ;;  %v11204_v19 = vrot.slane %v2914_v35, 7  ;;  %v9629_v47 = vld [vmem:[#allocation3 + $0x3c] sm:$0xff]  }
 0x26d   : > { %v2941_v62 = vrot.slane %v2939_v53, 7  ;;  %v2538_v23 = vmul.f32 %v11161_v9, %v2495_v49  ;;  %v3925_v63 = vrot.slane %v3813_v42, 5  ;;  %v3928_v31 = vrot.slane %v3814_v17, 5  ;;  %9253 = vmatpush3.bf16.msra.mxu0 %v9680_v0  ;;  %v3302_v42 = vld [vmem:[#allocation3 + $0x38] sm:$0x1] }
 0x26e   : > { %v3434_v55 = vsel %vm10676_vm7, %v3429_v54, %v3433_v48  ;;  %v2572_v10 = vadd.f32 %v11170_v29, %v2533_v12  ;;  %v2487_v26 = vadd.f32 %v11036_v28, %v10783_v46  ;;  %v2919_v30 = vor.u32 %v2917_v25, %v11204_v19  ;;  %v3301_v46 = vld [vmem:[#allocation3 + $0x34] sm:$0xf]  ;;  %v3120_v53 = vld [vmem:[#allocation3 + $0xa4] sm:$0x1] }
 0x26f   : > { %v2920_v3 = vrot.slane %v11204_v19, 4  ;;  %v2944_v14 = vor.u32 %v2942_v58, %v2941_v62  ;;  %v2946_v27 = vrot.slane %v2941_v62, 4  ;;  %v8113_v11 = vcombine.low %v3424_v18, %v3434_v55  ;;  %v3137_v58 = vld [vmem:[#allocation3 + $0xc0] sm:$0xf] }
 0x270   : > { %v2604_v52 = vmax.f32 %v2572_v10, 0.0  ;;  %v2577_v1 = vadd.f32 %v11170_v29, %v2538_v23  ;;  %v3926_v50 = vsel %vm10816_vm10, %v8129_v24, %v3925_v63  ;;  %v3117_v28 = vsel %vm10851_vm13, %v2919_v30, %v3116_v51 }
 0x271   : > { %v2945_v2 = vsel %vm10858_vm14, %v2937_v6, %v2944_v14  ;;  %v3128_v36 = vsel %vm10544_vm2, %v2946_v27, %v3127_v22  ;;  %v3927_v21 = vrot.slane %v3925_v63, 4  ;;  %3118 = vst [vmem:[#allocation3 + $0x9c] sm:$0xf] %v3117_v28  ;;  %6759 = vmatprep.mubr.bf16.mxu1 %v8113_v11  ;;  %v2536_v45 = vmul.f32 %v11161_v9, %v2487_v26  ;;  %v3815_v63 = vld [vmem:[#allocation3 + $0x30] sm:$0xe] }
 0x272   : > { %3126 = vst [vmem:[#allocation3 + $0xac] sm:$0xf] %v2945_v2  ;;  %3129 = vst [vmem:[#allocation3 + $0xb0] sm:$0x1] %v3128_v36  ;;  %v8422_v38 = vpack.c.bf16 %v2604_v52, %v2604_v52  ;;  %v2609_v40 = vmax.f32 %v2577_v1, 0.0  ;;  %v2498_v59 = vadd.f32 %v11047_v5, %v10800_v60  ;;  %6760 = vmatmul.mubr.bf16.gmra.mrb[140].mxu1 %v9628_v33  ;;  %v3436_v6 = vshrl.u32 %v3300_v57, 16 }
 0x273   : > { %v3929_v13 = vsel %vm10816_vm10, %v3927_v21, %v3928_v31  ;;  %v3439_v7 = vshll.u32 %v3300_v57, 16  ;;  %v3445_v32 = vshll.u32 %v3301_v46, 16  ;;  %v2575_v34 = vadd.f32 %v11170_v29, %v2536_v45  ;;  %v3816_v14 = vld [vmem:[#allocation3 + $0x34] sm:$0xf]  ;;  %v3303_v2 = vld [vmem:[#allocation3 + $0x3c] sm:$0xf] }
 0x274   : > { %v2922_v41 = vshrl.u32 %v8422_v38, 16  ;;  %v2925_v44 = vshll.u32 %v8422_v38, 16  ;;  %v8427_v39 = vpack.c.bf16 %v2609_v40, %v2609_v40  ;;  %v8145_v15 = vcombine.low %v3926_v50, %v3929_v13  ;;  %v3817_v50 = vld [vmem:[#allocation3 + $0x38] sm:$0x1]  ;;  %v3130_v21 = vld [vmem:[#allocation3 + $0xb4] sm:$0xf] }
 0x275   : > { %v2539_v49 = vmul.f32 %v11161_v9, %v2498_v59  ;;  %v3438_v17 = vrot.slane %v3436_v6, 4  ;;  %v3441_v24 = vrot.slane %v3439_v7, 5  ;;  %v3447_v25 = vrot.slane %v3445_v32, 5  ;;  %v3141_v45 = vld [vmem:[#allocation3 + $0xc8] sm:$0x1] }
 0x276   : > { %v2924_v60 = vrot.slane %v2922_v41, 7  ;;  %v2965_v5 = vshrl.u32 %v8427_v39, 16  ;;  %v2968_v35 = vshll.u32 %v8427_v39, 16  ;;  %6921 = vmatmul.mubr.bf16.gmra.mrb[172].mxu0 %v8145_v15  ;;  %v2607_v0 = vmax.f32 %v2575_v34, 0.0  ;;  %v3304_v32 = vld [vmem:[#allocation3 + $0x40] sm:$0xf] }
 0x277   : > { %6928 = vmatprep.mubr.bf16.mxu0 %v9629_v47  ;;  %v2578_v18 = vadd.f32 %v11170_v29, %v2539_v49  ;;  %v3442_v54 = vor.u32 %v3441_v24, %v3438_v17  ;;  %v3449_v48 = vshrl.u32 %v3301_v46, 16  ;;  %v3455_v23 = vshll.u32 %v3302_v42, 16 }
 0x278   : > { %v2927_v12 = vor.u32 %v2925_v44, %v2924_v60  ;;  %v2929_v19 = vrot.slane %v2924_v60, 4  ;;  %v2967_v62 = vrot.slane %v2965_v5, 7  ;;  %v8425_v51 = vpack.c.bf16 %v2607_v0, %v2607_v0  ;;  %v3819_v5 = vld [vmem:[#allocation3 + $0x40] sm:$0xf] }
 0x279   : > { %v2610_v22 = vmax.f32 %v2578_v18, 0.0  ;;  %v3443_v55 = vrot.slane %v3442_v54, 4  ;;  %v3451_v10 = vrot.slane %v3449_v48, 4  ;;  %v2490_v28 = vadd.f32 %v11051_v43, %v10787_v20  ;;  %v3305_v43 = vld [vmem:[#allocation3 + $0x44] sm:$0x1] }
 0x27a   : > { %v2928_v31 = vsel %vm10858_vm14, %v2920_v3, %v2927_v12  ;;  %v3121_v26 = vsel %vm10544_vm2, %v2929_v19, %v3120_v53  ;;  %v2970_v16 = vor.u32 %v2968_v35, %v2967_v62  ;;  %v2971_v30 = vrot.slane %v2967_v62, 4  ;;  %v3820_v35 = vld [vmem:[#allocation3 + $0x44] sm:$0x1]  ;;  %v9631_v19 = vld [vmem:[#allocation3 + $0x48] sm:$0xff]  }
 0x27b   : > { %3119 = vst [vmem:[#allocation3 + $0xa0] sm:$0xf] %v2928_v31  ;;  %3122 = vst [vmem:[#allocation3 + $0xa4] sm:$0x1] %v3121_v26  ;;  %v2948_v27 = vshrl.u32 %v8425_v51, 16  ;;  %v2951_v11 = vshll.u32 %v8425_v51, 16  ;;  %v8428_v52 = vpack.c.bf16 %v2610_v22, %v2610_v22  ;;  %v3448_v1 = vsel %vm10676_vm7, %v3443_v55, %v3447_v25 }
 0x27c   : > { %v3138_v57 = vsel %vm10851_vm13, %v2970_v16, %v3137_v58  ;;  %v3452_v46 = vor.u32 %v3451_v10, %v3447_v25  ;;  %v3457_v3 = vrot.slane %v3455_v23, 5  ;;  %v8130_v40 = vrot.slane %v3815_v63, 9  ;;  %v9630_v58 = vld [vmem:[#allocation3 + $0x30] sm:$0xff]   ;;  %v3306_v51 = vld [vmem:[#allocation3 + $0x48] sm:$0xf] }
 0x27d   : > { %3139 = vst [vmem:[#allocation3 + $0xc0] sm:$0xf] %v3138_v57  ;;  %v11246_v36 = vrot.slane %v2948_v27, 7  ;;  %v2973_v33 = vshrl.u32 %v8428_v52, 16  ;;  %v2976_v38 = vshll.u32 %v8428_v52, 16  ;;  %v2537_v13 = vmul.f32 %v11161_v9, %v2490_v28 }
 0x27e   : > { %v3453_v59 = vrot.slane %v3452_v46, 4  ;;  %v3932_v6 = vrot.slane %v3816_v14, 5  ;;  %v3935_v7 = vrot.slane %v3817_v50, 5  ;;  %v3460_v39 = vshrl.u32 %v3303_v2, 16  ;;  %v3818_v9 = vld [vmem:[#allocation3 + $0x3c] sm:$0xe] }
 0x27f   : > { %v2953_v41 = vor.u32 %v2951_v11, %v11246_v36  ;;  %v2954_v44 = vrot.slane %v11246_v36, 4  ;;  %v2975_v20 = vrot.slane %v2973_v33, 7  ;;  %v2576_v42 = vadd.f32 %v11170_v29, %v2537_v13  ;;  %v3307_v26 = vld [vmem:[#allocation3 + $0x4c] sm:$0xf]  ;;  %v3134_v11 = vld [vmem:[#allocation3 + $0xbc] sm:$0x1] }
 0x280   : > { %v3458_v15 = vsel %vm10676_vm7, %v3453_v59, %v3457_v3  ;;  %v3933_v34 = vsel %vm10816_vm10, %v8130_v40, %v3932_v6  ;;  %v3934_v47 = vrot.slane %v3932_v6, 4  ;;  %v3462_v29 = vrot.slane %v3460_v39, 4  ;;  %v3308_v57 = vld [vmem:[#allocation3 + $0x50] sm:$0x1]  ;;  %v3821_v33 = vld [vmem:[#allocation3 + $0x48] sm:$0xe] }
 0x281   : > { %v3131_v49 = vsel %vm10851_vm13, %v2953_v41, %v3130_v21  ;;  %v2978_v17 = vor.u32 %v2976_v38, %v2975_v20  ;;  %v2980_v24 = vrot.slane %v2975_v20, 4  ;;  %v8114_v60 = vcombine.low %v3448_v1, %v3458_v15  ;;  %v3822_v13 = vld [vmem:[#allocation3 + $0x4c] sm:$0xf]  ;;  %v3823_v20 = vld [vmem:[#allocation3 + $0x50] sm:$0x1] }
 0x282   : > { %3132 = vst [vmem:[#allocation3 + $0xb4] sm:$0xf] %v3131_v49  ;;  %v2608_v25 = vmax.f32 %v2576_v42, 0.0  ;;  %v3936_v53 = vsel %vm10816_vm10, %v3934_v47, %v3935_v7  ;;  %v3463_v0 = vshll.u32 %v3303_v2, 16  ;;  %v3469_v48 = vshll.u32 %v3304_v32, 16 }
 0x283   : > { %v2979_v18 = vsel %vm10858_vm14, %v2971_v30, %v2978_v17  ;;  %v3142_v37 = vsel %vm10544_vm2, %v2980_v24, %v3141_v45  ;;  %6767 = vmatprep.mubr.bf16.mxu1 %v8114_v60  ;;  %v8146_v54 = vcombine.low %v3933_v34, %v3936_v53  ;;  %v3473_v23 = vshrl.u32 %v3304_v32, 16  ;;  %v9635_v17 = vld [vmem:[#allocation3 + $0x54] sm:$0xff]  }
 0x284   : > { %3140 = vst [vmem:[#allocation3 + $0xc4] sm:$0xf] %v2979_v18  ;;  %3143 = vst [vmem:[#allocation3 + $0xc8] sm:$0x1] %v3142_v37  ;;  %v8426_v12 = vpack.c.bf16 %v2608_v25, %v2608_v25  ;;  %6768 = vmatmul.mubr.bf16.gmra.mrb[144].mxu1 %v9630_v58  ;;  %v3465_v62 = vrot.slane %v3463_v0, 5  ;;  %v3479_v63 = vshll.u32 %v3305_v43, 16 }
 0x285   : > { %6929 = vmatmul.mubr.bf16.gmra.mrb[176].mxu0 %v8146_v54  ;;  %v3471_v22 = vrot.slane %v3469_v48, 5  ;;  %v8131_v55 = vrot.slane %v3818_v9, 9  ;;  %v3939_v10 = vrot.slane %v3819_v5, 5  ;;  %v3942_v31 = vrot.slane %v3820_v35, 5  ;;  %v3309_v43 = vld [vmem:[#allocation3 + $0x54] sm:$0xf] }
 0x286   : > { %v2956_v16 = vshrl.u32 %v8426_v12, 16  ;;  %v2959_v30 = vshll.u32 %v8426_v12, 16  ;;  %6936 = vmatprep.mubr.bf16.mxu0 %v9631_v19  ;;  %v3466_v14 = vor.u32 %v3465_v62, %v3462_v29  ;;  %v3475_v27 = vrot.slane %v3473_v23, 4  ;;  %v3310_v60 = vld [vmem:[#allocation3 + $0x58] sm:$0xf]  ;;  %v9634_v35 = vld [vmem:[#allocation3 + $0x3c] sm:$0xff]  }
 0x287   : > { %v3481_v52 = vrot.slane %v3479_v63, 5  ;;  %v3940_v1 = vsel %vm10816_vm10, %v8131_v55, %v3939_v10  ;;  %v3941_v50 = vrot.slane %v3939_v10, 4  ;;  %v3484_v46 = vshrl.u32 %v3306_v51, 16  ;;  %v3311_v58 = vld [vmem:[#allocation3 + $0x5c] sm:$0x1] }
 0x288   : > { %v2958_v3 = vrot.slane %v2956_v16, 7  ;;  %v3467_v28 = vrot.slane %v3466_v14, 4  ;;  %v3476_v2 = vor.u32 %v3475_v27, %v3471_v22  ;;  %v3487_v21 = vshll.u32 %v3306_v51, 16  ;;  %v3824_v18 = vld [vmem:[#allocation3 + $0x54] sm:$0xe] }
 0x289   : > { %v3943_v38 = vsel %vm10816_vm10, %v3941_v50, %v3942_v31  ;;  %v3486_v40 = vrot.slane %v3484_v46, 4  ;;  %v3493_v45 = vshll.u32 %v3307_v26, 16  ;;  %v3497_v59 = vshrl.u32 %v3307_v26, 16  ;;  %v3825_v37 = vld [vmem:[#allocation3 + $0x58] sm:$0xf] }
 0x28a   : > { %v2961_v6 = vor.u32 %v2959_v30, %v2958_v3  ;;  %v2963_v7 = vrot.slane %v2958_v3, 4  ;;  %v3472_v32 = vsel %vm10676_vm7, %v3467_v28, %v3471_v22  ;;  %v3477_v41 = vrot.slane %v3476_v2, 4  ;;  %v3826_v62 = vld [vmem:[#allocation3 + $0x5c] sm:$0x1]  ;;  %v3312_v16 = vld [vmem:[#allocation3 + $0x60] sm:$0xf] }
 0x28b   : > { %v8147_v39 = vcombine.low %v3940_v1, %v3943_v38  ;;  %v3489_v15 = vrot.slane %v3487_v21, 5  ;;  %v3495_v42 = vrot.slane %v3493_v45, 5  ;;  %v3499_v34 = vrot.slane %v3497_v59, 4  ;;  %v3313_v46 = vld [vmem:[#allocation3 + $0x64] sm:$0xf] }
 0x28c   : > { %v2962_v47 = vsel %vm10858_vm14, %v2954_v44, %v2961_v6  ;;  %v3135_v9 = vsel %vm10544_vm2, %v2963_v7, %v3134_v11  ;;  %v3482_v49 = vsel %vm10676_vm7, %v3477_v41, %v3481_v52  ;;  %v3503_v24 = vshll.u32 %v3308_v57, 16  ;;  %v3314_v3 = vld [vmem:[#allocation3 + $0x68] sm:$0x1]  ;;  %v9637_v28 = vld [vmem:[#allocation3 + $0x60] sm:$0xff]  }
 0x28d   : > { %3133 = vst [vmem:[#allocation3 + $0xb8] sm:$0xf] %v2962_v47  ;;  %3136 = vst [vmem:[#allocation3 + $0xbc] sm:$0x1] %v3135_v9  ;;  %v8115_v5 = vcombine.low %v3472_v32, %v3482_v49  ;;  %6937 = vmatmul.mubr.bf16.gmra.mrb[180].mxu0 %v8147_v39  ;;  %v3490_v25 = vor.u32 %v3489_v15, %v3486_v40  ;;  %v3500_v53 = vor.u32 %v3499_v34, %v3495_v42  ;;  %v9636_v40 = vld [vmem:[#allocation3 + $0x48] sm:$0xff]  }
 0x28e   : > { %v8132_v36 = vrot.slane %v3821_v33, 9  ;;  %6944 = vmatprep.mubr.bf16.mxu0 %v9635_v17  ;;  %v3505_v56 = vrot.slane %v3503_v24, 5  ;;  %v3946_v44 = vrot.slane %v3822_v13, 5  ;;  %v3949_v29 = vrot.slane %v3823_v20, 5  ;;  %v3827_v7 = vld [vmem:[#allocation3 + $0x60] sm:$0xe] }
 0x28f   : > { %v3508_v0 = vshrl.u32 %v3309_v43, 16  ;;  %6775 = vmatprep.mubr.bf16.mxu1 %v8115_v5  ;;  %v3491_v54 = vrot.slane %v3490_v25, 4  ;;  %v3501_v48 = vrot.slane %v3500_v53, 4  ;;  %v3511_v12 = vshll.u32 %v3309_v43, 16  ;;  %v3828_v39 = vld [vmem:[#allocation3 + $0x64] sm:$0xf] }
 0x290   : > { %v3517_v19 = vshll.u32 %v3310_v60, 16  ;;  %6776 = vmatmul.mubr.bf16.gmra.mrb[148].mxu1 %v9634_v35  ;;  %v3947_v23 = vsel %vm10816_vm10, %v8132_v36, %v3946_v44  ;;  %v3948_v63 = vrot.slane %v3946_v44, 4  ;;  %v3521_v22 = vshrl.u32 %v3310_v60, 16  ;;  %v3829_v9 = vld [vmem:[#allocation3 + $0x68] sm:$0x1] }
 0x291   : > { %v3510_v51 = vrot.slane %v3508_v0, 4  ;;  %v3496_v55 = vsel %vm10676_vm7, %v3491_v54, %v3495_v42  ;;  %v3506_v10 = vsel %vm10676_vm7, %v3501_v48, %v3505_v56  ;;  %v3513_v31 = vrot.slane %v3511_v12, 5  ;;  %v3315_v49 = vld [vmem:[#allocation3 + $0x6c] sm:$0xf]  ;;  %v3316_v35 = vld [vmem:[#allocation3 + $0x70] sm:$0xf] }
 0x292   : > { %v3519_v26 = vrot.slane %v3517_v19, 5  ;;  %v8116_v30 = vcombine.low %v3496_v55, %v3506_v10  ;;  %v3950_v14 = vsel %vm10816_vm10, %v3948_v63, %v3949_v29  ;;  %v3523_v27 = vrot.slane %v3521_v22, 4  ;;  %v3317_v56 = vld [vmem:[#allocation3 + $0x74] sm:$0x1]  ;;  %v9641_v63 = vld [vmem:[#allocation3 + $0x6c] sm:$0xff]  }
 0x293   : > { %v3527_v11 = vshll.u32 %v3311_v58, 16  ;;  %v8148_v52 = vcombine.low %v3947_v23, %v3950_v14  ;;  %v3514_v1 = vor.u32 %v3513_v31, %v3510_v51  ;;  %v8133_v50 = vrot.slane %v3824_v18, 9  ;;  %v3832_v23 = vld [vmem:[#allocation3 + $0x74] sm:$0x1]  ;;  %v3318_v14 = vld [vmem:[#allocation3 + $0x78] sm:$0xf] }
 0x294   : > { %v3953_v57 = vrot.slane %v3825_v37, 5  ;;  %6783 = vmatprep.mubr.bf16.mxu1 %v8116_v30  ;;  %v3524_v2 = vor.u32 %v3523_v27, %v3519_v26  ;;  %v3956_v33 = vrot.slane %v3826_v62, 5  ;;  %v3532_v38 = vshrl.u32 %v3312_v16, 16  ;;  %v3830_v37 = vld [vmem:[#allocation3 + $0x6c] sm:$0xe]  ;;  %v9640_v27 = vld [vmem:[#allocation3 + $0x54] sm:$0xff]  }
 0x295   : > { %v3529_v21 = vrot.slane %v3527_v11, 5  ;;  %6945 = vmatmul.mubr.bf16.gmra.mrb[184].mxu0 %v8148_v52  ;;  %v3515_v45 = vrot.slane %v3514_v1, 4  ;;  %v3535_v6 = vshll.u32 %v3312_v16, 16  ;;  %v3541_v20 = vshll.u32 %v3313_v46, 16  ;;  %v3831_v62 = vld [vmem:[#allocation3 + $0x70] sm:$0xf] }
 0x296   : > { %v3954_v59 = vsel %vm10816_vm10, %v8133_v50, %v3953_v57  ;;  %v3955_v13 = vrot.slane %v3953_v57, 4  ;;  %6952 = vmatprep.mubr.bf16.mxu0 %v9637_v28  ;;  %v3525_v32 = vrot.slane %v3524_v2, 4  ;;  %v3534_v41 = vrot.slane %v3532_v38, 4  ;;  %v3319_v57 = vld [vmem:[#allocation3 + $0x7c] sm:$0xf] }
 0x297   : > { %v3545_v43 = vshrl.u32 %v3313_v46, 16  ;;  %v3520_v15 = vsel %vm10676_vm7, %v3515_v45, %v3519_v26  ;;  %v3537_v34 = vrot.slane %v3535_v6, 5  ;;  %v3551_v47 = vshll.u32 %v3314_v3, 16 }
 0x298   : > { %v3957_v42 = vsel %vm10816_vm10, %v3955_v13, %v3956_v33  ;;  %6784 = vmatmul.mubr.bf16.gmra.mrb[152].mxu1 %v9636_v40  ;;  %v3530_v17 = vsel %vm10676_vm7, %v3525_v32, %v3529_v21  ;;  %v3543_v60 = vrot.slane %v3541_v20, 5  ;;  %v8134_v58 = vrot.slane %v3827_v7, 9  ;;  %v3320_v21 = vld [vmem:[#allocation3 + $0x80] sm:$0x1]  ;;  %v3834_v13 = vld [vmem:[#allocation3 + $0x7c] sm:$0xf] }
 0x299   : > { %v8149_v24 = vcombine.low %v3954_v59, %v3957_v42  ;;  %v3547_v5 = vrot.slane %v3545_v43, 4  ;;  %v8117_v25 = vcombine.low %v3520_v15, %v3530_v17  ;;  %v3538_v53 = vor.u32 %v3537_v34, %v3534_v41  ;;  %v3833_v59 = vld [vmem:[#allocation3 + $0x78] sm:$0xe]  ;;  %v3835_v20 = vld [vmem:[#allocation3 + $0x80] sm:$0x1] }
 0x29a   : > { %v3553_v36 = vrot.slane %v3551_v47, 5  ;;  %v3960_v29 = vrot.slane %v3828_v39, 5  ;;  %v3963_v0 = vrot.slane %v3829_v9, 5  ;;  %v3556_v18 = vshrl.u32 %v3315_v49, 16  ;;  %v3321_v34 = vld [vmem:[#allocation3 + $0x84] sm:$0xf] }
 0x29b   : > { %v3548_v44 = vor.u32 %v3547_v5, %v3543_v60  ;;  %6791 = vmatprep.mubr.bf16.mxu1 %v8117_v25  ;;  %v3539_v54 = vrot.slane %v3538_v53, 4  ;;  %v3559_v48 = vshll.u32 %v3315_v49, 16  ;;  %v3565_v12 = vshll.u32 %v3316_v35, 16 }
 0x29c   : > { %v3569_v19 = vshrl.u32 %v3316_v35, 16  ;;  %v3961_v22 = vsel %vm10816_vm10, %v8134_v58, %v3960_v29  ;;  %v3962_v55 = vrot.slane %v3960_v29, 4  ;;  %v3558_v10 = vrot.slane %v3556_v18, 4  ;;  %v9644_v29 = vld [vmem:[#allocation3 + $0x60] sm:$0xff]  }
 0x29d   : > { %v3549_v51 = vrot.slane %v3548_v44, 4  ;;  %6953 = vmatmul.mubr.bf16.gmra.mrb[188].mxu0 %v8149_v24  ;;  %v3544_v31 = vsel %vm10676_vm7, %v3539_v54, %v3543_v60  ;;  %v3561_v26 = vrot.slane %v3559_v48, 5  ;;  %v3567_v16 = vrot.slane %v3565_v12, 5  ;;  %v9645_v24 = vld [vmem:[#allocation3 + $0x78] sm:$0xff]   ;;  %v3322_v44 = vld [vmem:[#allocation3 + $0x88] sm:$0xf] }
 0x29e   : > { %v3571_v30 = vrot.slane %v3569_v19, 4  ;;  %6960 = vmatprep.mubr.bf16.mxu0 %v9641_v63  ;;  %v3964_v52 = vsel %vm10816_vm10, %v3962_v55, %v3963_v0  ;;  %v3575_v1 = vshll.u32 %v3317_v56, 16  ;;  %v8135_v50 = vrot.slane %v3830_v37, 9  ;;  %v3323_v54 = vld [vmem:[#allocation3 + $0x8c] sm:$0x1] }
 0x29f   : > { %v3554_v11 = vsel %vm10676_vm7, %v3549_v51, %v3553_v36  ;;  %v8150_v3 = vcombine.low %v3961_v22, %v3964_v52  ;;  %v3562_v28 = vor.u32 %v3561_v26, %v3558_v10  ;;  %v3967_v38 = vrot.slane %v3831_v62, 5  ;;  %v3836_v63 = vld [vmem:[#allocation3 + $0x84] sm:$0xe]  ;;  %v3324_v51 = vld [vmem:[#allocation3 + $0x90] sm:$0xf] }
 0x2a0   : > { %v8118_v46 = vcombine.low %v3544_v31, %v3554_v11  ;;  %v3572_v2 = vor.u32 %v3571_v30, %v3567_v16  ;;  %6792 = vmatmul.mubr.bf16.gmra.mrb[156].mxu1 %v9640_v27  ;;  %v3577_v33 = vrot.slane %v3575_v1, 5  ;;  %v3970_v40 = vrot.slane %v3832_v23, 5  ;;  %v3325_v26 = vld [vmem:[#allocation3 + $0x94] sm:$0xf]  ;;  %v3837_v11 = vld [vmem:[#allocation3 + $0x88] sm:$0xf] }
 0x2a1   : > { %v3580_v45 = vshrl.u32 %v3318_v14, 16  ;;  %v3563_v6 = vrot.slane %v3562_v28, 4  ;;  %v3583_v32 = vshll.u32 %v3318_v14, 16  ;;  %v3589_v41 = vshll.u32 %v3319_v57, 16  ;;  %v3838_v52 = vld [vmem:[#allocation3 + $0x8c] sm:$0x1] }
 0x2a2   : > { %6799 = vmatprep.mubr.bf16.mxu1 %v8118_v46  ;;  %v3573_v7 = vrot.slane %v3572_v2, 4  ;;  %v3968_v43 = vsel %vm10816_vm10, %v8135_v50, %v3967_v38  ;;  %v3969_v39 = vrot.slane %v3967_v38, 4  ;;  %v3593_v42 = vshrl.u32 %v3319_v57, 16  ;;  %v9649_v38 = vld [vmem:[#allocation3 + $0x84] sm:$0xff]  }
 0x2a3   : > { %v3582_v15 = vrot.slane %v3580_v45, 4  ;;  %v3568_v47 = vsel %vm10676_vm7, %v3563_v6, %v3567_v16  ;;  %v3585_v49 = vrot.slane %v3583_v32, 5  ;;  %v3591_v17 = vrot.slane %v3589_v41, 5 }
 0x2a4   : > { %v3578_v9 = vsel %vm10676_vm7, %v3573_v7, %v3577_v33  ;;  %v3971_v5 = vsel %vm10816_vm10, %v3969_v39, %v3970_v40  ;;  %v3595_v35 = vrot.slane %v3593_v42, 4  ;;  %v3599_v25 = vshll.u32 %v3320_v21, 16  ;;  %v3839_v33 = vld [vmem:[#allocation3 + $0x90] sm:$0xe] }
 0x2a5   : > { %v8119_v60 = vcombine.low %v3568_v47, %v3578_v9  ;;  %6961 = vmatmul.mubr.bf16.gmra.mrb[192].mxu0 %v8150_v3  ;;  %v8151_v53 = vcombine.low %v3968_v43, %v3971_v5  ;;  %v3586_v36 = vor.u32 %v3585_v49, %v3582_v15  ;;  %v8136_v58 = vrot.slane %v3833_v59, 9  ;;  %v3840_v43 = vld [vmem:[#allocation3 + $0x94] sm:$0xf]  ;;  %v9648_v39 = vld [vmem:[#allocation3 + $0x6c] sm:$0xff]   ;;  %v3841_v9 = vld [vmem:[#allocation3 + $0x98] sm:$0x1] }
 0x2a6   : > { %v3974_v56 = vrot.slane %v3834_v13, 5  ;;  %6968 = vmatprep.mubr.bf16.mxu0 %v9645_v24  ;;  %v3596_v0 = vor.u32 %v3595_v35, %v3591_v17  ;;  %v3601_v18 = vrot.slane %v3599_v25, 5  ;;  %v3977_v37 = vrot.slane %v3835_v20, 5  ;;  %v3326_v13 = vld [vmem:[#allocation3 + $0x98] sm:$0x1] }
 0x2a7   : > { %v3604_v48 = vshrl.u32 %v3321_v34, 16  ;;  %v3587_v12 = vrot.slane %v3586_v36, 4  ;;  %v3607_v23 = vshll.u32 %v3321_v34, 16  ;;  %v3613_v10 = vshll.u32 %v3322_v44, 16  ;;  %v3327_v5 = vld [vmem:[#allocation3 + $0x9c] sm:$0xf] }
 0x2a8   : > { %v11312_v19 = vsel %vm10816_vm10, %v8136_v58, %v3974_v56  ;;  %v3976_v62 = vrot.slane %v3974_v56, 4  ;;  %6800 = vmatmul.mubr.bf16.gmra.mrb[160].mxu1 %v9644_v29  ;;  %v3597_v22 = vrot.slane %v3596_v0, 4  ;;  %v3617_v31 = vshrl.u32 %v3322_v44, 16  ;;  %v3328_v58 = vld [vmem:[#allocation3 + $0xa0] sm:$0xf] }
 0x2a9   : > { %v3606_v55 = vrot.slane %v3604_v48, 4  ;;  %6807 = vmatprep.mubr.bf16.mxu1 %v8119_v60  ;;  %v3592_v16 = vsel %vm10676_vm7, %v3587_v12, %v3591_v17  ;;  %v3609_v14 = vrot.slane %v3607_v23, 5  ;;  %v3623_v27 = vshll.u32 %v3323_v54, 16  ;;  %v3842_v12 = vld [vmem:[#allocation3 + $0x9c] sm:$0xe] }
 0x2aa   : > { %v11318_v30 = vsel %vm10816_vm10, %v3976_v62, %v3977_v37  ;;  %v3602_v1 = vsel %vm10676_vm7, %v3597_v22, %v3601_v18  ;;  %v3615_v57 = vrot.slane %v3613_v10, 5  ;;  %v3619_v46 = vrot.slane %v3617_v31, 4  ;;  %v3329_v23 = vld [vmem:[#allocation3 + $0xa4] sm:$0x1]  ;;  %v9653_v22 = vld [vmem:[#allocation3 + $0x90] sm:$0xff]  }
 0x2ab   : > { %v8152_v50 = vcombine.low %v11312_v19, %v11318_v30  ;;  %v8120_v3 = vcombine.low %v3592_v16, %v3602_v1  ;;  %v3610_v28 = vor.u32 %v3609_v14, %v3606_v55  ;;  %v3625_v2 = vrot.slane %v3623_v27, 5  ;;  %v3843_v16 = vld [vmem:[#allocation3 + $0xa0] sm:$0xf]  ;;  %v3330_v1 = vld [vmem:[#allocation3 + $0xa8] sm:$0xf] }
 0x2ac   : > { %v8137_v21 = vrot.slane %v3836_v63, 9  ;;  %v3620_v40 = vor.u32 %v3619_v46, %v3615_v57  ;;  %v3981_v45 = vrot.slane %v3837_v11, 5  ;;  %v3984_v59 = vrot.slane %v3838_v52, 5  ;;  %v3844_v52 = vld [vmem:[#allocation3 + $0xa4] sm:$0x1] }
 0x2ad   : > { %v3628_v6 = vshrl.u32 %v3324_v51, 16  ;;  %6969 = vmatmul.mubr.bf16.gmra.mrb[196].mxu0 %v8151_v53  ;;  %v3611_v7 = vrot.slane %v3610_v28, 4  ;;  %v3631_v32 = vshll.u32 %v3324_v51, 16  ;;  %v3637_v41 = vshll.u32 %v3325_v26, 16 }
 0x2ae   : > { %v3641_v20 = vshrl.u32 %v3325_v26, 16  ;;  %6976 = vmatprep.mubr.bf16.mxu0 %v9649_v38  ;;  %v3621_v15 = vrot.slane %v3620_v40, 4  ;;  %v11326_v42 = vsel %vm10816_vm10, %v8137_v21, %v3981_v45  ;;  %v3983_v34 = vrot.slane %v3981_v45, 4  ;;  %v3331_v40 = vld [vmem:[#allocation3 + $0xac] sm:$0xf] }
 0x2af   : > { %v3630_v47 = vrot.slane %v3628_v6, 4  ;;  %v3616_v49 = vsel %vm10676_vm7, %v3611_v7, %v3615_v57  ;;  %v3633_v17 = vrot.slane %v3631_v32, 5  ;;  %v3639_v24 = vrot.slane %v3637_v41, 5  ;;  %v9652_v57 = vld [vmem:[#allocation3 + $0x78] sm:$0xff]   ;;  %v3332_v45 = vld [vmem:[#allocation3 + $0xb0] sm:$0x1] }
 0x2b0   : > { %v3643_v60 = vrot.slane %v3641_v20, 4  ;;  %6808 = vmatmul.mubr.bf16.gmra.mrb[164].mxu1 %v9648_v39  ;;  %v3626_v35 = vsel %vm10676_vm7, %v3621_v15, %v3625_v2  ;;  %v11334_v25 = vsel %vm10816_vm10, %v3983_v34, %v3984_v59  ;;  %v3647_v53 = vshll.u32 %v3326_v13, 16  ;;  %v3845_v32 = vld [vmem:[#allocation3 + $0xa8] sm:$0xe] }
 0x2b1   : > { %v8138_v36 = vrot.slane %v3839_v33, 9  ;;  %6815 = vmatprep.mubr.bf16.mxu1 %v8120_v3  ;;  %v8121_v56 = vcombine.low %v3616_v49, %v3626_v35  ;;  %v8153_v44 = vcombine.low %v11326_v42, %v11334_v25  ;;  %v3634_v29 = vor.u32 %v3633_v17, %v3630_v47  ;;  %v3846_v49 = vld [vmem:[#allocation3 + $0xac] sm:$0xf]  ;;  %v3847_v35 = vld [vmem:[#allocation3 + $0xb0] sm:$0x1] }
 0x2b2   : > { %v3644_v0 = vor.u32 %v3643_v60, %v3639_v24  ;;  %v3649_v18 = vrot.slane %v3647_v53, 5  ;;  %v3988_v37 = vrot.slane %v3840_v43, 5  ;;  %v3991_v54 = vrot.slane %v3841_v9, 5  ;;  %v3333_v53 = vld [vmem:[#allocation3 + $0xb4] sm:$0xf] }
 0x2b3   : > { %v3652_v48 = vshrl.u32 %v3327_v5, 16  ;;  %v3635_v19 = vrot.slane %v3634_v29, 4  ;;  %v3655_v63 = vshll.u32 %v3327_v5, 16  ;;  %v3661_v51 = vshll.u32 %v3328_v58, 16  ;;  %v3850_v42 = vld [vmem:[#allocation3 + $0xbc] sm:$0x1] }
 0x2b4   : > { %v3645_v62 = vrot.slane %v3644_v0, 4  ;;  %v11340_v55 = vsel %vm10816_vm10, %v8138_v36, %v3988_v37  ;;  %v3990_v10 = vrot.slane %v3988_v37, 4  ;;  %v3665_v26 = vshrl.u32 %v3328_v58, 16  ;;  %v9657_v36 = vld [vmem:[#allocation3 + $0x9c] sm:$0xff]   ;;  %v5183_v25 = vld [vmem:[#allocation3 + $0x18] sm:$0xf] }
 0x2b5   : > { %v3654_v31 = vrot.slane %v3652_v48, 4  ;;  %6977 = vmatmul.mubr.bf16.gmra.mrb[200].mxu0 %v8152_v50  ;;  %v3640_v30 = vsel %vm10676_vm7, %v3635_v19, %v3639_v24  ;;  %v3657_v27 = vrot.slane %v3655_v63, 5  ;;  %v3663_v11 = vrot.slane %v3661_v51, 5  ;;  %v3848_v19 = vld [vmem:[#allocation3 + $0xb4] sm:$0xe] }
 0x2b6   : > { %v3650_v14 = vsel %vm10676_vm7, %v3645_v62, %v3649_v18  ;;  %6984 = vmatprep.mubr.bf16.mxu0 %v9653_v22  ;;  %v11348_v3 = vsel %vm10816_vm10, %v3990_v10, %v3991_v54  ;;  %v3667_v28 = vrot.slane %v3665_v26, 4  ;;  %v3671_v2 = vshll.u32 %v3329_v23, 16  ;;  %v3334_v18 = vld [vmem:[#allocation3 + $0xb8] sm:$0xf]  ;;  %v9656_v62 = vld [vmem:[#allocation3 + $0x84] sm:$0xff]  }
 0x2b7   : > { %v8122_v46 = vcombine.low %v3640_v30, %v3650_v14  ;;  %v8154_v50 = vcombine.low %v11340_v55, %v11348_v3  ;;  %v3658_v21 = vor.u32 %v3657_v27, %v3654_v31  ;;  %v8139_v33 = vrot.slane %v3842_v12, 9  ;;  %v3335_v22 = vld [vmem:[#allocation3 + $0xbc] sm:$0x1]  ;;  %v3849_v14 = vld [vmem:[#allocation3 + $0xb8] sm:$0xf] }
 0x2b8   : > { %v3995_v38 = vrot.slane %v3843_v16, 5  ;;  %6816 = vmatmul.mubr.bf16.gmra.mrb[168].mxu1 %v9652_v57  ;;  %v3668_v59 = vor.u32 %v3667_v28, %v3663_v11  ;;  %v3673_v13 = vrot.slane %v3671_v2, 5  ;;  %v3998_v6 = vrot.slane %v3844_v52, 5 }
 0x2b9   : > { %v3676_v7 = vshrl.u32 %v3330_v1, 16  ;;  %6823 = vmatprep.mubr.bf16.mxu1 %v8121_v56  ;;  %v3659_v41 = vrot.slane %v3658_v21, 4  ;;  %v3679_v39 = vshll.u32 %v3330_v1, 16  ;;  %v3685_v47 = vshll.u32 %v3331_v40, 16 }
 0x2ba   : > { %v11354_v20 = vsel %vm10816_vm10, %v8139_v33, %v3995_v38  ;;  %v3997_v43 = vrot.slane %v3995_v38, 4  ;;  %v3669_v15 = vrot.slane %v3668_v59, 4  ;;  %v3689_v9 = vshrl.u32 %v3331_v40, 16 }
 0x2bb   : > { %v3678_v34 = vrot.slane %v3676_v7, 4  ;;  %v3664_v17 = vsel %vm10676_vm7, %v3659_v41, %v3663_v11  ;;  %v3681_v60 = vrot.slane %v3679_v39, 5  ;;  %v3695_v5 = vshll.u32 %v3332_v45, 16  ;;  %v5184_v45 = vld [vmem:[#allocation3 + $0x1c] sm:$0xf] }
 0x2bc   : > { %v11360_v24 = vsel %vm10816_vm10, %v3997_v43, %v3998_v6  ;;  %v3674_v58 = vsel %vm10676_vm7, %v3669_v15, %v3673_v13  ;;  %v3687_v29 = vrot.slane %v3685_v47, 5  ;;  %v3691_v0 = vrot.slane %v3689_v9, 4  ;;  %v5185_v7 = vld [vmem:[#allocation3 + $0x20] sm:$0x1] }
 0x2bd   : > { %v8155_v56 = vcombine.low %v11354_v20, %v11360_v24  ;;  %6985 = vmatmul.mubr.bf16.gmra.mrb[204].mxu0 %v8153_v44  ;;  %v11369_v37 = vcombine.low %v3664_v17, %v3674_v58  ;;  %v3682_v54 = vor.u32 %v3681_v60, %v3678_v34  ;;  %v3697_v48 = vrot.slane %v3695_v5, 5  ;;  %v4750_v34 = vld [vmem:[#allocation3 + $0xc] sm:$0xe]  ;;  %v4751_v60 = vld [vmem:[#allocation3 + $0x10] sm:$0xf] }
 0x2be   : > { %v8140_v12 = vrot.slane %v3845_v32, 9  ;;  %6992 = vmatprep.mubr.bf16.mxu0 %v9657_v36  ;;  %v3692_v23 = vor.u32 %v3691_v0, %v3687_v29  ;;  %v4002_v63 = vrot.slane %v3846_v49, 5  ;;  %v4005_v51 = vrot.slane %v3847_v35, 5  ;;  %v9661_v32 = vld [vmem:[#allocation3 + $0xa8] sm:$0xff]   ;;  %v9660_v5 = vld [vmem:[#allocation3 + $0x90] sm:$0xff]  }
 0x2bf   : > { %v3700_v10 = vshrl.u32 %v3333_v53, 16  ;;  %v3683_v31 = vrot.slane %v3682_v54, 4  ;;  %v3703_v26 = vshll.u32 %v3333_v53, 16  ;;  %v3709_v16 = vshll.u32 %v3334_v18, 16 }
 0x2c0   : > { %v3713_v30 = vshrl.u32 %v3334_v18, 16  ;;  %6824 = vmatmul.mubr.bf16.gmra.mrb[172].mxu1 %v9656_v62  ;;  %v3693_v44 = vrot.slane %v3692_v23, 4  ;;  %v11373_v27 = vsel %vm10816_vm10, %v8140_v12, %v4002_v63  ;;  %v4004_v11 = vrot.slane %v4002_v63, 4  ;;  %v4238_v18 = vld [vmem:[#allocation3 + $0xc] sm:$0xf] }
 0x2c1   : > { %v3702_v52 = vrot.slane %v3700_v10, 4  ;;  %6831 = vmatprep.mubr.bf16.mxu1 %v8122_v46  ;;  %v3688_v1 = vsel %vm10676_vm7, %v3683_v31, %v3687_v29  ;;  %v3705_v57 = vrot.slane %v3703_v26, 5  ;;  %v3711_v28 = vrot.slane %v3709_v16, 5  ;;  %v4752_v29 = vld [vmem:[#allocation3 + $0x14] sm:$0x1] }
 0x2c2   : > { %v3715_v2 = vrot.slane %v3713_v30, 4  ;;  %v3698_v21 = vsel %vm10676_vm7, %v3693_v44, %v3697_v48  ;;  %v11381_v33 = vsel %vm10816_vm10, %v4004_v11, %v4005_v51  ;;  %v3719_v38 = vshll.u32 %v3335_v22, 16  ;;  %v4239_v22 = vld [vmem:[#allocation3 + $0x10] sm:$0xf]  ;;  %v4240_v16 = vld [vmem:[#allocation3 + $0x14] sm:$0x1] }
 0x2c3   : > { %v8141_v40 = vrot.slane %v3848_v19, 9  ;;  %v11383_v59 = vcombine.low %v3688_v1, %v3698_v21  ;;  %v8156_v46 = vcombine.low %v11373_v27, %v11381_v33  ;;  %v3706_v13 = vor.u32 %v3705_v57, %v3702_v52  ;;  %v5186_v11 = vld [vmem:[#allocation3 + $0x24] sm:$0xf]  ;;  %v9664_v1 = vld [vmem:[#allocation3 + $0x9c] sm:$0xff]   ;;  %v9665_v57 = vld [vmem:[#allocation3 + $0xb4] sm:$0xff]  }
 0x2c4   : > { %v3716_v6 = vor.u32 %v3715_v2, %v3711_v28  ;;  %v3721_v41 = vrot.slane %v3719_v38, 5  ;;  %v4009_v43 = vrot.slane %v3849_v14, 5  ;;  %v4012_v39 = vrot.slane %v3850_v42, 5  ;;  %v11407_v14 = vpop.f32.mrb[128].mxu1 }
 0x2c5   : > { %v5232_v15 = vshrl.u32 %v5183_v25, 16  ;;  %6993 = vmatmul.mubr.bf16.gmra.mrb[208].mxu0 %v8154_v50  ;;  %v3707_v47 = vrot.slane %v3706_v13, 4  ;;  %v5235_v49 = vshll.u32 %v5183_v25, 16  ;;  %v5241_v17 = vshll.u32 %v5184_v45, 16  ;;  %v11413_v52 = vpop.f32.mrb[129].mxu1 }
 0x2c6   : > { %v3717_v9 = vrot.slane %v3716_v6, 4  ;;  %7000 = vmatprep.mubr.bf16.mxu0 %v9661_v32  ;;  %v11392_v35 = vsel %vm10816_vm10, %v8141_v40, %v4009_v43  ;;  %v4011_v53 = vrot.slane %v4009_v43, 4  ;;  %v5245_v58 = vshrl.u32 %v5184_v45, 16  ;;  %v5188_v32 = vld [vmem:[#allocation3 + $0x2c] sm:$0x1] }
 0x2c7   : > { %v5234_v36 = vrot.slane %v5232_v15, 4  ;;  %v3712_v0 = vsel %vm10676_vm7, %v3707_v47, %v3711_v28  ;;  %v5237_v3 = vrot.slane %v5235_v49, 5  ;;  %v5243_v50 = vrot.slane %v5241_v17, 5 }
 0x2c8   : > { %v3722_v55 = vsel %vm10676_vm7, %v3717_v9, %v3721_v41  ;;  %6832 = vmatmul.mubr.bf16.gmra.mrb[176].mxu1 %v9660_v5  ;;  %v11402_v48 = vsel %vm10816_vm10, %v4011_v53, %v4012_v39  ;;  %v5247_v12 = vrot.slane %v5245_v58, 4  ;;  %v5251_v19 = vshll.u32 %v5185_v7, 16  ;;  %v5187_v7 = vld [vmem:[#allocation3 + $0x28] sm:$0xf]  ;;  %v4754_v9 = vld [vmem:[#allocation3 + $0x1c] sm:$0xf] }
 0x2c9   : > { %v11398_v54 = vcombine.low %v3712_v0, %v3722_v55  ;;  %6839 = vmatprep.mubr.bf16.mxu1 %v11369_v37  ;;  %v8157_v62 = vcombine.low %v11392_v35, %v11402_v48  ;;  %v5238_v23 = vor.u32 %v5237_v3, %v5234_v36  ;;  %v8190_v63 = vrot.slane %v4750_v34, 9  ;;  %v4755_v53 = vld [vmem:[#allocation3 + $0x20] sm:$0x1]  ;;  %v11430_v36 = vpop.f32.mrb[130].mxu1  ;;  %v4241_v3 = vld [vmem:[#allocation3 + $0x18] sm:$0xf] }
 0x2ca   : > { %v4848_v51 = vrot.slane %v4751_v60, 5  ;;  %v5248_v10 = vor.u32 %v5247_v12, %v5243_v50  ;;  %v5253_v31 = vrot.slane %v5251_v19, 5  ;;  %v4851_v26 = vrot.slane %v4752_v29, 5 }
 0x2cb   : > { %v4287_v30 = vshrl.u32 %v4238_v18, 16  ;;  %v5239_v42 = vrot.slane %v5238_v23, 4  ;;  %v4290_v44 = vshll.u32 %v4238_v18, 16  ;;  %v4296_v21 = vshll.u32 %v4239_v22, 16 }
 0x2cc   : > { %v11411_v25 = vsel %vm10816_vm10, %v8190_v63, %v4848_v51  ;;  %v4850_v37 = vrot.slane %v4848_v51, 4  ;;  %v5249_v28 = vrot.slane %v5248_v10, 4  ;;  %v4300_v38 = vshrl.u32 %v4239_v22, 16  ;;  %v4242_v10 = vld [vmem:[#allocation3 + $0x1c] sm:$0xf] }
 0x2cd   : > { %v4289_v2 = vrot.slane %v4287_v30, 4  ;;  %7001 = vmatmul.mubr.bf16.gmra.mrb[212].mxu0 %v8155_v56  ;;  %v5244_v40 = vsel %vm10676_vm7, %v5239_v42, %v5243_v50  ;;  %v4292_v13 = vrot.slane %v4290_v44, 5  ;;  %v4306_v6 = vshll.u32 %v4240_v16, 16  ;;  %v4753_v56 = vld [vmem:[#allocation3 + $0x18] sm:$0xe] }
 0x2ce   : > { %v11422_v45 = vsel %vm10816_vm10, %v4850_v37, %v4851_v26  ;;  %7008 = vmatprep.mubr.bf16.mxu0 %v9665_v57  ;;  %v5254_v41 = vsel %vm10676_vm7, %v5249_v28, %v5253_v31  ;;  %v4298_v20 = vrot.slane %v4296_v21, 5  ;;  %v4302_v24 = vrot.slane %v4300_v38, 4  ;;  %v11435_v31 = vpop.f32.mrb[131].mxu1  ;;  %v9669_v26 = vld [vmem:[#allocation3 + $0xa8] sm:$0xff]   ;;  %v4243_v37 = vld [vmem:[#allocation3 + $0x20] sm:$0x1] }
 0x2cf   : > { %v8206_v43 = vcombine.low %v11411_v25, %v11422_v45  ;;  %v11428_v39 = vcombine.low %v5244_v40, %v5254_v41  ;;  %v4293_v15 = vor.u32 %v4292_v13, %v4289_v2  ;;  %v4308_v34 = vrot.slane %v4306_v6, 5  ;;  %v5189_v2 = vld [vmem:[#allocation3 + $0x30] sm:$0xf]  ;;  %v5190_v21 = vld [vmem:[#allocation3 + $0x34] sm:$0xf] }
 0x2d0   : > { %v5256_v47 = vshrl.u32 %v5186_v11, 16  ;;  %6840 = vmatmul.mubr.bf16.gmra.mrb[180].mxu1 %v9664_v1  ;;  %v4303_v49 = vor.u32 %v4302_v24, %v4298_v20  ;;  %v5259_v17 = vshll.u32 %v5186_v11, 16  ;;  %v5265_v60 = vshll.u32 %v5187_v7, 16  ;;  %v5194_v45 = vld [vmem:[#allocation3 + $0x44] sm:$0x1] }
 0x2d1   : > { %v5269_v5 = vshrl.u32 %v5187_v7, 16  ;;  %6847 = vmatprep.mubr.bf16.mxu1 %v11383_v59  ;;  %v4294_v58 = vrot.slane %v4293_v15, 4  ;;  %v5275_v0 = vshll.u32 %v5188_v32, 16  ;;  %v8191_v55 = vrot.slane %v4753_v56, 9  ;;  %v9670_v59 = vld [vmem:[#allocation3 + $0xc0] sm:$0xff]  }
 0x2d2   : > { %v5258_v29 = vrot.slane %v5256_v47, 4  ;;  %v4304_v50 = vrot.slane %v4303_v49, 4  ;;  %v5261_v18 = vrot.slane %v5259_v17, 5  ;;  %v5267_v12 = vrot.slane %v5265_v60, 5  ;;  %v5191_v56 = vld [vmem:[#allocation3 + $0x38] sm:$0x1] }
 0x2d3   : > { %v5271_v19 = vrot.slane %v5269_v5, 4  ;;  %v4299_v23 = vsel %vm10676_vm7, %v4294_v58, %v4298_v20  ;;  %v5277_v63 = vrot.slane %v5275_v0, 5  ;;  %v4855_v51 = vrot.slane %v4754_v9, 5  ;;  %v4756_v15 = vld [vmem:[#allocation3 + $0x24] sm:$0xe] }
 0x2d4   : > { %v4858_v22 = vrot.slane %v4755_v53, 5  ;;  %v4309_v16 = vsel %vm10676_vm7, %v4304_v50, %v4308_v34  ;;  %v5262_v30 = vor.u32 %v5261_v18, %v5258_v29  ;;  %v4311_v44 = vshrl.u32 %v4241_v3, 16  ;;  %v4757_v17 = vld [vmem:[#allocation3 + $0x28] sm:$0xf]  ;;  %v4758_v29 = vld [vmem:[#allocation3 + $0x2c] sm:$0x1] }
 0x2d5   : > { %v5272_v42 = vor.u32 %v5271_v19, %v5267_v12  ;;  %7009 = vmatmul.mubr.bf16.gmra.mrb[216].mxu0 %v8156_v46  ;;  %v11442_v11 = vcombine.low %v4299_v23, %v4309_v16  ;;  %v11446_v1 = vsel %vm10816_vm10, %v8191_v55, %v4855_v51  ;;  %v4857_v57 = vrot.slane %v4855_v51, 4  ;;  %v4244_v18 = vld [vmem:[#allocation3 + $0x24] sm:$0xf] }
 0x2d6   : > { %v4314_v28 = vshll.u32 %v4241_v3, 16  ;;  %7016 = vmatprep.mubr.bf16.mxu0 %v9670_v59  ;;  %v5263_v38 = vrot.slane %v5262_v30, 4  ;;  %v4313_v13 = vrot.slane %v4311_v44, 4  ;;  %v4320_v6 = vshll.u32 %v4242_v10, 16 }
 0x2d7   : > { %v5273_v40 = vrot.slane %v5272_v42, 4  ;;  %v11450_v7 = vsel %vm10816_vm10, %v4857_v57, %v4858_v22  ;;  %v4324_v33 = vshrl.u32 %v4242_v10, 16  ;;  %v4330_v46 = vshll.u32 %v4243_v37, 16  ;;  %v4245_v42 = vld [vmem:[#allocation3 + $0x28] sm:$0xf] }
 0x2d8   : > { %v4316_v27 = vrot.slane %v4314_v28, 5  ;;  %6848 = vmatmul.mubr.bf16.gmra.mrb[184].mxu1 %v9669_v26  ;;  %v5268_v32 = vsel %vm10676_vm7, %v5263_v38, %v5267_v12  ;;  %v8207_v20 = vcombine.low %v11446_v1, %v11450_v7  ;;  %v4322_v24 = vrot.slane %v4320_v6, 5  ;;  %v5192_v38 = vld [vmem:[#allocation3 + $0x3c] sm:$0xf] }
 0x2d9   : > { %v5278_v41 = vsel %vm10676_vm7, %v5273_v40, %v5277_v63  ;;  %6855 = vmatprep.mubr.bf16.mxu1 %v11398_v54  ;;  %v4326_v9 = vrot.slane %v4324_v33, 4  ;;  %v4332_v49 = vrot.slane %v4330_v46, 5  ;;  %v5280_v60 = vshrl.u32 %v5189_v2, 16  ;;  %v9677_v63 = vld [vmem:[#allocation3 + $0xb4] sm:$0xff]   ;;  %v5193_v33 = vld [vmem:[#allocation3 + $0x40] sm:$0xf] }
 0x2da   : > { %v11459_v34 = vcombine.low %v5268_v32, %v5278_v41  ;;  %v4317_v47 = vor.u32 %v4316_v27, %v4313_v13  ;;  %v5283_v5 = vshll.u32 %v5189_v2, 16  ;;  %v5289_v53 = vshll.u32 %v5190_v21, 16  ;;  %v9681_v46 = vld [vmem:[#allocation3 + $0x18] sm:$0xff]  }
 0x2db   : > { %v5293_v58 = vshrl.u32 %v5190_v21, 16  ;;  %v4327_v55 = vor.u32 %v4326_v9, %v4322_v24  ;;  %v5299_v3 = vshll.u32 %v5191_v56, 16  ;;  %v8192_v50 = vrot.slane %v4756_v15, 9 }
 0x2dc   : > { %v4318_v0 = vrot.slane %v4317_v47, 4  ;;  %v5282_v12 = vrot.slane %v5280_v60, 4  ;;  %v5285_v19 = vrot.slane %v5283_v5, 5  ;;  %v5291_v23 = vrot.slane %v5289_v53, 5 }
 0x2dd   : > { %v5295_v54 = vrot.slane %v5293_v58, 4  ;;  %7017 = vmatmul.mubr.bf16.gmra.mrb[220].mxu0 %v8157_v62  ;;  %v4328_v22 = vrot.slane %v4327_v55, 4  ;;  %v5301_v10 = vrot.slane %v5299_v3, 5  ;;  %v4862_v26 = vrot.slane %v4757_v17, 5  ;;  %v4246_v62 = vld [vmem:[#allocation3 + $0x2c] sm:$0x1] }
 0x2de   : > { %v4323_v51 = vsel %vm10676_vm7, %v4318_v0, %v4322_v24  ;;  %7218 = vmatprep.mubr.bf16.mxu0 %v11428_v39  ;;  %v5286_v59 = vor.u32 %v5285_v19, %v5282_v12  ;;  %v4865_v30 = vrot.slane %v4758_v29, 5  ;;  %v4335_v37 = vshrl.u32 %v4244_v18, 16  ;;  %v4761_v17 = vld [vmem:[#allocation3 + $0x38] sm:$0x1]  ;;  %v4247_v29 = vld [vmem:[#allocation3 + $0x30] sm:$0xf] }
 0x2df   : > { %v5296_v16 = vor.u32 %v5295_v54, %v5291_v23  ;;  %v4333_v44 = vsel %vm10676_vm7, %v4328_v22, %v4332_v49  ;;  %v11471_v35 = vsel %vm10816_vm10, %v8192_v50, %v4862_v26  ;;  %v4864_v48 = vrot.slane %v4862_v26, 4  ;;  %v4760_v49 = vld [vmem:[#allocation3 + $0x34] sm:$0xf] }
 0x2e0   : > { %v4338_v57 = vshll.u32 %v4244_v18, 16  ;;  %6856 = vmatmul.mubr.bf16.gmra.mrb[188].mxu1 %v9677_v63  ;;  %v11473_v28 = vcombine.low %v4323_v51, %v4333_v44  ;;  %v5287_v2 = vrot.slane %v5286_v59, 4  ;;  %v4337_v21 = vrot.slane %v4335_v37, 4  ;;  %v9685_v18 = vld [vmem:[%s12361_s4 + $0x208] sm:$0xff]   ;;  %v4248_v12 = vld [vmem:[#allocation3 + $0x34] sm:$0xf] }
 0x2e1   : > { %v5297_v39 = vrot.slane %v5296_v16, 4  ;;  %7057 = vmatprep.mubr.bf16.mxu1 %v8206_v43  ;;  %v11480_v40 = vsel %vm10816_vm10, %v4864_v48, %v4865_v30  ;;  %v4344_v6 = vshll.u32 %v4245_v42, 16  ;;  %v4348_v27 = vshrl.u32 %v4245_v42, 16  ;;  %v4759_v43 = vld [vmem:[#allocation3 + $0x30] sm:$0xe] }
 0x2e2   : > { %v4340_v13 = vrot.slane %v4338_v57, 5  ;;  %v5292_v32 = vsel %vm10676_vm7, %v5287_v2, %v5291_v23  ;;  %v8208_v24 = vcombine.low %v11471_v35, %v11480_v40  ;;  %v4354_v25 = vshll.u32 %v4246_v62, 16  ;;  %v4249_v48 = vld [vmem:[#allocation3 + $0x38] sm:$0x1]  ;;  %v9683_v57 = vld [vmem:[#allocation3 + $0x24] sm:$0xff]  }
 0x2e3   : > { %v5302_v41 = vsel %vm10676_vm7, %v5297_v39, %v5301_v10  ;;  %v4346_v47 = vrot.slane %v4344_v6, 5  ;;  %v4350_v9 = vrot.slane %v4348_v27, 4  ;;  %v5304_v5 = vshrl.u32 %v5192_v38, 16 }
 0x2e4   : > { %v11488_v56 = vcombine.low %v5292_v32, %v5302_v41  ;;  %v4341_v15 = vor.u32 %v4340_v13, %v4337_v21  ;;  %v4356_v60 = vrot.slane %v4354_v25, 5  ;;  %v5307_v53 = vshll.u32 %v5192_v38, 16  ;;  %v9688_v21 = vld [vmem:[%s12361_s4 + $0x210] sm:$0xff]  }
 0x2e5   : > { %v5313_v58 = vshll.u32 %v5193_v33, 16  ;;  %7219 = vmatmul.mubr.bf16.vlgmr.msra.gmra.mrb[224].mxu0 %v9681_v46  ;;  %v4351_v55 = vor.u32 %v4350_v9, %v4346_v47  ;;  %v5317_v3 = vshrl.u32 %v5193_v33, 16  ;;  %v5323_v50 = vshll.u32 %v5194_v45, 16  ;;  %v5196_v33 = vld [vmem:[#allocation3 + $0x4c] sm:$0xf] }
 0x2e6   : > { %v4342_v0 = vrot.slane %v4341_v15, 4  ;;  %7226 = vmatprep.mubr.bf16.mxu0 %v11459_v34  ;;  %v5306_v19 = vrot.slane %v5304_v5, 4  ;;  %v5309_v23 = vrot.slane %v5307_v53, 5  ;;  %v8193_v63 = vrot.slane %v4759_v43, 9  ;;  %v9707_v34 = vld [vmem:[%s12361_s4 + $0x200] sm:$0xff]  }
 0x2e7   : > { %v5315_v54 = vrot.slane %v5313_v58, 5  ;;  %v4352_v22 = vrot.slane %v4351_v55, 4  ;;  %v5319_v10 = vrot.slane %v5317_v3, 4  ;;  %v5325_v26 = vrot.slane %v5323_v50, 5  ;;  %v5197_v45 = vld [vmem:[#allocation3 + $0x50] sm:$0x1] }
 0x2e8   : > { %v4347_v51 = vsel %vm10676_vm7, %v4342_v0, %v4346_v47  ;;  %7058 = vmatmul.mubr.bf16.vlgmr.msra.gmra.mrb[192].mxu1 %v11442_v11  ;;  %v5310_v59 = vor.u32 %v5309_v23, %v5306_v19  ;;  %v4869_v16 = vrot.slane %v4760_v49, 5  ;;  %v4872_v30 = vrot.slane %v4761_v17, 5  ;;  %v4762_v43 = vld [vmem:[#allocation3 + $0x3c] sm:$0xe]  ;;  %v4763_v17 = vld [vmem:[#allocation3 + $0x40] sm:$0xf] }
 0x2e9   : > { %v4359_v42 = vshrl.u32 %v4247_v29, 16  ;;  %7065 = vmatprep.mubr.bf16.mxu1 %v8207_v20  ;;  %9423 = vmatpush3.bf16.msra.mxu1 %v9707_v34  ;;  %v4357_v37 = vsel %vm10676_vm7, %v4352_v22, %v4356_v60  ;;  %v5320_v44 = vor.u32 %v5319_v10, %v5315_v54  ;;  %v4362_v62 = vshll.u32 %v4247_v29, 16  ;;  %v5195_v20 = vld [vmem:[#allocation3 + $0x48] sm:$0xf]  ;;  %v9691_v29 = vld [vmem:[%s12361_s4 + $0x218] sm:$0xff]   ;;  %v9694_v34 = vld [vmem:[%s12361_s4 + $0x220] sm:$0xff]  }
 0x2ea   : > { %v4368_v11 = vshll.u32 %v4248_v12, 16  ;;  %v11505_v2 = vcombine.low %v4347_v51, %v4357_v37  ;;  %v5311_v39 = vrot.slane %v5310_v59, 4  ;;  %9424 = vmatprep.subr.bf16.mxu1 %v9685_v18  ;;  %v11509_v1 = vsel %vm10816_vm10, %v8193_v63, %v4869_v16  ;;  %v9684_v59 = vld [vmem:[#allocation3 + $0x30] sm:$0xff]   ;;  %v4252_v37 = vld [vmem:[#allocation3 + $0x44] sm:$0x1] }
 0x2eb   : > { %v4871_v7 = vrot.slane %v4869_v16, 4  ;;  %v5321_v38 = vrot.slane %v5320_v44, 4  ;;  %v4361_v13 = vrot.slane %v4359_v42, 4  ;;  %v4364_v6 = vrot.slane %v4362_v62, 5 }
 0x2ec   : > { %v4370_v27 = vrot.slane %v4368_v11, 5  ;;  %v5316_v46 = vsel %vm10676_vm7, %v5311_v39, %v5315_v54  ;;  %v4372_v41 = vshrl.u32 %v4248_v12, 16  ;;  %v4378_v25 = vshll.u32 %v4249_v48, 16  ;;  %v4764_v12 = vld [vmem:[#allocation3 + $0x44] sm:$0x1] }
 0x2ed   : > { %v11518_v32 = vsel %vm10816_vm10, %v4871_v7, %v4872_v30  ;;  %7227 = vmatmul.mubr.bf16.gmra.mrb[228].mxu0 %v9683_v57  ;;  %v5326_v15 = vsel %vm10676_vm7, %v5321_v38, %v5325_v26  ;;  %9425 = vmatpush3.bf16.msra.mxu1 %v9685_v18  ;;  %v4365_v9 = vor.u32 %v4364_v6, %v4361_v13  ;;  %v5328_v49 = vshrl.u32 %v5195_v20, 16  ;;  %v4250_v54 = vld [vmem:[#allocation3 + $0x3c] sm:$0xf]  ;;  %v4251_v26 = vld [vmem:[#allocation3 + $0x40] sm:$0xf] }
 0x2ee   : > { %v8209_v47 = vcombine.low %v11509_v1, %v11518_v32  ;;  %7234 = vmatprep.mubr.bf16.mxu0 %v11488_v56  ;;  %v8241_v60 = vcombine.low %v5316_v46, %v5326_v15  ;;  %v4374_v5 = vrot.slane %v4372_v41, 4  ;;  %v4380_v53 = vrot.slane %v4378_v25, 5  ;;  %9426 = vmatprep.subr.bf16.mxu1 %v9688_v21  ;;  %v5198_v48 = vld [vmem:[#allocation3 + $0x54] sm:$0xf]  ;;  %v5199_v7 = vld [vmem:[#allocation3 + $0x58] sm:$0xf] }
 0x2ef   : > { %v5331_v58 = vshll.u32 %v5195_v20, 16  ;;  %v4366_v0 = vrot.slane %v4365_v9, 4  ;;  %v5330_v55 = vrot.slane %v5328_v49, 4  ;;  %v5337_v3 = vshll.u32 %v5196_v33, 16  ;;  %v5200_v6 = vld [vmem:[#allocation3 + $0x5c] sm:$0x1] }
 0x2f0   : > { %v5341_v50 = vshrl.u32 %v5196_v33, 16  ;;  %7066 = vmatmul.mubr.bf16.gmra.mrb[196].mxu1 %v11473_v28  ;;  %v4375_v18 = vor.u32 %v4374_v5, %v4370_v27  ;;  %v5347_v23 = vshll.u32 %v5197_v45, 16  ;;  %v8194_v56 = vrot.slane %v4762_v43, 9  ;;  %v4765_v49 = vld [vmem:[#allocation3 + $0x48] sm:$0xe] }
 0x2f1   : > { %v5333_v19 = vrot.slane %v5331_v58, 5  ;;  %7073 = vmatprep.mubr.bf16.mxu1 %v8208_v24  ;;  %v4371_v63 = vsel %vm10676_vm7, %v4366_v0, %v4370_v27  ;;  %v5339_v51 = vrot.slane %v5337_v3, 5  ;;  %v4876_v10 = vrot.slane %v4763_v17, 5  ;;  %9427 = vmatpush3.bf16.msra.mxu1 %v9688_v21  ;;  %v9697_v27 = vld [vmem:[%s12361_s4 + $0x228] sm:$0xff]  }
 0x2f2   : > { %v5343_v22 = vrot.slane %v5341_v50, 4  ;;  %v4376_v16 = vrot.slane %v4375_v18, 4  ;;  %v5349_v30 = vrot.slane %v5347_v23, 5  ;;  %v4879_v42 = vrot.slane %v4764_v12, 5  ;;  %9428 = vmatprep.subr.bf16.mxu1 %v9691_v29  ;;  %v4766_v58 = vld [vmem:[#allocation3 + $0x4c] sm:$0xf] }
 0x2f3   : > { %v5334_v28 = vor.u32 %v5333_v19, %v5330_v55  ;;  %v11539_v40 = vsel %vm10816_vm10, %v8194_v56, %v4876_v10  ;;  %v4878_v24 = vrot.slane %v4876_v10, 4  ;;  %v4383_v44 = vshrl.u32 %v4250_v54, 16  ;;  %v4253_v12 = vld [vmem:[#allocation3 + $0x48] sm:$0xf]  ;;  %v9700_v56 = vld [vmem:[%s12361_s4 + $0x230] sm:$0xff]  }
 0x2f4   : > { %v5344_v35 = vor.u32 %v5343_v22, %v5339_v51  ;;  %v4381_v62 = vsel %vm10676_vm7, %v4376_v16, %v4380_v53  ;;  %v4386_v57 = vshll.u32 %v4250_v54, 16  ;;  %v4392_v39 = vshll.u32 %v4251_v26, 16  ;;  %v9686_v54 = vld [vmem:[#allocation3 + $0x3c] sm:$0xff]  }
 0x2f5   : > { %v5335_v11 = vrot.slane %v5334_v28, 4  ;;  %7235 = vmatmul.mubr.bf16.gmra.mrb[232].mxu0 %v9684_v59  ;;  %v11543_v20 = vcombine.low %v4371_v63, %v4381_v62  ;;  %v11547_v38 = vsel %vm10816_vm10, %v4878_v24, %v4879_v42  ;;  %v4385_v13 = vrot.slane %v4383_v44, 4  ;;  %9429 = vmatpush3.bf16.msra.mxu1 %v9691_v29  ;;  %v4767_v29 = vld [vmem:[#allocation3 + $0x50] sm:$0x1] }
 0x2f6   : > { %v5345_v21 = vrot.slane %v5344_v35, 4  ;;  %7242 = vmatprep.mubr.bf16.mxu0 %v8241_v60  ;;  %v8210_v46 = vcombine.low %v11539_v40, %v11547_v38  ;;  %v4388_v41 = vrot.slane %v4386_v57, 5  ;;  %v4394_v25 = vrot.slane %v4392_v39, 5  ;;  %9430 = vmatprep.subr.bf16.mxu1 %v9694_v34  ;;  %v4768_v40 = vld [vmem:[#allocation3 + $0x54] sm:$0xe] }
 0x2f7   : > { %v5340_v33 = vsel %vm10676_vm7, %v5335_v11, %v5339_v51  ;;  %v4396_v43 = vshrl.u32 %v4251_v26, 16  ;;  %v4402_v15 = vshll.u32 %v4252_v37, 16  ;;  %v5352_v9 = vshrl.u32 %v5198_v48, 16  ;;  %v9703_v11 = vld [vmem:[%s12361_s4 + $0x238] sm:$0xff]  }
 0x2f8   : > { %v5350_v45 = vsel %vm10676_vm7, %v5345_v21, %v5349_v30  ;;  %7074 = vmatmul.mubr.bf16.gmra.mrb[200].mxu1 %v11505_v2  ;;  %v4389_v60 = vor.u32 %v4388_v41, %v4385_v13  ;;  %v5355_v5 = vshll.u32 %v5198_v48, 16  ;;  %v5361_v53 = vshll.u32 %v5199_v7, 16  ;;  %v5201_v13 = vld [vmem:[#allocation3 + $0x60] sm:$0xf]  ;;  %v4769_v38 = vld [vmem:[#allocation3 + $0x58] sm:$0xf] }
 0x2f9   : > { %v8242_v17 = vcombine.low %v5340_v33, %v5350_v45  ;;  %7081 = vmatprep.mubr.bf16.mxu1 %v8209_v47  ;;  %v4398_v0 = vrot.slane %v4396_v43, 4  ;;  %v4404_v55 = vrot.slane %v4402_v15, 5  ;;  %v5354_v3 = vrot.slane %v5352_v9, 4  ;;  %9431 = vmatpush3.bf16.msra.mxu1 %v9694_v34  ;;  %v4254_v47 = vld [vmem:[#allocation3 + $0x4c] sm:$0xf] }
 0x2fa   : > { %v5365_v50 = vshrl.u32 %v5199_v7, 16  ;;  %v4390_v18 = vrot.slane %v4389_v60, 4  ;;  %v5357_v19 = vrot.slane %v5355_v5, 5  ;;  %v5363_v23 = vrot.slane %v5361_v53, 5  ;;  %9432 = vmatprep.subr.bf16.mxu1 %v9697_v27  ;;  %v4255_v34 = vld [vmem:[#allocation3 + $0x50] sm:$0x1] }
 0x2fb   : > { %v5371_v2 = vshll.u32 %v5200_v6, 16  ;;  %v4399_v63 = vor.u32 %v4398_v0, %v4394_v25  ;;  %v8195_v1 = vrot.slane %v4765_v49, 9  ;;  %v4883_v32 = vrot.slane %v4766_v58, 5  ;;  %v5202_v45 = vld [vmem:[#allocation3 + $0x64] sm:$0xf]  ;;  %v9687_v60 = vld [vmem:[#allocation3 + $0x48] sm:$0xff]  }
 0x2fc   : > { %v5367_v51 = vrot.slane %v5365_v50, 4  ;;  %v4395_v22 = vsel %vm10676_vm7, %v4390_v18, %v4394_v25  ;;  %v5358_v10 = vor.u32 %v5357_v19, %v5354_v3  ;;  %v4886_v59 = vrot.slane %v4767_v29, 5 }
 0x2fd   : > { %v5373_v26 = vrot.slane %v5371_v2, 5  ;;  %7243 = vmatmul.mubr.bf16.gmra.mrb[236].mxu0 %v9686_v54  ;;  %v4400_v16 = vrot.slane %v4399_v63, 4  ;;  %v11569_v30 = vsel %vm10816_vm10, %v8195_v1, %v4883_v32  ;;  %v4885_v42 = vrot.slane %v4883_v32, 4  ;;  %9433 = vmatpush3.bf16.msra.mxu1 %v9697_v27 }
 0x2fe   : > { %v5368_v28 = vor.u32 %v5367_v51, %v5363_v23  ;;  %7250 = vmatprep.mubr.bf16.mxu0 %v8242_v17  ;;  %v5359_v24 = vrot.slane %v5358_v10, 4  ;;  %v4407_v37 = vshrl.u32 %v4253_v12, 16  ;;  %v4410_v44 = vshll.u32 %v4253_v12, 16  ;;  %9434 = vmatprep.subr.bf16.mxu1 %v9700_v56  ;;  %v5203_v17 = vld [vmem:[#allocation3 + $0x68] sm:$0x1] }
 0x2ff   : > { %v11571_v35 = vpop.f32.mrb[160].mxu0  ;;  %v4416_v48 = vshll.u32 %v4254_v47, 16  ;;  %v4405_v57 = vsel %vm10676_vm7, %v4400_v16, %v4404_v55  ;;  %v4887_v7 = vsel %vm10816_vm10, %v4885_v42, %v4886_v59  ;;  %v4420_v21 = vshrl.u32 %v4254_v47, 16  ;;  %v4256_v51 = vld [vmem:[#allocation3 + $0x54] sm:$0xf] }
 0x300   : > { %v11573_v62 = vpop.f32.mrb[161].mxu0  ;;  %v5369_v39 = vrot.slane %v5368_v28, 4  ;;  %7082 = vmatmul.mubr.bf16.gmra.mrb[204].mxu1 %v11543_v20  ;;  %v8178_v27 = vcombine.low %v4395_v22, %v4405_v57  ;;  %v5364_v33 = vsel %vm10676_vm7, %v5359_v24, %v5363_v23  ;;  %v8211_v41 = vcombine.low %v11569_v30, %v4887_v7  ;;  %v4770_v23 = vld [vmem:[#allocation3 + $0x5c] sm:$0x1]  ;;  %v4257_v10 = vld [vmem:[#allocation3 + $0x58] sm:$0xf] }
 0x301   : > { %v11582_v6 = vpop.f32.mrb[162].mxu0  ;;  %v4409_v25 = vrot.slane %v4407_v37, 4  ;;  %7089 = vmatprep.mubr.bf16.mxu1 %v8210_v46  ;;  %v4412_v9 = vrot.slane %v4410_v44, 5  ;;  %v4418_v49 = vrot.slane %v4416_v48, 5  ;;  %v4422_v20 = vrot.slane %v4420_v21, 4  ;;  %9435 = vmatpush3.bf16.msra.mxu1 %v9700_v56  ;;  %v9689_v44 = vld [vmem:[#allocation3 + $0x54] sm:$0xff]  }
 0x302   : > { %v11588_v43 = vpop.f32.mrb[163].mxu0  ;;  %v5374_v15 = vsel %vm10676_vm7, %v5369_v39, %v5373_v26  ;;  %v4426_v53 = vshll.u32 %v4255_v34, 16  ;;  %v5376_v58 = vshrl.u32 %v5201_v13, 16  ;;  %v5379_v29 = vshll.u32 %v5201_v13, 16  ;;  %9436 = vmatprep.subr.bf16.mxu1 %v9703_v11  ;;  %v4258_v30 = vld [vmem:[#allocation3 + $0x5c] sm:$0x1] }
 0x303   : > { %v8243_v5 = vcombine.low %v5364_v33, %v5374_v15  ;;  %v4413_v0 = vor.u32 %v4412_v9, %v4409_v25  ;;  %v4423_v55 = vor.u32 %v4422_v20, %v4418_v49  ;;  %v5385_v3 = vshll.u32 %v5202_v45, 16  ;;  %v5204_v33 = vld [vmem:[#allocation3 + $0x6c] sm:$0xf]  ;;  %v5205_v25 = vld [vmem:[#allocation3 + $0x70] sm:$0xf] }
 0x304   : > { %v5389_v50 = vshrl.u32 %v5202_v45, 16  ;;  %v4428_v46 = vrot.slane %v4426_v53, 5  ;;  %v5378_v12 = vrot.slane %v5376_v58, 4  ;;  %v5381_v18 = vrot.slane %v5379_v29, 5  ;;  %v4771_v20 = vld [vmem:[#allocation3 + $0x60] sm:$0xe] }
 0x305   : > { %v5395_v19 = vshll.u32 %v5203_v17, 16  ;;  %7251 = vmatmul.mubr.bf16.gmra.mrb[240].mxu0 %v9687_v60  ;;  %v4414_v2 = vrot.slane %v4413_v0, 4  ;;  %v4424_v56 = vrot.slane %v4423_v55, 4  ;;  %v5387_v54 = vrot.slane %v5385_v3, 5  ;;  %9437 = vmatpush3.bf16.msra.mxu1 %v9703_v11  ;;  %v4772_v58 = vld [vmem:[#allocation3 + $0x64] sm:$0xf] }
 0x306   : > { %v5391_v63 = vrot.slane %v5389_v50, 4  ;;  %7258 = vmatprep.mubr.bf16.mxu0 %v8243_v5  ;;  %v5382_v1 = vor.u32 %v5381_v18, %v5378_v12  ;;  %v8196_v47 = vrot.slane %v4768_v40, 9  ;;  %v4890_v22 = vrot.slane %v4769_v38, 5  ;;  %v4773_v50 = vld [vmem:[#allocation3 + $0x68] sm:$0x1] }
 0x307   : > { %v5397_v32 = vrot.slane %v5395_v19, 5  ;;  %v4419_v26 = vsel %vm10676_vm7, %v4414_v2, %v4418_v49  ;;  %v4429_v59 = vsel %vm10676_vm7, %v4424_v56, %v4428_v46  ;;  %v4893_v28 = vrot.slane %v4770_v23, 5  ;;  %v5206_v49 = vld [vmem:[#allocation3 + $0x74] sm:$0x1]  ;;  %v4259_v18 = vld [vmem:[#allocation3 + $0x60] sm:$0xf] }
 0x308   : > { %v5392_v16 = vor.u32 %v5391_v63, %v5387_v54  ;;  %7090 = vmatmul.mubr.bf16.gmra.mrb[208].mxu1 %v8178_v27  ;;  %v8179_v42 = vcombine.low %v4419_v26, %v4429_v59  ;;  %v5383_v34 = vrot.slane %v5382_v1, 4  ;;  %v4891_v24 = vsel %vm10816_vm10, %v8196_v47, %v4890_v22 }
 0x309   : > { %v4892_v37 = vrot.slane %v4890_v22, 4  ;;  %7097 = vmatprep.mubr.bf16.mxu1 %v8211_v41  ;;  %v4431_v11 = vshrl.u32 %v4256_v51, 16  ;;  %v4434_v57 = vshll.u32 %v4256_v51, 16  ;;  %v4440_v39 = vshll.u32 %v4257_v10, 16 }
 0x30a   : > { %v5393_v48 = vrot.slane %v5392_v16, 4  ;;  %v5388_v7 = vsel %vm10676_vm7, %v5383_v34, %v5387_v54  ;;  %v4444_v13 = vshrl.u32 %v4257_v10, 16  ;;  %v4450_v27 = vshll.u32 %v4258_v30, 16  ;;  %v4260_v10 = vld [vmem:[#allocation3 + $0x64] sm:$0xf] }
 0x30b   : > { %v4894_v21 = vsel %vm10816_vm10, %v4892_v37, %v4893_v28  ;;  %v4433_v41 = vrot.slane %v4431_v11, 4  ;;  %v4436_v9 = vrot.slane %v4434_v57, 5  ;;  %v4442_v60 = vrot.slane %v4440_v39, 5  ;;  %v9690_v34 = vld [vmem:[#allocation3 + $0x60] sm:$0xff]   ;;  %v5207_v11 = vld [vmem:[#allocation3 + $0x78] sm:$0xf] }
 0x30c   : > { %v5398_v45 = vsel %vm10676_vm7, %v5393_v48, %v5397_v32  ;;  %v8212_v15 = vcombine.low %v4891_v24, %v4894_v21  ;;  %v4446_v5 = vrot.slane %v4444_v13, 4  ;;  %v4452_v53 = vrot.slane %v4450_v27, 5 }
 0x30d   : > { %v8244_v17 = vcombine.low %v5388_v7, %v5398_v45  ;;  %7259 = vmatmul.mubr.bf16.gmra.mrb[244].mxu0 %v9689_v44  ;;  %v4437_v29 = vor.u32 %v4436_v9, %v4433_v41  ;;  %v5400_v0 = vshrl.u32 %v5204_v33, 16  ;;  %v5403_v55 = vshll.u32 %v5204_v33, 16  ;;  %v5208_v45 = vld [vmem:[#allocation3 + $0x7c] sm:$0xf] }
 0x30e   : > { %v5409_v3 = vshll.u32 %v5205_v25, 16  ;;  %v4447_v40 = vor.u32 %v4446_v5, %v4442_v60  ;;  %v5413_v38 = vshrl.u32 %v5205_v25, 16  ;;  %v5419_v46 = vshll.u32 %v5206_v49, 16 }
 0x30f   : > { %7266 = vmatprep.mubr.bf16.mxu0 %v8244_v17  ;;  %v8197_v12 = vrot.slane %v4771_v20, 9  ;;  %v4438_v19 = vrot.slane %v4437_v29, 4  ;;  %v5402_v23 = vrot.slane %v5400_v0, 4  ;;  %v5405_v2 = vrot.slane %v5403_v55, 5  ;;  %v4774_v17 = vld [vmem:[#allocation3 + $0x6c] sm:$0xe] }
 0x310   : > { %v5411_v56 = vrot.slane %v5409_v3, 5  ;;  %7098 = vmatmul.mubr.bf16.gmra.mrb[212].mxu1 %v8179_v42  ;;  %v4448_v54 = vrot.slane %v4447_v40, 4  ;;  %v5415_v63 = vrot.slane %v5413_v38, 4  ;;  %v5421_v51 = vrot.slane %v5419_v46, 5  ;;  %v4261_v42 = vld [vmem:[#allocation3 + $0x68] sm:$0x1] }
 0x311   : > { %v4897_v1 = vrot.slane %v4772_v58, 5  ;;  %7105 = vmatprep.mubr.bf16.mxu1 %v8212_v15  ;;  %v4443_v32 = vsel %vm10676_vm7, %v4438_v19, %v4442_v60  ;;  %v5406_v47 = vor.u32 %v5405_v2, %v5402_v23  ;;  %v4900_v22 = vrot.slane %v4773_v50, 5  ;;  %v5209_v15 = vld [vmem:[#allocation3 + $0x80] sm:$0x1]  ;;  %v4775_v29 = vld [vmem:[#allocation3 + $0x70] sm:$0xf] }
 0x312   : > { %v4455_v26 = vshrl.u32 %v4259_v18, 16  ;;  %v4453_v59 = vsel %vm10676_vm7, %v4448_v54, %v4452_v53  ;;  %v5416_v16 = vor.u32 %v5415_v63, %v5411_v56  ;;  %v4458_v48 = vshll.u32 %v4259_v18, 16  ;;  %v4776_v40 = vld [vmem:[#allocation3 + $0x74] sm:$0x1]  ;;  %v4262_v54 = vld [vmem:[#allocation3 + $0x6c] sm:$0xf] }
 0x313   : > { %v4898_v28 = vsel %vm10816_vm10, %v8197_v12, %v4897_v1  ;;  %v4899_v30 = vrot.slane %v4897_v1, 4  ;;  %v8180_v24 = vcombine.low %v4443_v32, %v4453_v59  ;;  %v5407_v37 = vrot.slane %v5406_v47, 4  ;;  %v9692_v63 = vld [vmem:[#allocation3 + $0x6c] sm:$0xff]  }
 0x314   : > { %v4457_v44 = vrot.slane %v4455_v26, 4  ;;  %v5417_v57 = vrot.slane %v5416_v16, 4  ;;  %v4464_v7 = vshll.u32 %v4260_v10, 16  ;;  %v4468_v21 = vshrl.u32 %v4260_v10, 16 }
 0x315   : > { %v4901_v39 = vsel %vm10816_vm10, %v4899_v30, %v4900_v22  ;;  %7267 = vmatmul.mubr.bf16.gmra.mrb[248].mxu0 %v9690_v34  ;;  %v5412_v13 = vsel %vm10676_vm7, %v5407_v37, %v5411_v56  ;;  %v4460_v33 = vrot.slane %v4458_v48, 5  ;;  %v4474_v25 = vshll.u32 %v4261_v42, 16  ;;  %v4263_v22 = vld [vmem:[#allocation3 + $0x70] sm:$0xf]  ;;  %v4264_v42 = vld [vmem:[#allocation3 + $0x74] sm:$0x1] }
 0x316   : > { %v8213_v27 = vcombine.low %v4898_v28, %v4901_v39  ;;  %v5422_v41 = vsel %vm10676_vm7, %v5417_v57, %v5421_v51  ;;  %v4466_v9 = vrot.slane %v4464_v7, 5  ;;  %v4470_v49 = vrot.slane %v4468_v21, 4  ;;  %v5210_v57 = vld [vmem:[#allocation3 + $0x84] sm:$0xf] }
 0x317   : > { %v5424_v20 = vshrl.u32 %v5207_v11, 16  ;;  %v8245_v60 = vcombine.low %v5412_v13, %v5422_v41  ;;  %v4461_v5 = vor.u32 %v4460_v33, %v4457_v44  ;;  %v4476_v53 = vrot.slane %v4474_v25, 5  ;;  %v5212_v41 = vld [vmem:[#allocation3 + $0x8c] sm:$0x1] }
 0x318   : > { %v5427_v58 = vshll.u32 %v5207_v11, 16  ;;  %7106 = vmatmul.mubr.bf16.gmra.mrb[216].mxu1 %v8180_v24  ;;  %v4471_v0 = vor.u32 %v4470_v49, %v4466_v9  ;;  %v5433_v3 = vshll.u32 %v5208_v45, 16  ;;  %v5437_v50 = vshrl.u32 %v5208_v45, 16 }
 0x319   : > { %v5426_v55 = vrot.slane %v5424_v20, 4  ;;  %7274 = vmatprep.mubr.bf16.mxu0 %v8245_v60  ;;  %7113 = vmatprep.mubr.bf16.mxu1 %v8213_v27  ;;  %v4462_v38 = vrot.slane %v4461_v5, 4  ;;  %v5443_v12 = vshll.u32 %v5209_v15, 16  ;;  %v8198_v18 = vrot.slane %v4774_v17, 9  ;;  %v5211_v27 = vld [vmem:[#allocation3 + $0x88] sm:$0xf] }
 0x31a   : > { %v5429_v46 = vrot.slane %v5427_v58, 5  ;;  %v4472_v19 = vrot.slane %v4471_v0, 4  ;;  %v5435_v23 = vrot.slane %v5433_v3, 5  ;;  %v5439_v2 = vrot.slane %v5437_v50, 4  ;;  %v4777_v60 = vld [vmem:[#allocation3 + $0x78] sm:$0xe] }
 0x31b   : > { %v4904_v56 = vrot.slane %v4775_v29, 5  ;;  %v4467_v51 = vsel %vm10676_vm7, %v4462_v38, %v4466_v9  ;;  %v5445_v32 = vrot.slane %v5443_v12, 5  ;;  %v4907_v47 = vrot.slane %v4776_v40, 5  ;;  %v4778_v5 = vld [vmem:[#allocation3 + $0x7c] sm:$0xf] }
 0x31c   : > { %v5430_v1 = vor.u32 %v5429_v46, %v5426_v55  ;;  %v4477_v10 = vsel %vm10676_vm7, %v4472_v19, %v4476_v53  ;;  %v5440_v26 = vor.u32 %v5439_v2, %v5435_v23  ;;  %v4479_v34 = vshrl.u32 %v4262_v54, 16  ;;  %v9693_v53 = vld [vmem:[#allocation3 + $0x78] sm:$0xff]   ;;  %v4779_v3 = vld [vmem:[#allocation3 + $0x80] sm:$0x1] }
 0x31d   : > { %v4905_v59 = vsel %vm10816_vm10, %v8198_v18, %v4904_v56  ;;  %v4906_v16 = vrot.slane %v4904_v56, 4  ;;  %7275 = vmatmul.mubr.bf16.gmra.mrb[252].mxu0 %v9692_v63  ;;  %v8181_v28 = vcombine.low %v4467_v51, %v4477_v10  ;;  %v4482_v24 = vshll.u32 %v4262_v54, 16  ;;  %v4265_v12 = vld [vmem:[#allocation3 + $0x78] sm:$0xf]  ;;  %v4267_v10 = vld [vmem:[#allocation3 + $0x80] sm:$0x1] }
 0x31e   : > { %v5431_v30 = vrot.slane %v5430_v1, 4  ;;  %v5441_v37 = vrot.slane %v5440_v26, 4  ;;  %v4488_v48 = vshll.u32 %v4263_v22, 16  ;;  %v4492_v11 = vshrl.u32 %v4263_v22, 16  ;;  %v4266_v1 = vld [vmem:[#allocation3 + $0x7c] sm:$0xf] }
 0x31f   : > { %v4908_v44 = vsel %vm10816_vm10, %v4906_v16, %v4907_v47  ;;  %v4481_v21 = vrot.slane %v4479_v34, 4  ;;  %v4484_v13 = vrot.slane %v4482_v24, 5  ;;  %v4498_v15 = vshll.u32 %v4264_v42, 16  ;;  %v5213_v42 = vld [vmem:[#allocation3 + $0x90] sm:$0xf] }
 0x320   : > { %v5436_v39 = vsel %vm10676_vm7, %v5431_v30, %v5435_v23  ;;  %v8214_v7 = vcombine.low %v4905_v59, %v4908_v44  ;;  %7114 = vmatmul.mubr.bf16.gmra.mrb[220].mxu1 %v8181_v28  ;;  %v5446_v33 = vsel %vm10676_vm7, %v5441_v37, %v5445_v32  ;;  %v4490_v25 = vrot.slane %v4488_v48, 5  ;;  %v5214_v34 = vld [vmem:[#allocation3 + $0x94] sm:$0xf] }
 0x321   : > { %v4494_v45 = vrot.slane %v4492_v11, 4  ;;  %v8246_v9 = vcombine.low %v5436_v39, %v5446_v33  ;;  %v4485_v49 = vor.u32 %v4484_v13, %v4481_v21  ;;  %v5448_v20 = vshrl.u32 %v5210_v57, 16  ;;  %v5215_v11 = vld [vmem:[#allocation3 + $0x98] sm:$0x1] }
 0x322   : > { %7121 = vmatprep.mubr.bf16.mxu1 %v8214_v7  ;;  %v5451_v17 = vshll.u32 %v5210_v57, 16  ;;  %v4500_v29 = vrot.slane %v4498_v15, 5  ;;  %v5457_v0 = vshll.u32 %v5211_v27, 16  ;;  %v5461_v55 = vshrl.u32 %v5211_v27, 16  ;;  %v4780_v27 = vld [vmem:[#allocation3 + $0x84] sm:$0xe] }
 0x323   : > { %v4495_v58 = vor.u32 %v4494_v45, %v4490_v25  ;;  %7282 = vmatprep.mubr.bf16.mxu0 %v8246_v9  ;;  %v4486_v50 = vrot.slane %v4485_v49, 4  ;;  %v5450_v40 = vrot.slane %v5448_v20, 4  ;;  %v5467_v46 = vshll.u32 %v5212_v41, 16  ;;  %v4781_v9 = vld [vmem:[#allocation3 + $0x88] sm:$0xf] }
 0x324   : > { %v5453_v38 = vrot.slane %v5451_v17, 5  ;;  %v5459_v19 = vrot.slane %v5457_v0, 5  ;;  %v5463_v23 = vrot.slane %v5461_v55, 4  ;;  %v8199_v2 = vrot.slane %v4777_v60, 9  ;;  %v9695_v17 = vld [vmem:[#allocation3 + $0x84] sm:$0xff]  }
 0x325   : > { %v4496_v18 = vrot.slane %v4495_v58, 4  ;;  %7283 = vmatmul.mubr.bf16.gmra.mrb[0].mxu0 %v9693_v53  ;;  %v4491_v56 = vsel %vm10676_vm7, %v4486_v50, %v4490_v25  ;;  %v5469_v63 = vrot.slane %v5467_v46, 5  ;;  %v4911_v51 = vrot.slane %v4778_v5, 5 }
 0x326   : > { %v5454_v54 = vor.u32 %v5453_v38, %v5450_v40  ;;  %v5464_v47 = vor.u32 %v5463_v23, %v5459_v19  ;;  %v4914_v22 = vrot.slane %v4779_v3, 5  ;;  %v4503_v26 = vshrl.u32 %v4265_v12, 16  ;;  %v4782_v40 = vld [vmem:[#allocation3 + $0x8c] sm:$0x1]  ;;  %v4268_v23 = vld [vmem:[#allocation3 + $0x84] sm:$0xf] }
 0x327   : > { %v4501_v32 = vsel %vm10676_vm7, %v4496_v18, %v4500_v29  ;;  %v4912_v28 = vsel %vm10816_vm10, %v8199_v2, %v4911_v51  ;;  %v4913_v30 = vrot.slane %v4911_v51, 4  ;;  %v4506_v44 = vshll.u32 %v4265_v12, 16 }
 0x328   : > { %v8182_v59 = vcombine.low %v4491_v56, %v4501_v32  ;;  %v5455_v16 = vrot.slane %v5454_v54, 4  ;;  %v5465_v24 = vrot.slane %v5464_v47, 4  ;;  %v4505_v37 = vrot.slane %v4503_v26, 4  ;;  %v11637_v57 = vpop.f32.mrb[164].mxu0 }
 0x329   : > { %v4512_v48 = vshll.u32 %v4266_v1, 16  ;;  %v4915_v7 = vsel %vm10816_vm10, %v4913_v30, %v4914_v22  ;;  %v4516_v21 = vshrl.u32 %v4266_v1, 16  ;;  %v4522_v13 = vshll.u32 %v4267_v10, 16  ;;  %v11643_v33 = vpop.f32.mrb[165].mxu0 }
 0x32a   : > { %7122 = vmatmul.mubr.bf16.gmra.mrb[224].mxu1 %v8182_v59  ;;  %v5460_v39 = vsel %vm10676_vm7, %v5455_v16, %v5459_v19  ;;  %v5470_v25 = vsel %vm10676_vm7, %v5465_v24, %v5469_v63  ;;  %v8215_v45 = vcombine.low %v4912_v28, %v4915_v7  ;;  %v4508_v15 = vrot.slane %v4506_v44, 5  ;;  %v11647_v49 = vpop.f32.mrb[166].mxu0  ;;  %v4269_v28 = vld [vmem:[#allocation3 + $0x88] sm:$0xf] }
 0x32b   : > { %v4514_v41 = vrot.slane %v4512_v48, 5  ;;  %v8247_v20 = vcombine.low %v5460_v39, %v5470_v25  ;;  %v4518_v60 = vrot.slane %v4516_v21, 4  ;;  %v4524_v5 = vrot.slane %v4522_v13, 5  ;;  %v11649_v58 = vpop.f32.mrb[132].mxu1  ;;  %v11651_v29 = vpop.f32.mrb[167].mxu0 }
 0x32c   : > { %v5472_v53 = vshrl.u32 %v5213_v42, 16  ;;  %7129 = vmatprep.mubr.bf16.mxu1 %v8215_v45  ;;  %v4509_v0 = vor.u32 %v4508_v15, %v4505_v37  ;;  %v5475_v55 = vshll.u32 %v5213_v42, 16  ;;  %v5481_v3 = vshll.u32 %v5214_v34, 16  ;;  %v11653_v38 = vpop.f32.mrb[133].mxu1  ;;  %v4270_v37 = vld [vmem:[#allocation3 + $0x8c] sm:$0x1] }
 0x32d   : > { %v5485_v50 = vshrl.u32 %v5214_v34, 16  ;;  %7290 = vmatprep.mubr.bf16.mxu0 %v8247_v20  ;;  %v4519_v46 = vor.u32 %v4518_v60, %v4514_v41  ;;  %v5491_v18 = vshll.u32 %v5215_v11, 16  ;;  %v8200_v19 = vrot.slane %v4780_v27, 9  ;;  %v11655_v2 = vpop.f32.mrb[134].mxu1  ;;  %v5216_v21 = vld [vmem:[#allocation3 + $0x9c] sm:$0xf] }
 0x32e   : > { %v5474_v12 = vrot.slane %v5472_v53, 4  ;;  %7291 = vmatmul.mubr.bf16.gmra.mrb[4].mxu0 %v9695_v17  ;;  %v4510_v56 = vrot.slane %v4509_v0, 4  ;;  %v5477_v54 = vrot.slane %v5475_v55, 5  ;;  %v5483_v63 = vrot.slane %v5481_v3, 5  ;;  %v11657_v1 = vpop.f32.mrb[135].mxu1  ;;  %v9696_v0 = vld [vmem:[#allocation3 + $0x90] sm:$0xff]  }
 0x32f   : > { %v5487_v51 = vrot.slane %v5485_v50, 4  ;;  %v4520_v32 = vrot.slane %v4519_v46, 4  ;;  %v5493_v47 = vrot.slane %v5491_v18, 5  ;;  %v4918_v22 = vrot.slane %v4781_v9, 5  ;;  %v5217_v15 = vld [vmem:[#allocation3 + $0xa0] sm:$0xf] }
 0x330   : > { %v4921_v10 = vrot.slane %v4782_v40, 5  ;;  %v4515_v26 = vsel %vm10676_vm7, %v4510_v56, %v4514_v41  ;;  %v5478_v59 = vor.u32 %v5477_v54, %v5474_v12  ;;  %v4527_v30 = vshrl.u32 %v4268_v23, 16  ;;  %v5218_v60 = vld [vmem:[#allocation3 + $0xa4] sm:$0x1]  ;;  %v4784_v40 = vld [vmem:[#allocation3 + $0x94] sm:$0xf] }
 0x331   : > { %v5488_v16 = vor.u32 %v5487_v51, %v5483_v63  ;;  %v4525_v42 = vsel %vm10676_vm7, %v4520_v32, %v4524_v5  ;;  %v4919_v34 = vsel %vm10816_vm10, %v8200_v19, %v4918_v22  ;;  %v4920_v24 = vrot.slane %v4918_v22, 4  ;;  %v4783_v5 = vld [vmem:[#allocation3 + $0x90] sm:$0xe]  ;;  %v4785_v46 = vld [vmem:[#allocation3 + $0x98] sm:$0x1] }
 0x332   : > { %v4530_v44 = vshll.u32 %v4268_v23, 16  ;;  %v8183_v48 = vcombine.low %v4515_v26, %v4525_v42  ;;  %v5479_v11 = vrot.slane %v5478_v59, 4  ;;  %v4529_v7 = vrot.slane %v4527_v30, 4 }
 0x333   : > { %v5489_v39 = vrot.slane %v5488_v16, 4  ;;  %v4922_v13 = vsel %vm10816_vm10, %v4920_v24, %v4921_v10  ;;  %v4536_v25 = vshll.u32 %v4269_v28, 16  ;;  %v4540_v45 = vshrl.u32 %v4269_v28, 16 }
 0x334   : > { %v4532_v27 = vrot.slane %v4530_v44, 5  ;;  %7130 = vmatmul.mubr.bf16.gmra.mrb[228].mxu1 %v8183_v48  ;;  %v5484_v41 = vsel %vm10676_vm7, %v5479_v11, %v5483_v63  ;;  %v8216_v20 = vcombine.low %v4919_v34, %v4922_v13  ;;  %v4546_v17 = vshll.u32 %v4270_v37, 16 }
 0x335   : > { %v5494_v9 = vsel %vm10676_vm7, %v5489_v39, %v5493_v47  ;;  %v4538_v3 = vrot.slane %v4536_v25, 5  ;;  %v4542_v50 = vrot.slane %v4540_v45, 4  ;;  %v11671_v12 = vpop.f32.mrb[136].mxu1  ;;  %v5496_v19 = vshrl.u32 %v5216_v21, 16 }
 0x336   : > { %v8248_v53 = vcombine.low %v5484_v41, %v5494_v9  ;;  %v4533_v55 = vor.u32 %v4532_v27, %v4529_v7  ;;  %7137 = vmatprep.mubr.bf16.mxu1 %v8216_v20  ;;  %v4548_v18 = vrot.slane %v4546_v17, 5  ;;  %v5499_v23 = vshll.u32 %v5216_v21, 16  ;;  %v11673_v54 = vpop.f32.mrb[168].mxu0  ;;  %v11675_v63 = vpop.f32.mrb[137].mxu1  ;;  %v4271_v27 = vld [vmem:[#allocation3 + $0x90] sm:$0xf] }
 0x337   : > { %v5505_v56 = vshll.u32 %v5217_v15, 16  ;;  %v4543_v32 = vor.u32 %v4542_v50, %v4538_v3  ;;  %v5509_v47 = vshrl.u32 %v5217_v15, 16  ;;  %v5515_v22 = vshll.u32 %v5218_v60, 16  ;;  %v11677_v10 = vpop.f32.mrb[169].mxu0  ;;  %v11679_v26 = vpop.f32.mrb[138].mxu1 }
 0x338   : > { %7298 = vmatprep.mubr.bf16.mxu0 %v8248_v53  ;;  %v4534_v51 = vrot.slane %v4533_v55, 4  ;;  %v5498_v59 = vrot.slane %v5496_v19, 4  ;;  %v5501_v16 = vrot.slane %v5499_v23, 5  ;;  %v8201_v30 = vrot.slane %v4783_v5, 9  ;;  %v11681_v42 = vpop.f32.mrb[170].mxu0  ;;  %v11683_v34 = vpop.f32.mrb[139].mxu1 }
 0x339   : > { %7299 = vmatmul.mubr.bf16.gmra.mrb[8].mxu0 %v9696_v0  ;;  %v5507_v28 = vrot.slane %v5505_v56, 5  ;;  %v4544_v37 = vrot.slane %v4543_v32, 4  ;;  %v5511_v44 = vrot.slane %v5509_v47, 4  ;;  %v5517_v48 = vrot.slane %v5515_v22, 5  ;;  %v11687_v11 = vpop.f32.mrb[171].mxu0  ;;  %v9698_v23 = vld [vmem:[#allocation3 + $0x9c] sm:$0xff]  }
 0x33a   : > { %v4539_v24 = vsel %vm10676_vm7, %v4534_v51, %v4538_v3  ;;  %v5502_v39 = vor.u32 %v5501_v16, %v5498_v59  ;;  %v4925_v7 = vrot.slane %v4784_v40, 5  ;;  %v4928_v21 = vrot.slane %v4785_v46, 5  ;;  %v4272_v9 = vld [vmem:[#allocation3 + $0x94] sm:$0xf]  ;;  %v4273_v0 = vld [vmem:[#allocation3 + $0x98] sm:$0x1] }
 0x33b   : > { %v8920_v13 = vadd.f32 %v11413_v52, %v11407_v14  ;;  %v4549_v25 = vsel %vm10676_vm7, %v4544_v37, %v4548_v18  ;;  %v5512_v45 = vor.u32 %v5511_v44, %v5507_v28  ;;  %v9032_v15 = vadd.f32 %v11573_v62, %v11571_v35  ;;  %v5219_v3 = vld [vmem:[#allocation3 + $0xa8] sm:$0xf]  ;;  %v5220_v50 = vld [vmem:[#allocation3 + $0xac] sm:$0xf]  ;;  %v4786_v47 = vld [vmem:[#allocation3 + $0x9c] sm:$0xe] }
 0x33c   : > { %v8923_v41 = vadd.f32 %v11435_v31, %v11430_v36  ;;  %v8184_v20 = vcombine.low %v4539_v24, %v4549_v25  ;;  %v5503_v17 = vrot.slane %v5502_v39, 4  ;;  %v4926_v60 = vsel %vm10816_vm10, %v8201_v30, %v4925_v7  ;;  %v4787_v30 = vld [vmem:[#allocation3 + $0xa0] sm:$0xf]  ;;  %v4788_v39 = vld [vmem:[#allocation3 + $0xa4] sm:$0x1] }
 0x33d   : > { %v4927_v5 = vrot.slane %v4925_v7, 4  ;;  %v5513_v53 = vrot.slane %v5512_v45, 4  ;;  %v11699_v14 = vadd.f32 %v9032_v15, %v8920_v13  ;;  %v9035_v52 = vadd.f32 %v11588_v43, %v11582_v6  ;;  %v5221_v43 = vld [vmem:[#allocation3 + $0xb0] sm:$0x1] }
 0x33e   : > { %v4551_v55 = vshrl.u32 %v4271_v27, 16  ;;  %7138 = vmatmul.mubr.bf16.gmra.mrb[232].mxu1 %v8184_v20  ;;  %v5508_v35 = vsel %vm10676_vm7, %v5503_v17, %v5507_v28  ;;  %v4554_v31 = vshll.u32 %v4271_v27, 16  ;;  %v4560_v62 = vshll.u32 %v4272_v9, 16 }
 0x33f   : > { %v4929_v36 = vsel %vm10816_vm10, %v4927_v5, %v4928_v21  ;;  %v5518_v40 = vsel %vm10676_vm7, %v5513_v53, %v5517_v48  ;;  %v11709_v18 = vadd.f32 %v9035_v52, %v8923_v41  ;;  %v4564_v32 = vshrl.u32 %v4272_v9, 16 }
 0x340   : > { %v8217_v46 = vcombine.low %v4926_v60, %v4929_v36  ;;  %v4553_v6 = vrot.slane %v4551_v55, 4  ;;  %v8249_v19 = vcombine.low %v5508_v35, %v5518_v40  ;;  %v4556_v56 = vrot.slane %v4554_v31, 5 }
 0x341   : > { %v4562_v51 = vrot.slane %v4560_v62, 5  ;;  %v4570_v22 = vshll.u32 %v4273_v0, 16  ;;  %v5520_v59 = vshrl.u32 %v5219_v3, 16  ;;  %v5523_v16 = vshll.u32 %v5219_v3, 16  ;;  %v4274_v3 = vld [vmem:[#allocation3 + $0x9c] sm:$0xf] }
 0x342   : > { %7145 = vmatprep.mubr.bf16.mxu1 %v8217_v46  ;;  %v5529_v28 = vshll.u32 %v5220_v50, 16  ;;  %7306 = vmatprep.mubr.bf16.mxu0 %v8249_v19  ;;  %v4557_v24 = vor.u32 %v4556_v56, %v4553_v6  ;;  %v4566_v37 = vrot.slane %v4564_v32, 4  ;;  %v5533_v44 = vshrl.u32 %v5220_v50, 16  ;;  %v4275_v6 = vld [vmem:[#allocation3 + $0xa0] sm:$0xf] }
 0x343   : > { %v5539_v48 = vshll.u32 %v5221_v43, 16  ;;  %7307 = vmatmul.mubr.bf16.gmra.mrb[12].mxu0 %v9698_v23  ;;  %v4572_v7 = vrot.slane %v4570_v22, 5  ;;  %v5522_v21 = vrot.slane %v5520_v59, 4  ;;  %v5525_v13 = vrot.slane %v5523_v16, 5  ;;  %v4276_v56 = vld [vmem:[#allocation3 + $0xa4] sm:$0x1] }
 0x344   : > { %v5531_v27 = vrot.slane %v5529_v28, 5  ;;  %v4558_v25 = vrot.slane %v4557_v24, 4  ;;  %v4567_v45 = vor.u32 %v4566_v37, %v4562_v51  ;;  %v5535_v15 = vrot.slane %v5533_v44, 4  ;;  %v5223_v22 = vld [vmem:[#allocation3 + $0xb8] sm:$0xf] }
 0x345   : > { %v5541_v41 = vrot.slane %v5539_v48, 5  ;;  %v5526_v9 = vor.u32 %v5525_v13, %v5522_v21  ;;  %v8202_v20 = vrot.slane %v4786_v47, 9  ;;  %v4932_v17 = vrot.slane %v4787_v30, 5  ;;  %v11715_v55 = vpop.f32.mrb[140].mxu1  ;;  %v5224_v59 = vld [vmem:[#allocation3 + $0xbc] sm:$0x1] }
 0x346   : > { %v4935_v60 = vrot.slane %v4788_v39, 5  ;;  %v4563_v5 = vsel %vm10676_vm7, %v4558_v25, %v4562_v51  ;;  %v4568_v53 = vrot.slane %v4567_v45, 4  ;;  %v5536_v52 = vor.u32 %v5535_v15, %v5531_v27  ;;  %v11721_v50 = vpop.f32.mrb[141].mxu1  ;;  %v5222_v51 = vld [vmem:[#allocation3 + $0xb4] sm:$0xf]  ;;  %v9699_v39 = vld [vmem:[#allocation3 + $0xa8] sm:$0xff]  }
 0x347   : > { %v9038_v0 = vadd.f32 %v11643_v33, %v11637_v57  ;;  %v5527_v35 = vrot.slane %v5526_v9, 4  ;;  %v4933_v36 = vsel %vm10816_vm10, %v8202_v20, %v4932_v17  ;;  %v4934_v31 = vrot.slane %v4932_v17, 4  ;;  %v11729_v43 = vpop.f32.mrb[142].mxu1  ;;  %v4789_v44 = vld [vmem:[#allocation3 + $0xa8] sm:$0xe] }
 0x348   : > { %v8926_v62 = vadd.f32 %v11653_v38, %v11649_v58  ;;  %v4573_v40 = vsel %vm10676_vm7, %v4568_v53, %v4572_v7  ;;  %v5537_v46 = vrot.slane %v5536_v52, 4  ;;  %v9041_v57 = vadd.f32 %v11651_v29, %v11647_v49  ;;  %v11739_v49 = vpop.f32.mrb[143].mxu1  ;;  %v4790_v20 = vld [vmem:[#allocation3 + $0xac] sm:$0xf]  ;;  %v4791_v52 = vld [vmem:[#allocation3 + $0xb0] sm:$0x1] }
 0x349   : > { %v8929_v33 = vadd.f32 %v11657_v1, %v11655_v2  ;;  %v8185_v19 = vcombine.low %v4563_v5, %v4573_v40  ;;  %v5532_v58 = vsel %vm10676_vm7, %v5527_v35, %v5531_v27  ;;  %v4936_v38 = vsel %vm10816_vm10, %v4934_v31, %v4935_v60  ;;  %v11737_v32 = vpop.f32.mrb[172].mxu0 }
 0x34a   : > { %v11735_v23 = vadd.f32 %v9038_v0, %v8926_v62  ;;  %v5542_v29 = vsel %vm10676_vm7, %v5537_v46, %v5541_v41  ;;  %v8218_v2 = vcombine.low %v4933_v36, %v4936_v38  ;;  %v4575_v47 = vshrl.u32 %v4274_v3, 16  ;;  %v11745_v16 = vpop.f32.mrb[173].mxu0 }
 0x34b   : > { %v11743_v1 = vadd.f32 %v9041_v57, %v8929_v33  ;;  %7146 = vmatmul.mubr.bf16.gmra.mrb[236].mxu1 %v8185_v19  ;;  %v8250_v28 = vcombine.low %v5532_v58, %v5542_v29  ;;  %v4578_v30 = vshll.u32 %v4274_v3, 16  ;;  %v4584_v24 = vshll.u32 %v4275_v6, 16  ;;  %v11747_v48 = vpop.f32.mrb[174].mxu0 }
 0x34c   : > { %v4588_v37 = vshrl.u32 %v4275_v6, 16  ;;  %7153 = vmatprep.mubr.bf16.mxu1 %v8218_v2  ;;  %v4577_v7 = vrot.slane %v4575_v47, 4  ;;  %v4594_v21 = vshll.u32 %v4276_v56, 16  ;;  %v5544_v13 = vshrl.u32 %v5222_v51, 16  ;;  %v11749_v25 = vpop.f32.mrb[175].mxu0 }
 0x34d   : > { %v5547_v27 = vshll.u32 %v5222_v51, 16  ;;  %7314 = vmatprep.mubr.bf16.mxu0 %v8250_v28  ;;  %v4580_v45 = vrot.slane %v4578_v30, 5  ;;  %v4586_v15 = vrot.slane %v4584_v24, 5  ;;  %v5553_v9 = vshll.u32 %v5223_v22, 16  ;;  %v4278_v28 = vld [vmem:[#allocation3 + $0xac] sm:$0xf] }
 0x34e   : > { %v4590_v41 = vrot.slane %v4588_v37, 4  ;;  %7315 = vmatmul.mubr.bf16.gmra.mrb[16].mxu0 %v9699_v39  ;;  %v4596_v17 = vrot.slane %v4594_v21, 5  ;;  %v5546_v60 = vrot.slane %v5544_v13, 4  ;;  %v5557_v53 = vshrl.u32 %v5223_v22, 16  ;;  %v4279_v39 = vld [vmem:[#allocation3 + $0xb0] sm:$0x1] }
 0x34f   : > { %v5549_v5 = vrot.slane %v5547_v27, 5  ;;  %v4581_v0 = vor.u32 %v4580_v45, %v4577_v7  ;;  %v5555_v36 = vrot.slane %v5553_v9, 5  ;;  %v5563_v31 = vshll.u32 %v5224_v59, 16  ;;  %v4277_v59 = vld [vmem:[#allocation3 + $0xa8] sm:$0xf] }
 0x350   : > { %v4591_v35 = vor.u32 %v4590_v41, %v4586_v15  ;;  %v5559_v3 = vrot.slane %v5557_v53, 4  ;;  %v8203_v40 = vrot.slane %v4789_v44, 9  ;;  %v4939_v46 = vrot.slane %v4790_v20, 5  ;;  %v5227_v13 = vld [vmem:[#allocation3 + $0xc8] sm:$0x1] }
 0x351   : > { %v5550_v62 = vor.u32 %v5549_v5, %v5546_v60  ;;  %v4582_v57 = vrot.slane %v4581_v0, 4  ;;  %v5565_v6 = vrot.slane %v5563_v31, 5  ;;  %v4942_v19 = vrot.slane %v4791_v52, 5  ;;  %v4792_v9 = vld [vmem:[#allocation3 + $0xb4] sm:$0xe] }
 0x352   : > { %v4592_v33 = vrot.slane %v4591_v35, 4  ;;  %v5560_v38 = vor.u32 %v5559_v3, %v5555_v36  ;;  %v4940_v56 = vsel %vm10816_vm10, %v8203_v40, %v4939_v46  ;;  %v4941_v51 = vrot.slane %v4939_v46, 4  ;;  %v9701_v60 = vld [vmem:[#allocation3 + $0xb4] sm:$0xff]   ;;  %v4794_v35 = vld [vmem:[#allocation3 + $0xbc] sm:$0x1] }
 0x353   : > { %v5551_v58 = vrot.slane %v5550_v62, 4  ;;  %v4587_v29 = vsel %vm10676_vm7, %v4582_v57, %v4586_v15  ;;  %v9044_v47 = vadd.f32 %v11677_v10, %v11673_v54  ;;  %v8932_v22 = vadd.f32 %v11675_v63, %v11671_v12  ;;  %v5225_v63 = vld [vmem:[#allocation3 + $0xc0] sm:$0xf]  ;;  %v5226_v10 = vld [vmem:[#allocation3 + $0xc4] sm:$0xf] }
 0x354   : > { %v4597_v2 = vsel %vm10676_vm7, %v4592_v33, %v4596_v17  ;;  %v5561_v37 = vrot.slane %v5560_v38, 4  ;;  %v4943_v44 = vsel %vm10816_vm10, %v4941_v51, %v4942_v19  ;;  %v9047_v54 = vadd.f32 %v11687_v11, %v11681_v42  ;;  %v4793_v5 = vld [vmem:[#allocation3 + $0xb8] sm:$0xf] }
 0x355   : > { %v8186_v30 = vcombine.low %v4587_v29, %v4597_v2  ;;  %v5556_v24 = vsel %vm10676_vm7, %v5551_v58, %v5555_v36  ;;  %v8219_v7 = vcombine.low %v4940_v56, %v4943_v44  ;;  %v11765_v21 = vadd.f32 %v9044_v47, %v8932_v22 }
 0x356   : > { %v8935_v12 = vadd.f32 %v11683_v34, %v11679_v26  ;;  %v5566_v27 = vsel %vm10676_vm7, %v5561_v37, %v5565_v6  ;;  %v4599_v45 = vshrl.u32 %v4277_v59, 16  ;;  %v4602_v15 = vshll.u32 %v4277_v59, 16 }
 0x357   : > { %7154 = vmatmul.mubr.bf16.gmra.mrb[240].mxu1 %v8186_v30  ;;  %v4608_v41 = vshll.u32 %v4278_v28, 16  ;;  %v8251_v20 = vcombine.low %v5556_v24, %v5566_v27  ;;  %v4612_v42 = vshrl.u32 %v4278_v28, 16  ;;  %v4618_v11 = vshll.u32 %v4279_v39, 16  ;;  %v11775_v26 = vpop.f32.mrb[144].mxu1  ;;  %v4280_v27 = vld [vmem:[#allocation3 + $0xb4] sm:$0xf] }
 0x358   : > { %7161 = vmatprep.mubr.bf16.mxu1 %v8219_v7  ;;  %v11773_v17 = vadd.f32 %v9047_v54, %v8935_v12  ;;  %v4601_v34 = vrot.slane %v4599_v45, 4  ;;  %v4604_v53 = vrot.slane %v4602_v15, 5  ;;  %v5568_v0 = vshrl.u32 %v5225_v63, 16  ;;  %v11777_v36 = vpop.f32.mrb[176].mxu0  ;;  %v11779_v31 = vpop.f32.mrb[145].mxu1 }
 0x359   : > { %v4610_v52 = vrot.slane %v4608_v41, 5  ;;  %7322 = vmatprep.mubr.bf16.mxu0 %v8251_v20  ;;  %v4614_v62 = vrot.slane %v4612_v42, 4  ;;  %v4620_v3 = vrot.slane %v4618_v11, 5  ;;  %v5571_v40 = vshll.u32 %v5225_v63, 16  ;;  %v11781_v57 = vpop.f32.mrb[177].mxu0  ;;  %v11783_v33 = vpop.f32.mrb[146].mxu1 }
 0x35a   : > { %v5577_v46 = vshll.u32 %v5226_v10, 16  ;;  %7323 = vmatmul.mubr.bf16.gmra.mrb[20].mxu0 %v9701_v60  ;;  %v4605_v6 = vor.u32 %v4604_v53, %v4601_v34  ;;  %v5570_v19 = vrot.slane %v5568_v0, 4  ;;  %v5581_v58 = vshrl.u32 %v5226_v10, 16  ;;  %v11785_v56 = vpop.f32.mrb[178].mxu0  ;;  %v11787_v51 = vpop.f32.mrb[147].mxu1 }
 0x35b   : > { %v5587_v38 = vshll.u32 %v5227_v13, 16  ;;  %v4615_v29 = vor.u32 %v4614_v62, %v4610_v52  ;;  %v5573_v2 = vrot.slane %v5571_v40, 5  ;;  %v8204_v22 = vrot.slane %v4792_v9, 9  ;;  %v11789_v59 = vpop.f32.mrb[179].mxu0  ;;  %v4282_v11 = vld [vmem:[#allocation3 + $0xbc] sm:$0x1] }
 0x35c   : > { %v5579_v47 = vrot.slane %v5577_v46, 5  ;;  %v4606_v28 = vrot.slane %v4605_v6, 4  ;;  %v5583_v30 = vrot.slane %v5581_v58, 4  ;;  %v4946_v37 = vrot.slane %v4793_v5, 5  ;;  %v4797_v62 = vld [vmem:[#allocation3 + $0xc8] sm:$0x1] }
 0x35d   : > { %v5589_v24 = vrot.slane %v5587_v38, 5  ;;  %v4616_v44 = vrot.slane %v4615_v29, 4  ;;  %v5574_v39 = vor.u32 %v5573_v2, %v5570_v19  ;;  %v4949_v7 = vrot.slane %v4794_v35, 5  ;;  %v9702_v46 = vld [vmem:[#allocation3 + $0xc0] sm:$0xff]  }
 0x35e   : > { %v9050_v54 = vadd.f32 %v11745_v16, %v11737_v32  ;;  %v4611_v12 = vsel %vm10676_vm7, %v4606_v28, %v4610_v52  ;;  %v5584_v63 = vor.u32 %v5583_v30, %v5579_v47  ;;  %v4947_v10 = vsel %vm10816_vm10, %v8204_v22, %v4946_v37  ;;  %v4281_v32 = vld [vmem:[#allocation3 + $0xb8] sm:$0xf]  ;;  %v4283_v28 = vld [vmem:[#allocation3 + $0xc0] sm:$0xf] }
 0x35f   : > { %v4948_v13 = vrot.slane %v4946_v37, 4  ;;  %v4621_v45 = vsel %vm10676_vm7, %v4616_v44, %v4620_v3  ;;  %v5575_v15 = vrot.slane %v5574_v39, 4  ;;  %v8938_v41 = vadd.f32 %v11721_v50, %v11715_v55 }
 0x360   : > { %v9053_v9 = vadd.f32 %v11749_v25, %v11747_v48  ;;  %v8187_v16 = vcombine.low %v4611_v12, %v4621_v45  ;;  %v5585_v20 = vrot.slane %v5584_v63, 4  ;;  %v8941_v42 = vadd.f32 %v11739_v49, %v11729_v43  ;;  %v11807_v5 = vpop.f32.mrb[180].mxu0  ;;  %v4795_v48 = vld [vmem:[#allocation3 + $0xc0] sm:$0xe]  ;;  %v4796_v25 = vld [vmem:[#allocation3 + $0xc4] sm:$0xf] }
 0x361   : > { %v4950_v60 = vsel %vm10816_vm10, %v4948_v13, %v4949_v7  ;;  %v5580_v34 = vsel %vm10676_vm7, %v5575_v15, %v5579_v47  ;;  %v11811_v55 = vadd.f32 %v9050_v54, %v8938_v41  ;;  %v4623_v50 = vshrl.u32 %v4280_v27, 16  ;;  %v11813_v52 = vpop.f32.mrb[181].mxu0  ;;  %v4284_v13 = vld [vmem:[#allocation3 + $0xc4] sm:$0xf] }
 0x362   : > { %v8220_v53 = vcombine.low %v4947_v10, %v4950_v60  ;;  %7162 = vmatmul.mubr.bf16.gmra.mrb[244].mxu1 %v8187_v16  ;;  %v5590_v0 = vsel %vm10676_vm7, %v5585_v20, %v5589_v24  ;;  %v11817_v35 = vadd.f32 %v9053_v9, %v8941_v42  ;;  %v4626_v43 = vshll.u32 %v4280_v27, 16  ;;  %v11819_v3 = vpop.f32.mrb[182].mxu0  ;;  %v339_v9 = vld [vmem:[#allocation3 + $0xcc] sm:$0x1] }
 0x363   : > { %v4632_v49 = vshll.u32 %v4281_v32, 16  ;;  %v8252_v40 = vcombine.low %v5580_v34, %v5590_v0  ;;  %v4625_v6 = vrot.slane %v4623_v50, 4  ;;  %v4636_v19 = vshrl.u32 %v4281_v32, 16  ;;  %v11821_v38 = vpop.f32.mrb[148].mxu1  ;;  %v11823_v29 = vpop.f32.mrb[183].mxu0 }
 0x364   : > { %7169 = vmatprep.mubr.bf16.mxu1 %v8220_v53  ;;  %v4642_v58 = vshll.u32 %v4282_v11, 16  ;;  %v4628_v2 = vrot.slane %v4626_v43, 5  ;;  %v4953_v22 = vrot.slane %v4796_v25, 5  ;;  %v11825_v30 = vpop.f32.mrb[149].mxu1  ;;  %v8205_v44 = vrot.slane %v4795_v48, 9 }
 0x365   : > { %v4634_v47 = vrot.slane %v4632_v49, 5  ;;  %7330 = vmatprep.mubr.bf16.mxu0 %v8252_v40  ;;  %v4638_v24 = vrot.slane %v4636_v19, 4  ;;  %v9056_v39 = vadd.f32 %v11781_v57, %v11777_v36  ;;  %v11829_v7 = vpop.f32.mrb[150].mxu1  ;;  %v4956_v63 = vrot.slane %v4797_v62, 5  ;;  %v4285_v36 = vld [vmem:[#allocation3 + $0xc8] sm:$0x1] }
 0x366   : > { %v4644_v37 = vrot.slane %v4642_v58, 5  ;;  %7331 = vmatmul.mubr.bf16.gmra.mrb[24].mxu0 %v9702_v46  ;;  %v4629_v54 = vor.u32 %v4628_v2, %v4625_v6  ;;  %v4955_v12 = vrot.slane %v4953_v22, 4  ;;  %v8944_v10 = vadd.f32 %v11779_v31, %v11775_v26  ;;  %v11833_v27 = vpop.f32.mrb[151].mxu1  ;;  %v395_v31 = vld [vmem:[#allocation3 + $0xd4] sm:$0x1] }
 0x367   : > { %v4639_v45 = vor.u32 %v4638_v24, %v4634_v47  ;;  %v9059_v15 = vadd.f32 %v11789_v59, %v11785_v56  ;;  %v8947_v41 = vadd.f32 %v11787_v51, %v11783_v33  ;;  %v4647_v57 = vshrl.u32 %v4283_v28, 16  ;;  %v5229_v51 = vld [vmem:[#allocation3 + $0xd0] sm:$0xf]  ;;  %v5696_v25 = vld [vmem:[#allocation3 + $0x1c] sm:$0xf] }
 0x368   : > { %v4630_v32 = vrot.slane %v4629_v54, 4  ;;  %v4954_v16 = vsel %vm10816_vm10, %v8205_v44, %v4953_v22  ;;  %v11841_v20 = vadd.f32 %v9056_v39, %v8944_v10  ;;  %v4650_v26 = vshll.u32 %v4283_v28, 16  ;;  %v11843_v60 = vpop.f32.mrb[184].mxu0 }
 0x369   : > { %v4640_v42 = vrot.slane %v4639_v45, 4  ;;  %v4957_v56 = vsel %vm10816_vm10, %v4955_v12, %v4956_v63  ;;  %v11847_v59 = vadd.f32 %v9059_v15, %v8947_v41  ;;  %v4649_v33 = vrot.slane %v4647_v57, 4  ;;  %v11849_v11 = vpop.f32.mrb[185].mxu0  ;;  %v5695_v63 = vld [vmem:[#allocation3 + $0x18] sm:$0xe] }
 0x36a   : > { %v4635_v34 = vsel %vm10676_vm7, %v4630_v32, %v4634_v47  ;;  %v4652_v53 = vrot.slane %v4650_v26, 5  ;;  %v4656_v50 = vshll.u32 %v4284_v13, 16  ;;  %v4660_v48 = vshrl.u32 %v4284_v13, 16  ;;  %v11853_v0 = vpop.f32.mrb[186].mxu0  ;;  %v11877_v57 = vld [vmem:[#allocation3 + $0x28] sm:$0xf] }
 0x36b   : > { %v4645_v43 = vsel %vm10676_vm7, %v4640_v42, %v4644_v37  ;;  %v4666_v49 = vshll.u32 %v4285_v36, 16  ;;  %v340_v62 = vsel %vm10544_vm2, 0, %v339_v9  ;;  %v396_v46 = vsel %vm10571_vm4, 0, %v395_v31  ;;  %v11861_v6 = vpop.f32.mrb[152].mxu1  ;;  %v11863_v19 = vpop.f32.mrb[187].mxu0 }
 0x36c   : > { %v8188_v58 = vcombine.low %v4635_v34, %v4645_v43  ;;  %v4653_v2 = vor.u32 %v4652_v53, %v4649_v33  ;;  %v4658_v47 = vrot.slane %v4656_v50, 5  ;;  %v4662_v22 = vrot.slane %v4660_v48, 4  ;;  %341 = vst [vmem:[#allocation3 + $0xcc] sm:$0x1] %v340_v62  ;;  %397 = vst [vmem:[#allocation3 + $0xd4] sm:$0x1] %v396_v46 }
 0x36d   : > { %v11865_v28 = vpop.f32.mrb[153].mxu1  ;;  %v8221_v24 = vcombine.low %v4954_v16, %v4957_v56  ;;  %v5601_v37 = vshll.u32 %v5229_v51, 16  ;;  %v5605_v44 = vshrl.u32 %v5229_v51, 16  ;;  %v5793_v10 = vrot.slane %v5696_v25, 5  ;;  %v5700_v34 = vld [vmem:[#allocation3 + $0x2c] sm:$0x1] }
 0x36e   : > { %v11867_v39 = vpop.f32.mrb[154].mxu1  ;;  %7170 = vmatmul.mubr.bf16.gmra.mrb[248].mxu1 %v8188_v58  ;;  %v4654_v54 = vrot.slane %v4653_v2, 4  ;;  %v4663_v12 = vor.u32 %v4662_v22, %v4658_v47  ;;  %v9062_v41 = vadd.f32 %v11813_v52, %v11807_v5  ;;  %v8950_v36 = vadd.f32 %v11825_v30, %v11821_v38  ;;  %v5702_v50 = vld [vmem:[#allocation3 + $0x34] sm:$0xf]  ;;  %v5698_v43 = vld [vmem:[#allocation3 + $0x24] sm:$0xe] }
 0x36f   : > { %v11869_v13 = vpop.f32.mrb[155].mxu1  ;;  %7177 = vmatprep.mubr.bf16.mxu1 %v8221_v24  ;;  %v11871_v45 = vrot.slane %v5601_v37, 5  ;;  %v5607_v15 = vrot.slane %v5605_v44, 4  ;;  %v4668_v32 = vrot.slane %v4666_v49, 5  ;;  %v5795_v16 = vrot.slane %v5793_v10, 4 }
 0x370   : > { %v4664_v9 = vrot.slane %v4663_v12, 4  ;;  %v5796_v26 = vrot.slane %v5697_v61, 5  ;;  %v11879_v31 = vpop.f32.mrb[188].mxu0  ;;  %v8254_v42 = vrot.slane %v5695_v63, 9  ;;  %v11881_v56 = vadd.f32 %v9062_v41, %v8950_v36  ;;  %v5703_v49 = vld [vmem:[#allocation3 + $0x38] sm:$0x1] }
 0x371   : > { %v9065_v33 = vadd.f32 %v11823_v29, %v11819_v3  ;;  %v8953_v5 = vadd.f32 %v11833_v27, %v11829_v7  ;;  %v11887_v52 = vpop.f32.mrb[189].mxu0  ;;  %v5608_v30 = vor.u32 %v5607_v15, %v11871_v45  ;;  %v5800_v53 = vrot.slane %v11877_v57, 5  ;;  %v5701_v37 = vld [vmem:[#allocation3 + $0x30] sm:$0xe] }
 0x372   : > { %v4669_v38 = vsel %vm10676_vm7, %v4664_v9, %v4668_v32  ;;  %v5797_v51 = vsel %vm10816_vm10, %v5795_v16, %v5796_v26  ;;  %v11895_v48 = vpop.f32.mrb[190].mxu0  ;;  %v4659_v3 = vsel %vm10676_vm7, %v4654_v54, %v4658_v47  ;;  %v5794_v27 = vsel %vm10816_vm10, %v8254_v42, %v5793_v10  ;;  %v11905_v32 = vld [vmem:[#allocation3 + $0x40] sm:$0xf] }
 0x373   : > { %v5228_v29 = vld [vmem:[#allocation3 + $0xcc] sm:$0xf]  ;;  %v5230_v7 = vld [vmem:[#allocation3 + $0xd4] sm:$0x1]  ;;  %v11901_v25 = vadd.f32 %v9065_v33, %v8953_v5  ;;  %v8189_v62 = vcombine.low %v4659_v3, %v4669_v38  ;;  %v8960_v2 = vpop.f32.mrb[156].mxu1  ;;  %v8270_v22 = vcombine.low %v5794_v27, %v5797_v51  ;;  %v5802_v24 = vrot.slane %v5800_v53, 4 }
 0x374   : > { %v5592_v40 = vshrl.u32 %v5228_v29, 16  ;;  %v5595_v46 = vshll.u32 %v5228_v29, 16  ;;  %v5611_v58 = vshll.u32 %v5230_v7, 16  ;;  %v5807_v44 = vrot.slane %v5702_v50, 5  ;;  %v8961_v61 = vpop.f32.mrb[157].mxu1  ;;  %v9076_v47 = vpop.f32.mrb[191].mxu0 }
 0x375   : > { %v5609_v63 = vrot.slane %v5608_v30, 4  ;;  %v8963_v15 = vpop.f32.mrb[158].mxu1  ;;  %v5803_v41 = vrot.slane %v5700_v34, 5  ;;  %v5810_v57 = vrot.slane %v5703_v49, 5  ;;  %v9068_v9 = vadd.f32 %v11849_v11, %v11843_v60  ;;  %v11909_v38 = vld [vmem:[#allocation3 + $0x4c] sm:$0xf] }
 0x376   : > { %7178 = vmatmul.mubr.bf16.gmra.mrb[252].mxu1 %v8189_v62  ;;  %v5594_v54 = vrot.slane %v5592_v40, 4  ;;  %v5597_v12 = vrot.slane %v5595_v46, 5  ;;  %v5613_v10 = vrot.slane %v5611_v58, 5  ;;  %v5809_v36 = vrot.slane %v5807_v44, 4  ;;  %v8964_v16 = vpop.f32.mrb[159].mxu1  ;;  %v9704_v62 = vld [vmem:[#allocation3 + $0xcc] sm:$0xff]  }
 0x377   : > { %9438 = vmatprep.mubr.bf16.mxu1 %v8270_v22  ;;  %v8255_v42 = vrot.slane %v5698_v43, 9  ;;  %v8256_v33 = vrot.slane %v5701_v37, 9  ;;  %v8956_v5 = vadd.f32 %v11865_v28, %v11861_v6  ;;  %v5804_v51 = vsel %vm10816_vm10, %v5802_v24, %v5803_v41  ;;  %v5706_v58 = vld [vmem:[#allocation3 + $0x44] sm:$0x1]  ;;  %v5709_v22 = vld [vmem:[#allocation3 + $0x50] sm:$0x1] }
 0x378   : > { %v5598_v26 = vor.u32 %v5597_v12, %v5594_v54  ;;  %v9078_v30 = vpop.f32.mrb[192].mxu0  ;;  %v5811_v34 = vsel %vm10816_vm10, %v5809_v36, %v5810_v57  ;;  %v9071_v60 = vadd.f32 %v11863_v19, %v11853_v0  ;;  %v8959_v11 = vadd.f32 %v11869_v13, %v11867_v39  ;;  %v5704_v37 = vld [vmem:[#allocation3 + $0x3c] sm:$0xe]  ;;  %v11937_v36 = vld [vmem:[#allocation3 + $0x58] sm:$0xf] }
 0x379   : > { %v9079_v50 = vpop.f32.mrb[193].mxu0  ;;  %v5614_v6 = vsel %vm10676_vm7, %v5609_v63, %v5613_v10  ;;  %v11921_v28 = vadd.f32 %v9068_v9, %v8956_v5  ;;  %v5814_v29 = vrot.slane %v11905_v32, 5  ;;  %v5801_v27 = vsel %vm10816_vm10, %v8255_v42, %v5800_v53  ;;  %v5707_v10 = vld [vmem:[#allocation3 + $0x48] sm:$0xe] }
 0x37a   : > { %v5599_v3 = vrot.slane %v5598_v26, 4  ;;  %v9081_v7 = vpop.f32.mrb[194].mxu0  ;;  %v5808_v43 = vsel %vm10816_vm10, %v8256_v33, %v5807_v44  ;;  %v11928_v0 = vadd.f32 %v9071_v60, %v8959_v11  ;;  %v5821_v19 = vrot.slane %v11909_v38, 5  ;;  %v5714_v26 = vld [vmem:[#allocation3 + $0x64] sm:$0xf] }
 0x37b   : > { %v8966_v39 = vpop.f32.mrb[160].mxu1  ;;  %v9082_v13 = vpop.f32.mrb[195].mxu0  ;;  %v8271_v40 = vcombine.low %v5801_v27, %v5804_v51  ;;  %v8272_v46 = vcombine.low %v5808_v43, %v5811_v34  ;;  %v5816_v54 = vrot.slane %v5814_v29, 4  ;;  %v9074_v12 = vadd.f32 %v11887_v52, %v11879_v31 }
 0x37c   : > { %v5604_v49 = vsel %vm10676_vm7, %v5599_v3, %v11871_v45  ;;  %v8967_v24 = vpop.f32.mrb[161].mxu1  ;;  %v5823_v44 = vrot.slane %v5821_v19, 4  ;;  %v8962_v41 = vadd.f32 %v8961_v61, %v8960_v2  ;;  %v9077_v8 = vadd.f32 %v9076_v47, %v11895_v48 }
 0x37d   : > { %v8253_v53 = vcombine.low %v5604_v49, %v5614_v6  ;;  %v8969_v63 = vpop.f32.mrb[162].mxu1  ;;  %v8965_v45 = vadd.f32 %v8964_v16, %v8963_v15  ;;  %v5817_v9 = vrot.slane %v5706_v58, 5  ;;  %v5824_v32 = vrot.slane %v5709_v22, 5  ;;  %v5712_v49 = vld [vmem:[#allocation3 + $0x5c] sm:$0x1] }
 0x37e   : > { %9439 = vmatmul.mubr.bf16.vlgmr.msra.gmra.mrb[0].mxu1 %v8271_v40  ;;  %v8970_v57 = vpop.f32.mrb[163].mxu1  ;;  %v8257_v42 = vrot.slane %v5704_v37, 9  ;;  %v11939_v33 = vadd.f32 %v9074_v12, %v8962_v41  ;;  %v8258_v48 = vrot.slane %v5707_v10, 9  ;;  %v5828_v47 = vrot.slane %v11937_v36, 5  ;;  %v5720_v37 = vld [vmem:[#allocation3 + $0x7c] sm:$0xf] }
 0x37f   : > { %7338 = vmatprep.mubr.bf16.mxu0 %v8253_v53  ;;  %9442 = vmatprep.mubr.bf16.mxu1 %v8272_v46  ;;  %v11941_v31 = vadd.f32 %v9077_v8, %v8965_v45  ;;  %v5818_v2 = vsel %vm10816_vm10, %v5816_v54, %v5817_v9  ;;  %v5825_v61 = vsel %vm10816_vm10, %v5823_v44, %v5824_v32  ;;  %v5835_v16 = vrot.slane %v5714_v26, 5  ;;  %v5713_v53 = vld [vmem:[#allocation3 + $0x60] sm:$0xe] }
 0x380   : > { %7339 = vmatmul.mubr.bf16.gmra.mrb[28].mxu0 %v9704_v62  ;;  %v9084_v52 = vpop.f32.mrb[196].mxu0  ;;  %v9080_v5 = vadd.f32 %v9079_v50, %v9078_v30  ;;  %v8968_v38 = vadd.f32 %v8967_v24, %v8966_v39  ;;  %v9083_v51 = vadd.f32 %v9082_v13, %v9081_v7  ;;  %v5815_v60 = vsel %vm10816_vm10, %v8257_v42, %v5814_v29  ;;  %v5715_v30 = vld [vmem:[#allocation3 + $0x68] sm:$0x1]  ;;  %v5710_v39 = vld [vmem:[#allocation3 + $0x54] sm:$0xe] }
 0x381   : > { %v9085_v15 = vpop.f32.mrb[197].mxu0  ;;  %v8971_v11 = vadd.f32 %v8970_v57, %v8969_v63  ;;  %v8273_v27 = vcombine.low %v5815_v60, %v5818_v2  ;;  %v5822_v43 = vsel %vm10816_vm10, %v8258_v48, %v5821_v19  ;;  %v5830_v58 = vrot.slane %v5828_v47, 4  ;;  %v5717_v13 = vld [vmem:[#allocation3 + $0x70] sm:$0xf] }
 0x382   : > { %v9087_v34 = vpop.f32.mrb[198].mxu0  ;;  %v11952_v62 = vadd.f32 %v9080_v5, %v8968_v38  ;;  %v8274_v46 = vcombine.low %v5822_v43, %v5825_v61  ;;  %v5837_v29 = vrot.slane %v5835_v16, 4  ;;  %v5831_v24 = vrot.slane %v5712_v49, 5  ;;  %v5718_v38 = vld [vmem:[#allocation3 + $0x74] sm:$0x1] }
 0x383   : > { %v8972_v3 = vpop.f32.mrb[164].mxu1  ;;  %v9088_v6 = vpop.f32.mrb[199].mxu0  ;;  %v11954_v50 = vadd.f32 %v9083_v51, %v8971_v11  ;;  %v9086_v19 = vadd.f32 %v9085_v15, %v9084_v52  ;;  %v5838_v12 = vrot.slane %v5715_v30, 5  ;;  %v8259_v41 = vrot.slane %v5710_v39, 9  ;;  %v5716_v49 = vld [vmem:[#allocation3 + $0x6c] sm:$0xe] }
 0x384   : > { %v8973_v40 = vpop.f32.mrb[165].mxu1  ;;  %v9089_v44 = vadd.f32 %v9088_v6, %v9087_v34  ;;  %v5832_v8 = vsel %vm10816_vm10, %v5830_v58, %v5831_v24  ;;  %v5842_v45 = vrot.slane %v5717_v13, 5  ;;  %v8260_v9 = vrot.slane %v5713_v53, 9  ;;  %v5721_v6 = vld [vmem:[#allocation3 + $0x80] sm:$0x1] }
 0x385   : > { %v8975_v7 = vpop.f32.mrb[166].mxu1  ;;  %v8974_v54 = vadd.f32 %v8973_v40, %v8972_v3  ;;  %v5839_v32 = vsel %vm10816_vm10, %v5837_v29, %v5838_v12  ;;  %v5849_v26 = vrot.slane %v5720_v37, 5  ;;  %v5829_v2 = vsel %vm10816_vm10, %v8259_v41, %v5828_v47  ;;  %v5719_v30 = vld [vmem:[#allocation3 + $0x78] sm:$0xe] }
 0x386   : > { %9443 = vmatmul.mubr.bf16.gmra.mrb[4].mxu1 %v8273_v27  ;;  %v8976_v22 = vpop.f32.mrb[167].mxu1  ;;  %v8275_v15 = vcombine.low %v5829_v2, %v5832_v8  ;;  %v5836_v5 = vsel %vm10816_vm10, %v8260_v9, %v5835_v16  ;;  %v5844_v3 = vrot.slane %v5842_v45, 4  ;;  %v5845_v58 = vrot.slane %v5718_v38, 5 }
 0x387   : > { %9446 = vmatprep.mubr.bf16.mxu1 %v8274_v46  ;;  %v8977_v63 = vadd.f32 %v8976_v22, %v8975_v7  ;;  %v11958_v36 = vadd.f32 %v9086_v19, %v8974_v54  ;;  %v8276_v11 = vcombine.low %v5836_v5, %v5839_v32  ;;  %v5851_v40 = vrot.slane %v5849_v26, 4  ;;  %v5723_v46 = vld [vmem:[#allocation3 + $0x88] sm:$0xf]  ;;  %v5726_v7 = vld [vmem:[#allocation3 + $0x94] sm:$0xf] }
 0x388   : > { %v9090_v10 = vpop.f32.mrb[200].mxu0  ;;  %v5852_v29 = vrot.slane %v5721_v6, 5  ;;  %v8261_v22 = vrot.slane %v5716_v49, 9  ;;  %v5846_v24 = vsel %vm10816_vm10, %v5844_v3, %v5845_v58  ;;  %v5856_v53 = vrot.slane %v5723_v46, 5  ;;  %v5727_v5 = vld [vmem:[#allocation3 + $0x98] sm:$0x1] }
 0x389   : > { %v9091_v57 = vpop.f32.mrb[201].mxu0  ;;  %v11962_v42 = vadd.f32 %v9089_v44, %v8977_v63  ;;  %v8262_v54 = vrot.slane %v5719_v30, 9  ;;  %v5863_v12 = vrot.slane %v5726_v7, 5  ;;  %v5725_v6 = vld [vmem:[#allocation3 + $0x90] sm:$0xe]  ;;  %v5866_v49 = vrot.slane %v5727_v5, 5 }
 0x38a   : > { %v9093_v52 = vpop.f32.mrb[202].mxu0  ;;  %v9092_v51 = vadd.f32 %v9091_v57, %v9090_v10  ;;  %v5853_v44 = vsel %vm10816_vm10, %v5851_v40, %v5852_v29  ;;  %v5843_v41 = vsel %vm10816_vm10, %v8261_v22, %v5842_v45  ;;  %v5735_v5 = vld [vmem:[#allocation3 + $0xb8] sm:$0xf] }
 0x38b   : > { %v8978_v48 = vpop.f32.mrb[168].mxu1  ;;  %v9094_v61 = vpop.f32.mrb[203].mxu0  ;;  %v8277_v9 = vcombine.low %v5843_v41, %v5846_v24  ;;  %v5850_v32 = vsel %vm10816_vm10, %v8262_v54, %v5849_v26  ;;  %v5730_v41 = vld [vmem:[#allocation3 + $0xa4] sm:$0x1] }
 0x38c   : > { %v8979_v34 = vpop.f32.mrb[169].mxu1  ;;  %v9095_v60 = vadd.f32 %v9094_v61, %v9093_v52  ;;  %v5724_v52 = vld [vmem:[#allocation3 + $0x8c] sm:$0x1]  ;;  %v8278_v61 = vcombine.low %v5850_v32, %v5853_v44 }
 0x38d   : > { %v8980_v27 = vadd.f32 %v8979_v34, %v8978_v48  ;;  %v8981_v43 = vpop.f32.mrb[170].mxu1  ;;  %v5722_v34 = vld [vmem:[#allocation3 + $0x84] sm:$0xe]  ;;  %v5859_v45 = vrot.slane %v5724_v52, 5  ;;  %v5733_v52 = vld [vmem:[#allocation3 + $0xb0] sm:$0x1] }
 0x38e   : > { %9447 = vmatmul.mubr.bf16.gmra.mrb[8].mxu1 %v8275_v15  ;;  %v8982_v47 = vpop.f32.mrb[171].mxu1  ;;  %v5858_v15 = vrot.slane %v5856_v53, 4  ;;  %v8263_v46 = vrot.slane %v5722_v34, 9  ;;  %v5738_v34 = vld [vmem:[#allocation3 + $0xc4] sm:$0xf] }
 0x38f   : > { %9450 = vmatprep.mubr.bf16.mxu1 %v8276_v11  ;;  %v11968_v39 = vadd.f32 %v9092_v51, %v8980_v27  ;;  %v8983_v16 = vadd.f32 %v8982_v47, %v8981_v43  ;;  %v5729_v11 = vld [vmem:[#allocation3 + $0xa0] sm:$0xf]  ;;  %v5732_v27 = vld [vmem:[#allocation3 + $0xac] sm:$0xf] }
 0x390   : > { %v9096_v13 = vpop.f32.mrb[204].mxu0  ;;  %v5860_v47 = vsel %vm10816_vm10, %v5858_v15, %v5859_v45  ;;  %v5870_v58 = vrot.slane %v5729_v11, 5  ;;  %v5880_v11 = vrot.slane %v5733_v52, 5 }
 0x391   : > { %v11972_v37 = vadd.f32 %v9095_v60, %v8983_v16  ;;  %v9097_v19 = vpop.f32.mrb[205].mxu0  ;;  %v5865_v60 = vrot.slane %v5863_v12, 4  ;;  %v8264_v16 = vrot.slane %v5725_v6, 9 }
 0x392   : > { %v9098_v63 = vadd.f32 %v9097_v19, %v9096_v13  ;;  %v9099_v10 = vpop.f32.mrb[206].mxu0  ;;  %v5877_v13 = vrot.slane %v5732_v27, 5  ;;  %v5857_v19 = vsel %vm10816_vm10, %v8263_v46, %v5856_v53  ;;  %v5872_v32 = vrot.slane %v5870_v58, 4 }
 0x393   : > { %v8984_v8 = vpop.f32.mrb[172].mxu1  ;;  %v9100_v57 = vpop.f32.mrb[207].mxu0  ;;  %v5867_v29 = vsel %vm10816_vm10, %v5865_v60, %v5866_v49  ;;  %v5873_v53 = vrot.slane %v5730_v41, 5  ;;  %v5884_v27 = vrot.slane %v5735_v5, 5 }
 0x394   : > { %v8985_v2 = vpop.f32.mrb[173].mxu1  ;;  %v9101_v48 = vadd.f32 %v9100_v57, %v9099_v10  ;;  %v5864_v10 = vsel %vm10816_vm10, %v8264_v16, %v5863_v12  ;;  %v5879_v15 = vrot.slane %v5877_v13, 4 }
 0x395   : > { %v8986_v38 = vadd.f32 %v8985_v2, %v8984_v8  ;;  %v8987_v51 = vpop.f32.mrb[174].mxu1  ;;  %v5874_v6 = vsel %vm10816_vm10, %v5872_v32, %v5873_v53 }
 0x396   : > { %9451 = vmatmul.mubr.bf16.gmra.mrb[12].mxu1 %v8277_v9  ;;  %v8988_v3 = vpop.f32.mrb[175].mxu1  ;;  %v8280_v9 = vcombine.low %v5864_v10, %v5867_v29  ;;  %v5881_v46 = vsel %vm10816_vm10, %v5879_v15, %v5880_v11  ;;  %v5737_v15 = vld [vmem:[#allocation3 + $0xc0] sm:$0xe] }
 0x397   : > { %9454 = vmatprep.mubr.bf16.mxu1 %v8278_v61  ;;  %v11980_v43 = vadd.f32 %v9098_v63, %v8986_v38  ;;  %v8989_v26 = vadd.f32 %v8988_v3, %v8987_v51  ;;  %v8279_v63 = vcombine.low %v5857_v19, %v5860_v47  ;;  %v5728_v61 = vld [vmem:[#allocation3 + $0x9c] sm:$0xe]  ;;  %v5731_v51 = vld [vmem:[#allocation3 + $0xa8] sm:$0xe]  ;;  %v5891_v47 = vrot.slane %v5738_v34, 5 }
 0x398   : > { %v9102_v40 = vpop.f32.mrb[208].mxu0  ;;  %v8265_v45 = vrot.slane %v5728_v61, 9  ;;  %v5742_v34 = vld [vmem:[#allocation3 + $0xd4] sm:$0x1] }
 0x399   : > { %v11984_v30 = vadd.f32 %v9101_v48, %v8989_v26  ;;  %v9103_v7 = vpop.f32.mrb[209].mxu0 }
 0x39a   : > { %v9104_v22 = vadd.f32 %v9103_v7, %v9102_v40  ;;  %v9105_v24 = vpop.f32.mrb[210].mxu0  ;;  %v8266_v40 = vrot.slane %v5731_v51, 9  ;;  %v5871_v29 = vsel %vm10816_vm10, %v8265_v45, %v5870_v58  ;;  %v5740_v51 = vld [vmem:[#allocation3 + $0xcc] sm:$0xe] }
 0x39b   : > { %v8990_v54 = vpop.f32.mrb[176].mxu1  ;;  %v9106_v44 = vpop.f32.mrb[211].mxu0  ;;  %v8281_v19 = vcombine.low %v5871_v29, %v5874_v6  ;;  %v8269_v29 = vrot.slane %v5740_v51, 9 }
 0x39c   : > { %v8991_v8 = vpop.f32.mrb[177].mxu1  ;;  %v9107_v57 = vadd.f32 %v9106_v44, %v9105_v24  ;;  %v5736_v44 = vld [vmem:[#allocation3 + $0xbc] sm:$0x1] }
 0x39d   : > { %v8992_v2 = vadd.f32 %v8991_v8, %v8990_v54  ;;  %v8993_v48 = vpop.f32.mrb[178].mxu1  ;;  %v5878_v54 = vsel %vm10816_vm10, %v8266_v40, %v5877_v13  ;;  %v5887_v58 = vrot.slane %v5736_v44, 5 }
 0x39e   : > { %9455 = vmatmul.mubr.bf16.gmra.mrb[16].mxu1 %v8279_v63  ;;  %v8994_v38 = vpop.f32.mrb[179].mxu1  ;;  %v5741_v63 = vld [vmem:[#allocation3 + $0xd0] sm:$0xf]  ;;  %v8282_v8 = vcombine.low %v5878_v54, %v5881_v46 }
 0x39f   : > { %9458 = vmatprep.mubr.bf16.mxu1 %v8280_v9  ;;  %v11992_v60 = vadd.f32 %v9104_v22, %v8992_v2  ;;  %v8995_v12 = vadd.f32 %v8994_v38, %v8993_v48  ;;  %v5739_v9 = vld [vmem:[#allocation3 + $0xc8] sm:$0x1]  ;;  %v5734_v2 = vld [vmem:[#allocation3 + $0xb4] sm:$0xe]  ;;  %v5893_v48 = vrot.slane %v5891_v47, 4  ;;  %v5898_v5 = vrot.slane %v5741_v63, 5 }
 0x3a0   : > { %v9108_v3 = vpop.f32.mrb[212].mxu0  ;;  %v5894_v53 = vrot.slane %v5739_v9, 5  ;;  %v8267_v11 = vrot.slane %v5734_v2, 9 }
 0x3a1   : > { %v11996_v26 = vadd.f32 %v9107_v57, %v8995_v12  ;;  %v9109_v49 = vpop.f32.mrb[213].mxu0  ;;  %v5886_v57 = vrot.slane %v5884_v27, 4 }
 0x3a2   : > { %v9110_v7 = vadd.f32 %v9109_v49, %v9108_v3  ;;  %v9111_v16 = vpop.f32.mrb[214].mxu0  ;;  %v8268_v49 = vrot.slane %v5737_v15, 9  ;;  %v5895_v40 = vsel %vm10816_vm10, %v5893_v48, %v5894_v53 }
 0x3a3   : > { %v8996_v22 = vpop.f32.mrb[180].mxu1  ;;  %v9112_v24 = vpop.f32.mrb[215].mxu0  ;;  %v5888_v3 = vsel %vm10816_vm10, %v5886_v57, %v5887_v58 }
 0x3a4   : > { %v8997_v10 = vpop.f32.mrb[181].mxu1  ;;  %v9113_v41 = vadd.f32 %v9112_v24, %v9111_v16  ;;  %v5901_v24 = vrot.slane %v5742_v34, 5  ;;  %v5892_v63 = vsel %vm10816_vm10, %v8268_v49, %v5891_v47 }
 0x3a5   : > { %v8998_v32 = vadd.f32 %v8997_v10, %v8996_v22  ;;  %v8999_v52 = vpop.f32.mrb[182].mxu1  ;;  %v5900_v22 = vrot.slane %v5898_v5, 4 }
 0x3a6   : > { %9459 = vmatmul.mubr.bf16.gmra.mrb[20].mxu1 %v8281_v19  ;;  %v9000_v61 = vpop.f32.mrb[183].mxu1 }
 0x3a7   : > { %9462 = vmatprep.mubr.bf16.mxu1 %v8282_v8  ;;  %v12004_v38 = vadd.f32 %v9110_v7, %v8998_v32  ;;  %v9001_v13 = vadd.f32 %v9000_v61, %v8999_v52  ;;  %v5885_v7 = vsel %vm10816_vm10, %v8267_v11, %v5884_v27  ;;  %v8284_v8 = vcombine.low %v5892_v63, %v5895_v40 }
 0x3a8   : > { %v9114_v12 = vpop.f32.mrb[216].mxu0  ;;  %v8283_v44 = vcombine.low %v5885_v7, %v5888_v3  ;;  %v5899_v27 = vsel %vm10816_vm10, %v8269_v29, %v5898_v5  ;;  %v5902_v52 = vsel %vm10816_vm10, %v5900_v22, %v5901_v24 }
 0x3a9   : > { %v12008_v45 = vadd.f32 %v9113_v41, %v9001_v13  ;;  %v9115_v6 = vpop.f32.mrb[217].mxu0  ;;  %v8285_v15 = vcombine.low %v5899_v27, %v5902_v52 }
 0x3aa   : > { %v9116_v46 = vadd.f32 %v9115_v6, %v9114_v12  ;;  %v9117_v16 = vpop.f32.mrb[218].mxu0 }
 0x3ab   : > { %v9002_v19 = vpop.f32.mrb[184].mxu1  ;;  %v9118_v54 = vpop.f32.mrb[219].mxu0 }
 0x3ac   : > { %v9003_v10 = vpop.f32.mrb[185].mxu1  ;;  %v9119_v41 = vadd.f32 %v9118_v54, %v9117_v16 }
 0x3ad   : > { %v9004_v57 = vadd.f32 %v9003_v10, %v9002_v19  ;;  %v9005_v9 = vpop.f32.mrb[186].mxu1 }
 0x3ae   : > { %9463 = vmatmul.mubr.bf16.gmra.mrb[24].mxu1 %v8283_v44  ;;  %v9006_v32 = vpop.f32.mrb[187].mxu1 }
 0x3af   : > { %9466 = vmatprep.mubr.bf16.mxu1 %v8284_v8  ;;  %v12020_v2 = vadd.f32 %v9116_v46, %v9004_v57  ;;  %v9007_v48 = vadd.f32 %v9006_v32, %v9005_v9 }
 0x3b0   : > { %v9120_v61 = vpop.f32.mrb[220].mxu0 }
 0x3b1   : > { %v12022_v58 = vadd.f32 %v9119_v41, %v9007_v48  ;;  %v9121_v47 = vpop.f32.mrb[221].mxu0 }
 0x3b2   : > { %v9122_v13 = vadd.f32 %v9121_v47, %v9120_v61  ;;  %v9123_v53 = vpop.f32.mrb[222].mxu0 }
 0x3b3   : > { %v9008_v51 = vpop.f32.mrb[188].mxu1  ;;  %v9124_v34 = vpop.f32.mrb[223].mxu0 }
 0x3b4   : > { %v9009_v12 = vpop.f32.mrb[189].mxu1  ;;  %v9125_v11 = vadd.f32 %v9124_v34, %v9123_v53 }
 0x3b5   : > { %v9010_v3 = vadd.f32 %v9009_v12, %v9008_v51  ;;  %v9011_v6 = vpop.f32.mrb[190].mxu1 }
 0x3b6   : > { %9467 = vmatmul.mubr.bf16.gmra.mrb[28].mxu1 %v8285_v15  ;;  %v9012_v5 = vpop.f32.mrb[191].mxu1 }
 0x3b7   : > { %v12024_v4 = vadd.f32 %v9122_v13, %v9010_v3  ;;  %v9013_v49 = vadd.f32 %v9012_v5, %v9011_v6 }
 0x3b8   : > { %v9254_v40 = vpop.f32.mrb[224].mxu0 }
 0x3b9   : > { %v12026_v46 = vadd.f32 %v9125_v11, %v9013_v49  ;;  %v9255_v16 = vpop.f32.mrb[225].mxu0 }
 0x3ba   : > { %v12028_v7 = vadd.f32 %v9255_v16, %v9254_v40  ;;  %v9257_v29 = vpop.f32.mrb[226].mxu0 }
 0x3bb   : > { %v9142_v22 = vpop.f32.mrb[192].mxu1  ;;  %v9258_v24 = vpop.f32.mrb[227].mxu0 }
 0x3bc   : > { %v9143_v19 = vpop.f32.mrb[193].mxu1  ;;  %v12030_v54 = vadd.f32 %v9258_v24, %v9257_v29 }
 0x3bd   : > { %v9144_v44 = vadd.f32 %v9143_v19, %v9142_v22  ;;  %v9145_v63 = vpop.f32.mrb[194].mxu1 }
 0x3be   : > { %v9146_v10 = vpop.f32.mrb[195].mxu1 }
 0x3bf   : > { %v7060_v41 = vadd.f32 %v9144_v44, %v11699_v14  ;;  %v9147_v8 = vadd.f32 %v9146_v10, %v9145_v63 }
 0x3c0   : > { %v9260_v57 = vpop.f32.mrb[228].mxu0 }
 0x3c1   : > { %v7063_v9 = vadd.f32 %v9147_v8, %v11709_v18  ;;  %v9261_v32 = vpop.f32.mrb[229].mxu0 }
 0x3c2   : > { %v9262_v27 = vadd.f32 %v9261_v32, %v9260_v57  ;;  %v9263_v52 = vpop.f32.mrb[230].mxu0 }
 0x3c3   : > { %v9148_v48 = vpop.f32.mrb[196].mxu1  ;;  %v9264_v61 = vpop.f32.mrb[231].mxu0 }
 0x3c4   : > { %v9149_v47 = vpop.f32.mrb[197].mxu1  ;;  %v9265_v15 = vadd.f32 %v9264_v61, %v9263_v52 }
 0x3c5   : > { %v9150_v13 = vadd.f32 %v9149_v47, %v9148_v48  ;;  %v9151_v53 = vpop.f32.mrb[198].mxu1 }
 0x3c6   : > { %v9152_v51 = vpop.f32.mrb[199].mxu1 }
 0x3c7   : > { %v7068_v34 = vadd.f32 %v9150_v13, %v11735_v23  ;;  %v9153_v12 = vadd.f32 %v9152_v51, %v9151_v53 }
 0x3c8   : > { %v9266_v11 = vpop.f32.mrb[232].mxu0 }
 0x3c9   : > { %v7071_v14 = vadd.f32 %v9153_v12, %v11743_v1  ;;  %v9267_v3 = vpop.f32.mrb[233].mxu0  ;;  %v12039_v12 = vadd.f32 %v9262_v27, %v7068_v34  ;;  %v12048_v27 = vadd.f32 %v12030_v54, %v7063_v9 }
 0x3ca   : > { %v9268_v6 = vadd.f32 %v9267_v3, %v9266_v11  ;;  %v9269_v5 = vpop.f32.mrb[234].mxu0 }
 0x3cb   : > { %v9154_v18 = vpop.f32.mrb[200].mxu1  ;;  %v9270_v49 = vpop.f32.mrb[235].mxu0 }
 0x3cc   : > { %v9155_v40 = vpop.f32.mrb[201].mxu1  ;;  %v9271_v16 = vadd.f32 %v9270_v49, %v9269_v5 }
 0x3cd   : > { %v9156_v29 = vadd.f32 %v9155_v40, %v9154_v18  ;;  %v9157_v22 = vpop.f32.mrb[202].mxu1 }
 0x3ce   : > { %v9158_v24 = vpop.f32.mrb[203].mxu1 }
 0x3cf   : > { %v7076_v19 = vadd.f32 %v9156_v29, %v11765_v21  ;;  %v9159_v44 = vadd.f32 %v9158_v24, %v9157_v22  ;;  %v12043_v22 = vadd.f32 %v12028_v7, %v7060_v41 }
 0x3d0   : > { %v9272_v63 = vpop.f32.mrb[236].mxu0 }
 0x3d1   : > { %v7079_v23 = vadd.f32 %v9159_v44, %v11773_v17  ;;  %v9273_v10 = vpop.f32.mrb[237].mxu0 }
 0x3d2   : > { %v9274_v8 = vadd.f32 %v9273_v10, %v9272_v63  ;;  %v9275_v57 = vpop.f32.mrb[238].mxu0  ;;  %v12045_v63 = vadd.f32 %v9265_v15, %v7071_v14  ;;  %v12054_v14 = vadd.f32 %v9268_v6, %v7076_v19 }
 0x3d3   : > { %v9160_v1 = vpop.f32.mrb[204].mxu1  ;;  %v9276_v32 = vpop.f32.mrb[239].mxu0 }
 0x3d4   : > { %v9161_v52 = vpop.f32.mrb[205].mxu1  ;;  %v9277_v48 = vadd.f32 %v9276_v32, %v9275_v57 }
 0x3d5   : > { %v9162_v61 = vadd.f32 %v9161_v52, %v9160_v1  ;;  %v9163_v47 = vpop.f32.mrb[206].mxu1 }
 0x3d6   : > { %v9164_v13 = vpop.f32.mrb[207].mxu1 }
 0x3d7   : > { %v7084_v53 = vadd.f32 %v9162_v61, %v11811_v55  ;;  %v9165_v51 = vadd.f32 %v9164_v13, %v9163_v47 }
 0x3d8   : > { %v9278_v21 = vpop.f32.mrb[240].mxu0 }
 0x3d9   : > { %v7087_v11 = vadd.f32 %v9165_v51, %v11817_v35  ;;  %v9279_v3 = vpop.f32.mrb[241].mxu0  ;;  %v12051_v10 = vadd.f32 %v9274_v8, %v7084_v53  ;;  %v12058_v51 = vadd.f32 %v9271_v16, %v7079_v23 }
 0x3da   : > { %v9280_v17 = vadd.f32 %v9279_v3, %v9278_v21  ;;  %v9281_v5 = vpop.f32.mrb[242].mxu0 }
 0x3db   : > { %v9166_v18 = vpop.f32.mrb[208].mxu1  ;;  %v9282_v49 = vpop.f32.mrb[243].mxu0  ;;  %v12056_v9 = vadd.f32 %v9277_v48, %v7087_v11 }
 0x3dc   : > { %v9167_v40 = vpop.f32.mrb[209].mxu1  ;;  %v9283_v29 = vadd.f32 %v9282_v49, %v9281_v5 }
 0x3dd   : > { %v9168_v24 = vadd.f32 %v9167_v40, %v9166_v18  ;;  %v9169_v44 = vpop.f32.mrb[210].mxu1 }
 0x3de   : > { %v9170_v55 = vpop.f32.mrb[211].mxu1 }
 0x3df   : > { %v7092_v35 = vadd.f32 %v9168_v24, %v11841_v20  ;;  %v9171_v34 = vadd.f32 %v9170_v55, %v9169_v44 }
 0x3e0   : > { %v9284_v57 = vpop.f32.mrb[244].mxu0 }
 0x3e1   : > { %v7095_v1 = vadd.f32 %v9171_v34, %v11847_v59  ;;  %v9285_v32 = vpop.f32.mrb[245].mxu0  ;;  %v12064_v48 = vadd.f32 %v9280_v17, %v7092_v35 }
 0x3e2   : > { %v9286_v52 = vadd.f32 %v9285_v32, %v9284_v57  ;;  %v9287_v7 = vpop.f32.mrb[246].mxu0 }
 0x3e3   : > { %v9172_v41 = vpop.f32.mrb[212].mxu1  ;;  %v9288_v61 = vpop.f32.mrb[247].mxu0  ;;  %v12068_v44 = vadd.f32 %v9283_v29, %v7095_v1 }
 0x3e4   : > { %v9173_v47 = vpop.f32.mrb[213].mxu1  ;;  %v9289_v15 = vadd.f32 %v9288_v61, %v9287_v7 }
 0x3e5   : > { %v9174_v13 = vadd.f32 %v9173_v47, %v9172_v41  ;;  %v9175_v54 = vpop.f32.mrb[214].mxu1 }
 0x3e6   : > { %v9176_v20 = vpop.f32.mrb[215].mxu1 }
 0x3e7   : > { %v7100_v8 = vadd.f32 %v9174_v13, %v11881_v56  ;;  %v9177_v53 = vadd.f32 %v9176_v20, %v9175_v54 }
 0x3e8   : > { %v9290_v59 = vpop.f32.mrb[248].mxu0 }
 0x3e9   : > { %v7103_v21 = vadd.f32 %v9177_v53, %v11901_v25  ;;  %v9291_v3 = vpop.f32.mrb[249].mxu0  ;;  %v12062_v5 = vadd.f32 %v9286_v52, %v7100_v8 }
 0x3ea   : > { %v9292_v18 = vadd.f32 %v9291_v3, %v9290_v59  ;;  %v9293_v49 = vpop.f32.mrb[250].mxu0 }
 0x3eb   : > { %v9178_v6 = vpop.f32.mrb[216].mxu1  ;;  %v9294_v19 = vpop.f32.mrb[251].mxu0  ;;  %v12066_v23 = vadd.f32 %v9289_v15, %v7103_v21 }
 0x3ec   : > { %v9179_v40 = vpop.f32.mrb[217].mxu1  ;;  %v9295_v24 = vadd.f32 %v9294_v19, %v9293_v49 }
 0x3ed   : > { %v9180_v11 = vadd.f32 %v9179_v40, %v9178_v6  ;;  %v9181_v16 = vpop.f32.mrb[218].mxu1 }
 0x3ee   : > { %v9182_v56 = vpop.f32.mrb[219].mxu1 }
 0x3ef   : > { %v7108_v25 = vadd.f32 %v9180_v11, %v11921_v28  ;;  %v9183_v55 = vadd.f32 %v9182_v56, %v9181_v16 }
 0x3f0   : > { %v9296_v34 = vpop.f32.mrb[252].mxu0 }
 0x3f1   : > { %v7111_v57 = vadd.f32 %v9183_v55, %v11928_v0  ;;  %v9297_v32 = vpop.f32.mrb[253].mxu0  ;;  %v12072_v47 = vadd.f32 %v9292_v18, %v7108_v25 }
 0x3f2   : > { %v9298_v52 = vadd.f32 %v9297_v32, %v9296_v34  ;;  %v9299_v7 = vpop.f32.mrb[254].mxu0 }
 0x3f3   : > { %v9184_v41 = vpop.f32.mrb[220].mxu1  ;;  %v9300_v61 = vpop.f32.mrb[255].mxu0  ;;  %v12074_v29 = vadd.f32 %v9295_v24, %v7111_v57 }
 0x3f4   : > { %v9185_v17 = vpop.f32.mrb[221].mxu1  ;;  %v9301_v35 = vadd.f32 %v9300_v61, %v9299_v7 }
 0x3f5   : > { %v9186_v15 = vadd.f32 %v9185_v17, %v9184_v41  ;;  %v9187_v13 = vpop.f32.mrb[222].mxu1 }
 0x3f6   : > { %v9188_v54 = vpop.f32.mrb[223].mxu1 }
 0x3f7   : > { %v7116_v28 = vadd.f32 %v9186_v15, %v11939_v33  ;;  %v9189_v1 = vadd.f32 %v9188_v54, %v9187_v13 }
 0x3f8   : > { %v9302_v20 = vpop.f32.mrb[0].mxu0 }
 0x3f9   : > { %v7119_v0 = vadd.f32 %v9189_v1, %v11941_v31  ;;  %v9303_v8 = vpop.f32.mrb[1].mxu0  ;;  %v12078_v53 = vadd.f32 %v9298_v52, %v7116_v28 }
 0x3fa   : > { %v9304_v59 = vadd.f32 %v9303_v8, %v9302_v20  ;;  %v9305_v21 = vpop.f32.mrb[2].mxu0 }
 0x3fb   : > { %v9306_v3 = vpop.f32.mrb[3].mxu0  ;;  %v12080_v49 = vadd.f32 %v9301_v35, %v7119_v0 }
 0x3fc   : > { %v9307_v6 = vadd.f32 %v9306_v3, %v9305_v21 }
 0x3fd   : > { %v9190_v18 = vpop.f32.mrb[224].mxu1 }
 0x3fe   : > { %v9191_v19 = vpop.f32.mrb[225].mxu1 }
 0x3ff   : > { %v9192_v40 = vadd.f32 %v9191_v19, %v9190_v18  ;;  %v9193_v24 = vpop.f32.mrb[226].mxu1 }
 0x400   : > { %v9194_v11 = vpop.f32.mrb[227].mxu1 }
 0x401   : > { %v7124_v33 = vadd.f32 %v9192_v40, %v11952_v62  ;;  %v9195_v16 = vadd.f32 %v9194_v11, %v9193_v24  ;;  %v9308_v56 = vpop.f32.mrb[4].mxu0 }
 0x402   : > { %v9309_v25 = vpop.f32.mrb[5].mxu0 }
 0x403   : > { %v7127_v31 = vadd.f32 %v9195_v16, %v11954_v50  ;;  %v12084_v55 = vadd.f32 %v9304_v59, %v7124_v33  ;;  %v9310_v34 = vadd.f32 %v9309_v25, %v9308_v56  ;;  %v9311_v57 = vpop.f32.mrb[6].mxu0 }
 0x404   : > { %v9312_v32 = vpop.f32.mrb[7].mxu0 }
 0x405   : > { %v12086_v52 = vadd.f32 %v9307_v6, %v7127_v31  ;;  %v9313_v7 = vadd.f32 %v9312_v32, %v9311_v57 }
 0x407   : > { %v9196_v41 = vpop.f32.mrb[228].mxu1 }
 0x408   : > { %v9197_v61 = vpop.f32.mrb[229].mxu1 }
 0x409   : > { %v9198_v17 = vadd.f32 %v9197_v61, %v9196_v41  ;;  %v9199_v35 = vpop.f32.mrb[230].mxu1 }
 0x40a   : > { %v9200_v15 = vpop.f32.mrb[231].mxu1 }
 0x40b   : > { %v7132_v62 = vadd.f32 %v9198_v17, %v11958_v36  ;;  %v9201_v13 = vadd.f32 %v9200_v15, %v9199_v35 }
 0x40c   : > { %v9314_v54 = vpop.f32.mrb[8].mxu0 }
 0x40d   : > { %v9315_v28 = vpop.f32.mrb[9].mxu0  ;;  %v7135_v50 = vadd.f32 %v9201_v13, %v11962_v42  ;;  %v12090_v0 = vadd.f32 %v9310_v34, %v7132_v62 }
 0x40e   : > { %v9316_v1 = vadd.f32 %v9315_v28, %v9314_v54  ;;  %v9317_v20 = vpop.f32.mrb[10].mxu0 }
 0x40f   : > { %v9318_v8 = vpop.f32.mrb[11].mxu0  ;;  %v12092_v21 = vadd.f32 %v9313_v7, %v7135_v50 }
 0x410   : > { %v9319_v59 = vadd.f32 %v9318_v8, %v9317_v20 }
 0x411   : > { %v9202_v3 = vpop.f32.mrb[232].mxu1 }
 0x412   : > { %v9203_v18 = vpop.f32.mrb[233].mxu1 }
 0x413   : > { %v9204_v6 = vadd.f32 %v9203_v18, %v9202_v3  ;;  %v9205_v19 = vpop.f32.mrb[234].mxu1 }
 0x414   : > { %v9206_v40 = vpop.f32.mrb[235].mxu1 }
 0x415   : > { %v7140_v36 = vadd.f32 %v9204_v6, %v11968_v39  ;;  %v9207_v24 = vadd.f32 %v9206_v40, %v9205_v19 }
 0x416   : > { %v9320_v11 = vpop.f32.mrb[12].mxu0 }
 0x417   : > { %v7143_v33 = vadd.f32 %v9207_v24, %v11972_v37  ;;  %v9321_v42 = vpop.f32.mrb[13].mxu0  ;;  %v12096_v16 = vadd.f32 %v9316_v1, %v7140_v36 }
 0x418   : > { %v9322_v56 = vadd.f32 %v9321_v42, %v9320_v11  ;;  %v9323_v31 = vpop.f32.mrb[14].mxu0 }
 0x419   : > { %v9324_v25 = vpop.f32.mrb[15].mxu0  ;;  %v12098_v34 = vadd.f32 %v9319_v59, %v7143_v33 }
 0x41a   : > { %v9325_v57 = vadd.f32 %v9324_v25, %v9323_v31 }
 0x41e   : > { %v9208_v32 = vpop.f32.mrb[236].mxu1 }
 0x41f   : > { %v9209_v7 = vpop.f32.mrb[237].mxu1 }
 0x420   : > { %v9210_v41 = vadd.f32 %v9209_v7, %v9208_v32  ;;  %v9211_v61 = vpop.f32.mrb[238].mxu1 }
 0x421   : > { %v9212_v17 = vpop.f32.mrb[239].mxu1  ;;  %v9326_v35 = vpop.f32.mrb[16].mxu0 }
 0x422   : > { %v7148_v39 = vadd.f32 %v9210_v41, %v11980_v43  ;;  %v9213_v15 = vadd.f32 %v9212_v17, %v9211_v61  ;;  %v9327_v62 = vpop.f32.mrb[17].mxu0 }
 0x423   : > { %v9328_v37 = vadd.f32 %v9327_v62, %v9326_v35  ;;  %v9329_v13 = vpop.f32.mrb[18].mxu0 }
 0x424   : > { %v7151_v54 = vadd.f32 %v9213_v15, %v11984_v30  ;;  %v9330_v28 = vpop.f32.mrb[19].mxu0  ;;  %v12102_v50 = vadd.f32 %v9322_v56, %v7148_v39 }
 0x425   : > { %v9331_v1 = vadd.f32 %v9330_v28, %v9329_v13 }
 0x426   : > { %v12104_v20 = vadd.f32 %v9325_v57, %v7151_v54 }
 0x42a   : > { %v9214_v8 = vpop.f32.mrb[240].mxu1 }
 0x42b   : > { %v9215_v59 = vpop.f32.mrb[241].mxu1 }
 0x42c   : > { %v9216_v3 = vadd.f32 %v9215_v59, %v9214_v8  ;;  %v9217_v18 = vpop.f32.mrb[242].mxu1 }
 0x42d   : > { %v9218_v6 = vpop.f32.mrb[243].mxu1  ;;  %v9332_v40 = vpop.f32.mrb[20].mxu0 }
 0x42e   : > { %v7156_v19 = vadd.f32 %v9216_v3, %v11992_v60  ;;  %v9219_v43 = vadd.f32 %v9218_v6, %v9217_v18  ;;  %v9333_v36 = vpop.f32.mrb[21].mxu0 }
 0x42f   : > { %v9334_v11 = vadd.f32 %v9333_v36, %v9332_v40  ;;  %v9335_v30 = vpop.f32.mrb[22].mxu0 }
 0x430   : > { %v7159_v24 = vadd.f32 %v9219_v43, %v11996_v26  ;;  %v12108_v33 = vadd.f32 %v9328_v37, %v7156_v19  ;;  %v9336_v42 = vpop.f32.mrb[23].mxu0 }
 0x431   : > { %v9337_v56 = vadd.f32 %v9336_v42, %v9335_v30 }
 0x432   : > { %v12110_v31 = vadd.f32 %v9331_v1, %v7159_v24 }
 0x435   : > { %v9220_v25 = vpop.f32.mrb[244].mxu1 }
 0x436   : > { %v9221_v57 = vpop.f32.mrb[245].mxu1 }
 0x437   : > { %v9222_v32 = vadd.f32 %v9221_v57, %v9220_v25  ;;  %v9223_v7 = vpop.f32.mrb[246].mxu1 }
 0x438   : > { %v9224_v41 = vpop.f32.mrb[247].mxu1 }
 0x439   : > { %v7164_v60 = vadd.f32 %v9222_v32, %v12004_v38  ;;  %v9225_v61 = vadd.f32 %v9224_v41, %v9223_v7  ;;  %v9338_v17 = vpop.f32.mrb[24].mxu0 }
 0x43a   : > { %v9339_v35 = vpop.f32.mrb[25].mxu0 }
 0x43b   : > { %v7167_v26 = vadd.f32 %v9225_v61, %v12008_v45  ;;  %v9340_v39 = vadd.f32 %v9339_v35, %v9338_v17  ;;  %v9341_v15 = vpop.f32.mrb[26].mxu0  ;;  %v12114_v62 = vadd.f32 %v9334_v11, %v7164_v60 }
 0x43c   : > { %v9342_v37 = vpop.f32.mrb[27].mxu0 }
 0x43d   : > { %v9343_v13 = vadd.f32 %v9342_v37, %v9341_v15  ;;  %v12116_v54 = vadd.f32 %v9337_v56, %v7167_v26  ;;  %v8362_v26 = vld [vmem:[%s9959_s21 + $0x31] sm:$0xff] }
 0x441   : > { %v9226_v28 = vpop.f32.mrb[248].mxu1 }
 0x442   : > { %v9227_v1 = vpop.f32.mrb[249].mxu1 }
 0x443   : > { %v9228_v8 = vadd.f32 %v9227_v1, %v9226_v28  ;;  %v9229_v59 = vpop.f32.mrb[250].mxu1 }
 0x444   : > { %v9230_v3 = vpop.f32.mrb[251].mxu1 }
 0x445   : > { %v7172_v38 = vadd.f32 %v9228_v8, %v12020_v2  ;;  %v9231_v18 = vadd.f32 %v9230_v3, %v9229_v59  ;;  %v8363_v8 = vld [vmem:[%s9959_s21 + $0x39] sm:$0xff] }
 0x447   : > { %v7175_v6 = vadd.f32 %v9231_v18, %v12022_v58  ;;  %v12120_v45 = vadd.f32 %v9340_v39, %v7172_v38  ;;  %v12129_v58 = vld [vmem:[%s12362_s5] ss:$0 sm:$0xff] }
 0x449   : > { %v9232_v19 = vpop.f32.mrb[252].mxu1  ;;  %v12122_v43 = vadd.f32 %v9343_v13, %v7175_v6  ;;  %v8360_v13 = vld [vmem:[%s9959_s21 + $0x19] sm:$0xff] }
 0x44a   : > { %v9233_v40 = vpop.f32.mrb[253].mxu1 }
 0x44b   : > { %v9234_v36 = vadd.f32 %v9233_v40, %v9232_v19  ;;  %v9235_v24 = vpop.f32.mrb[254].mxu1 }
 0x44c   : > { %v9236_v11 = vpop.f32.mrb[255].mxu1 }
 0x44d   : > { %v7180_v30 = vadd.f32 %v9234_v36, %v12024_v4  ;;  %v9237_v42 = vadd.f32 %v9236_v11, %v9235_v24  ;;  %v12136_v4 = vld [vmem:[%s12363_s6] ss:$0 sm:$0xff] }
 0x44f   : > { %v7183_v56 = vadd.f32 %v9237_v42, %v12026_v46 }
 0x451   : > { %v9440_v2 = vpop.f32.mrb[0].mxu1 }
 0x452   : > { %v7390_v25 = vadd.f32 %v9440_v2, %v12039_v12  ;;  %v7381_v57 = vpop.f32.mrb[1].mxu1 }
 0x453   : > { %v9344_v32 = vpop.f32.mrb[28].mxu0  ;;  %v7382_v46 = vadd.f32 %v7381_v57, %v12043_v22  ;;  %v9441_v7 = vpop.f32.mrb[2].mxu1 }
 0x454   : > { %v9345_v41 = vpop.f32.mrb[29].mxu0  ;;  %v7517_v60 = vmul.f32 %v12129_v58, %v7390_v25  ;;  %v7393_v61 = vadd.f32 %v9441_v7, %v12045_v63  ;;  %v7384_v12 = vpop.f32.mrb[3].mxu1 }
 0x455   : > { %v9346_v17 = vadd.f32 %v9345_v41, %v9344_v32  ;;  %v9347_v35 = vpop.f32.mrb[30].mxu0  ;;  %v7515_v39 = vmul.f32 %v12129_v58, %v7382_v46  ;;  %v7385_v15 = vadd.f32 %v7384_v12, %v12048_v27  ;;  %v8361_v27 = vld [vmem:[%s9959_s21 + $0x21] sm:$0xff] }
 0x456   : > { %v9348_v37 = vpop.f32.mrb[31].mxu0  ;;  %v7556_v22 = vadd.f32 %v12136_v4, %v7517_v60  ;;  %v7518_v28 = vmul.f32 %v12129_v58, %v7393_v61  ;;  %v8366_v60 = vld [vmem:[%s9959_s21 + $0x61] sm:$0xff] }
 0x457   : > { %v9349_v1 = vadd.f32 %v9348_v37, %v9347_v35  ;;  %v7554_v63 = vadd.f32 %v12136_v4, %v7515_v39  ;;  %v7516_v59 = vmul.f32 %v12129_v58, %v7385_v15  ;;  %v12152_v3 = vadd.f32 %v9346_v17, %v7180_v30  ;;  %v8364_v17 = vld [vmem:[%s9959_s21 + $0x49] sm:$0xff] }
 0x458   : > { %v7620_v38 = vadd.f32 %v8362_v26, %v7556_v22  ;;  %v7557_v18 = vadd.f32 %v12136_v4, %v7518_v28  ;;  %v8367_v39 = vld [vmem:[%s9959_s21 + $0x69] sm:$0xff]  ;;  %v8365_v22 = vld [vmem:[%s9959_s21 + $0x51] sm:$0xff] }
 0x459   : > { %v7618_v6 = vadd.f32 %v8360_v13, %v7554_v63  ;;  %v7555_v19 = vadd.f32 %v12136_v4, %v7516_v59  ;;  %v9444_v40 = vpop.f32.mrb[4].mxu1  ;;  %v12157_v36 = vadd.f32 %v9349_v1, %v7183_v56 }
 0x45a   : > { %v7652_v24 = vmax.f32 %v7620_v38, 0.0  ;;  %v7621_v11 = vadd.f32 %v8363_v8, %v7557_v18  ;;  %v7406_v42 = vadd.f32 %v9444_v40, %v12051_v10  ;;  %v7397_v2 = vpop.f32.mrb[5].mxu1 }
 0x45b   : > { %v7650_v25 = vmax.f32 %v7618_v6, 0.0  ;;  %v7619_v57 = vadd.f32 %v8361_v27, %v7555_v19  ;;  %v7398_v30 = vadd.f32 %v7397_v2, %v12054_v14  ;;  %v9445_v32 = vpop.f32.mrb[6].mxu1 }
 0x45c   : > { %7684 = vst [vmem:[%s12161_s19 + $0x10] sm:$0xff] %v7652_v24  ;;  %v7653_v56 = vmax.f32 %v7621_v11, 0.0  ;;  %v7521_v46 = vmul.f32 %v12129_v58, %v7406_v42  ;;  %v7409_v10 = vadd.f32 %v9445_v32, %v12056_v9  ;;  %v7400_v7 = vpop.f32.mrb[7].mxu1  ;;  %v8370_v42 = vld [vmem:[%s9959_s21 + $0x91] sm:$0xff] }
 0x45d   : > { %7682 = vst [vmem:[%s12161_s19] sm:$0xff] %v7650_v25  ;;  %v7651_v41 = vmax.f32 %v7619_v57, 0.0  ;;  %v7519_v14 = vmul.f32 %v12129_v58, %v7398_v30  ;;  %v7401_v61 = vadd.f32 %v7400_v7, %v12058_v51  ;;  %v8368_v57 = vld [vmem:[%s9959_s21 + $0x79] sm:$0xff]  ;;  %v8369_v7 = vld [vmem:[%s9959_s21 + $0x81] sm:$0xff] }
 0x45e   : > { %7685 = vst [vmem:[%s12161_s19 + $0x18] sm:$0xff] %v7653_v56  ;;  %v7560_v12 = vadd.f32 %v12136_v4, %v7521_v46  ;;  %v7522_v35 = vmul.f32 %v12129_v58, %v7409_v10  ;;  %v8371_v56 = vld [vmem:[%s9959_s21 + $0x99] sm:$0xff] }
 0x45f   : > { %7683 = vst [vmem:[%s12161_s19 + $0x8] sm:$0xff] %v7651_v41  ;;  %v7558_v26 = vadd.f32 %v12136_v4, %v7519_v14  ;;  %v7520_v9 = vmul.f32 %v12129_v58, %v7401_v61 }
 0x460   : > { %v7624_v15 = vadd.f32 %v8366_v60, %v7560_v12  ;;  %v7561_v37 = vadd.f32 %v12136_v4, %v7522_v35 }
 0x461   : > { %v7622_v13 = vadd.f32 %v8364_v17, %v7558_v26  ;;  %v7559_v51 = vadd.f32 %v12136_v4, %v7520_v9  ;;  %v9448_v28 = vpop.f32.mrb[8].mxu1 }
 0x462   : > { %v7656_v1 = vmax.f32 %v7624_v15, 0.0  ;;  %v7625_v63 = vadd.f32 %v8367_v39, %v7561_v37  ;;  %v7422_v8 = vadd.f32 %v9448_v28, %v12062_v5  ;;  %v7413_v59 = vpop.f32.mrb[9].mxu1 }
 0x463   : > { %v7654_v38 = vmax.f32 %v7622_v13, 0.0  ;;  %v7623_v18 = vadd.f32 %v8365_v22, %v7559_v51  ;;  %v7414_v27 = vadd.f32 %v7413_v59, %v12064_v48  ;;  %v9449_v6 = vpop.f32.mrb[10].mxu1  ;;  %v8374_v51 = vld [vmem:[%s9959_s21 + $0xc1] sm:$0xff] }
 0x464   : > { %7688 = vst [vmem:[%s12161_s19 + $0x30] sm:$0xff] %v7656_v1  ;;  %v7657_v19 = vmax.f32 %v7625_v63, 0.0  ;;  %v7525_v40 = vmul.f32 %v12129_v58, %v7422_v8  ;;  %v7425_v24 = vadd.f32 %v9449_v6, %v12066_v23  ;;  %v7416_v11 = vpop.f32.mrb[11].mxu1  ;;  %v8372_v63 = vld [vmem:[%s9959_s21 + $0xa9] sm:$0xff]  ;;  %v8373_v6 = vld [vmem:[%s9959_s21 + $0xb1] sm:$0xff] }
 0x465   : > { %7686 = vst [vmem:[%s12161_s19 + $0x20] sm:$0xff] %v7654_v38  ;;  %v7655_v5 = vmax.f32 %v7623_v18, 0.0  ;;  %v7523_v2 = vmul.f32 %v12129_v58, %v7414_v27  ;;  %v7417_v25 = vadd.f32 %v7416_v11, %v12068_v44  ;;  %v8375_v38 = vld [vmem:[%s9959_s21 + $0xc9] sm:$0xff] }
 0x466   : > { %7689 = vst [vmem:[%s12161_s19 + $0x38] sm:$0xff] %v7657_v19  ;;  %v7564_v48 = vadd.f32 %v12136_v4, %v7525_v40  ;;  %v7526_v30 = vmul.f32 %v12129_v58, %v7425_v24 }
 0x467   : > { %7687 = vst [vmem:[%s12161_s19 + $0x28] sm:$0xff] %v7655_v5  ;;  %v7562_v32 = vadd.f32 %v12136_v4, %v7523_v2  ;;  %v7524_v23 = vmul.f32 %v12129_v58, %v7417_v25 }
 0x468   : > { %v7628_v46 = vadd.f32 %v8370_v42, %v7564_v48  ;;  %v7565_v10 = vadd.f32 %v12136_v4, %v7526_v30 }
 0x469   : > { %v7626_v41 = vadd.f32 %v8368_v57, %v7562_v32  ;;  %v7563_v44 = vadd.f32 %v12136_v4, %v7524_v23  ;;  %v9452_v60 = vpop.f32.mrb[12].mxu1 }
 0x46a   : > { %v7660_v14 = vmax.f32 %v7628_v46, 0.0  ;;  %v7629_v61 = vadd.f32 %v8371_v56, %v7565_v10  ;;  %v7438_v12 = vadd.f32 %v9452_v60, %v12078_v53  ;;  %v7429_v17 = vpop.f32.mrb[13].mxu1  ;;  %v8378_v46 = vld [vmem:[%s9959_s21 + $0xf1] sm:$0xff] }
 0x46b   : > { %v7658_v35 = vmax.f32 %v7626_v41, 0.0  ;;  %v7627_v26 = vadd.f32 %v8369_v7, %v7563_v44  ;;  %v7430_v39 = vadd.f32 %v7429_v17, %v12072_v47  ;;  %v9453_v9 = vpop.f32.mrb[14].mxu1  ;;  %v8376_v41 = vld [vmem:[%s9959_s21 + $0xd9] sm:$0xff]  ;;  %v8377_v17 = vld [vmem:[%s9959_s21 + $0xe1] sm:$0xff] }
 0x46c   : > { %7692 = vst [vmem:[%s12161_s19 + $0x50] sm:$0xff] %v7660_v14  ;;  %v7661_v15 = vmax.f32 %v7629_v61, 0.0  ;;  %v7529_v37 = vmul.f32 %v12129_v58, %v7438_v12  ;;  %v7441_v22 = vadd.f32 %v9453_v9, %v12080_v49  ;;  %v7432_v13 = vpop.f32.mrb[15].mxu1  ;;  %v8379_v14 = vld [vmem:[%s9959_s21 + $0xf9] sm:$0xff] }
 0x46d   : > { %7690 = vst [vmem:[%s12161_s19 + $0x40] sm:$0xff] %v7658_v35  ;;  %v7659_v53 = vmax.f32 %v7627_v26, 0.0  ;;  %v7527_v28 = vmul.f32 %v12129_v58, %v7430_v39  ;;  %v7433_v1 = vadd.f32 %v7432_v13, %v12074_v29 }
 0x46e   : > { %7693 = vst [vmem:[%s12161_s19 + $0x58] sm:$0xff] %v7661_v15  ;;  %v7568_v47 = vadd.f32 %v12136_v4, %v7529_v37  ;;  %v7530_v8 = vmul.f32 %v12129_v58, %v7441_v22 }
 0x46f   : > { %7691 = vst [vmem:[%s12161_s19 + $0x48] sm:$0xff] %v7659_v53  ;;  %v7566_v59 = vadd.f32 %v12136_v4, %v7527_v28  ;;  %v7528_v49 = vmul.f32 %v12129_v58, %v7433_v1 }
 0x470   : > { %v7632_v18 = vadd.f32 %v8374_v51, %v7568_v47  ;;  %v7569_v27 = vadd.f32 %v12136_v4, %v7530_v8  ;;  %v8382_v8 = vld [vmem:[%s9959_s21 + $0x121] sm:$0xff] }
 0x471   : > { %v7630_v19 = vadd.f32 %v8372_v63, %v7566_v59  ;;  %v7567_v29 = vadd.f32 %v12136_v4, %v7528_v49  ;;  %v9456_v40 = vpop.f32.mrb[16].mxu1  ;;  %v8380_v49 = vld [vmem:[%s9959_s21 + $0x109] sm:$0xff] }
 0x472   : > { %v7664_v24 = vmax.f32 %v7632_v18, 0.0  ;;  %v7633_v11 = vadd.f32 %v8375_v38, %v7569_v27  ;;  %v7454_v5 = vadd.f32 %v9456_v40, %v12090_v0  ;;  %v7445_v42 = vpop.f32.mrb[17].mxu1  ;;  %v8381_v40 = vld [vmem:[%s9959_s21 + $0x111] sm:$0xff] }
 0x473   : > { %v7662_v2 = vmax.f32 %v7630_v19, 0.0  ;;  %v7631_v25 = vadd.f32 %v8373_v6, %v7567_v29  ;;  %v7446_v48 = vadd.f32 %v7445_v42, %v12084_v55  ;;  %v9457_v57 = vpop.f32.mrb[18].mxu1  ;;  %v8383_v6 = vld [vmem:[%s9959_s21 + $0x129] sm:$0xff] }
 0x474   : > { %7696 = vst [vmem:[%s12161_s19 + $0x70] sm:$0xff] %v7664_v24  ;;  %v7665_v30 = vmax.f32 %v7633_v11, 0.0  ;;  %v7533_v32 = vmul.f32 %v12129_v58, %v7454_v5  ;;  %v7457_v56 = vadd.f32 %v9457_v57, %v12092_v21  ;;  %v7448_v23 = vpop.f32.mrb[19].mxu1 }
 0x475   : > { %7694 = vst [vmem:[%s12161_s19 + $0x60] sm:$0xff] %v7662_v2  ;;  %v7663_v0 = vmax.f32 %v7631_v25, 0.0  ;;  %v7531_v10 = vmul.f32 %v12129_v58, %v7446_v48  ;;  %v7449_v7 = vadd.f32 %v7448_v23, %v12086_v52 }
 0x476   : > { %7697 = vst [vmem:[%s12161_s19 + $0x78] sm:$0xff] %v7665_v30  ;;  %v7572_v55 = vadd.f32 %v12136_v4, %v7533_v32  ;;  %v7534_v44 = vmul.f32 %v12129_v58, %v7457_v56 }
 0x477   : > { %7695 = vst [vmem:[%s12161_s19 + $0x68] sm:$0xff] %v7663_v0  ;;  %v7570_v60 = vadd.f32 %v12136_v4, %v7531_v10  ;;  %v7532_v21 = vmul.f32 %v12129_v58, %v7449_v7  ;;  %v8386_v10 = vld [vmem:[%s9959_s21 + $0x151] sm:$0xff] }
 0x478   : > { %v7636_v61 = vadd.f32 %v8378_v46, %v7572_v55  ;;  %v7573_v12 = vadd.f32 %v12136_v4, %v7534_v44 }
 0x479   : > { %v7634_v35 = vadd.f32 %v8376_v41, %v7570_v60  ;;  %v7571_v52 = vadd.f32 %v12136_v4, %v7532_v21  ;;  %v9460_v26 = vpop.f32.mrb[20].mxu1  ;;  %v8384_v41 = vld [vmem:[%s9959_s21 + $0x139] sm:$0xff] }
 0x47a   : > { %v7668_v39 = vmax.f32 %v7636_v61, 0.0  ;;  %v7637_v9 = vadd.f32 %v8379_v14, %v7573_v12  ;;  %v7470_v15 = vadd.f32 %v9460_v26, %v12102_v50  ;;  %v7461_v37 = vpop.f32.mrb[21].mxu1  ;;  %v8387_v14 = vld [vmem:[%s9959_s21 + $0x159] sm:$0xff]  ;;  %v8385_v12 = vld [vmem:[%s9959_s21 + $0x141] sm:$0xff] }
 0x47b   : > { %v7666_v22 = vmax.f32 %v7634_v35, 0.0  ;;  %v7635_v13 = vadd.f32 %v8377_v17, %v7571_v52  ;;  %v7462_v53 = vadd.f32 %v7461_v37, %v12096_v16  ;;  %v9461_v51 = vpop.f32.mrb[22].mxu1 }
 0x47c   : > { %7700 = vst [vmem:[%s12161_s19 + $0x90] sm:$0xff] %v7668_v39  ;;  %v7669_v28 = vmax.f32 %v7637_v9, 0.0  ;;  %v7537_v1 = vmul.f32 %v12129_v58, %v7470_v15  ;;  %v7473_v47 = vadd.f32 %v9461_v51, %v12104_v20  ;;  %v7464_v63 = vpop.f32.mrb[23].mxu1 }
 0x47d   : > { %7698 = vst [vmem:[%s12161_s19 + $0x80] sm:$0xff] %v7666_v22  ;;  %v7667_v50 = vmax.f32 %v7635_v13, 0.0  ;;  %v7535_v59 = vmul.f32 %v12129_v58, %v7462_v53  ;;  %v7465_v38 = vadd.f32 %v7464_v63, %v12098_v34 }
 0x47e   : > { %7701 = vst [vmem:[%s12161_s19 + $0x98] sm:$0xff] %v7669_v28  ;;  %v7576_v16 = vadd.f32 %v12136_v4, %v7537_v1  ;;  %v7538_v18 = vmul.f32 %v12129_v58, %v7473_v47  ;;  %v8390_v47 = vld [vmem:[%s9959_s21 + $0x181] sm:$0xff] }
 0x47f   : > { %7699 = vst [vmem:[%s12161_s19 + $0x88] sm:$0xff] %v7667_v50  ;;  %v7574_v27 = vadd.f32 %v12136_v4, %v7535_v59  ;;  %v7536_v20 = vmul.f32 %v12129_v58, %v7465_v38  ;;  %v8391_v38 = vld [vmem:[%s9959_s21 + $0x189] sm:$0xff] }
 0x480   : > { %v7640_v19 = vadd.f32 %v8382_v8, %v7576_v16  ;;  %v7577_v29 = vadd.f32 %v12136_v4, %v7538_v18  ;;  %v8388_v8 = vld [vmem:[%s9959_s21 + $0x169] sm:$0xff] }
 0x481   : > { %v7638_v24 = vadd.f32 %v8380_v49, %v7574_v27  ;;  %v7575_v34 = vadd.f32 %v12136_v4, %v7536_v20  ;;  %v9464_v11 = vpop.f32.mrb[24].mxu1  ;;  %v8389_v27 = vld [vmem:[%s9959_s21 + $0x171] sm:$0xff]  ;;  %s9708_s21 = scalar_lea.vmem %s12309_s20, 4096 }
 0x482   : > { %v7672_v5 = vmax.f32 %v7640_v19, 0.0  ;;  %v7641_v42 = vadd.f32 %v8383_v6, %v7577_v29  ;;  %v7486_v2 = vadd.f32 %v9464_v11, %v12114_v62  ;;  %v7477_v25 = vpop.f32.mrb[25].mxu1  ;;  %p9709_p11 = scmp.ne.s32.totalorder %s12309_s20, %s9708_s21  ;;  %p9716_p1 = scmp.lt.s32.totalorder %s9714_s13, %s9708_s21 }
 0x483   : > { %v7670_v48 = vmax.f32 %v7638_v24, 0.0  ;;  %v7639_v57 = vadd.f32 %v8381_v40, %v7575_v34  ;;  %v7478_v30 = vadd.f32 %v7477_v25, %v12108_v33  ;;  %v9465_v32 = vpop.f32.mrb[26].mxu1 }
 0x484   : > { %7704 = vst [vmem:[%s12161_s19 + $0xb0] sm:$0xff] %v7672_v5  ;;  %v7673_v56 = vmax.f32 %v7641_v42, 0.0  ;;  %v7541_v23 = vmul.f32 %v12129_v58, %v7486_v2  ;;  %v7489_v0 = vadd.f32 %v9465_v32, %v12116_v54  ;;  %v7480_v46 = vpop.f32.mrb[27].mxu1  ;;  %p9710_p12 = pnand %p9709_p11, %p9854_p5  ;;  %p9717_p2 = por %p9716_p1, %p9715_p0 }
 0x485   : > { %7702 = vst [vmem:[%s12161_s19 + $0xa0] sm:$0xff] %v7670_v48  ;;  %v7671_v62 = vmax.f32 %v7639_v57, 0.0  ;;  %v7539_v7 = vmul.f32 %v12129_v58, %v7478_v30  ;;  %v7481_v55 = vadd.f32 %v7480_v46, %v12110_v31 }
 0x486   : > { %7705 = vst [vmem:[%s12161_s19 + $0xb8] sm:$0xff] %v7673_v56  ;;  %v7580_v33 = vadd.f32 %v12136_v4, %v7541_v23  ;;  %v7542_v44 = vmul.f32 %v12129_v58, %v7489_v0  ;;  %p9711_p13 = pneg %p9710_p12 }
 0x487   : > { %7703 = vst [vmem:[%s12161_s19 + $0xa8] sm:$0xff] %v7671_v62  ;;  %v7578_v60 = vadd.f32 %v12136_v4, %v7539_v7  ;;  %v7540_v54 = vmul.f32 %v12129_v58, %v7481_v55 }
 0x488   : > { %v7644_v21 = vadd.f32 %v8386_v10, %v7580_v33  ;;  %v7581_v61 = vadd.f32 %v12136_v4, %v7542_v44  ;;  %p9718_p3 = pnand %p9717_p2, %p9711_p13 }
 0x489   : > { %v7642_v17 = vadd.f32 %v8384_v41, %v7578_v60  ;;  %v7579_v31 = vadd.f32 %v12136_v4, %v7540_v54  ;;  %v9468_v35 = vpop.f32.mrb[28].mxu1 }
 0x48a   : > { %v7676_v52 = vmax.f32 %v7644_v21, 0.0  ;;  %v7645_v26 = vadd.f32 %v8387_v14, %v7581_v61  ;;  %v7502_v39 = vadd.f32 %v9468_v35, %v12152_v3  ;;  %v7493_v9 = vpop.f32.mrb[29].mxu1 }
 0x48b   : > { %v7674_v15 = vmax.f32 %v7642_v17, 0.0  ;;  %v7643_v37 = vadd.f32 %v8385_v12, %v7579_v31  ;;  %v7494_v22 = vadd.f32 %v7493_v9, %v12120_v45  ;;  %v9469_v13 = vpop.f32.mrb[30].mxu1 }
 0x48c   : > { %7708 = vst [vmem:[%s12161_s19 + $0xd0] sm:$0xff] %v7676_v52  ;;  %v7677_v53 = vmax.f32 %v7645_v26, 0.0  ;;  %v7545_v51 = vmul.f32 %v12129_v58, %v7502_v39  ;;  %v7505_v28 = vadd.f32 %v9469_v13, %v12157_v36  ;;  %v7496_v1 = vpop.f32.mrb[31].mxu1 }
 0x48d   : > { %7706 = vst [vmem:[%s12161_s19 + $0xc0] sm:$0xff] %v7674_v15  ;;  %v7675_v3 = vmax.f32 %v7643_v37, 0.0  ;;  %v7543_v63 = vmul.f32 %v12129_v58, %v7494_v22  ;;  %v7497_v45 = vadd.f32 %v7496_v1, %v12122_v43 }
 0x48e   : > { %7709 = vst [vmem:[%s12161_s19 + $0xd8] sm:$0xff] %v7677_v53  ;;  %v7584_v50 = vadd.f32 %v12136_v4, %v7545_v51  ;;  %v7546_v59 = vmul.f32 %v12129_v58, %v7505_v28 }
 0x48f   : > { %7707 = vst [vmem:[%s12161_s19 + $0xc8] sm:$0xff] %v7675_v3  ;;  %v7582_v36 = vadd.f32 %v12136_v4, %v7543_v63  ;;  %v7544_v16 = vmul.f32 %v12129_v58, %v7497_v45 }
 0x490   : > { %v7648_v49 = vadd.f32 %v8390_v47, %v7584_v50  ;;  %v7585_v18 = vadd.f32 %v12136_v4, %v7546_v59 }
 0x491   : > { %v7646_v43 = vadd.f32 %v8388_v8, %v7582_v36  ;;  %v7583_v6 = vadd.f32 %v12136_v4, %v7544_v16 }
 0x492   : > { %v7680_v20 = vmax.f32 %v7648_v49, 0.0  ;;  %v7649_v19 = vadd.f32 %v8391_v38, %v7585_v18 }
 0x493   : > { %v7678_v29 = vmax.f32 %v7646_v43, 0.0  ;;  %v7647_v40 = vadd.f32 %v8389_v27, %v7583_v6 }
 0x494   : > { %7712 = vst [vmem:[%s12161_s19 + $0xf0] sm:$0xff] %v7680_v20  ;;  %v7681_v58 = vmax.f32 %v7649_v19, 0.0 }
 0x495   : > { %7710 = vst [vmem:[%s12161_s19 + $0xe0] sm:$0xff] %v7678_v29  ;;  %v7679_v4 = vmax.f32 %v7647_v40, 0.0 }
 0x496   : > { %7713 = vst [vmem:[%s12161_s19 + $0xf8] sm:$0xff] %v7681_v58 }
 0x497   : > { %7711 = vst [vmem:[%s12161_s19 + $0xe8] sm:$0xff] %v7679_v4 }
 0x498   : > { %9721 = shalt.err (!%p9718_p3)
}
 0x499   : > { %s9722_s14 = scalar_lea.hbm %s12307_s8, 4096  ;;  %s9726_s18 = scalar_lea.hbm %s12364_s7, 8192 }
 0x49a   : > { %p9723_p4 = scmp.ne.s32.totalorder %s12307_s8, %s9722_s14  ;;  %p9727_p9 = scmp.lt.u32.totalorder %s12307_s8, %s12364_s7 }
 0x49b   : > { %p9728_p10 = scmp.lt.u32.totalorder %s9726_s18, %s9722_s14  ;;  %p9730_p12 = scmp.lt.u32.totalorder %s9722_s14, %s12307_s8 }
 0x49c   : > { %p9724_p7 = pnand %p9723_p4, %p9854_p5 }
 0x49d   : > { %p9729_p11 = por %p9728_p10, %p9727_p9 }
 0x49e   : > { %p9725_p8 = pneg %p9724_p7 }
 0x49f   : > { %p9731_p13 = por %p9730_p12, %p9729_p11 }
 0x4a1   : > { %p9732_p0 = pnand %p9731_p13, %p9725_p8 }
 0x4a3   : > { %9735 = shalt.err (!%p9732_p0)
}
 0x4a4   : > { %s9774_s22 = smov 128   ;;  %s9775_s23 = smov 8  }
 0x4a5   : > { %9471 = dma.vmem_to_hbm [thread:$0]  (%p9854_p5), %s12309_s20, 4096, %s12307_s8, %s12316_s28, %s9774_s22, %s9774_s22, %s9775_s23  }
 0x4a6 PF: > { %p9477_p1 = scmp.ge.s32.totalorder %s9770_s27, 2  ;;  %s7743_s21 = sand.u32 1, %s9758_s24  }
 0x4a7   : > { %s7744_s9 = scalar_lea.sflag [#allocation5], %s7743_s21 }
 0x4a8   : > { %p9474_p2 = pnand %p9477_p1, %p9858_p6 }
 0x4aa   : > { %9753 = dma.done.wait (!%p9474_p2), %s7744_s9, 4096  }
 0x4ab   : > { %9755 = vsyncadd (!%p9474_p2), %s7744_s9, 4294963200  ;;  %p17_p3 = scmp.ge.s32.totalorder %s9841_s30, 4   ;;  %s12383_s24 = smov %s9762_s25 }
 0x4ac   : > { %s12384_s25 = smov %s9766_s26  ;;  %s12385_s26 = smov %s9852_s10 }
 0x4ad   : > { %s12386_s27 = smov %s9841_s30  ;;  %19 = sbr.rel (!%p17_p3) target bundleno = 3 (0x3), region = 88 }
 0x4b4   :  { %7749 = vsyncpa [#allocation5], 1 }
 0x4b5   :  { %7751 = vsyncpa [#allocation5 + $0x1], 1 }

</bundles_post_ra>
